<compile_context>
chip_gen: v7x
topology: tpu7x:2x2x1
jax: 0.10.0
libtpu: 0.0.40
codegen_flags: <defaults>
</compile_context>

<pallas_src>
import jax
import jax.numpy as jnp
import numpy as np
from jax.experimental import pallas as pl
from jax.experimental.pallas import tpu as pltpu

_EPS = 1e-5


# ----------------------------------------------------------------------------
# Host-side weight folding (one-time, numpy).
# ----------------------------------------------------------------------------
def _fold_first_conv(w_hwio, w_in, wup):
    """Fold (nearest-2x upsample in H and W) + 3x3 conv (padding 1) into 3 banded
    matrices applied to 3-row windows of the ORIGINAL-resolution input.

    Returns (3, w_in*Cin, 2*wup*Cout).  Window tap dy' maps input lane (wi, ci)
    to output lane (p, wo, co); p is the parity of the upsampled output row that
    is packed into the lane axis."""
    _, _, cin, cout = w_hwio.shape
    wt = np.asarray(w_hwio, np.float32)
    big = np.zeros((3, w_in * cin, 2 * wup * cout), np.float32)
    for p in range(2):                      # parity of the upsampled output row
        for dy in range(3):                 # H tap (upsampled, padded coords)
            dyp = 1 + (p + dy - 1) // 2     # which original row of the 3-row window
            for dx in range(3):             # W tap (upsampled, padded coords)
                for wo in range(wup):       # output column (upsampled)
                    wu = wo + dx - 1        # input column (upsampled)
                    if wu < 0 or wu >= wup:
                        continue            # zero padding along W
                    wi = wu // 2            # original column (nearest upsample)
                    big[dyp,
                        wi * cin:(wi + 1) * cin,
                        (p * wup + wo) * cout:(p * wup + wo + 1) * cout] += wt[dy, dx]
    return big


def _fold_second_conv(w_hwio, wup):
    """Fold a 3x3 conv (padding 1) over the packed-row layout (two upsampled rows
    per packed row) into 3 banded matrices.  Returns (3, 2*wup*Cin, 2*wup*Cout)."""
    _, _, cin, cout = w_hwio.shape
    wt = np.asarray(w_hwio, np.float32)
    big = np.zeros((3, 2 * wup * cin, 2 * wup * cout), np.float32)
    for p in range(2):
        for dy in range(3):
            dyp = 1 + (p + dy - 1) // 2     # packed window row
            pi = (p + dy - 1) % 2           # parity block inside that packed row
            for dx in range(3):
                for wo in range(wup):
                    wi = wo + dx - 1
                    if wi < 0 or wi >= wup:
                        continue
                    big[dyp,
                        (pi * wup + wi) * cin:(pi * wup + wi + 1) * cin,
                        (p * wup + wo) * cout:(p * wup + wo + 1) * cout] += wt[dy, dx]
    return big


# ----------------------------------------------------------------------------
# Pallas kernel.
# ----------------------------------------------------------------------------
def _resblock_kernel(x_ref, w1_ref, wsk_ref, w2_ref,
                     b1_ref, g1_ref, be1_ref,
                     b2_ref, g2_ref, be2_ref, bsk_ref,
                     csum_ref, cbc_ref,
                     o_ref, xpad_ref, ypad_ref):
    n_img, h, wcin = x_ref.shape
    lanes = o_ref.shape[-1]                      # 2 * Wup * Cout (multiple of 128)
    cout = csum_ref.shape[-1]
    rows = n_img * h
    inv_m = 1.0 / float(rows * (lanes // cout))  # 1 / (N * Hup * Wup)
    hp = jax.lax.Precision.HIGHEST

    # H-padded original-resolution input in VMEM (zero only the 1-row halo).
    zx = jnp.zeros((n_img, 1, wcin), xpad_ref.dtype)
    xpad_ref[:, 0:1, :] = zx
    xpad_ref[:, h + 1:h + 2, :] = zx
    xpad_ref[:, 1:h + 1, :] = x_ref[...]

    def batchnorm(y, g_ref, be_ref):
        # Single-pass BN: per-channel sums via two tiny pooling matmuls (MXU),
        # folded into one per-lane scale + shift.
        s1 = jnp.sum(y, axis=0, keepdims=True)                   # (1, lanes) f32
        s2 = jnp.sum(y * y, axis=0, keepdims=True)
        ch1 = jnp.dot(s1, csum_ref[...], preferred_element_type=jnp.float32,
                      precision=hp) * inv_m                      # (1, cout)  E[y]
        ch2 = jnp.dot(s2, csum_ref[...], preferred_element_type=jnp.float32,
                      precision=hp) * inv_m                      # (1, cout)  E[y^2]
        mean = jnp.dot(ch1, cbc_ref[...], preferred_element_type=jnp.float32,
                       precision=hp)                             # (1, lanes)
        ex2 = jnp.dot(ch2, cbc_ref[...], preferred_element_type=jnp.float32,
                      precision=hp)
        var = ex2 - mean * mean
        scale = g_ref[...] * jax.lax.rsqrt(var + _EPS)
        shift = be_ref[...] - mean * scale
        return y * scale + shift

    # --- stage 1 (conv1) + skip conv: they share the same 3-row window taps. ---
    acc1 = jnp.zeros((rows, lanes), jnp.float32)
    acsk = jnp.zeros((rows, lanes), jnp.float32)
    for dy in range(3):
        taps = xpad_ref[:, dy:dy + h, :].reshape(rows, wcin)     # bf16
        acc1 = acc1 + jnp.dot(taps, w1_ref[dy],
                              preferred_element_type=jnp.float32)
        acsk = acsk + jnp.dot(taps, wsk_ref[dy],
                              preferred_element_type=jnp.float32)
    y = batchnorm(jnp.maximum(acc1 + b1_ref[...], 0.0), g1_ref, be1_ref)

    # --- stage 2 (conv2) over the packed intermediate (re-padded in VMEM). ---
    zy = jnp.zeros((n_img, 1, lanes), ypad_ref.dtype)
    ypad_ref[:, 0:1, :] = zy
    ypad_ref[:, h + 1:h + 2, :] = zy
    ypad_ref[:, 1:h + 1, :] = y.astype(ypad_ref.dtype).reshape(n_img, h, lanes)

    acc2 = jnp.zeros((rows, lanes), jnp.float32)
    for dy in range(3):
        taps = ypad_ref[:, dy:dy + h, :].reshape(rows, lanes)    # bf16
        acc2 = acc2 + jnp.dot(taps, w2_ref[dy],
                              preferred_element_type=jnp.float32)
    y2 = batchnorm(jnp.maximum(acc2 + b2_ref[...], 0.0), g2_ref, be2_ref)

    o_ref[...] = (acsk + bsk_ref[...] + y2).astype(o_ref.dtype)


# ----------------------------------------------------------------------------
# Wrapper.
# ----------------------------------------------------------------------------
def make_resblock(params, n, h, w):
    """Pre-folds weights and returns an NCHW -> NCHW forward function."""
    cin = params["w1"].shape[2]
    cout = params["w1"].shape[3]
    hup, wup = 2 * h, 2 * w
    lanes = 2 * wup * cout                       # packed, lane-dense output width

    bw1 = jnp.asarray(_fold_first_conv(params["w1"], w, wup), jnp.bfloat16)
    bwsk = jnp.asarray(_fold_first_conv(params["wsk"], w, wup), jnp.bfloat16)
    bw2 = jnp.asarray(_fold_second_conv(params["w2"], wup), jnp.bfloat16)

    eye = np.eye(cout, dtype=np.float32)
    csum = jnp.asarray(np.tile(eye, (2 * wup, 1)))   # (lanes, cout): pool lanes -> channel
    cbc = jnp.asarray(np.tile(eye, (1, 2 * wup)))    # (cout, lanes): channel -> lanes

    def lane_vec(v):    # (1, cout) -> (1, lanes), lane l holds v[l % cout]
        return jnp.tile(v.astype(jnp.float32), (1, 2 * wup))

    consts = (bw1, bwsk, bw2,
              lane_vec(params["b1"]), lane_vec(params["g1"]), lane_vec(params["be1"]),
              lane_vec(params["b2"]), lane_vec(params["g2"]), lane_vec(params["be2"]),
              lane_vec(params["bsk"]), csum, cbc)

    vmem = pl.BlockSpec(memory_space=pltpu.MemorySpace.VMEM)

    @jax.jit
    def forward(x_nchw, folded):
        # No upsample / pad / im2col in HBM: only transpose + reshape + cast.
        x = jnp.transpose(x_nchw, (0, 2, 3, 1))             # NCHW -> NHWC
        x = x.reshape(n, h, w * cin).astype(jnp.bfloat16)   # lanes = (w, cin)
        out2d = pl.pallas_call(
            _resblock_kernel,
            out_shape=jax.ShapeDtypeStruct((n * h, lanes), jnp.float32),
            in_specs=[vmem] * 13,
            out_specs=vmem,
            scratch_shapes=[
                pltpu.VMEM((n, h + 2, w * cin), jnp.bfloat16),   # padded input
                pltpu.VMEM((n, h + 2, lanes), jnp.bfloat16),     # padded intermediate
            ],
            compiler_params=pltpu.CompilerParams(
                vmem_limit_bytes=32 * 1024 * 1024),
        )(x, *folded)
        out = out2d.reshape(n, h, 2, wup, cout)             # (n, m, p, w_up, c)
        out = jnp.transpose(out, (0, 4, 1, 2, 3))           # (n, c, m, p, w_up)
        return out.reshape(n, cout, hup, wup)               # rows interleave to 2m+p

    return lambda x_nchw: forward(x_nchw, consts)


# ----------------------------------------------------------------------------
# Pure-JAX reference (f32, HIGHEST) with identical semantics, for verification.
# ----------------------------------------------------------------------------
def _resblock_ref(x_nchw, p):
    x = jnp.repeat(jnp.repeat(x_nchw, 2, axis=2), 2, axis=3)

    def conv(xn, wgt, b):
        y = jax.lax.conv_general_dilated(
            xn, wgt, window_strides=(1, 1), padding=((1, 1), (1, 1)),
            dimension_numbers=("NCHW", "HWIO", "NCHW"),
            precision=jax.lax.Precision.HIGHEST)
        return y + b.reshape(1, -1, 1, 1)

    def bn(y, g, be):
        mean = jnp.mean(y, axis=(0, 2, 3), keepdims=True)
        var = jnp.mean(jnp.square(y - mean), axis=(0, 2, 3), keepdims=True)
        return (y - mean) * jax.lax.rsqrt(var + _EPS) * g.reshape(1, -1, 1, 1) \
            + be.reshape(1, -1, 1, 1)

    st = bn(jnp.maximum(conv(x, p["w1"], p["b1"]), 0.0), p["g1"], p["be1"])
    st = bn(jnp.maximum(conv(st, p["w2"], p["b2"]), 0.0), p["g2"], p["be2"])
    sk = conv(x, p["wsk"], p["bsk"])
    return sk + st


def _init_params(key, fin, fout):
    ks = jax.random.split(key, 10)

    def wgt(k, cin):   # conv weights stored HWIO: (3, 3, cin, fout)
        return 0.1 * jax.random.normal(k, (3, 3, cin, fout), jnp.float32)

    def vec(k):        # per-channel vectors stored as (1, fout)
        return 0.1 * jax.random.normal(k, (1, fout), jnp.float32)

    return {
        "w1": wgt(ks[0], fin),  "b1": vec(ks[1]),
        "g1": 1.0 + vec(ks[2]), "be1": vec(ks[3]),
        "w2": wgt(ks[4], fout), "b2": vec(ks[5]),
        "g2": 1.0 + vec(ks[6]), "be2": vec(ks[7]),
        "wsk": wgt(ks[8], fin), "bsk": vec(ks[9]),
    }


if __name__ == "__main__":
    fin, fout = 4, 8
    n, h, w = 2, 16, 16

    key = jax.random.PRNGKey(0)
    kx, kp = jax.random.split(key)
    x = jax.random.normal(kx, (n, fin, h, w), jnp.float32)
    params = _init_params(kp, fin, fout)

    fwd = make_resblock(params, n, h, w)
    out = jax.block_until_ready(fwd(x))

    ref = jax.block_until_ready(_resblock_ref(x, params))
    assert out.shape == (n, fout, 2 * h, 2 * w), out.shape
    # bf16 MXU inputs (f32 accumulate) vs the f32/HIGHEST reference: the two
    # ReLU+BatchNorm stages amplify the additive rounding noise, so the check is
    # correspondingly loose (structural errors would be O(0.3..1) and still caught).
    np.testing.assert_allclose(np.asarray(out), np.asarray(ref),
                               rtol=1e-1, atol=2e-1)
    print("KERNEL_OK")
</pallas_src>

<mosaic_0001>
module attributes {stable_mosaic.version = 11 : i64} {
  func.func @_resblock_kernel(%arg0: memref<2x16x64xbf16, #tpu.memory_space<vmem>>, %arg1: memref<3x64x512xbf16, #tpu.memory_space<vmem>>, %arg2: memref<3x64x512xbf16, #tpu.memory_space<vmem>>, %arg3: memref<3x512x512xbf16, #tpu.memory_space<vmem>>, %arg4: memref<1x512xf32, #tpu.memory_space<vmem>>, %arg5: memref<1x512xf32, #tpu.memory_space<vmem>>, %arg6: memref<1x512xf32, #tpu.memory_space<vmem>>, %arg7: memref<1x512xf32, #tpu.memory_space<vmem>>, %arg8: memref<1x512xf32, #tpu.memory_space<vmem>>, %arg9: memref<1x512xf32, #tpu.memory_space<vmem>>, %arg10: memref<1x512xf32, #tpu.memory_space<vmem>>, %arg11: memref<512x8xf32, #tpu.memory_space<vmem>>, %arg12: memref<8x512xf32, #tpu.memory_space<vmem>>, %arg13: memref<32x512xf32, #tpu.memory_space<vmem>>, %arg14: memref<2x18x64xbf16, #tpu.memory_space<vmem>>, %arg15: memref<2x18x512xbf16, #tpu.memory_space<vmem>>) attributes {dimension_semantics = [], scalar_prefetch = 0 : i64, scratch_operands = 2 : i64, tpu.core_type = #tpu.core_type<tc>} {
    %cst = arith.constant 0.000000e+00 : bf16
    %0 = vector.broadcast %cst : bf16 to vector<2x1x64xbf16>
    %c0 = arith.constant 0 : index
    %c0_0 = arith.constant 0 : index
    %c0_1 = arith.constant 0 : index
    %1 = vector.load %arg14[%c0, %c0_0, %c0_1] : memref<2x18x64xbf16, #tpu.memory_space<vmem>>, vector<2x1x64xbf16>
    tpu.vector_store %arg14[%c0, %c0_0, %c0_1], %0 {strides = array<i32>} : memref<2x18x64xbf16, #tpu.memory_space<vmem>>, vector<2x1x64xbf16>,
    %c0_2 = arith.constant 0 : index
    %c17 = arith.constant 17 : index
    %c0_3 = arith.constant 0 : index
    %2 = vector.load %arg14[%c0_2, %c17, %c0_3] : memref<2x18x64xbf16, #tpu.memory_space<vmem>>, vector<2x1x64xbf16>
    tpu.vector_store %arg14[%c0_2, %c17, %c0_3], %0 {strides = array<i32>} : memref<2x18x64xbf16, #tpu.memory_space<vmem>>, vector<2x1x64xbf16>,
    %c0_4 = arith.constant 0 : index
    %c0_5 = arith.constant 0 : index
    %c0_6 = arith.constant 0 : index
    %3 = vector.load %arg0[%c0_4, %c0_5, %c0_6] : memref<2x16x64xbf16, #tpu.memory_space<vmem>>, vector<2x16x64xbf16>
    %c0_7 = arith.constant 0 : index
    %c1 = arith.constant 1 : index
    %c0_8 = arith.constant 0 : index
    %4 = vector.load %arg14[%c0_7, %c1, %c0_8] : memref<2x18x64xbf16, #tpu.memory_space<vmem>>, vector<2x16x64xbf16>
    tpu.vector_store %arg14[%c0_7, %c1, %c0_8], %3 {strides = array<i32>} : memref<2x18x64xbf16, #tpu.memory_space<vmem>>, vector<2x16x64xbf16>,
    %cst_9 = arith.constant 0.000000e+00 : f32
    %5 = vector.broadcast %cst_9 : f32 to vector<32x512xf32>
    %cst_10 = arith.constant 0.000000e+00 : f32
    %6 = vector.broadcast %cst_10 : f32 to vector<32x512xf32>
    %c0_11 = arith.constant 0 : index
    %c0_12 = arith.constant 0 : index
    %c0_13 = arith.constant 0 : index
    %7 = vector.load %arg14[%c0_11, %c0_12, %c0_13] : memref<2x18x64xbf16, #tpu.memory_space<vmem>>, vector<2x16x64xbf16>
    %8 = vector.shape_cast %7 : vector<2x16x64xbf16> to vector<32x64xbf16>
    %c0_14 = arith.constant 0 : index
    %c0_15 = arith.constant 0 : index
    %c0_16 = arith.constant 0 : index
    %9 = vector.load %arg1[%c0_14, %c0_15, %c0_16] : memref<3x64x512xbf16, #tpu.memory_space<vmem>>, vector<1x64x512xbf16>
    %10 = vector.shape_cast %9 : vector<1x64x512xbf16> to vector<64x512xbf16>
    %cst_17 = arith.constant dense<0.000000e+00> : vector<32x512xf32>
    %11 = tpu.matmul %8, %10, %cst_17 {dimension_numbers = #tpu.dot_dimension_numbers<[1], [0], [0], [1], [0, 0, 1, 1], [], []>} : vector<32x64xbf16>, vector<64x512xbf16>, vector<32x512xf32> -> vector<32x512xf32>
    %12 = arith.addf %5, %11 : vector<32x512xf32>
    %c0_18 = arith.constant 0 : index
    %c0_19 = arith.constant 0 : index
    %c0_20 = arith.constant 0 : index
    %13 = vector.load %arg2[%c0_18, %c0_19, %c0_20] : memref<3x64x512xbf16, #tpu.memory_space<vmem>>, vector<1x64x512xbf16>
    %14 = vector.shape_cast %13 : vector<1x64x512xbf16> to vector<64x512xbf16>
    %cst_21 = arith.constant dense<0.000000e+00> : vector<32x512xf32>
    %15 = tpu.matmul %8, %14, %cst_21 {dimension_numbers = #tpu.dot_dimension_numbers<[1], [0], [0], [1], [0, 0, 1, 1], [], []>} : vector<32x64xbf16>, vector<64x512xbf16>, vector<32x512xf32> -> vector<32x512xf32>
    %16 = arith.addf %6, %15 : vector<32x512xf32>
    %c0_22 = arith.constant 0 : index
    %c1_23 = arith.constant 1 : index
    %c0_24 = arith.constant 0 : index
    %17 = vector.load %arg14[%c0_22, %c1_23, %c0_24] : memref<2x18x64xbf16, #tpu.memory_space<vmem>>, vector<2x16x64xbf16>
    %18 = vector.shape_cast %17 : vector<2x16x64xbf16> to vector<32x64xbf16>
    %c1_25 = arith.constant 1 : index
    %c0_26 = arith.constant 0 : index
    %c0_27 = arith.constant 0 : index
    %19 = vector.load %arg1[%c1_25, %c0_26, %c0_27] : memref<3x64x512xbf16, #tpu.memory_space<vmem>>, vector<1x64x512xbf16>
    %20 = vector.shape_cast %19 : vector<1x64x512xbf16> to vector<64x512xbf16>
    %cst_28 = arith.constant dense<0.000000e+00> : vector<32x512xf32>
    %21 = tpu.matmul %18, %20, %cst_28 {dimension_numbers = #tpu.dot_dimension_numbers<[1], [0], [0], [1], [0, 0, 1, 1], [], []>} : vector<32x64xbf16>, vector<64x512xbf16>, vector<32x512xf32> -> vector<32x512xf32>
    %22 = arith.addf %12, %21 : vector<32x512xf32>
    %c1_29 = arith.constant 1 : index
    %c0_30 = arith.constant 0 : index
    %c0_31 = arith.constant 0 : index
    %23 = vector.load %arg2[%c1_29, %c0_30, %c0_31] : memref<3x64x512xbf16, #tpu.memory_space<vmem>>, vector<1x64x512xbf16>
    %24 = vector.shape_cast %23 : vector<1x64x512xbf16> to vector<64x512xbf16>
    %cst_32 = arith.constant dense<0.000000e+00> : vector<32x512xf32>
    %25 = tpu.matmul %18, %24, %cst_32 {dimension_numbers = #tpu.dot_dimension_numbers<[1], [0], [0], [1], [0, 0, 1, 1], [], []>} : vector<32x64xbf16>, vector<64x512xbf16>, vector<32x512xf32> -> vector<32x512xf32>
    %26 = arith.addf %16, %25 : vector<32x512xf32>
    %c0_33 = arith.constant 0 : index
    %c2 = arith.constant 2 : index
    %c0_34 = arith.constant 0 : index
    %27 = vector.load %arg14[%c0_33, %c2, %c0_34] : memref<2x18x64xbf16, #tpu.memory_space<vmem>>, vector<2x16x64xbf16>
    %28 = vector.shape_cast %27 : vector<2x16x64xbf16> to vector<32x64xbf16>
    %c2_35 = arith.constant 2 : index
    %c0_36 = arith.constant 0 : index
    %c0_37 = arith.constant 0 : index
    %29 = vector.load %arg1[%c2_35, %c0_36, %c0_37] : memref<3x64x512xbf16, #tpu.memory_space<vmem>>, vector<1x64x512xbf16>
    %30 = vector.shape_cast %29 : vector<1x64x512xbf16> to vector<64x512xbf16>
    %cst_38 = arith.constant dense<0.000000e+00> : vector<32x512xf32>
    %31 = tpu.matmul %28, %30, %cst_38 {dimension_numbers = #tpu.dot_dimension_numbers<[1], [0], [0], [1], [0, 0, 1, 1], [], []>} : vector<32x64xbf16>, vector<64x512xbf16>, vector<32x512xf32> -> vector<32x512xf32>
    %32 = arith.addf %22, %31 : vector<32x512xf32>
    %c2_39 = arith.constant 2 : index
    %c0_40 = arith.constant 0 : index
    %c0_41 = arith.constant 0 : index
    %33 = vector.load %arg2[%c2_39, %c0_40, %c0_41] : memref<3x64x512xbf16, #tpu.memory_space<vmem>>, vector<1x64x512xbf16>
    %34 = vector.shape_cast %33 : vector<1x64x512xbf16> to vector<64x512xbf16>
    %cst_42 = arith.constant dense<0.000000e+00> : vector<32x512xf32>
    %35 = tpu.matmul %28, %34, %cst_42 {dimension_numbers = #tpu.dot_dimension_numbers<[1], [0], [0], [1], [0, 0, 1, 1], [], []>} : vector<32x64xbf16>, vector<64x512xbf16>, vector<32x512xf32> -> vector<32x512xf32>
    %36 = arith.addf %26, %35 : vector<32x512xf32>
    %c0_43 = arith.constant 0 : index
    %c0_44 = arith.constant 0 : index
    %37 = vector.load %arg4[%c0_43, %c0_44] : memref<1x512xf32, #tpu.memory_space<vmem>>, vector<1x512xf32>
    %38 = vector.broadcast %37 : vector<1x512xf32> to vector<32x512xf32>
    %39 = arith.addf %32, %38 : vector<32x512xf32>
    %cst_45 = arith.constant 0.000000e+00 : f32
    %40 = vector.broadcast %cst_45 : f32 to vector<32x512xf32>
    %41 = arith.maximumf %39, %40 : vector<32x512xf32>
    %cst_46 = arith.constant dense<0.000000e+00> : vector<512xf32>
    %42 = vector.multi_reduction <add>, %41, %cst_46 [0] : vector<32x512xf32> to vector<512xf32>
    %43 = vector.shape_cast %42 : vector<512xf32> to vector<1x512xf32>
    %44 = arith.mulf %41, %41 : vector<32x512xf32>
    %cst_47 = arith.constant dense<0.000000e+00> : vector<512xf32>
    %45 = vector.multi_reduction <add>, %44, %cst_47 [0] : vector<32x512xf32> to vector<512xf32>
    %46 = vector.shape_cast %45 : vector<512xf32> to vector<1x512xf32>
    %c0_48 = arith.constant 0 : index
    %c0_49 = arith.constant 0 : index
    %47 = vector.load %arg11[%c0_48, %c0_49] : memref<512x8xf32, #tpu.memory_space<vmem>>, vector<512x8xf32>
    %cst_50 = arith.constant dense<0.000000e+00> : vector<1x8xf32>
    %48 = tpu.matmul %43, %47, %cst_50 {dimension_numbers = #tpu.dot_dimension_numbers<[1], [0], [0], [1], [0, 0, 1, 1], [], []>, precision = #tpu.contract_precision<fp32>} : vector<1x512xf32>, vector<512x8xf32>, vector<1x8xf32> -> vector<1x8xf32>
    %cst_51 = arith.constant 4.8828125E-4 : f32
    %49 = vector.broadcast %cst_51 : f32 to vector<1x8xf32>
    %50 = arith.mulf %48, %49 : vector<1x8xf32>
    %c0_52 = arith.constant 0 : index
    %c0_53 = arith.constant 0 : index
    %51 = vector.load %arg11[%c0_52, %c0_53] : memref<512x8xf32, #tpu.memory_space<vmem>>, vector<512x8xf32>
    %cst_54 = arith.constant dense<0.000000e+00> : vector<1x8xf32>
    %52 = tpu.matmul %46, %51, %cst_54 {dimension_numbers = #tpu.dot_dimension_numbers<[1], [0], [0], [1], [0, 0, 1, 1], [], []>, precision = #tpu.contract_precision<fp32>} : vector<1x512xf32>, vector<512x8xf32>, vector<1x8xf32> -> vector<1x8xf32>
    %cst_55 = arith.constant 4.8828125E-4 : f32
    %53 = vector.broadcast %cst_55 : f32 to vector<1x8xf32>
    %54 = arith.mulf %52, %53 : vector<1x8xf32>
    %c0_56 = arith.constant 0 : index
    %c0_57 = arith.constant 0 : index
    %55 = vector.load %arg12[%c0_56, %c0_57] : memref<8x512xf32, #tpu.memory_space<vmem>>, vector<8x512xf32>
    %cst_58 = arith.constant dense<0.000000e+00> : vector<1x512xf32>
    %56 = tpu.matmul %50, %55, %cst_58 {dimension_numbers = #tpu.dot_dimension_numbers<[1], [0], [0], [1], [0, 0, 1, 1], [], []>, precision = #tpu.contract_precision<fp32>} : vector<1x8xf32>, vector<8x512xf32>, vector<1x512xf32> -> vector<1x512xf32>
    %c0_59 = arith.constant 0 : index
    %c0_60 = arith.constant 0 : index
    %57 = vector.load %arg12[%c0_59, %c0_60] : memref<8x512xf32, #tpu.memory_space<vmem>>, vector<8x512xf32>
    %cst_61 = arith.constant dense<0.000000e+00> : vector<1x512xf32>
    %58 = tpu.matmul %54, %57, %cst_61 {dimension_numbers = #tpu.dot_dimension_numbers<[1], [0], [0], [1], [0, 0, 1, 1], [], []>, precision = #tpu.contract_precision<fp32>} : vector<1x8xf32>, vector<8x512xf32>, vector<1x512xf32> -> vector<1x512xf32>
    %59 = arith.mulf %56, %56 : vector<1x512xf32>
    %60 = arith.subf %58, %59 : vector<1x512xf32>
    %c0_62 = arith.constant 0 : index
    %c0_63 = arith.constant 0 : index
    %61 = vector.load %arg5[%c0_62, %c0_63] : memref<1x512xf32, #tpu.memory_space<vmem>>, vector<1x512xf32>
    %cst_64 = arith.constant 9.99999974E-6 : f32
    %62 = vector.broadcast %cst_64 : f32 to vector<1x512xf32>
    %63 = arith.addf %60, %62 : vector<1x512xf32>
    %64 = math.rsqrt %63 : vector<1x512xf32>
    %65 = arith.mulf %61, %64 : vector<1x512xf32>
    %c0_65 = arith.constant 0 : index
    %c0_66 = arith.constant 0 : index
    %66 = vector.load %arg6[%c0_65, %c0_66] : memref<1x512xf32, #tpu.memory_space<vmem>>, vector<1x512xf32>
    %67 = arith.mulf %56, %65 : vector<1x512xf32>
    %68 = arith.subf %66, %67 : vector<1x512xf32>
    %69 = vector.broadcast %65 : vector<1x512xf32> to vector<32x512xf32>
    %70 = arith.mulf %41, %69 : vector<32x512xf32>
    %71 = vector.broadcast %68 : vector<1x512xf32> to vector<32x512xf32>
    %72 = arith.addf %70, %71 : vector<32x512xf32>
    %cst_67 = arith.constant 0.000000e+00 : bf16
    %73 = vector.broadcast %cst_67 : bf16 to vector<2x1x512xbf16>
    %c0_68 = arith.constant 0 : index
    %c0_69 = arith.constant 0 : index
    %c0_70 = arith.constant 0 : index
    %74 = vector.load %arg15[%c0_68, %c0_69, %c0_70] : memref<2x18x512xbf16, #tpu.memory_space<vmem>>, vector<2x1x512xbf16>
    tpu.vector_store %arg15[%c0_68, %c0_69, %c0_70], %73 {strides = array<i32>} : memref<2x18x512xbf16, #tpu.memory_space<vmem>>, vector<2x1x512xbf16>,
    %c0_71 = arith.constant 0 : index
    %c17_72 = arith.constant 17 : index
    %c0_73 = arith.constant 0 : index
    %75 = vector.load %arg15[%c0_71, %c17_72, %c0_73] : memref<2x18x512xbf16, #tpu.memory_space<vmem>>, vector<2x1x512xbf16>
    tpu.vector_store %arg15[%c0_71, %c17_72, %c0_73], %73 {strides = array<i32>} : memref<2x18x512xbf16, #tpu.memory_space<vmem>>, vector<2x1x512xbf16>,
    %76 = arith.truncf %72 : vector<32x512xf32> to vector<32x512xbf16>
    %77 = vector.shape_cast %76 : vector<32x512xbf16> to vector<2x16x512xbf16>
    %c0_74 = arith.constant 0 : index
    %c1_75 = arith.constant 1 : index
    %c0_76 = arith.constant 0 : index
    %78 = vector.load %arg15[%c0_74, %c1_75, %c0_76] : memref<2x18x512xbf16, #tpu.memory_space<vmem>>, vector<2x16x512xbf16>
    tpu.vector_store %arg15[%c0_74, %c1_75, %c0_76], %77 {strides = array<i32>} : memref<2x18x512xbf16, #tpu.memory_space<vmem>>, vector<2x16x512xbf16>,
    %cst_77 = arith.constant 0.000000e+00 : f32
    %79 = vector.broadcast %cst_77 : f32 to vector<32x512xf32>
    %c0_78 = arith.constant 0 : index
    %c0_79 = arith.constant 0 : index
    %c0_80 = arith.constant 0 : index
    %80 = vector.load %arg15[%c0_78, %c0_79, %c0_80] : memref<2x18x512xbf16, #tpu.memory_space<vmem>>, vector<2x16x512xbf16>
    %81 = vector.shape_cast %80 : vector<2x16x512xbf16> to vector<32x512xbf16>
    %c0_81 = arith.constant 0 : index
    %c0_82 = arith.constant 0 : index
    %c0_83 = arith.constant 0 : index
    %82 = vector.load %arg3[%c0_81, %c0_82, %c0_83] : memref<3x512x512xbf16, #tpu.memory_space<vmem>>, vector<1x512x512xbf16>
    %83 = vector.shape_cast %82 : vector<1x512x512xbf16> to vector<512x512xbf16>
    %cst_84 = arith.constant dense<0.000000e+00> : vector<32x512xf32>
    %84 = tpu.matmul %81, %83, %cst_84 {dimension_numbers = #tpu.dot_dimension_numbers<[1], [0], [0], [1], [0, 0, 1, 1], [], []>} : vector<32x512xbf16>, vector<512x512xbf16>, vector<32x512xf32> -> vector<32x512xf32>
    %85 = arith.addf %79, %84 : vector<32x512xf32>
    %c0_85 = arith.constant 0 : index
    %c1_86 = arith.constant 1 : index
    %c0_87 = arith.constant 0 : index
    %86 = vector.load %arg15[%c0_85, %c1_86, %c0_87] : memref<2x18x512xbf16, #tpu.memory_space<vmem>>, vector<2x16x512xbf16>
    %87 = vector.shape_cast %86 : vector<2x16x512xbf16> to vector<32x512xbf16>
    %c1_88 = arith.constant 1 : index
    %c0_89 = arith.constant 0 : index
    %c0_90 = arith.constant 0 : index
    %88 = vector.load %arg3[%c1_88, %c0_89, %c0_90] : memref<3x512x512xbf16, #tpu.memory_space<vmem>>, vector<1x512x512xbf16>
    %89 = vector.shape_cast %88 : vector<1x512x512xbf16> to vector<512x512xbf16>
    %cst_91 = arith.constant dense<0.000000e+00> : vector<32x512xf32>
    %90 = tpu.matmul %87, %89, %cst_91 {dimension_numbers = #tpu.dot_dimension_numbers<[1], [0], [0], [1], [0, 0, 1, 1], [], []>} : vector<32x512xbf16>, vector<512x512xbf16>, vector<32x512xf32> -> vector<32x512xf32>
    %91 = arith.addf %85, %90 : vector<32x512xf32>
    %c0_92 = arith.constant 0 : index
    %c2_93 = arith.constant 2 : index
    %c0_94 = arith.constant 0 : index
    %92 = vector.load %arg15[%c0_92, %c2_93, %c0_94] : memref<2x18x512xbf16, #tpu.memory_space<vmem>>, vector<2x16x512xbf16>
    %93 = vector.shape_cast %92 : vector<2x16x512xbf16> to vector<32x512xbf16>
    %c2_95 = arith.constant 2 : index
    %c0_96 = arith.constant 0 : index
    %c0_97 = arith.constant 0 : index
    %94 = vector.load %arg3[%c2_95, %c0_96, %c0_97] : memref<3x512x512xbf16, #tpu.memory_space<vmem>>, vector<1x512x512xbf16>
    %95 = vector.shape_cast %94 : vector<1x512x512xbf16> to vector<512x512xbf16>
    %cst_98 = arith.constant dense<0.000000e+00> : vector<32x512xf32>
    %96 = tpu.matmul %93, %95, %cst_98 {dimension_numbers = #tpu.dot_dimension_numbers<[1], [0], [0], [1], [0, 0, 1, 1], [], []>} : vector<32x512xbf16>, vector<512x512xbf16>, vector<32x512xf32> -> vector<32x512xf32>
    %97 = arith.addf %91, %96 : vector<32x512xf32>
    %c0_99 = arith.constant 0 : index
    %c0_100 = arith.constant 0 : index
    %98 = vector.load %arg7[%c0_99, %c0_100] : memref<1x512xf32, #tpu.memory_space<vmem>>, vector<1x512xf32>
    %99 = vector.broadcast %98 : vector<1x512xf32> to vector<32x512xf32>
    %100 = arith.addf %97, %99 : vector<32x512xf32>
    %cst_101 = arith.constant 0.000000e+00 : f32
    %101 = vector.broadcast %cst_101 : f32 to vector<32x512xf32>
    %102 = arith.maximumf %100, %101 : vector<32x512xf32>
    %cst_102 = arith.constant dense<0.000000e+00> : vector<512xf32>
    %103 = vector.multi_reduction <add>, %102, %cst_102 [0] : vector<32x512xf32> to vector<512xf32>
    %104 = vector.shape_cast %103 : vector<512xf32> to vector<1x512xf32>
    %105 = arith.mulf %102, %102 : vector<32x512xf32>
    %cst_103 = arith.constant dense<0.000000e+00> : vector<512xf32>
    %106 = vector.multi_reduction <add>, %105, %cst_103 [0] : vector<32x512xf32> to vector<512xf32>
    %107 = vector.shape_cast %106 : vector<512xf32> to vector<1x512xf32>
    %c0_104 = arith.constant 0 : index
    %c0_105 = arith.constant 0 : index
    %108 = vector.load %arg11[%c0_104, %c0_105] : memref<512x8xf32, #tpu.memory_space<vmem>>, vector<512x8xf32>
    %cst_106 = arith.constant dense<0.000000e+00> : vector<1x8xf32>
    %109 = tpu.matmul %104, %108, %cst_106 {dimension_numbers = #tpu.dot_dimension_numbers<[1], [0], [0], [1], [0, 0, 1, 1], [], []>, precision = #tpu.contract_precision<fp32>} : vector<1x512xf32>, vector<512x8xf32>, vector<1x8xf32> -> vector<1x8xf32>
    %cst_107 = arith.constant 4.8828125E-4 : f32
    %110 = vector.broadcast %cst_107 : f32 to vector<1x8xf32>
    %111 = arith.mulf %109, %110 : vector<1x8xf32>
    %c0_108 = arith.constant 0 : index
    %c0_109 = arith.constant 0 : index
    %112 = vector.load %arg11[%c0_108, %c0_109] : memref<512x8xf32, #tpu.memory_space<vmem>>, vector<512x8xf32>
    %cst_110 = arith.constant dense<0.000000e+00> : vector<1x8xf32>
    %113 = tpu.matmul %107, %112, %cst_110 {dimension_numbers = #tpu.dot_dimension_numbers<[1], [0], [0], [1], [0, 0, 1, 1], [], []>, precision = #tpu.contract_precision<fp32>} : vector<1x512xf32>, vector<512x8xf32>, vector<1x8xf32> -> vector<1x8xf32>
    %cst_111 = arith.constant 4.8828125E-4 : f32
    %114 = vector.broadcast %cst_111 : f32 to vector<1x8xf32>
    %115 = arith.mulf %113, %114 : vector<1x8xf32>
    %c0_112 = arith.constant 0 : index
    %c0_113 = arith.constant 0 : index
    %116 = vector.load %arg12[%c0_112, %c0_113] : memref<8x512xf32, #tpu.memory_space<vmem>>, vector<8x512xf32>
    %cst_114 = arith.constant dense<0.000000e+00> : vector<1x512xf32>
    %117 = tpu.matmul %111, %116, %cst_114 {dimension_numbers = #tpu.dot_dimension_numbers<[1], [0], [0], [1], [0, 0, 1, 1], [], []>, precision = #tpu.contract_precision<fp32>} : vector<1x8xf32>, vector<8x512xf32>, vector<1x512xf32> -> vector<1x512xf32>
    %c0_115 = arith.constant 0 : index
    %c0_116 = arith.constant 0 : index
    %118 = vector.load %arg12[%c0_115, %c0_116] : memref<8x512xf32, #tpu.memory_space<vmem>>, vector<8x512xf32>
    %cst_117 = arith.constant dense<0.000000e+00> : vector<1x512xf32>
    %119 = tpu.matmul %115, %118, %cst_117 {dimension_numbers = #tpu.dot_dimension_numbers<[1], [0], [0], [1], [0, 0, 1, 1], [], []>, precision = #tpu.contract_precision<fp32>} : vector<1x8xf32>, vector<8x512xf32>, vector<1x512xf32> -> vector<1x512xf32>
    %120 = arith.mulf %117, %117 : vector<1x512xf32>
    %121 = arith.subf %119, %120 : vector<1x512xf32>
    %c0_118 = arith.constant 0 : index
    %c0_119 = arith.constant 0 : index
    %122 = vector.load %arg8[%c0_118, %c0_119] : memref<1x512xf32, #tpu.memory_space<vmem>>, vector<1x512xf32>
    %cst_120 = arith.constant 9.99999974E-6 : f32
    %123 = vector.broadcast %cst_120 : f32 to vector<1x512xf32>
    %124 = arith.addf %121, %123 : vector<1x512xf32>
    %125 = math.rsqrt %124 : vector<1x512xf32>
    %126 = arith.mulf %122, %125 : vector<1x512xf32>
    %c0_121 = arith.constant 0 : index
    %c0_122 = arith.constant 0 : index
    %127 = vector.load %arg9[%c0_121, %c0_122] : memref<1x512xf32, #tpu.memory_space<vmem>>, vector<1x512xf32>
    %128 = arith.mulf %117, %126 : vector<1x512xf32>
    %129 = arith.subf %127, %128 : vector<1x512xf32>
    %130 = vector.broadcast %126 : vector<1x512xf32> to vector<32x512xf32>
    %131 = arith.mulf %102, %130 : vector<32x512xf32>
    %132 = vector.broadcast %129 : vector<1x512xf32> to vector<32x512xf32>
    %133 = arith.addf %131, %132 : vector<32x512xf32>
    %c0_123 = arith.constant 0 : index
    %c0_124 = arith.constant 0 : index
    %134 = vector.load %arg10[%c0_123, %c0_124] : memref<1x512xf32, #tpu.memory_space<vmem>>, vector<1x512xf32>
    %135 = vector.broadcast %134 : vector<1x512xf32> to vector<32x512xf32>
    %136 = arith.addf %36, %135 : vector<32x512xf32>
    %137 = arith.addf %136, %133 : vector<32x512xf32>
    %c0_125 = arith.constant 0 : index
    %c0_126 = arith.constant 0 : index
    %138 = vector.load %arg13[%c0_125, %c0_126] : memref<32x512xf32, #tpu.memory_space<vmem>>, vector<32x512xf32>
    tpu.vector_store %arg13[%c0_125, %c0_126], %137 {strides = array<i32>} : memref<32x512xf32, #tpu.memory_space<vmem>>, vector<32x512xf32>,
    return
  }
}

</mosaic_0001>

<bundles_post_ra>
// kernel: forward.1
= control target key start
LH: loop header
LB: loop body
LE: loop exit
PB: predicated region body
PF: predicated region fallthrough
CT: control target
= control target key end

     0   :  { %18 = vsyncpa [#allocation5], 0  ;;  %s26507_s0 = inlined_call_operand.vmem [shape: bf16[2,16,64], index: 0, kind: input, shape index: {}]   ;;  %s26508_s1 = inlined_call_operand.hbm [shape: bf16[3,64,512], index: 1, kind: input, shape index: {}]   ;;  %s26509_s2 = inlined_call_operand.hbm [shape: bf16[3,64,512], index: 2, kind: input, shape index: {}]   ;;  %s26510_s3 = inlined_call_operand.hbm [shape: bf16[3,512,512], index: 3, kind: input, shape index: {}]   ;;  %s26511_s4 = inlined_call_operand.hbm [shape: f32[1,512], index: 4, kind: input, shape index: {}]   ;;  %s26512_s5 = inlined_call_operand.hbm [shape: f32[1,512], index: 5, kind: input, shape index: {}]   ;;  %s26513_s6 = inlined_call_operand.hbm [shape: f32[1,512], index: 6, kind: input, shape index: {}]   ;;  %s26514_s7 = inlined_call_operand.hbm [shape: f32[1,512], index: 7, kind: input, shape index: {}]   ;;  %s26515_s8 = inlined_call_operand.hbm [shape: f32[1,512], index: 8, kind: input, shape index: {}]   ;;  %s26516_s9 = inlined_call_operand.hbm [shape: f32[1,512], index: 9, kind: input, shape index: {}]   ;;  %s26517_s10 = inlined_call_operand.hbm [shape: f32[1,512], index: 10, kind: input, shape index: {}]   ;;  %s26518_s11 = inlined_call_operand.vmem [shape: f32[512,8], index: 11, kind: input, shape index: {}]   ;;  %s26519_s12 = inlined_call_operand.hbm [shape: f32[8,512], index: 12, kind: input, shape index: {}]   ;;  %s26520_s13 = inlined_call_operand.vmem [shape: f32[32,512], index: 13, kind: output, shape index: {}]  }
   0x1   :  { %19 = vsyncpa [#allocation7], 0 }
   0x2   :  { %20 = vsyncpa [#allocation10], 0 }
   0x3   :  { %21 = vsyncpa [#allocation13], 0 }
   0x4   :  { %22 = vsyncpa [#allocation16], 0 }
   0x5   :  { %23 = vsyncpa [#allocation19], 0  ;;  %s21470_s25 = smov [#allocation6]   ;;  %s21471_s27 = smov [#allocation9]  }
   0x6   :  { %s43_s26 = sshll.u32 %s21470_s25, 4  ;;  %s68_s28 = sshll.u32 %s21471_s27, 4  ;;  %s44_s26 = int_to_ptr.vmem [resolvable:$true] %s43_s26  ;;  %s69_s28 = int_to_ptr.vmem [resolvable:$true] %s68_s28 }
   0x7   :  { %s21216_s14 = scalar_lea.hbm %s26509_s2, 6144 }
   0x8   :  { %p21217_p0 = scmp.ne.s32.totalorder %s26509_s2, %s21216_s14  ;;  %p21220_p1 = scmp.lt.u32.totalorder %s21216_s14, %s26509_s2 }
   0xa   :  { %p21222_p2 = pnand %p21220_p1, %p21217_p0 }
   0xc   :  { %21225 = shalt.err (!%p21222_p2)
}
   0xd   :  { %s21226_s19 = scalar_lea.vmem %s44_s26, 6144  ;;  %p21231_p4 = scmp.lt.s32.totalorder %s44_s26, %s44_s26 }
   0xe   :  { %p21227_p3 = scmp.ne.s32.totalorder %s44_s26, %s21226_s19  ;;  %p21232_p5 = scmp.lt.s32.totalorder %s21226_s19, %s21226_s19 }
  0x10   :  { %p21233_p6 = por %p21232_p5, %p21231_p4 }
  0x12   :  { %p21234_p7 = pnand %p21233_p6, %p21227_p3 }
  0x14   :  { %21237 = shalt.err (!%p21234_p7)
}
  0x15   :  { %s21472_s20 = smov 256   ;;  %s21473_s21 = smov 16  }
  0x16   :  { %49 = dma.hbm_to_vmem [thread:$0]  %s26509_s2, 6144, %s44_s26, [#allocation7], %s21472_s20, %s21472_s20, %s21473_s21  }
  0x17   :  { %s21238_s27 = scalar_lea.hbm %s26511_s4, 64 }
  0x18   :  { %p21239_p8 = scmp.ne.s32.totalorder %s26511_s4, %s21238_s27  ;;  %p21242_p9 = scmp.lt.u32.totalorder %s21238_s27, %s26511_s4 }
  0x1a   :  { %p21244_p10 = pnand %p21242_p9, %p21239_p8 }
  0x1c   :  { %21247 = shalt.err (!%p21244_p10)
}
  0x1d   :  { %s21248_s16 = scalar_lea.vmem %s69_s28, 64  ;;  %p21253_p12 = scmp.lt.s32.totalorder %s69_s28, %s69_s28 }
  0x1e   :  { %p21249_p11 = scmp.ne.s32.totalorder %s69_s28, %s21248_s16  ;;  %p21254_p13 = scmp.lt.s32.totalorder %s21248_s16, %s21248_s16 }
  0x20   :  { %p21255_p0 = por %p21254_p13, %p21253_p12 }
  0x22   :  { %p21256_p1 = pnand %p21255_p0, %p21249_p11 }
  0x24   :  { %21259 = shalt.err (!%p21256_p1)
}
  0x25   :  { %71 = dma.hbm_to_vmem [thread:$0]  %s26511_s4, 64, %s69_s28, [#allocation10]  }
  0x26   :  { %s21474_s17 = smov [#allocation12]   ;;  %s21475_s19 = smov [#allocation15]  }
  0x27   :  { %s88_s18 = sshll.u32 %s21474_s17, 4  ;;  %s108_s22 = sshll.u32 %s21475_s19, 4  ;;  %s89_s18 = int_to_ptr.vmem [resolvable:$true] %s88_s18  ;;  %s109_s22 = int_to_ptr.vmem [resolvable:$true] %s108_s22 }
  0x28   :  { %s21260_s25 = scalar_lea.hbm %s26513_s6, 64 }
  0x29   :  { %p21261_p2 = scmp.ne.s32.totalorder %s26513_s6, %s21260_s25  ;;  %p21264_p3 = scmp.lt.u32.totalorder %s21260_s25, %s26513_s6 }
  0x2b   :  { %p21266_p4 = pnand %p21264_p3, %p21261_p2 }
  0x2d   :  { %21269 = shalt.err (!%p21266_p4)
}
  0x2e   :  { %s21270_s4 = scalar_lea.vmem %s89_s18, 64  ;;  %p21275_p6 = scmp.lt.s32.totalorder %s89_s18, %s89_s18 }
  0x2f   :  { %p21271_p5 = scmp.ne.s32.totalorder %s89_s18, %s21270_s4  ;;  %p21276_p7 = scmp.lt.s32.totalorder %s21270_s4, %s21270_s4 }
  0x31   :  { %p21277_p8 = por %p21276_p7, %p21275_p6 }
  0x33   :  { %p21278_p9 = pnand %p21277_p8, %p21271_p5 }
  0x35   :  { %21281 = shalt.err (!%p21278_p9)
}
  0x36   :  { %91 = dma.hbm_to_vmem [thread:$0]  %s26513_s6, 64, %s89_s18, [#allocation13]  }
  0x37   :  { %s21282_s26 = scalar_lea.hbm %s26515_s8, 64 }
  0x38   :  { %p21283_p10 = scmp.ne.s32.totalorder %s26515_s8, %s21282_s26  ;;  %p21286_p11 = scmp.lt.u32.totalorder %s21282_s26, %s26515_s8 }
  0x3a   :  { %p21288_p12 = pnand %p21286_p11, %p21283_p10 }
  0x3c   :  { %21291 = shalt.err (!%p21288_p12)
}
  0x3d   :  { %s21292_s25 = scalar_lea.vmem %s109_s22, 64  ;;  %p21297_p0 = scmp.lt.s32.totalorder %s109_s22, %s109_s22 }
  0x3e   :  { %p21293_p13 = scmp.ne.s32.totalorder %s109_s22, %s21292_s25  ;;  %p21298_p1 = scmp.lt.s32.totalorder %s21292_s25, %s21292_s25 }
  0x40   :  { %p21299_p2 = por %p21298_p1, %p21297_p0 }
  0x42   :  { %p21300_p3 = pnand %p21299_p2, %p21293_p13 }
  0x44   :  { %21303 = shalt.err (!%p21300_p3)
}
  0x45   :  { %111 = dma.hbm_to_vmem [thread:$0]  %s26515_s8, 64, %s109_s22, [#allocation16]  }
  0x46   :  { %s21476_s27 = smov [#allocation18]   ;;  %s21477_s30 = smov [#allocation4]  }
  0x47   :  { %s128_s29 = sshll.u32 %s21476_s27, 4  ;;  %s31_s14 = sshll.u32 %s21477_s30, 4  ;;  %s129_s29 = int_to_ptr.vmem [resolvable:$true] %s128_s29  ;;  %s21607_s14 = int_to_ptr.vmem [resolvable:$true] %s31_s14 }
  0x48   :  { %s21304_s15 = scalar_lea.hbm %s26517_s10, 64 }
  0x49   :  { %p21305_p4 = scmp.ne.s32.totalorder %s26517_s10, %s21304_s15  ;;  %p21308_p5 = scmp.lt.u32.totalorder %s21304_s15, %s26517_s10 }
  0x4b   :  { %p21310_p6 = pnand %p21308_p5, %p21305_p4 }
  0x4d   :  { %21313 = shalt.err (!%p21310_p6)
}
  0x4e   :  { %s21314_s8 = scalar_lea.vmem %s129_s29, 64  ;;  %p21319_p8 = scmp.lt.s32.totalorder %s129_s29, %s129_s29 }
  0x4f   :  { %p21315_p7 = scmp.ne.s32.totalorder %s129_s29, %s21314_s8  ;;  %p21320_p9 = scmp.lt.s32.totalorder %s21314_s8, %s21314_s8 }
  0x51   :  { %p21321_p10 = por %p21320_p9, %p21319_p8 }
  0x53   :  { %p21322_p11 = pnand %p21321_p10, %p21315_p7 }
  0x55   :  { %21325 = shalt.err (!%p21322_p11)
}
  0x56   :  { %131 = dma.hbm_to_vmem [thread:$0]  %s26517_s10, 64, %s129_s29, [#allocation19]  }
  0x57   :  { %s21326_s25 = scalar_lea.hbm %s26508_s1, 6144 }
  0x58   :  { %p21327_p12 = scmp.ne.s32.totalorder %s26508_s1, %s21326_s25  ;;  %p21330_p13 = scmp.lt.u32.totalorder %s21326_s25, %s26508_s1 }
  0x5a   :  { %p21332_p0 = pnand %p21330_p13, %p21327_p12 }
  0x5c   :  { %21335 = shalt.err (!%p21332_p0)
}
  0x5d   :  { %s21336_s4 = scalar_lea.vmem %s21607_s14, 6144  ;;  %p21341_p2 = scmp.lt.s32.totalorder %s21607_s14, %s21607_s14 }
  0x5e   :  { %p21337_p1 = scmp.ne.s32.totalorder %s21607_s14, %s21336_s4  ;;  %p21342_p3 = scmp.lt.s32.totalorder %s21336_s4, %s21336_s4 }
  0x60   :  { %p21343_p4 = por %p21342_p3, %p21341_p2 }
  0x62   :  { %p21344_p5 = pnand %p21343_p4, %p21337_p1 }
  0x64   :  { %21347 = shalt.err (!%p21344_p5)
}
  0x65   :  { %37 = dma.hbm_to_vmem [thread:$0]  %s26508_s1, 6144, %s21607_s14, [#allocation5], %s21472_s20, %s21472_s20, %s21473_s21  }
  0x66   :  { %s21478_s28 = smov [#allocation8]   ;;  %s21479_s16 = smov [#allocation11]  }
  0x67   :  { %s55_s15 = sshll.u32 %s21478_s28, 4  ;;  %s78_s2 = sshll.u32 %s21479_s16, 4  ;;  %s56_s15 = int_to_ptr.vmem [resolvable:$true] %s55_s15  ;;  %s79_s2 = int_to_ptr.vmem [resolvable:$true] %s78_s2 }
  0x68   :  { %s21348_s8 = scalar_lea.hbm %s26510_s3, 49152 }
  0x69   :  { %p21349_p6 = scmp.ne.s32.totalorder %s26510_s3, %s21348_s8  ;;  %p21352_p7 = scmp.lt.u32.totalorder %s21348_s8, %s26510_s3 }
  0x6b   :  { %p21354_p8 = pnand %p21352_p7, %p21349_p6 }
  0x6d   :  { %21357 = shalt.err (!%p21354_p8)
}
  0x6e   :  { %s21358_s1 = scalar_lea.vmem %s56_s15, 49152  ;;  %p21363_p10 = scmp.lt.s32.totalorder %s56_s15, %s56_s15 }
  0x6f   :  { %p21359_p9 = scmp.ne.s32.totalorder %s56_s15, %s21358_s1  ;;  %p21364_p11 = scmp.lt.s32.totalorder %s21358_s1, %s21358_s1 }
  0x71   :  { %p21365_p12 = por %p21364_p11, %p21363_p10 }
  0x73   :  { %p21366_p13 = pnand %p21365_p12, %p21359_p9 }
  0x75   :  { %21369 = shalt.err (!%p21366_p13)
}
  0x76   :  { %61 = dma.hbm_to_vmem [thread:$0]  %s26510_s3, 49152, %s56_s15, [#allocation7], %s21472_s20, %s21472_s20, %s21473_s21  }
  0x77   :  { %s21370_s27 = scalar_lea.hbm %s26512_s5, 64 }
  0x78   :  { %p21371_p0 = scmp.ne.s32.totalorder %s26512_s5, %s21370_s27  ;;  %p21374_p1 = scmp.lt.u32.totalorder %s21370_s27, %s26512_s5 }
  0x7a   :  { %p21376_p2 = pnand %p21374_p1, %p21371_p0 }
  0x7c   :  { %21379 = shalt.err (!%p21376_p2)
}
  0x7d   :  { %s21380_s28 = scalar_lea.vmem %s79_s2, 64  ;;  %p21385_p4 = scmp.lt.s32.totalorder %s79_s2, %s79_s2 }
  0x7e   :  { %p21381_p3 = scmp.ne.s32.totalorder %s79_s2, %s21380_s28  ;;  %p21386_p5 = scmp.lt.s32.totalorder %s21380_s28, %s21380_s28 }
  0x80   :  { %p21387_p6 = por %p21386_p5, %p21385_p4 }
  0x82   :  { %p21388_p7 = pnand %p21387_p6, %p21381_p3 }
  0x84   :  { %21391 = shalt.err (!%p21388_p7)
}
  0x85   :  { %81 = dma.hbm_to_vmem [thread:$0]  %s26512_s5, 64, %s79_s2, [#allocation10]  }
  0x86   :  { %s21480_s21 = smov [#allocation14]   ;;  %s21481_s16 = smov [#allocation17]  }
  0x87   :  { %s98_s15 = sshll.u32 %s21480_s21, 4  ;;  %s118_s26 = sshll.u32 %s21481_s16, 4  ;;  %s99_s15 = int_to_ptr.vmem [resolvable:$true] %s98_s15  ;;  %s119_s26 = int_to_ptr.vmem [resolvable:$true] %s118_s26 }
  0x88   :  { %s21392_s22 = scalar_lea.hbm %s26514_s7, 64 }
  0x89   :  { %p21393_p8 = scmp.ne.s32.totalorder %s26514_s7, %s21392_s22  ;;  %p21396_p9 = scmp.lt.u32.totalorder %s21392_s22, %s26514_s7 }
  0x8b   :  { %p21398_p10 = pnand %p21396_p9, %p21393_p8 }
  0x8d   :  { %21401 = shalt.err (!%p21398_p10)
}
  0x8e   :  { %s21402_s5 = scalar_lea.vmem %s99_s15, 64  ;;  %p21407_p12 = scmp.lt.s32.totalorder %s99_s15, %s99_s15 }
  0x8f   :  { %p21403_p11 = scmp.ne.s32.totalorder %s99_s15, %s21402_s5  ;;  %p21408_p13 = scmp.lt.s32.totalorder %s21402_s5, %s21402_s5 }
  0x91   :  { %p21409_p0 = por %p21408_p13, %p21407_p12 }
  0x93   :  { %p21410_p1 = pnand %p21409_p0, %p21403_p11 }
  0x95   :  { %21413 = shalt.err (!%p21410_p1)
}
  0x96   :  { %101 = dma.hbm_to_vmem [thread:$0]  %s26514_s7, 64, %s99_s15, [#allocation13]  }
  0x97   :  { %s21414_s18 = scalar_lea.hbm %s26516_s9, 64 }
  0x98   :  { %p21415_p2 = scmp.ne.s32.totalorder %s26516_s9, %s21414_s18  ;;  %p21418_p3 = scmp.lt.u32.totalorder %s21414_s18, %s26516_s9 }
  0x9a   :  { %p21420_p4 = pnand %p21418_p3, %p21415_p2 }
  0x9c   :  { %21423 = shalt.err (!%p21420_p4)
}
  0x9d   :  { %s21424_s29 = scalar_lea.vmem %s119_s26, 64  ;;  %p21429_p6 = scmp.lt.s32.totalorder %s119_s26, %s119_s26 }
  0x9e   :  { %p21425_p5 = scmp.ne.s32.totalorder %s119_s26, %s21424_s29  ;;  %p21430_p7 = scmp.lt.s32.totalorder %s21424_s29, %s21424_s29 }
  0xa0   :  { %p21431_p8 = por %p21430_p7, %p21429_p6 }
  0xa2   :  { %p21432_p9 = pnand %p21431_p8, %p21425_p5 }
  0xa4   :  { %21435 = shalt.err (!%p21432_p9)
}
  0xa5   :  { %121 = dma.hbm_to_vmem [thread:$0]  %s26516_s9, 64, %s119_s26, [#allocation16]  }
  0xa6   :  { %s21482_s3 = smov [#allocation20]   ;;  %s21436_s16 = scalar_lea.hbm %s26519_s12, 512 }
  0xa7   :  { %s140_s20 = sshll.u32 %s21482_s3, 4  ;;  %p21437_p10 = scmp.ne.s32.totalorder %s26519_s12, %s21436_s16  ;;  %s141_s20 = int_to_ptr.vmem [resolvable:$true] %s140_s20 }
  0xa8   :  { %p21440_p11 = scmp.lt.u32.totalorder %s21436_s16, %s26519_s12 }
  0xaa   :  { %p21442_p12 = pnand %p21440_p11, %p21437_p10 }
  0xac   :  { %21445 = shalt.err (!%p21442_p12)
}
  0xad   :  { %s21446_s23 = scalar_lea.vmem %s141_s20, 512  ;;  %p21451_p0 = scmp.lt.s32.totalorder %s141_s20, %s141_s20 }
  0xae   :  { %p21447_p13 = scmp.ne.s32.totalorder %s141_s20, %s21446_s23  ;;  %p21452_p1 = scmp.lt.s32.totalorder %s21446_s23, %s21446_s23 }
  0xb0   :  { %p21453_p2 = por %p21452_p1, %p21451_p0 }
  0xb2   :  { %p21454_p3 = pnand %p21453_p2, %p21447_p13 }
  0xb4   :  { %21457 = shalt.err (!%p21454_p3)
}
  0xb5   :  { %143 = dma.hbm_to_vmem [thread:$0]  %s26519_s12, 512, %s141_s20, [#allocation19]  }
  0xb6   :  { %21458 = dma.done.wait [#allocation5], 6144  }
  0xb7   :  { %21459 = vsyncadd [#allocation5], 4294961152 }
  0xb8   :  { %21460 = dma.done.wait [#allocation7], 55296  }
  0xb9   :  { %21461 = vsyncadd [#allocation7], 4294912000 }
  0xba   :  { %21462 = dma.done.wait [#allocation10], 128  }
  0xbb   :  { %21463 = vsyncadd [#allocation10], 4294967168 }
  0xbc   :  { %21464 = dma.done.wait [#allocation13], 128  }
  0xbd   :  { %21465 = vsyncadd [#allocation13], 4294967168 }
  0xbe   :  { %21466 = dma.done.wait [#allocation16], 128  }
  0xbf   :  { %21467 = vsyncadd [#allocation16], 4294967168 }
  0xc0   :  { %21468 = dma.done.wait [#allocation19], 576  }
  0xc1   :  { %21469 = vsyncadd [#allocation19], 4294966720  ;;  %v21483_v0 = vmov 0   ;;  %vm178_vm0 = vcmask 516096   ;;  %v20481_v1 = vld [vmem:[#allocation4 + $0x84] ss:$16 sps:$4 sm:$0xff]  }
  0xc2   :  { %489 = vmatprep.mubr.bf16.mxu0 %v21483_v0  ;;  %542 = vmatprep.mubr.bf16.mxu1 %v21483_v0  ;;  %vm179_vm1 = vsmask.f32 256  ;;  %v20483_v2 = vld [vmem:[#allocation4 + $0x80] ss:$16 sps:$4 sm:$0xff]   ;;  %v20484_v3 = vld [vmem:[#allocation4 + $0xa4] ss:$16 sps:$4 sm:$0xff]  }
  0xc3   :  { %457 = vmatprep.subr.bf16.mxu0 %v20481_v1  ;;  %vm187_vm2 = vsmask.f32 7938  ;;  %v20486_v4 = vld [vmem:[#allocation4 + $0xa0] ss:$16 sps:$4 sm:$0xff]   ;;  %vm21707_vm3 = vmand %vm178_vm0, %vm179_vm1  ;;  %v20487_v6 = vld [vmem:[#allocation4 + $0xc4] ss:$16 sps:$4 sm:$0xff]  }
  0xc4   :  { %458 = vmatpush1.bf16.msra.mxu0 %v20483_v2  ;;  %v349_v7 = vld [vmem:[#allocation4 + $0x88] sm:$0xff]  ;;  %v351_v8 = vld [vmem:[#allocation4 + $0x98] sm:$0xff]  ;;  %vm21712_vm4 = vmand %vm178_vm0, %vm187_vm2  ;;  %vm199_vm5 = vsmask.f32 4368  ;;  %vm241_vm6 = vcmask 519168   ;;  %v27019_v24 = vmov 0 }
  0xc5   :  { %459 = vmatprep.subr.bf16.mxu0 %v20484_v3  ;;  %v20493_v10 = vld [vmem:[#allocation4 + $0x8c] ss:$16 sps:$4 sm:$0xff]   ;;  %v16473_v11 = vcombine.low %v349_v7, %v351_v8  ;;  %v20489_v12 = vld [vmem:[#allocation4 + $0xc0] ss:$16 sps:$4 sm:$0xff]   ;;  %v20490_v13 = vld [vmem:[#allocation4 + $0xe4] ss:$16 sps:$4 sm:$0xff]  }
  0xc6   :  { %v181_v14 = vld [vmem:[#allocation2] sm:$0x1]  ;;  %510 = vmatprep.subr.bf16.mxu1 %v20493_v10  ;;  %v184_v16 = vld [vmem:[#allocation2 + $0xc] sm:$0x1]  ;;  %v189_v17 = vld [vmem:[#allocation2 + $0x8] sm:$0x1] }
  0xc7   :  { %v182_v15 = vsel %vm21707_vm3, 0, %v181_v14  ;;  %v20492_v18 = vld [vmem:[#allocation4 + $0xe0] ss:$16 sps:$4 sm:$0xff]   ;;  %v185_v19 = vsel %vm21707_vm3, 0, %v184_v16  ;;  %v190_v20 = vsel %vm21712_vm4, 0, %v189_v17  ;;  %511 = vmatpush1.bf16.msra.mxu1 %v16473_v11  ;;  %vm21733_vm7 = vmor %vm179_vm1, %vm199_vm5  ;;  %v357_v35 = vld [vmem:[#allocation4 + $0xc8] sm:$0xff] }
  0xc8   :  { %460 = vmatpush1.bf16.msra.mxu0 %v20486_v4  ;;  %183 = vst [vmem:[#allocation2] sm:$0x1] %v182_v15  ;;  %v195_v21 = vld [vmem:[%s26507_s0] sm:$0xf]  ;;  %v196_v22 = vld [vmem:[%s26507_s0 + $0x4] sm:$0xf]  ;;  %vm21739_vm8 = vmand %vm241_vm6, %vm187_vm2 }
  0xc9   :  { %461 = vmatprep.subr.bf16.mxu0 %v20487_v6  ;;  %186 = vst [vmem:[#allocation2 + $0xc] sm:$0x1] %v185_v19  ;;  %191 = vst [vmem:[#allocation2 + $0x8] sm:$0x1] %v190_v20  ;;  %v197_v23 = vld [vmem:[%s26507_s0 + $0x8] sm:$0xf] }
  0xca   :  { %v27020_v24 = vsel %vm21733_vm7, 4294967295, %v27019_v24  ;;  %v202_v25 = vshrl.u32 %v195_v21, 16  ;;  %v205_v26 = vshll.u32 %v195_v21, 16  ;;  %v210_v27 = vshrl.u32 %v196_v22, 16  ;;  %v20498_v31 = vld [vmem:[#allocation4 + $0xac] ss:$16 sps:$4 sm:$0xff]  }
  0xcb   :  { %27021 = vst [vmem:[#allocation27_spill] sm:$0xff] %v27020_v24  ;;  %v213_v28 = vshll.u32 %v196_v22, 16  ;;  %v219_v29 = vshrl.u32 %v197_v23, 16  ;;  %v222_v30 = vshll.u32 %v197_v23, 16  ;;  %v20497_v32 = vld [vmem:[#allocation4 + $0x4] ss:$16 sps:$4 sm:$0xff]   ;;  %512 = vmatprep.subr.bf16.mxu1 %v20498_v31 }
  0xcc   :  { %462 = vmatpush1.bf16.msra.mxu0 %v20489_v12  ;;  %v204_v33 = vrot.slane %v202_v25, 7  ;;  %v212_v34 = vrot.slane %v210_v27, 7  ;;  %v20503_v38 = vld [vmem:[#allocation4 + $0xa8] ss:$16 sps:$4 sm:$0xff]   ;;  %v20504_v44 = vld [vmem:[#allocation4 + $0xcc] ss:$16 sps:$4 sm:$0xff]  }
  0xcd   :  { %463 = vmatprep.subr.bf16.mxu0 %v20490_v13  ;;  %v221_v36 = vrot.slane %v219_v29, 7  ;;  %v359_v39 = vld [vmem:[#allocation4 + $0xd8] sm:$0xff]  ;;  %513 = vmatpush1.bf16.msra.mxu1 %v20503_v38  ;;  %v198_v51 = vld [vmem:[%s26507_s0 + $0xc] sm:$0xf]  ;;  %vm296_vm9 = vsmask.f32 3328 }
  0xce   :  { %v207_v40 = vor.u32 %v205_v26, %v204_v33  ;;  %v208_v41 = vrot.slane %v204_v33, 4  ;;  %v215_v42 = vor.u32 %v213_v28, %v212_v34  ;;  %v217_v43 = vrot.slane %v212_v34, 4  ;;  %v192_v46 = vld [vmem:[#allocation2 + $0x14] sm:$0x1]  ;;  %514 = vmatprep.subr.bf16.mxu1 %v20504_v44  ;;  %v20514_v62 = vld [vmem:[#allocation4 + $0xe8] ss:$16 sps:$4 sm:$0xff]  }
  0xcf   :  { %v224_v45 = vor.u32 %v222_v30, %v221_v36  ;;  %v16481_v47 = vcombine.low %v357_v35, %v359_v39  ;;  %v243_v49 = vld [vmem:[#allocation2] sm:$0xf]  ;;  %v193_v50 = vsel %vm21712_vm4, 0, %v192_v46  ;;  %v227_v55 = vshrl.u32 %v198_v51, 16  ;;  %v20509_v59 = vld [vmem:[#allocation4 + $0xec] ss:$16 sps:$4 sm:$0xff]  }
  0xd0   :  { %464 = vmatpush1.bf16.msra.mxu0 %v20492_v18  ;;  %v216_v48 = vsel %vm21733_vm7, %v208_v41, %v215_v42  ;;  %v244_v52 = vsel %vm21739_vm8, %v207_v40, %v243_v49  ;;  %v248_v53 = vld [vmem:[#allocation2 + $0x8] sm:$0x1]  ;;  %v251_v54 = vld [vmem:[#allocation2 + $0xc] sm:$0xf]  ;;  %194 = vst [vmem:[#allocation2 + $0x14] sm:$0x1] %v193_v50 }
  0xd1   :  { %659 = vmatprep.subr.bf16.mxu0 %v20497_v32  ;;  %247 = vst.msk [vmem:[#allocation2 + $0x4] sm:$0xf] %vm241_vm6, %v216_v48  ;;  %v230_v56 = vshll.u32 %v198_v51, 16  ;;  %245 = vst [vmem:[#allocation2] sm:$0xf] %v244_v52  ;;  %v249_v57 = vsel %vm21707_vm3, %v217_v43, %v248_v53  ;;  %v252_v58 = vsel %vm21739_vm8, %v224_v45, %v251_v54  ;;  %v225_v60 = vrot.slane %v221_v36, 4 }
  0xd2   :  { %250 = vst [vmem:[#allocation2 + $0x8] sm:$0x1] %v249_v57  ;;  %253 = vst [vmem:[#allocation2 + $0xc] sm:$0xf] %v252_v58  ;;  %v229_v61 = vrot.slane %v227_v55, 7  ;;  %515 = vmatpush1.bf16.msra.mxu1 %v16481_v47  ;;  %vm1160_vm11 = vcmask 1042432  }
  0xd3   :  { %516 = vmatprep.subr.bf16.mxu1 %v20509_v59  ;;  %v20517_v2 = vld [vmem:[#allocation4 + $0xc] ss:$16 sps:$4 sm:$0xff]   ;;  %vm297_vm10 = vsmask.f32 7440  ;;  %vm1161_vm12 = vcmask 1046532   ;;  %v27024_v22 = vmov 0 }
  0xd4   :  { %v232_v63 = vor.u32 %v230_v56, %v229_v61  ;;  %v234_v1 = vrot.slane %v229_v61, 4  ;;  %vm21777_vm13 = vmor %vm296_vm9, %vm297_vm10  ;;  %v27027_v30 = vmov 0  ;;  %vm450_vm15 = vcmask 523264   ;;  %v20495_v42 = vld [vmem:[#allocation4] ss:$16 sps:$4 sm:$0xff]  }
  0xd5   :  { %v27025_v22 = vsel %vm21777_vm13, 4294967295, %v27024_v22  ;;  %vm21783_vm14 = vmor %vm1160_vm11, %vm1161_vm12  ;;  %v20502_v48 = vld [vmem:[#allocation4 + $0x24] ss:$16 sps:$4 sm:$0xff]   ;;  %v20515_v50 = vld [vmem:[#allocation4 + $0x8] ss:$16 sps:$4 sm:$0xff]   ;;  %vm5287_vm0 = vcmask 64512  }
  0xd6   :  { %v233_v3 = vsel %vm21733_vm7, %v225_v60, %v232_v63  ;;  %517 = vmatpush1.bf16.msra.mxu1 %v20514_v62  ;;  %27026 = vst [vmem:[#allocation28_spill] sm:$0xff] %v27025_v22  ;;  %v27028_v30 = vsel %vm21783_vm14, 4294967295, %v27027_v30  ;;  %v20523_v52 = vld [vmem:[#allocation4 + $0x2c] ss:$16 sps:$4 sm:$0xff]   ;;  %v20500_v56 = vld [vmem:[#allocation4 + $0x20] ss:$16 sps:$4 sm:$0xff]  }
  0xd7   :  { %254 = vst.msk [vmem:[#allocation2 + $0x10] sm:$0xf] %vm241_vm6, %v233_v3  ;;  %v255_v6 = vld [vmem:[#allocation2 + $0x14] sm:$0x1]  ;;  %712 = vmatprep.subr.bf16.mxu1 %v20517_v2  ;;  %27029 = vst [vmem:[#allocation29_spill] sm:$0xff] %v27028_v30  ;;  %vm7312_vm4 = vcmask 1044484  }
  0xd8   :  { %v21759_v4 = vld [vmem:[#allocation2 + $0x4] sm:$0xf]  ;;  %v21762_v7 = vld [vmem:[#allocation2] sm:$0xf]  ;;  %v256_v10 = vsel %vm21707_vm3, %v234_v1, %v255_v6  ;;  %v20508_v57 = vld [vmem:[#allocation4 + $0x44] ss:$16 sps:$4 sm:$0xff]  }
  0xd9   :  { %v309_v8 = vshll.u32 %v21759_v4, 16  ;;  %v313_v9 = vshrl.u32 %v21759_v4, 16  ;;  %v294_v11 = vld [vmem:[#allocation2 + $0x8] sm:$0x1]  ;;  %v300_v12 = vshrl.u32 %v21762_v7, 16  ;;  %v303_v13 = vshll.u32 %v21762_v7, 16 }
  0xda   :  { %257 = vst [vmem:[#allocation2 + $0x14] sm:$0x1] %v256_v10  ;;  %v21770_v14 = vld [vmem:[#allocation2 + $0xc] sm:$0xf]  ;;  %v319_v17 = vshll.u32 %v294_v11, 16  ;;  %v1165_v18 = vrot.slane %v21759_v4, 5 }
  0xdb   :  { %v311_v15 = vrot.slane %v309_v8, 5  ;;  %v315_v16 = vrot.slane %v313_v9, 4  ;;  %v302_v19 = vrot.slane %v300_v12, 4  ;;  %v305_v20 = vrot.slane %v303_v13, 5  ;;  %v20521_v61 = vld [vmem:[#allocation4 + $0x28] ss:$16 sps:$4 sm:$0xff]  }
  0xdc   :  { %v324_v21 = vshrl.u32 %v21770_v14, 16  ;;  %v327_v5 = vshll.u32 %v21770_v14, 16  ;;  %v321_v25 = vrot.slane %v319_v17, 5  ;;  %v1168_v26 = vrot.slane %v294_v11, 5  ;;  %v20529_v63 = vld [vmem:[#allocation4 + $0x4c] ss:$16 sps:$4 sm:$0xff]  }
  0xdd   :  { %v316_v23 = vor.u32 %v315_v16, %v311_v15  ;;  %v306_v27 = vor.u32 %v305_v20, %v302_v19  ;;  %v1167_v33 = vrot.slane %v1165_v18, 4  ;;  %v20506_v2 = vld [vmem:[#allocation4 + $0x40] ss:$16 sps:$4 sm:$0xff]   ;;  %v20513_v3 = vld [vmem:[#allocation4 + $0x64] ss:$16 sps:$4 sm:$0xff]   ;;  %v21830_v13 = vcombine.low %v21762_v7, %v21759_v4 }
  0xde   :  { %v326_v28 = vrot.slane %v324_v21, 4  ;;  %v329_v29 = vrot.slane %v327_v5, 5  ;;  %v21787_v32 = vld [vmem:[#allocation2 + $0x10] sm:$0xf]  ;;  %v20536_v8 = vld [vmem:[#allocation4 + $0x6c] ss:$16 sps:$4 sm:$0xff]  }
  0xdf   :  { %v317_v31 = vrot.slane %v316_v23, 4  ;;  %v307_v34 = vrot.slane %v306_v27, 4  ;;  %v333_v36 = vshll.u32 %v21787_v32, 16  ;;  %v337_v37 = vshrl.u32 %v21787_v32, 16  ;;  %v20527_v6 = vld [vmem:[#allocation4 + $0x48] ss:$16 sps:$4 sm:$0xff]  }
  0xe0   :  { %v330_v35 = vor.u32 %v329_v29, %v326_v28  ;;  %v21797_v40 = vsel %vm21783_vm14, %v1167_v33, %v1168_v26  ;;  %v1172_v41 = vrot.slane %v21787_v32, 5  ;;  %v20511_v9 = vld [vmem:[#allocation4 + $0x60] ss:$16 sps:$4 sm:$0xff]   ;;  %v20520_v10 = vld [vmem:[#allocation6 + $0x84] ss:$16 sps:$4 sm:$0xff]   ;;  %v21840_v5 = vcombine.low %v21770_v14, %v21787_v32 }
  0xe1   :  { %v322_v38 = vsel %vm21777_vm13, %v317_v31, %v321_v25  ;;  %v295_v39 = vld [vmem:[#allocation2 + $0x14] sm:$0x1]  ;;  %v312_v43 = vsel %vm21777_vm13, %v307_v34, %v311_v15  ;;  %v335_v45 = vrot.slane %v333_v36, 5  ;;  %v339_v46 = vrot.slane %v337_v37, 4  ;;  %v20534_v11 = vld [vmem:[#allocation4 + $0x68] ss:$16 sps:$4 sm:$0xff]  }
  0xe2   :  { %v331_v44 = vrot.slane %v330_v35, 4  ;;  %v21802_v47 = vcombine.low %v312_v43, %v322_v38  ;;  %v343_v49 = vshll.u32 %v295_v39, 16  ;;  %v1174_v53 = vrot.slane %v1172_v41, 4  ;;  %v20542_v12 = vld [vmem:[#allocation6 + $0x8c] ss:$16 sps:$4 sm:$0xff]  }
  0xe3   :  { %v340_v51 = vor.u32 %v339_v46, %v335_v45  ;;  %v1175_v54 = vrot.slane %v295_v39, 5  ;;  %v20518_v15 = vld [vmem:[#allocation6 + $0x80] ss:$16 sps:$4 sm:$0xff]   ;;  %v20526_v16 = vld [vmem:[#allocation6 + $0xa4] ss:$16 sps:$4 sm:$0xff]   ;;  %vm7310_vm3 = vcmask 1040384  }
  0xe4   :  { %16487 = vmatmul.mubr.msk.bf16.vlgmr.msra.gmra.mrb[0].mxu0 %vm450_vm15, %v21802_v47  ;;  %v345_v55 = vrot.slane %v343_v49, 5  ;;  %16489 = vmatmul.mubr.msk.bf16.vlgmr.msra.gmra.mrb[0].mxu1 %vm450_vm15, %v21802_v47  ;;  %v336_v58 = vsel %vm21777_vm13, %v331_v44, %v335_v45  ;;  %v20540_v17 = vld [vmem:[#allocation6 + $0x88] ss:$16 sps:$4 sm:$0xff]   ;;  %v20548_v19 = vld [vmem:[#allocation6 + $0xac] ss:$16 sps:$4 sm:$0xff]   ;;  %vm7311_vm6 = vmand %vm7310_vm3, %vm179_vm1 }
  0xe5   :  { %660 = vmatpush1.bf16.msra.mxu0 %v20495_v42  ;;  %499 = vmatprep.mubr.bf16.mxu0 %v21483_v0  ;;  %v341_v59 = vrot.slane %v340_v51, 4  ;;  %v21815_v60 = vsel %vm21783_vm14, %v1174_v53, %v1175_v54  ;;  %v20524_v20 = vld [vmem:[#allocation6 + $0xa0] ss:$16 sps:$4 sm:$0xff]   ;;  %v20532_v21 = vld [vmem:[#allocation6 + $0xc4] ss:$16 sps:$4 sm:$0xff]   ;;  %vm7328_vm10 = vmand %vm7310_vm3, %vm187_vm2  ;;  %vm7466_vm3 = vcmask 1047556  }
  0xe6   :  { %661 = vmatprep.subr.bf16.mxu0 %v20502_v48  ;;  %713 = vmatpush1.bf16.msra.mxu1 %v20515_v50  ;;  %v20546_v7 = vld [vmem:[#allocation6 + $0xa8] ss:$16 sps:$4 sm:$0xff]   ;;  %v20554_v23 = vld [vmem:[#allocation6 + $0xcc] ss:$16 sps:$4 sm:$0xff]   ;;  %v20530_v25 = vld [vmem:[#allocation6 + $0xc0] ss:$16 sps:$4 sm:$0xff]  }
  0xe7   :  { %v346_v62 = vsel %vm21777_vm13, %v341_v59, %v345_v55  ;;  %714 = vmatprep.subr.bf16.mxu1 %v20523_v52  ;;  %552 = vmatprep.mubr.bf16.mxu1 %v21483_v0  ;;  %v20539_v26 = vld [vmem:[#allocation6 + $0xe4] ss:$16 sps:$4 sm:$0xff]   ;;  %v1154_v27 = vld [vmem:[#allocation2] sm:$0xe]  ;;  %v20560_v31 = vld [vmem:[#allocation6 + $0xec] ss:$16 sps:$4 sm:$0xff]  }
  0xe8   :  { %v21820_v1 = vcombine.low %v336_v58, %v346_v62  ;;  %v20552_v28 = vld [vmem:[#allocation6 + $0xc8] ss:$16 sps:$4 sm:$0xff]   ;;  %v16553_v29 = vrot.slane %v1154_v27, 9  ;;  %v20537_v33 = vld [vmem:[#allocation6 + $0xe0] ss:$16 sps:$4 sm:$0xff]  }
  0xe9   :  { %662 = vmatpush1.bf16.msra.mxu0 %v20500_v56  ;;  %v20545_v34 = vld [vmem:[#allocation6 + $0x4] ss:$16 sps:$4 sm:$0xff]   ;;  %v20558_v36 = vld [vmem:[#allocation6 + $0xe8] ss:$16 sps:$4 sm:$0xff]   ;;  %v20566_v38 = vld [vmem:[#allocation6 + $0xc] ss:$16 sps:$4 sm:$0xff]  }
  0xea   :  { %663 = vmatprep.subr.bf16.mxu0 %v20508_v57  ;;  %715 = vmatpush1.bf16.msra.mxu1 %v20521_v61  ;;  %v1166_v14 = vsel %vm21783_vm14, %v16553_v29, %v1165_v18  ;;  %v1155_v37 = vld [vmem:[#allocation2 + $0xc] sm:$0xe]  ;;  %v20543_v4 = vld [vmem:[#allocation6] ss:$16 sps:$4 sm:$0xff]   ;;  %v20572_v44 = vld [vmem:[#allocation6 + $0x2c] ss:$16 sps:$4 sm:$0xff]  }
  0xeb   :  { %716 = vmatprep.subr.bf16.mxu1 %v20529_v63  ;;  %v21852_v35 = vcombine.low %v1166_v14, %v21797_v40  ;;  %v16554_v39 = vrot.slane %v1155_v37, 9  ;;  %v20551_v18 = vld [vmem:[#allocation6 + $0x24] ss:$16 sps:$4 sm:$0xff]   ;;  %v20564_v40 = vld [vmem:[#allocation6 + $0x8] ss:$16 sps:$4 sm:$0xff]  }
  0xec   :  { %16488 = vmatmul.mubr.msk.bf16.gmra.mrb[4].mxu0 %vm450_vm15, %v21820_v1  ;;  %16490 = vmatmul.mubr.msk.bf16.gmra.mrb[4].mxu1 %vm450_vm15, %v21820_v1  ;;  %v20549_v45 = vld [vmem:[#allocation6 + $0x20] ss:$16 sps:$4 sm:$0xff]   ;;  %v20557_v46 = vld [vmem:[#allocation6 + $0x44] ss:$16 sps:$4 sm:$0xff]   ;;  %v20578_v49 = vld [vmem:[#allocation6 + $0x4c] ss:$16 sps:$4 sm:$0xff]  }
  0xed   :  { %664 = vmatpush1.bf16.msra.mxu0 %v20506_v2  ;;  %691 = vmatprep.mubr.bf16.mxu0 %v21483_v0  ;;  %v1173_v42 = vsel %vm21783_vm14, %v16554_v39, %v1172_v41  ;;  %v20555_v32 = vld [vmem:[#allocation6 + $0x40] ss:$16 sps:$4 sm:$0xff]   ;;  %v20570_v41 = vld [vmem:[#allocation6 + $0x28] ss:$16 sps:$4 sm:$0xff]   ;;  %v20563_v48 = vld [vmem:[#allocation6 + $0x64] ss:$16 sps:$4 sm:$0xff]  }
  0xee   :  { %665 = vmatprep.subr.bf16.mxu0 %v20513_v3  ;;  %717 = vmatpush1.bf16.msra.mxu1 %v20527_v6  ;;  %v21860_v43 = vcombine.low %v1173_v42, %v21815_v60  ;;  %v20576_v50 = vld [vmem:[#allocation6 + $0x48] ss:$16 sps:$4 sm:$0xff]   ;;  %v20584_v51 = vld [vmem:[#allocation6 + $0x6c] ss:$16 sps:$4 sm:$0xff]   ;;  %v20561_v52 = vld [vmem:[#allocation6 + $0x60] ss:$16 sps:$4 sm:$0xff]  }
  0xef   :  { %718 = vmatprep.subr.bf16.mxu1 %v20536_v8  ;;  %744 = vmatprep.mubr.bf16.mxu1 %v21483_v0  ;;  %v20569_v53 = vld [vmem:[#allocation4 + $0x104] ss:$16 sps:$4 sm:$0xff]   ;;  %v20590_v54 = vld [vmem:[#allocation4 + $0x10c] ss:$16 sps:$4 sm:$0xff]   ;;  %v20567_v55 = vld [vmem:[#allocation4 + $0x100] ss:$16 sps:$4 sm:$0xff]  }
  0xf0   :  { %v20575_v56 = vld [vmem:[#allocation4 + $0x124] ss:$16 sps:$4 sm:$0xff]   ;;  %v20588_v57 = vld [vmem:[#allocation4 + $0x108] ss:$16 sps:$4 sm:$0xff]   ;;  %v20596_v58 = vld [vmem:[#allocation4 + $0x12c] ss:$16 sps:$4 sm:$0xff]  }
  0xf1   :  { %666 = vmatpush1.bf16.msra.mxu0 %v20511_v9  ;;  %v20573_v59 = vld [vmem:[#allocation4 + $0x120] ss:$16 sps:$4 sm:$0xff]   ;;  %v20581_v60 = vld [vmem:[#allocation4 + $0x144] ss:$16 sps:$4 sm:$0xff]   ;;  %v20594_v61 = vld [vmem:[#allocation4 + $0x128] ss:$16 sps:$4 sm:$0xff]  }
  0xf2   :  { %862 = vmatprep.subr.bf16.mxu0 %v20520_v10  ;;  %719 = vmatpush1.bf16.msra.mxu1 %v20534_v11  ;;  %v20602_v62 = vld [vmem:[#allocation4 + $0x14c] ss:$16 sps:$4 sm:$0xff]   ;;  %v20579_v63 = vld [vmem:[#allocation4 + $0x140] ss:$16 sps:$4 sm:$0xff]   ;;  %v20600_v2 = vld [vmem:[#allocation4 + $0x148] ss:$16 sps:$4 sm:$0xff]  }
  0xf3   :  { %915 = vmatprep.subr.bf16.mxu1 %v20542_v12  ;;  %v20608_v3 = vld [vmem:[#allocation4 + $0x16c] ss:$16 sps:$4 sm:$0xff]   ;;  %v20585_v6 = vld [vmem:[#allocation4 + $0x160] ss:$16 sps:$4 sm:$0xff]   ;;  %v20593_v8 = vld [vmem:[#allocation6 + $0x104] ss:$16 sps:$4 sm:$0xff]  }
  0xf4   :  { %16509 = vmatmul.mubr.msk.bf16.vlgmr.msra.gmra.mrb[0].mxu0 %vm450_vm15, %v21830_v13  ;;  %v20606_v9 = vld [vmem:[#allocation4 + $0x168] ss:$16 sps:$4 sm:$0xff]   ;;  %v20614_v10 = vld [vmem:[#allocation6 + $0x10c] ss:$16 sps:$4 sm:$0xff]   ;;  %v20591_v11 = vld [vmem:[#allocation6 + $0x100] ss:$16 sps:$4 sm:$0xff]  }
  0xf5   :  { %863 = vmatpush1.bf16.msra.mxu0 %v20518_v15  ;;  %701 = vmatprep.mubr.bf16.mxu0 %v21483_v0  ;;  %v20599_v12 = vld [vmem:[#allocation6 + $0x124] ss:$16 sps:$4 sm:$0xff]   ;;  %v20617_v15 = vld [vmem:[#allocation6 + $0x12c] ss:$16 sps:$4 sm:$0xff]   ;;  %vm7313_vm5 = vsmask.f32 4352 }
  0xf6   :  { %864 = vmatprep.subr.bf16.mxu0 %v20526_v16  ;;  %16511 = vmatmul.mubr.msk.bf16.vlgmr.msra.gmra.mrb[0].mxu1 %vm450_vm15, %v21830_v13  ;;  %v20597_v16 = vld [vmem:[#allocation6 + $0x120] ss:$16 sps:$4 sm:$0xff]   ;;  %v21911_v27 = vld [vmem:[%s26518_s11 + $0x80] sm:$0xff]  ;;  %v21955_v39 = vld [vmem:[%s26518_s11 + $0x90] sm:$0xff]  ;;  %vm7329_vm1 = vsmask.f32 7954 }
  0xf7   :  { %916 = vmatpush1.bf16.msra.mxu1 %v20540_v17  ;;  %754 = vmatprep.mubr.bf16.mxu1 %v21483_v0  ;;  %v20605_v17 = vld [vmem:[#allocation6 + $0x144] ss:$16 sps:$4 sm:$0xff]   ;;  %v1882_v29 = vand.u32 4294901760, %v21911_v27  ;;  %vm7314_vm8 = vmand %vm7312_vm4, %vm7313_vm5 }
  0xf8   :  { %917 = vmatprep.subr.bf16.mxu1 %v20548_v19  ;;  %v20615_v19 = vld [vmem:[#allocation6 + $0x128] ss:$16 sps:$4 sm:$0xff]   ;;  %vm24089_vm9 = vmor %vm7314_vm8, %vm7311_vm6 }
  0xf9   :  { %865 = vmatpush1.bf16.msra.mxu0 %v20524_v20  ;;  %v20620_v20 = vld [vmem:[#allocation6 + $0x14c] ss:$16 sps:$4 sm:$0xff]   ;;  %vm7330_vm11 = vmand %vm7312_vm4, %vm7329_vm1 }
  0xfa   :  { %866 = vmatprep.subr.bf16.mxu0 %v20532_v21  ;;  %v20603_v21 = vld [vmem:[#allocation6 + $0x140] ss:$16 sps:$4 sm:$0xff]   ;;  %vm7331_vm12 = vmor %vm7330_vm11, %vm7328_vm10 }
  0xfb   :  { %918 = vmatpush1.bf16.msra.mxu1 %v20546_v7  ;;  %v20611_v7 = vld [vmem:[#allocation6 + $0x164] ss:$16 sps:$4 sm:$0xff]   ;;  %vm7467_vm5 = vmand %vm7466_vm3, %vm7329_vm1 }
  0xfc   :  { %16510 = vmatmul.mubr.msk.bf16.gmra.mrb[4].mxu0 %vm450_vm15, %v21840_v5  ;;  %919 = vmatprep.subr.bf16.mxu1 %v20554_v23  ;;  %v20623_v23 = vld [vmem:[#allocation6 + $0x16c] ss:$16 sps:$4 sm:$0xff]  }
  0xfd   :  { %867 = vmatpush1.bf16.msra.mxu0 %v20530_v25  ;;  %894 = vmatprep.mubr.bf16.mxu0 %v21483_v0  ;;  %v20609_v25 = vld [vmem:[#allocation6 + $0x160] ss:$16 sps:$4 sm:$0xff]  }
  0xfe   :  { %868 = vmatprep.subr.bf16.mxu0 %v20539_v26  ;;  %16512 = vmatmul.mubr.msk.bf16.gmra.mrb[4].mxu1 %vm450_vm15, %v21840_v5  ;;  %v20621_v26 = vld [vmem:[#allocation6 + $0x168] ss:$16 sps:$4 sm:$0xff]  }
  0xff   :  { %920 = vmatpush1.bf16.msra.mxu1 %v20552_v28  ;;  %947 = vmatprep.mubr.bf16.mxu1 %v21483_v0  ;;  %v21916_v28 = vld [vmem:[%s26518_s11 + $0x88] sm:$0xff] }
 0x100   :  { %921 = vmatprep.subr.bf16.mxu1 %v20560_v31  ;;  %v21923_v31 = vld [vmem:[%s26518_s11] sm:$0xff] }
 0x101   :  { %869 = vmatpush1.bf16.msra.mxu0 %v20537_v33  ;;  %v21928_v33 = vld [vmem:[%s26518_s11 + $0x8] sm:$0xff]  ;;  %v1834_v14 = vand.u32 4294901760, %v21923_v31 }
 0x102   :  { %1048 = vmatprep.subr.bf16.mxu0 %v20545_v34  ;;  %v1837_v34 = vand.u32 4294901760, %v21928_v33 }
 0x103   :  { %922 = vmatpush1.bf16.msra.mxu1 %v20558_v36  ;;  %v21945_v37 = vsub.f32 %v21923_v31, %v1834_v14 }
 0x104   :  { %16529 = vmatmul.mubr.msk.bf16.vlgmr.msra.gmra.mrb[8].mxu0 %vm450_vm15, %v21802_v47  ;;  %1101 = vmatprep.subr.bf16.mxu1 %v20566_v38  ;;  %v21950_v38 = vsub.f32 %v21928_v33, %v1837_v34 }
 0x105   :  { %1049 = vmatpush1.bf16.msra.mxu0 %v20543_v4  ;;  %904 = vmatprep.mubr.bf16.mxu0 %v21483_v0  ;;  %v21960_v4 = vld [vmem:[%s26518_s11 + $0x98] sm:$0xff] }
 0x106   :  { %1050 = vmatprep.subr.bf16.mxu0 %v20551_v18  ;;  %16531 = vmatmul.mubr.msk.bf16.vlgmr.msra.gmra.mrb[8].mxu1 %vm450_vm15, %v21802_v47  ;;  %v20582_v47 = vld [vmem:[#allocation6 + $0x68] ss:$16 sps:$4 sm:$0xff]  }
 0x107   :  { %1102 = vmatpush1.bf16.msra.mxu1 %v20564_v40  ;;  %957 = vmatprep.mubr.bf16.mxu1 %v21483_v0  ;;  %v1888_v40 = vand.u32 4294901760, %v21955_v39 }
 0x108   :  { %1103 = vmatprep.subr.bf16.mxu1 %v20572_v44  ;;  %v21969_v44 = vld [vmem:[%s26518_s11 + $0x10] sm:$0xff] }
 0x109   :  { %1051 = vmatpush1.bf16.msra.mxu0 %v20549_v45  ;;  %v21974_v45 = vld [vmem:[%s26518_s11 + $0x18] sm:$0xff] }
 0x10a   :  { %1052 = vmatprep.subr.bf16.mxu0 %v20557_v46  ;;  %v26531_v46 = vand.u32 4294901760, %v21945_v37 }
 0x10b   :  { %1104 = vmatpush1.bf16.msra.mxu1 %v20570_v41  ;;  %v1840_v41 = vand.u32 4294901760, %v21969_v44 }
 0x10c   :  { %16530 = vmatmul.mubr.msk.bf16.gmra.mrb[12].mxu0 %vm450_vm15, %v21820_v1  ;;  %1105 = vmatprep.subr.bf16.mxu1 %v20578_v49 }
 0x10d   :  { %1053 = vmatpush1.bf16.msra.mxu0 %v20555_v32  ;;  %1080 = vmatprep.mubr.bf16.mxu0 %v21483_v0  ;;  %v26530_v32 = vand.u32 4294901760, %v21950_v38 }
 0x10e   :  { %1054 = vmatprep.subr.bf16.mxu0 %v20563_v48  ;;  %16532 = vmatmul.mubr.msk.bf16.gmra.mrb[12].mxu1 %vm450_vm15, %v21820_v1  ;;  %v20587_v1 = vld [vmem:[#allocation4 + $0x164] ss:$16 sps:$4 sm:$0xff]  }
 0x10f   :  { %1106 = vmatpush1.bf16.msra.mxu1 %v20576_v50  ;;  %1133 = vmatprep.mubr.bf16.mxu1 %v21483_v0  ;;  %v21988_v50 = vsub.f32 %v21955_v39, %v1888_v40 }
 0x110   :  { %1107 = vmatprep.subr.bf16.mxu1 %v20584_v51 }
 0x111   :  { %1055 = vmatpush1.bf16.msra.mxu0 %v20561_v52  ;;  %v1949_v52 = vsub.f32 %v21945_v37, %v26531_v46 }
 0x112   :  { %1286 = vmatprep.subr.bf16.mxu0 %v20569_v53  ;;  %v1956_v53 = vsub.f32 %v21950_v38, %v26530_v32 }
 0x113   :  { %1108 = vmatpush1.bf16.msra.mxu1 %v20582_v47  ;;  %v1843_v47 = vand.u32 4294901760, %v21974_v45 }
 0x114   :  { %16549 = vmatmul.mubr.msk.bf16.vlgmr.msra.gmra.mrb[8].mxu0 %vm450_vm15, %v21830_v13  ;;  %1339 = vmatprep.subr.bf16.mxu1 %v20590_v54 }
 0x115   :  { %1287 = vmatpush1.bf16.msra.mxu0 %v20567_v55  ;;  %1090 = vmatprep.mubr.bf16.mxu0 %v21483_v0 }
 0x116   :  { %1288 = vmatprep.subr.bf16.mxu0 %v20575_v56  ;;  %16551 = vmatmul.mubr.msk.bf16.vlgmr.msra.gmra.mrb[8].mxu1 %vm450_vm15, %v21830_v13  ;;  %v20612_v13 = vld [vmem:[#allocation6 + $0x108] ss:$16 sps:$4 sm:$0xff]   ;;  %v26529_v56 = vand.u32 4294901760, %v21988_v50 }
 0x117   :  { %1340 = vmatpush1.bf16.msra.mxu1 %v20588_v57  ;;  %1143 = vmatprep.mubr.bf16.mxu1 %v21483_v0 }
 0x118   :  { %1341 = vmatprep.subr.bf16.mxu1 %v20596_v58  ;;  %v22007_v58 = vld [vmem:[%s26518_s11 + $0xa0] sm:$0xff] }
 0x119   :  { %1289 = vmatpush1.bf16.msra.mxu0 %v20573_v59  ;;  %v22012_v59 = vld [vmem:[%s26518_s11 + $0xa8] sm:$0xff] }
 0x11a   :  { %1290 = vmatprep.subr.bf16.mxu0 %v20581_v60  ;;  %v1950_v60 = vand.u32 4294901760, %v1949_v52 }
 0x11b   :  { %1342 = vmatpush1.bf16.msra.mxu1 %v20594_v61  ;;  %v1957_v61 = vand.u32 4294901760, %v1956_v53 }
 0x11c   :  { %16550 = vmatmul.mubr.msk.bf16.gmra.mrb[12].mxu0 %vm450_vm15, %v21840_v5  ;;  %1343 = vmatprep.subr.bf16.mxu1 %v20602_v62  ;;  %v22017_v62 = vsub.f32 %v21969_v44, %v1840_v41 }
 0x11d   :  { %1291 = vmatpush1.bf16.msra.mxu0 %v20579_v63  ;;  %1318 = vmatprep.mubr.bf16.mxu0 %v21483_v0 }
 0x11e   :  { %1292 = vmatprep.subr.bf16.mxu0 %v20587_v1  ;;  %16552 = vmatmul.mubr.msk.bf16.gmra.mrb[12].mxu1 %vm450_vm15, %v21840_v5  ;;  %v20618_v5 = vld [vmem:[#allocation6 + $0x148] ss:$16 sps:$4 sm:$0xff]   ;;  %v2075_v1 = vsub.f32 %v21988_v50, %v26529_v56 }
 0x11f   :  { %1344 = vmatpush1.bf16.msra.mxu1 %v20600_v2  ;;  %1371 = vmatprep.mubr.bf16.mxu1 %v21483_v0 }
 0x120   :  { %1345 = vmatprep.subr.bf16.mxu1 %v20608_v3  ;;  %v22030_v3 = vld [vmem:[%s26518_s11 + $0x20] sm:$0xff] }
 0x121   :  { %1293 = vmatpush1.bf16.msra.mxu0 %v20585_v6  ;;  %v22032_v6 = vpack.c.bf16 %v1957_v61, %v1950_v60  ;;  %v22102_v61 = vld [vmem:[%s26518_s11 + $0x30] sm:$0xff] }
 0x122   :  { %1505 = vmatprep.subr.bf16.mxu0 %v20593_v8  ;;  %v26522_v8 = vand.u32 4294901760, %v22017_v62  ;;  %v27058_v30 = vand.u32 4294901760, %v22102_v61 }
 0x123   :  { %1346 = vmatpush1.bf16.msra.mxu1 %v20606_v9  ;;  %27031 = vst [vmem:[#allocation31_spill] sm:$0xff] %v22032_v6  ;;  %v22038_v9 = vsub.f32 %v21974_v45, %v1843_v47 }
 0x124   :  { %16573 = vmatmul.mubr.msk.bf16.vlgmr.msra.gmra.mrb[0].mxu0 %vm450_vm15, %v21852_v35  ;;  %1558 = vmatprep.subr.bf16.mxu1 %v20614_v10  ;;  %v22043_v10 = vld [vmem:[%s26518_s11 + $0x28] sm:$0xff] }
 0x125   :  { %1506 = vmatpush1.bf16.msra.mxu0 %v20591_v11  ;;  %1328 = vmatprep.mubr.bf16.mxu0 %v21483_v0  ;;  %v22048_v11 = vld [vmem:[%s26518_s11 + $0xb0] sm:$0xff] }
 0x126   :  { %1507 = vmatprep.subr.bf16.mxu0 %v20599_v12  ;;  %16575 = vmatmul.mubr.msk.bf16.vlgmr.msra.gmra.mrb[0].mxu1 %vm450_vm15, %v21852_v35  ;;  %v2076_v12 = vand.u32 4294901760, %v2075_v1  ;;  %v22107_v1 = vld [vmem:[%s26518_s11 + $0x38] sm:$0xff] }
 0x127   :  { %1381 = vmatprep.mubr.bf16.mxu1 %v21483_v0  ;;  %1559 = vmatpush1.bf16.msra.mxu1 %v20612_v13  ;;  %v27059_v22 = vand.u32 4294901760, %v22107_v1 }
 0x128   :  { %1560 = vmatprep.subr.bf16.mxu1 %v20617_v15  ;;  %v1894_v15 = vand.u32 4294901760, %v22007_v58 }
 0x129   :  { %1508 = vmatpush1.bf16.msra.mxu0 %v20597_v16  ;;  %v22055_v16 = vld [vmem:[%s26518_s11 + $0xb8] sm:$0xff]  ;;  %v22312_v24 = vpack.c.bf16 %v27059_v22, %v27058_v30  ;;  %v1782_v22 = vld [vmem:[%s26518_s11 + $0x68] sm:$0xff]  ;;  %v1799_v30 = vld [vmem:[%s26518_s11 + $0xf0] sm:$0xff] }
 0x12a   :  { %1509 = vmatprep.subr.bf16.mxu0 %v20605_v17  ;;  %v1963_v17 = vsub.f32 %v22017_v62, %v26522_v8 }
 0x12b   :  { %1561 = vmatpush1.bf16.msra.mxu1 %v20615_v19  ;;  %v26521_v19 = vand.u32 4294901760, %v22038_v9  ;;  %27060 = vst [vmem:[#allocation58_spill] sm:$0xff] %v22312_v24 }
 0x12c   :  { %16574 = vmatmul.mubr.msk.bf16.gmra.mrb[4].mxu0 %vm450_vm15, %v21860_v43  ;;  %1562 = vmatprep.subr.bf16.mxu1 %v20620_v20  ;;  %v1897_v20 = vand.u32 4294901760, %v22012_v59 }
 0x12d   :  { %1510 = vmatpush1.bf16.msra.mxu0 %v20603_v21  ;;  %1537 = vmatprep.mubr.bf16.mxu0 %v21483_v0  ;;  %v1846_v21 = vand.u32 4294901760, %v22030_v3 }
 0x12e   :  { %1511 = vmatprep.subr.bf16.mxu0 %v20611_v7  ;;  %16576 = vmatmul.mubr.msk.bf16.gmra.mrb[4].mxu1 %vm450_vm15, %v21860_v43 }
 0x12f   :  { %1563 = vmatpush1.bf16.msra.mxu1 %v20618_v5  ;;  %1590 = vmatprep.mubr.bf16.mxu1 %v21483_v0  ;;  %v22069_v5 = vsub.f32 %v22007_v58, %v1894_v15  ;;  %v22084_v52 = vsub.f32 %v22030_v3, %v1846_v21 }
 0x130   :  { %1564 = vmatprep.subr.bf16.mxu1 %v20623_v23  ;;  %v1849_v23 = vand.u32 4294901760, %v22043_v10 }
 0x131   :  { %1512 = vmatpush1.bf16.msra.mxu0 %v20609_v25  ;;  %v1900_v25 = vand.u32 4294901760, %v22048_v11  ;;  %v26528_v53 = vand.u32 4294901760, %v22069_v5 }
 0x133   :  { %1565 = vmatpush1.bf16.msra.mxu1 %v20621_v26  ;;  %v1964_v26 = vand.u32 4294901760, %v1963_v17  ;;  %v22097_v60 = vsub.f32 %v22048_v11, %v1900_v25  ;;  %v26525_v17 = vand.u32 4294901760, %v22084_v52 }
 0x134   :  { %16593 = vmatmul.mubr.msk.bf16.vlgmr.msra.gmra.mrb[8].mxu0 %vm450_vm15, %v21852_v35 }
 0x135   :  { %1547 = vmatprep.mubr.bf16.mxu0 %v21483_v0  ;;  %27034 = vst [vmem:[#allocation34_spill] sm:$0xff] %v22097_v60 }
 0x136   :  { %16595 = vmatmul.mubr.msk.bf16.vlgmr.msra.gmra.mrb[8].mxu1 %vm450_vm15, %v21852_v35  ;;  %v21935_v35 = vsub.f32 %v21911_v27, %v1882_v29 }
 0x137   :  { %1600 = vmatprep.mubr.bf16.mxu1 %v21483_v0  ;;  %v1885_v0 = vand.u32 4294901760, %v21916_v28 }
 0x138   :  { %v26538_v18 = vand.u32 4294901760, %v21935_v35 }
 0x139   :  { %v21940_v36 = vsub.f32 %v21916_v28, %v1885_v0 }
 0x13a   :  { %v2061_v48 = vsub.f32 %v21935_v35, %v26538_v18 }
 0x13b   :  { %v26532_v42 = vand.u32 4294901760, %v21940_v36 }
 0x13c   :  { %16594 = vmatmul.mubr.msk.bf16.gmra.mrb[12].mxu0 %vm450_vm15, %v21860_v43  ;;  %v2062_v54 = vand.u32 4294901760, %v2061_v48  ;;  %v1970_v48 = vsub.f32 %v22038_v9, %v26521_v19  ;;  %v2089_v19 = vsub.f32 %v22069_v5, %v26528_v53  ;;  %v26539_v53 = vand.u32 4294901760, %v22107_v1 }
 0x13d   :  { %v2068_v49 = vsub.f32 %v21940_v36, %v26532_v42 }
 0x13e   :  { %16596 = vmatmul.mubr.msk.bf16.gmra.mrb[12].mxu1 %vm450_vm15, %v21860_v43  ;;  %v1891_v43 = vand.u32 4294901760, %v21960_v4  ;;  %vm7464_vm15 = vcmask 1043456  }
 0x13f   :  { %v2069_v55 = vand.u32 4294901760, %v2068_v49  ;;  %v22079_v49 = vsub.f32 %v22012_v59, %v1897_v20  ;;  %vm24152_vm4 = vmand %vm7464_vm15, %vm187_vm2 }
 0x140   :  { %v21993_v51 = vsub.f32 %v21960_v4, %v1891_v43  ;;  %v22177_v56 = vpack.c.bf16 %v1891_v43, %v1888_v40  ;;  %v22198_v4 = vsub.f32 %v22107_v1, %v26539_v53  ;;  %vm24166_vm2 = vmor %vm7467_vm5, %vm24152_vm4 }
 0x141   :  { %v22019_v63 = vpack.c.bf16 %v2069_v55, %v2062_v54  ;;  %v22091_v54 = vsub.f32 %v22043_v10, %v1849_v23  ;;  %v1903_v55 = vand.u32 4294901760, %v22055_v16 }
 0x142   :  { %v26523_v57 = vand.u32 4294901760, %v21993_v51  ;;  %27039 = vst [vmem:[#allocation39_spill] sm:$0xff] %v22177_v56  ;;  %27043 = vst [vmem:[#allocation43_spill] sm:$0xff] %v22198_v4 }
 0x143   :  { %27030 = vst [vmem:[#allocation30_spill] sm:$0xff] %v22019_v63  ;;  %18738 = vmatprep.subr.bf16.mxu1 %v22019_v63  ;;  %27033 = vst [vmem:[#allocation33_spill] sm:$0xff] %v22091_v54  ;;  %v26526_v8 = vand.u32 4294901760, %v22091_v54  ;;  %v22125_v27 = vsub.f32 %v22055_v16, %v1903_v55 }
 0x144   :  { %v2082_v2 = vsub.f32 %v21993_v51, %v26523_v57  ;;  %18740 = vmatpush3.bf16.msra.mxu1 %v22032_v6  ;;  %v26527_v57 = vand.u32 4294901760, %v22097_v60 }
 0x145   :  { %27036 = vst [vmem:[#allocation36_spill] sm:$0xff] %v22125_v27  ;;  %v1984_v31 = vsub.f32 %v22091_v54, %v26526_v8 }
 0x146   :  { %v2083_v13 = vand.u32 4294901760, %v2082_v2  ;;  %v22113_v2 = vpack.c.bf16 %v1885_v0, %v1882_v29  ;;  %v22137_v0 = vpack.c.bf16 %v1837_v34, %v1834_v14  ;;  %v2103_v33 = vsub.f32 %v22097_v60, %v26527_v57  ;;  %v22162_v34 = vld [vmem:[%s26518_s11 + $0x40] sm:$0xff] }
 0x147   :  { %v26537_v14 = vand.u32 4294901760, %v22125_v27  ;;  %v26540_v57 = vand.u32 4294901760, %v22102_v61  ;;  %v1985_v32 = vand.u32 4294901760, %v1984_v31 }
 0x148   :  { %v22064_v7 = vpack.c.bf16 %v2083_v13, %v2076_v12  ;;  %27035 = vst [vmem:[#allocation35_spill] sm:$0xff] %v22113_v2  ;;  %v1971_v12 = vand.u32 4294901760, %v1970_v48  ;;  %v26524_v13 = vand.u32 4294901760, %v22079_v49  ;;  %18706 = vmatprep.subr.bf16.mxu0 %v22113_v2  ;;  %27038 = vst [vmem:[#allocation38_spill] sm:$0xff] %v22137_v0  ;;  %v1977_v48 = vsub.f32 %v22084_v52, %v26525_v17  ;;  %v22167_v17 = vld [vmem:[%s26518_s11 + $0x48] sm:$0xff] }
 0x149   :  { %18708 = vmatpush3.bf16.msra.mxu0 %v22137_v0  ;;  %v2104_v46 = vand.u32 4294901760, %v2103_v33  ;;  %v2110_v42 = vsub.f32 %v22125_v27, %v26537_v14  ;;  %v22193_v39 = vsub.f32 %v22102_v61, %v26540_v57 }
 0x14a   :  { %27032 = vst [vmem:[#allocation32_spill] sm:$0xff] %v22064_v7  ;;  %18742 = vmatprep.subr.bf16.mxu1 %v22064_v7  ;;  %v22127_v28 = vpack.c.bf16 %v1971_v12, %v1964_v26  ;;  %v2096_v29 = vsub.f32 %v22079_v49, %v26524_v13  ;;  %v22145_v26 = vld [vmem:[%s26518_s11 + $0xc0] sm:$0xff]  ;;  %v22150_v12 = vld [vmem:[%s26518_s11 + $0xc8] sm:$0xff]  ;;  %v2090_v13 = vand.u32 4294901760, %v2089_v19  ;;  %v1978_v8 = vand.u32 4294901760, %v1977_v48  ;;  %18710 = vmatprep.subr.bf16.mxu0 %v22177_v56 }
 0x14b   :  { %v22188_v48 = vpack.c.bf16 %v1843_v47, %v1840_v41  ;;  %27042 = vst [vmem:[#allocation42_spill] sm:$0xff] %v22193_v39  ;;  %v2111_v43 = vand.u32 4294901760, %v2110_v42  ;;  %v1906_v44 = vand.u32 4294901760, %v22145_v26  ;;  %v1909_v45 = vand.u32 4294901760, %v22150_v12 }
 0x14c   :  { %27037 = vst [vmem:[#allocation37_spill] sm:$0xff] %v22127_v28  ;;  %18744 = vmatpush3.bf16.msra.mxu1 %v22127_v28  ;;  %v2097_v19 = vand.u32 4294901760, %v2096_v29  ;;  %v22200_v40 = vpack.c.bf16 %v1985_v32, %v1978_v8  ;;  %v26536_v41 = vand.u32 4294901760, %v22193_v39  ;;  %v26535_v47 = vand.u32 4294901760, %v22198_v4 }
 0x14d   :  { %27041 = vst [vmem:[#allocation41_spill] sm:$0xff] %v22188_v48  ;;  %18712 = vmatpush3.bf16.msra.mxu0 %v22188_v48  ;;  %v1861_v32 = vand.u32 4294901760, %v22167_v17  ;;  %v22215_v42 = vpack.c.bf16 %v1897_v20, %v1894_v15  ;;  %v22218_v8 = vpack.c.bf16 %v2111_v43, %v2104_v46  ;;  %v22221_v31 = vsub.f32 %v22145_v26, %v1906_v44 }
 0x14e   :  { %v22182_v29 = vpack.c.bf16 %v2097_v19, %v2090_v13  ;;  %27044 = vst [vmem:[#allocation44_spill] sm:$0xff] %v22200_v40  ;;  %v1858_v13 = vand.u32 4294901760, %v22162_v34  ;;  %v22224_v33 = vsub.f32 %v22150_v12, %v1909_v45  ;;  %v1795_v19 = vld [vmem:[%s26518_s11 + $0xd0] sm:$0xff]  ;;  %v1991_v58 = vsub.f32 %v22193_v39, %v26536_v41  ;;  %v1796_v12 = vld [vmem:[%s26518_s11 + $0xd8] sm:$0xff] }
 0x14f   :  { %27045 = vst [vmem:[#allocation45_spill] sm:$0xff] %v22215_v42  ;;  %27046 = vst [vmem:[#allocation46_spill] sm:$0xff] %v22218_v8  ;;  %v1998_v59 = vsub.f32 %v22198_v4, %v26535_v47  ;;  %v22239_v46 = vpack.c.bf16 %v1849_v23, %v1846_v21  ;;  %18714 = vmatprep.subr.bf16.mxu0 %v22215_v42  ;;  %v26534_v15 = vand.u32 4294901760, %v22221_v31  ;;  %v1912_v21 = vand.u32 4294901760, %v1795_v19 }
 0x150   :  { %27040 = vst [vmem:[#allocation40_spill] sm:$0xff] %v22182_v29  ;;  %18746 = vmatprep.subr.bf16.mxu1 %v22182_v29  ;;  %27047 = vst [vmem:[#allocation47_spill] sm:$0xff] %v22221_v31  ;;  %v26533_v20 = vand.u32 4294901760, %v22224_v33  ;;  %v22246_v26 = vsub.f32 %v22162_v34, %v1858_v13  ;;  %v1992_v3 = vand.u32 4294901760, %v1991_v58  ;;  %v22253_v10 = vsub.f32 %v22167_v17, %v1861_v32  ;;  %v22271_v17 = vld [vmem:[%s26518_s11 + $0x50] sm:$0xff] }
 0x151   :  { %18748 = vmatpush3.bf16.msra.mxu1 %v22200_v40  ;;  %27048 = vst [vmem:[#allocation48_spill] sm:$0xff] %v22224_v33  ;;  %27049 = vst [vmem:[#allocation49_spill] sm:$0xff] %v22239_v46  ;;  %v1999_v43 = vand.u32 4294901760, %v1998_v59  ;;  %18716 = vmatpush3.bf16.msra.mxu0 %v22239_v46  ;;  %v22259_v23 = vpack.c.bf16 %v1903_v55, %v1900_v25  ;;  %v2117_v34 = vsub.f32 %v22221_v31, %v26534_v15  ;;  %v22279_v25 = vld [vmem:[%s26518_s11 + $0x58] sm:$0xff]  ;;  %v22284_v55 = vld [vmem:[%s26518_s11 + $0xe0] sm:$0xff] }
 0x152   :  { %18750 = vmatprep.subr.bf16.mxu1 %v22218_v8  ;;  %27050 = vst [vmem:[#allocation50_spill] sm:$0xff] %v22246_v26  ;;  %27051 = vst [vmem:[#allocation51_spill] sm:$0xff] %v22253_v10  ;;  %v2124_v58 = vsub.f32 %v22224_v33, %v26533_v20  ;;  %v26541_v59 = vand.u32 4294901760, %v22246_v26  ;;  %v26548_v16 = vand.u32 4294901760, %v22253_v10  ;;  %v22289_v20 = vld [vmem:[%s26518_s11 + $0xe8] sm:$0xff]  ;;  %v1915_v47 = vand.u32 4294901760, %v1796_v12 }
 0x153   :  { %27052 = vst [vmem:[#allocation52_spill] sm:$0xff] %v22259_v23  ;;  %v22273_v11 = vpack.c.bf16 %v1999_v43, %v1992_v3  ;;  %v2118_v15 = vand.u32 4294901760, %v2117_v34  ;;  %18718 = vmatprep.subr.bf16.mxu0 %v22259_v23  ;;  %v22299_v14 = vsub.f32 %v1795_v19, %v1912_v21  ;;  %v22301_v18 = vpack.c.bf16 %v1909_v45, %v1906_v44  ;;  %v22318_v44 = vld [vmem:[%s26518_s11 + $0x60] sm:$0xff] }
 0x154   :  { %v2125_v3 = vand.u32 4294901760, %v2124_v58  ;;  %v2005_v43 = vsub.f32 %v22246_v26, %v26541_v59  ;;  %v2012_v41 = vsub.f32 %v22253_v10, %v26548_v16  ;;  %v22305_v58 = vsub.f32 %v1796_v12, %v1915_v47 }
 0x155   :  { %27053 = vst [vmem:[#allocation53_spill] sm:$0xff] %v22273_v11  ;;  %18752 = vmatpush3.bf16.msra.mxu1 %v22273_v11  ;;  %27054 = vst [vmem:[#allocation54_spill] sm:$0xff] %v22299_v14  ;;  %v26551_v59 = vand.u32 4294901760, %v22299_v14  ;;  %v1864_v16 = vand.u32 4294901760, %v22271_v17  ;;  %v1918_v19 = vand.u32 4294901760, %v22284_v55  ;;  %v1921_v61 = vand.u32 4294901760, %v22289_v20  ;;  %18720 = vmatpush3.bf16.msra.mxu0 %v22312_v24 }
 0x156   :  { %27055 = vst [vmem:[#allocation55_spill] sm:$0xff] %v22301_v18  ;;  %v22303_v53 = vpack.c.bf16 %v2125_v3, %v2118_v15  ;;  %v2006_v34 = vand.u32 4294901760, %v2005_v43  ;;  %27057 = vst [vmem:[#allocation57_spill] sm:$0xff] %v22305_v58  ;;  %v2013_v57 = vand.u32 4294901760, %v2012_v41  ;;  %v26550_v45 = vand.u32 4294901760, %v22305_v58  ;;  %18722 = vmatprep.subr.bf16.mxu0 %v22301_v18 }
 0x157   :  { %v1867_v41 = vand.u32 4294901760, %v22279_v25  ;;  %v2131_v15 = vsub.f32 %v22299_v14, %v26551_v59  ;;  %v22338_v12 = vsub.f32 %v22271_v17, %v1864_v16  ;;  %v22340_v3 = vpack.c.bf16 %v1861_v32, %v1858_v13  ;;  %v1800_v17 = vld [vmem:[%s26518_s11 + $0xf8] sm:$0xff] }
 0x158   :  { %27056 = vst [vmem:[#allocation56_spill] sm:$0xff] %v22303_v53  ;;  %18754 = vmatprep.subr.bf16.mxu1 %v22303_v53  ;;  %v22331_v1 = vpack.c.bf16 %v2013_v57, %v2006_v34  ;;  %v22342_v43 = vpack.c.bf16 %v1915_v47, %v1912_v21  ;;  %v2138_v53 = vsub.f32 %v22305_v58, %v26550_v45 }
 0x159   :  { %27062 = vst [vmem:[#allocation60_spill] sm:$0xff] %v22340_v3  ;;  %v22348_v57 = vsub.f32 %v22279_v25, %v1867_v41  ;;  %v22352_v34 = vsub.f32 %v22284_v55, %v1918_v19  ;;  %v2132_v47 = vand.u32 4294901760, %v2131_v15  ;;  %v26556_v13 = vand.u32 4294901760, %v22338_v12  ;;  %18724 = vmatpush3.bf16.msra.mxu0 %v22340_v3 }
 0x15a   :  { %27061 = vst [vmem:[#allocation59_spill] sm:$0xff] %v22331_v1  ;;  %27063 = vst [vmem:[#allocation61_spill] sm:$0xff] %v22342_v43  ;;  %18756 = vmatpush3.bf16.msra.mxu1 %v22331_v1  ;;  %v22360_v32 = vsub.f32 %v22289_v20, %v1921_v61  ;;  %v2139_v21 = vand.u32 4294901760, %v2138_v53  ;;  %v1870_v55 = vand.u32 4294901760, %v22318_v44  ;;  %v1873_v15 = vand.u32 4294901760, %v1782_v22  ;;  %18726 = vmatprep.subr.bf16.mxu0 %v22342_v43 }
 0x15b   :  { %27064 = vst [vmem:[#allocation62_spill] sm:$0xff] %v22352_v34  ;;  %v26558_v25 = vand.u32 4294901760, %v22348_v57  ;;  %v26561_v45 = vand.u32 4294901760, %v22352_v34  ;;  %v2019_v59 = vsub.f32 %v22338_v12, %v26556_v13  ;;  %v1924_v1 = vand.u32 4294901760, %v1799_v30 }
 0x15c   :  { %27065 = vst [vmem:[#allocation63_spill] sm:$0xff] %v22360_v32  ;;  %v26563_v11 = vand.u32 4294901760, %v22360_v32  ;;  %v22370_v8 = vpack.c.bf16 %v2139_v21, %v2132_v47  ;;  %v22379_v40 = vsub.f32 %v22318_v44, %v1870_v55  ;;  %v22385_v47 = vsub.f32 %v1782_v22, %v1873_v15  ;;  %v1783_v44 = vld [vmem:[%s26518_s11 + $0x70] sm:$0xff] }
 0x15d   :  { %v2026_v53 = vsub.f32 %v22348_v57, %v26558_v25  ;;  %v2145_v20 = vsub.f32 %v22352_v34, %v26561_v45  ;;  %v2020_v13 = vand.u32 4294901760, %v2019_v59  ;;  %v1927_v21 = vand.u32 4294901760, %v1800_v17 }
 0x15e   :  { %27066 = vst [vmem:[#allocation64_spill] sm:$0xff] %v22370_v8  ;;  %v2152_v29 = vsub.f32 %v22360_v32, %v26563_v11  ;;  %18758 = vmatprep.subr.bf16.mxu1 %v22370_v8  ;;  %v26570_v7 = vand.u32 4294901760, %v22379_v40  ;;  %v22389_v45 = vsub.f32 %v1799_v30, %v1924_v1  ;;  %v22394_v59 = vpack.c.bf16 %v1921_v61, %v1918_v19  ;;  %v1784_v8 = vld [vmem:[%s26518_s11 + $0x78] sm:$0xff] }
 0x15f   :  { %v2027_v25 = vand.u32 4294901760, %v2026_v53  ;;  %v2146_v28 = vand.u32 4294901760, %v2145_v20  ;;  %v2039_v11 = vand.u32 4294901760, %v22385_v47  ;;  %v2164_v22 = vsub.f32 %v1800_v17, %v1927_v21 }
 0x160   :  { %27067 = vst [vmem:[#allocation65_spill] sm:$0xff] %v22394_v59  ;;  %v2153_v6 = vand.u32 4294901760, %v2152_v29  ;;  %v2033_v30 = vsub.f32 %v22379_v40, %v26570_v7  ;;  %v2158_v20 = vand.u32 4294901760, %v22389_v45  ;;  %v22406_v63 = vpack.c.bf16 %v1867_v41, %v1864_v16 }
 0x161   :  { %v22400_v53 = vpack.c.bf16 %v2027_v25, %v2020_v13  ;;  %v2040_v29 = vsub.f32 %v22385_v47, %v2039_v11  ;;  %v2165_v61 = vand.u32 4294901760, %v2164_v22  ;;  %v1876_v17 = vand.u32 4294901760, %v1783_v44 }
 0x162   :  { %27069 = vst [vmem:[#allocation67_spill] sm:$0xff] %v22406_v63  ;;  %v22408_v19 = vpack.c.bf16 %v2153_v6, %v2146_v28  ;;  %v2034_v43 = vand.u32 4294901760, %v2033_v30  ;;  %v2159_v13 = vsub.f32 %v22389_v45, %v2158_v20  ;;  %18728 = vmatpush3.bf16.msra.mxu0 %v22406_v63  ;;  %v1879_v25 = vand.u32 4294901760, %v1784_v8 }
 0x163   :  { %27068 = vst [vmem:[#allocation66_spill] sm:$0xff] %v22400_v53  ;;  %18760 = vmatpush3.bf16.msra.mxu1 %v22400_v53  ;;  %v22414_v3 = vpack.c.bf16 %v1873_v15, %v1870_v55  ;;  %v2041_v16 = vand.u32 4294901760, %v2040_v29  ;;  %v22417_v41 = vpack.c.bf16 %v1927_v21, %v1924_v1  ;;  %v2166_v6 = vsub.f32 %v2164_v22, %v2165_v61 }
 0x164   :  { %27070 = vst [vmem:[#allocation68_spill] sm:$0xff] %v22408_v19  ;;  %18762 = vmatprep.subr.bf16.mxu1 %v22408_v19  ;;  %v2045_v28 = vsub.f32 %v1783_v44, %v1876_v17  ;;  %18730 = vmatprep.subr.bf16.mxu0 %v22394_v59  ;;  %v2160_v7 = vand.u32 4294901760, %v2159_v13  ;;  %v2052_v18 = vsub.f32 %v1784_v8, %v1879_v25  ;;  %v27093_v19 = vand.u32 4294901760, %v22338_v12 }
 0x165   :  { %27071 = vst [vmem:[#allocation69_spill] sm:$0xff] %v22414_v3  ;;  %27072 = vst [vmem:[#allocation70_spill] sm:$0xff] %v22417_v41  ;;  %v22420_v53 = vpack.c.bf16 %v2041_v16, %v2034_v43  ;;  %v2167_v30 = vand.u32 4294901760, %v2166_v6  ;;  %v22423_v55 = vpack.c.bf16 %v1879_v25, %v1876_v17  ;;  %v22427_v15 = vpack.c.bf16 %v21950_v38, %v21945_v37 }
 0x166   :  { %v2046_v24 = vand.u32 4294901760, %v2045_v28  ;;  %v2053_v23 = vand.u32 4294901760, %v2052_v18  ;;  %18732 = vmatpush3.bf16.msra.mxu0 %v22414_v3  ;;  %v22435_v8 = vpack.c.bf16 %v21940_v36, %v21935_v35  ;;  %v22440_v29 = vpack.c.bf16 %v21993_v51, %v21988_v50 }
 0x167   :  { %27073 = vst [vmem:[#allocation71_spill] sm:$0xff] %v22420_v53  ;;  %27074 = vst [vmem:[#allocation72_spill] sm:$0xff] %v22423_v55  ;;  %18764 = vmatpush3.bf16.msra.mxu1 %v22420_v53  ;;  %v22430_v1 = vpack.c.bf16 %v2167_v30, %v2160_v7  ;;  %18734 = vmatprep.subr.bf16.mxu0 %v22417_v41  ;;  %v22445_v7 = vpack.c.bf16 %v22038_v9, %v22017_v62 }
 0x168   :  { %27075 = vst [vmem:[#allocation73_spill] sm:$0xff] %v22427_v15  ;;  %v2047_v21 = vsub.f32 %v2045_v28, %v2046_v24  ;;  %27077 = vst [vmem:[#allocation75_spill] sm:$0xff] %v22435_v8  ;;  %v2054_v43 = vsub.f32 %v2052_v18, %v2053_v23  ;;  %v22452_v25 = vpack.c.bf16 %v22079_v49, %v22069_v5 }
 0x169   :  { %27076 = vst [vmem:[#allocation74_spill] sm:$0xff] %v22430_v1  ;;  %18766 = vmatprep.subr.bf16.mxu1 %v22430_v1  ;;  %27078 = vst [vmem:[#allocation76_spill] sm:$0xff] %v22440_v29  ;;  %v22456_v16 = vpack.c.bf16 %v22091_v54, %v22084_v52  ;;  %v22462_v6 = vpack.c.bf16 %v22125_v27, %v22097_v60  ;;  %v22466_v30 = vpack.c.bf16 %v22198_v4, %v22193_v39 }
 0x16a   :  { %v2048_v44 = vand.u32 4294901760, %v2047_v21  ;;  %v2055_v17 = vand.u32 4294901760, %v2054_v43  ;;  %18736 = vmatpush3.bf16.msra.mxu0 %v22423_v55  ;;  %27079 = vst [vmem:[#allocation77_spill] sm:$0xff] %v22445_v7  ;;  %27081 = vst [vmem:[#allocation79_spill] sm:$0xff] %v22452_v25  ;;  %v22470_v21 = vpack.c.bf16 %v22224_v33, %v22221_v31  ;;  %v22474_v43 = vpack.c.bf16 %v22253_v10, %v22246_v26 }
 0x16b   :  { %18770 = vmatprep.subr.bf16.mxu0 %v22435_v8  ;;  %27082 = vst [vmem:[#allocation80_spill] sm:$0xff] %v22456_v16  ;;  %27083 = vst [vmem:[#allocation81_spill] sm:$0xff] %v22462_v6  ;;  %v22486_v8 = vpack.c.bf16 %v22360_v32, %v22352_v34  ;;  %v22493_v1 = vpack.c.bf16 %v2164_v22, %v22389_v45  ;;  %v22495_v53 = vpack.c.bf16 %v2052_v18, %v2045_v28 }
 0x16c   :  { %v22448_v13 = vpack.c.bf16 %v2055_v17, %v2048_v44  ;;  %27084 = vst [vmem:[#allocation82_spill] sm:$0xff] %v22466_v30  ;;  %27085 = vst [vmem:[#allocation83_spill] sm:$0xff] %v22470_v21  ;;  %v22478_v44 = vpack.c.bf16 %v22305_v58, %v22299_v14  ;;  %v22482_v17 = vpack.c.bf16 %v22348_v57, %v22338_v12  ;;  %v27094_v58 = vand.u32 4294901760, %v22348_v57  ;;  %v1627_v12 = vld [vmem:[#allocation9] sm:$0xf] }
 0x16d   :  { %27086 = vst [vmem:[#allocation84_spill] sm:$0xff] %v22474_v43  ;;  %27089 = vst [vmem:[#allocation87_spill] sm:$0xff] %v22486_v8  ;;  %v27096_v10 = vand.u32 4294901760, %v22379_v40  ;;  %v22507_v32 = vpack.c.bf16 %v2165_v61, %v2158_v20  ;;  %v22509_v34 = vpack.c.bf16 %v2053_v23, %v2046_v24 }
 0x16e   :  { %27080 = vst [vmem:[#allocation78_spill] sm:$0xff] %v22448_v13  ;;  %18768 = vmatpush3.bf16.msra.mxu1 %v22448_v13  ;;  %27087 = vst [vmem:[#allocation85_spill] sm:$0xff] %v22478_v44  ;;  %v22490_v13 = vpack.c.bf16 %v22385_v47, %v22379_v40  ;;  %v22501_v14 = vpack.c.bf16 %v27094_v58, %v27093_v19  ;;  %v1629_v47 = vlaneseq }
 0x16f   :  { %18802 = vmatprep.subr.bf16.mxu1 %v22113_v2  ;;  %27088 = vst [vmem:[#allocation86_spill] sm:$0xff] %v22482_v17  ;;  %27091 = vst [vmem:[#allocation89_spill] sm:$0xff] %v22493_v1  ;;  %v22505_v26 = vpack.c.bf16 %v2039_v11, %v27096_v10 }
 0x170   :  { %27090 = vst [vmem:[#allocation88_spill] sm:$0xff] %v22490_v13  ;;  %27092 = vst [vmem:[#allocation90_spill] sm:$0xff] %v22495_v53  ;;  %v22511_v33 = vshrl.u32 %v1629_v47, 7 }
 0x171   :  { %27095 = vst [vmem:[#allocation91_spill] sm:$0xff] %v22501_v14  ;;  %27097 = vst [vmem:[#allocation92_spill] sm:$0xff] %v22505_v26 }
 0x172   :  { %27098 = vst [vmem:[#allocation93_spill] sm:$0xff] %v22507_v32  ;;  %27099 = vst [vmem:[#allocation94_spill] sm:$0xff] %v22509_v34  ;;  %v22514_v18 = vsub.s32 2, %v22511_v33  ;;  %v22517_v45 = vsub.s32 3, %v22511_v33  ;;  %v22520_v58 = vsub.s32 0, %v22511_v33  ;;  %v22523_v40 = vsub.s32 1, %v22511_v33 }
 0x173   :  { %27100 = vst [vmem:[#allocation95_spill] sm:$0xff] %v22511_v33 }
 0x174   :  { %27101 = vst [vmem:[#allocation96_spill] sm:$0xff] %v22514_v18  ;;  %27102 = vst [vmem:[#allocation97_spill] sm:$0xff] %v22517_v45  ;;  %v1640_v10 = vrot.slane %v1627_v12, %v22514_v18  ;;  %v1644_v23 = vrot.slane %v1627_v12, %v22517_v45  ;;  %v1632_v11 = vrot.slane %v1627_v12, %v22520_v58 }
 0x175   :  { %27103 = vst [vmem:[#allocation98_spill] sm:$0xff] %v22520_v58  ;;  %27104 = vst [vmem:[#allocation99_spill] sm:$0xff] %v22523_v40  ;;  %v1636_v22 = vrot.slane %v1627_v12, %v22523_v40 }
 0x1f7   :  { %v1320_v24 = vpop.f32.mrb[0].mxu0 }
 0x1f8   :  { %v1322_v57 = vpop.f32.mrb[1].mxu0  ;;  %v1649_v18 = vadd.f32 %v1632_v11, %v1320_v24 }
 0x1f9   :  { %v1324_v20 = vpop.f32.mrb[2].mxu0  ;;  %v1373_v19 = vpop.f32.mrb[0].mxu1  ;;  %v1650_v31 = vadd.f32 %v1636_v22, %v1322_v57 }
 0x1fa   :  { %v1653_v61 = vadd.f32 %v1632_v11, %v1324_v20  ;;  %v1326_v28 = vpop.f32.mrb[3].mxu0  ;;  %v22529_v47 = vadd.f32 %v1640_v10, %v1373_v19  ;;  %v1375_v34 = vpop.f32.mrb[1].mxu1  ;;  %v22541_v40 = vmax.f32 %v1649_v18, 0.0 }
 0x1fb   :  { %v1654_v32 = vadd.f32 %v1636_v22, %v1326_v28  ;;  %v22531_v33 = vadd.f32 %v1644_v23, %v1375_v34  ;;  %v1377_v26 = vpop.f32.mrb[2].mxu1  ;;  %v22543_v28 = vmax.f32 %v1650_v31, 0.0 }
 0x1fc   :  { %27105 = vst [vmem:[#allocation100_spill] sm:$0xff] %v22529_v47  ;;  %v22533_v14 = vadd.f32 %v1640_v10, %v1377_v26  ;;  %v1379_v45 = vpop.f32.mrb[3].mxu1  ;;  %v22537_v4 = vmax.f32 %v1653_v61, 0.0  ;;  %27109 = vst [vmem:[#allocation104_spill] sm:$0xff] %v22541_v40 }
 0x1fd   :  { %v22535_v58 = vadd.f32 %v1644_v23, %v1379_v45  ;;  %v22539_v12 = vmax.f32 %v1654_v32, 0.0  ;;  %27110 = vst [vmem:[#allocation105_spill] sm:$0xff] %v22543_v28 }
 0x1fe   :  { %27106 = vst [vmem:[#allocation101_spill] sm:$0xff] %v22533_v14  ;;  %27107 = vst [vmem:[#allocation102_spill] sm:$0xff] %v22537_v4  ;;  %v1681_v26 = vadd.f32 %v22537_v4, %v22541_v40 }
 0x1ff   :  { %27108 = vst [vmem:[#allocation103_spill] sm:$0xff] %v22539_v12  ;;  %v1330_v20 = vpop.f32.mrb[4].mxu0  ;;  %v1690_v18 = vadd.f32 %v22539_v12, %v22543_v28 }
 0x200   :  { %v1657_v19 = vadd.f32 %v1632_v11, %v1330_v20  ;;  %v1332_v47 = vpop.f32.mrb[5].mxu0 }
 0x201   :  { %v1658_v34 = vadd.f32 %v1636_v22, %v1332_v47  ;;  %v1334_v39 = vpop.f32.mrb[6].mxu0  ;;  %v1383_v24 = vpop.f32.mrb[4].mxu1 }
 0x202   :  { %v22547_v57 = vmax.f32 %v1657_v19, 0.0  ;;  %v1661_v45 = vadd.f32 %v1632_v11, %v1334_v39  ;;  %v1336_v61 = vpop.f32.mrb[7].mxu0  ;;  %v22549_v14 = vadd.f32 %v1640_v10, %v1383_v24  ;;  %v1385_v32 = vpop.f32.mrb[5].mxu1 }
 0x203   :  { %v22553_v20 = vmax.f32 %v1658_v34, 0.0  ;;  %v1662_v31 = vadd.f32 %v1636_v22, %v1336_v61  ;;  %v22555_v27 = vadd.f32 %v1644_v23, %v1385_v32  ;;  %v1387_v47 = vpop.f32.mrb[6].mxu1 }
 0x204   :  { %27111 = vst [vmem:[#allocation106_spill] sm:$0xff] %v22547_v57  ;;  %v1682_v60 = vadd.f32 %v1681_v26, %v22547_v57  ;;  %v22558_v54 = vmax.f32 %v1661_v45, 0.0  ;;  %v1389_v19 = vpop.f32.mrb[7].mxu1 }
 0x205   :  { %27112 = vst [vmem:[#allocation107_spill] sm:$0xff] %v22553_v20  ;;  %v1691_v39 = vadd.f32 %v1690_v18, %v22553_v20  ;;  %v22561_v11 = vmax.f32 %v1662_v31, 0.0  ;;  %v22577_v20 = vadd.f32 %v1640_v10, %v1387_v47 }
 0x206   :  { %27113 = vst [vmem:[#allocation108_spill] sm:$0xff] %v22558_v54  ;;  %v1683_v24 = vadd.f32 %v1682_v60, %v22558_v54 }
 0x207   :  { %27114 = vst [vmem:[#allocation109_spill] sm:$0xff] %v22561_v11  ;;  %v1692_v40 = vadd.f32 %v1691_v39, %v22561_v11  ;;  %v22565_v4 = vpop.f32.mrb[8].mxu0 }
 0x208   :  { %27115 = vst [vmem:[#allocation110_spill] sm:$0xff] %v22565_v4  ;;  %v1684_v34 = vrot.slane %v1683_v24, 4  ;;  %v22567_v22 = vpop.f32.mrb[9].mxu0  ;;  %v22581_v4 = vadd.f32 %v1644_v23, %v1389_v19 }
 0x209   :  { %27116 = vst [vmem:[#allocation111_spill] sm:$0xff] %v22567_v22  ;;  %v1693_v61 = vrot.slane %v1692_v40, 4  ;;  %v22569_v32 = vpop.f32.mrb[10].mxu0  ;;  %v22571_v26 = vpop.f32.mrb[8].mxu1 }
 0x20a   :  { %27117 = vst [vmem:[#allocation112_spill] sm:$0xff] %v22569_v32  ;;  %27118 = vst [vmem:[#allocation113_spill] sm:$0xff] %v22571_v26  ;;  %v1685_v45 = vadd.f32 %v1684_v34, %v1683_v24  ;;  %v22573_v57 = vpop.f32.mrb[11].mxu0  ;;  %v22575_v18 = vpop.f32.mrb[9].mxu1 }
 0x20b   :  { %27119 = vst [vmem:[#allocation114_spill] sm:$0xff] %v22573_v57  ;;  %27120 = vst [vmem:[#allocation115_spill] sm:$0xff] %v22575_v18  ;;  %v1694_v31 = vadd.f32 %v1693_v61, %v1692_v40  ;;  %v22579_v60 = vpop.f32.mrb[10].mxu1  ;;  %v22696_v18 = vld [vmem:[%s26518_s11 + $0x1f8] sm:$0xff] }
 0x20c   :  { %27121 = vst [vmem:[#allocation116_spill] sm:$0xff] %v22579_v60  ;;  %v1686_v39 = vrot.slane %v1685_v45, 2  ;;  %v22583_v54 = vpop.f32.mrb[11].mxu1  ;;  %v22650_v60 = vld [vmem:[%s26518_s11 + $0x1e0] sm:$0xff]  ;;  %27148 = vst [vmem:[#allocation136_spill] sm:$0xff] %v22696_v18 }
 0x20d   :  { %27122 = vst [vmem:[#allocation117_spill] sm:$0xff] %v22583_v54  ;;  %v1695_v22 = vrot.slane %v1694_v31, 2  ;;  %27139 = vst [vmem:[#allocation130_spill] sm:$0xff] %v22650_v60 }
 0x20e   :  { %v1687_v11 = vadd.f32 %v1686_v39, %v1685_v45 }
 0x20f   :  { %v1696_v32 = vadd.f32 %v1695_v22, %v1694_v31  ;;  %v22585_v28 = vpop.f32.mrb[12].mxu0 }
 0x210   :  { %27123 = vst [vmem:[#allocation118_spill] sm:$0xff] %v22585_v28  ;;  %v1688_v24 = vrot.slane %v1687_v11, 1  ;;  %v22587_v34 = vpop.f32.mrb[13].mxu0 }
 0x211   :  { %27124 = vst [vmem:[#allocation119_spill] sm:$0xff] %v22587_v34  ;;  %v22589_v26 = vpop.f32.mrb[14].mxu0  ;;  %v1697_v40 = vrot.slane %v1696_v32, 1  ;;  %v22591_v10 = vpop.f32.mrb[12].mxu1  ;;  %v22691_v34 = vld [vmem:[%s26518_s11 + $0x1f0] sm:$0xff] }
 0x212   :  { %27125 = vst [vmem:[#allocation120_spill] sm:$0xff] %v22589_v26  ;;  %27126 = vst [vmem:[#allocation121_spill] sm:$0xff] %v22591_v10  ;;  %v1689_v47 = vadd.f32 %v1688_v24, %v1687_v11  ;;  %v22593_v61 = vpop.f32.mrb[15].mxu0  ;;  %v22595_v23 = vpop.f32.mrb[13].mxu1  ;;  %v22667_v10 = vld [vmem:[%s26518_s11 + $0x160] sm:$0xff]  ;;  %v22672_v26 = vld [vmem:[%s26518_s11 + $0x168] sm:$0xff] }
 0x213   :  { %27127 = vst [vmem:[#allocation122_spill] sm:$0xff] %v22593_v61  ;;  %27128 = vst [vmem:[#allocation123_spill] sm:$0xff] %v22595_v23  ;;  %v1698_v19 = vadd.f32 %v1697_v40, %v1696_v32  ;;  %v22597_v54 = vpop.f32.mrb[14].mxu1  ;;  %v22662_v23 = vmax.f32 %v22555_v27, 0.0 }
 0x214   :  { %27129 = vst [vmem:[#allocation124_spill] sm:$0xff] %v22597_v54  ;;  %v22599_v45 = vand.u32 4294901760, %v1689_v47  ;;  %v22601_v22 = vpop.f32.mrb[15].mxu1  ;;  %v27131_v54 = vld [vmem:[#allocation52_spill] sm:$0xff]  ;;  %27143 = vst [vmem:[#allocation133_spill] sm:$0xff] %v22667_v10 }
 0x215   :  { %27130 = vst [vmem:[#allocation125_spill] sm:$0xff] %v22601_v22  ;;  %v22603_v31 = vand.u32 4294901760, %v1698_v19  ;;  %27142 = vst [vmem:[#allocation132_spill] sm:$0xff] %v22662_v23 }
 0x216   :  { %v22606_v39 = vsub.f32 %v1689_v47, %v22599_v45  ;;  %27144 = vst [vmem:[#allocation134_spill] sm:$0xff] %v22672_v26  ;;  %27147 = vst [vmem:[#allocation135_spill] sm:$0xff] %v22691_v34 }
 0x217   :  { %2170 = vmatprep.mubr.f32.mxu1 %v22603_v31  ;;  %v1930_v11 = vsub.f32 %v1698_v19, %v22603_v31 }
 0x218   :  { %2172 = vmatmul.mubr.f32.vlgmr.msra.gmra.mrb[16].mxu1 %v22599_v45  ;;  %v26623_v24 = vand.u32 4294901760, %v22606_v39 }
 0x219   :  { %18804 = vmatpush3.bf16.msra.mxu1 %v22137_v0  ;;  %v1931_v32 = vand.u32 4294901760, %v1930_v11 }
 0x21a   :  { %18806 = vmatprep.subr.bf16.mxu1 %v22177_v56  ;;  %v1938_v40 = vsub.f32 %v22606_v39, %v26623_v24  ;;  %v27138_v24 = vld [vmem:[#allocation60_spill] sm:$0xff] }
 0x21b   :  { %2414 = vmatprep.mubr.f32.mxu1 %v1931_v32  ;;  %v1932_v47 = vsub.f32 %v1930_v11, %v1931_v32  ;;  %v27132_v32 = vld [vmem:[#allocation58_spill] sm:$0xff] }
 0x21c   :  { %v1939_v19 = vand.u32 4294901760, %v1938_v40  ;;  %v22638_v40 = vmax.f32 %v22531_v33, 0.0  ;;  %v22655_v33 = vld [vmem:[%s26518_s11 + $0x1e8] sm:$0xff] }
 0x21d   :  { %18808 = vmatpush3.bf16.msra.mxu1 %v22188_v48  ;;  %v1933_v22 = vand.u32 4294901760, %v1932_v47  ;;  %v27133_v47 = vld [vmem:[#allocation55_spill] sm:$0xff]  ;;  %27140 = vst [vmem:[#allocation131_spill] sm:$0xff] %v22655_v33 }
 0x21e   :  { %18810 = vmatprep.subr.bf16.mxu1 %v22215_v42  ;;  %27136 = vst [vmem:[#allocation128_spill] sm:$0xff] %v22638_v40 }
 0x21f   :  { %1934 = vmatprep.mubr.f32.mxu0 %v1933_v22  ;;  %v22630_v22 = vld [vmem:[%s26518_s11 + $0x150] sm:$0xff] }
 0x220   :  { %1940 = vmatmul.mubr.f32.vlgmr.msra.gmra.mrb[16].mxu0 %v1939_v19  ;;  %27134 = vst [vmem:[#allocation126_spill] sm:$0xff] %v22630_v22  ;;  %v22641_v19 = vmax.f32 %v22535_v58, 0.0  ;;  %v27141_v58 = vld [vmem:[#allocation61_spill] sm:$0xff]  ;;  %v27145_v27 = vand.u32 4294901760, %v22630_v22 }
 0x221   :  { %18772 = vmatpush3.bf16.msra.mxu0 %v22427_v15  ;;  %18812 = vmatpush3.bf16.msra.mxu1 %v22239_v46 }
 0x222   :  { %2307 = vmatprep.mubr.f32.mxu0 %v1930_v11  ;;  %18774 = vmatprep.subr.bf16.mxu0 %v22440_v29  ;;  %v22635_v11 = vld [vmem:[%s26518_s11 + $0x158] sm:$0xff]  ;;  %27137 = vst [vmem:[#allocation129_spill] sm:$0xff] %v22641_v19  ;;  %v1708_v61 = vadd.f32 %v22641_v19, %v22638_v40  ;;  %v22681_v28 = vsub.f32 %v22630_v22, %v27145_v27  ;;  %v22719_v27 = vld [vmem:[%s26518_s11 + $0x180] sm:$0xff]  ;;  %v27155_v29 = vand.u32 4294901760, %v22672_v26 }
 0x223   :  { %18814 = vmatprep.subr.bf16.mxu1 %v27131_v54  ;;  %27135 = vst [vmem:[#allocation127_spill] sm:$0xff] %v22635_v11  ;;  %v27146_v57 = vand.u32 4294901760, %v22635_v11 }
 0x224   :  { %v1709_v19 = vadd.f32 %v1708_v61, %v22662_v23 }
 0x225   :  { %18776 = vmatpush3.bf16.msra.mxu0 %v22445_v7  ;;  %18816 = vmatpush3.bf16.msra.mxu1 %v27132_v32 }
 0x226   :  { %18778 = vmatprep.subr.bf16.mxu0 %v22452_v25  ;;  %18818 = vmatprep.subr.bf16.mxu1 %v27133_v47  ;;  %v27153_v25 = vand.u32 4294901760, %v22655_v33 }
 0x228   :  { %v22729_v7 = vsub.f32 %v22655_v33, %v27153_v25  ;;  %v22744_v25 = vld [vmem:[%s26518_s11 + $0x188] sm:$0xff] }
 0x229   :  { %18780 = vmatpush3.bf16.msra.mxu0 %v22456_v16  ;;  %18820 = vmatpush3.bf16.msra.mxu1 %v27138_v24  ;;  %v22710_v16 = vld [vmem:[%s26518_s11 + $0x178] sm:$0xff] }
 0x22a   :  { %18782 = vmatprep.subr.bf16.mxu0 %v22462_v6  ;;  %18822 = vmatprep.subr.bf16.mxu1 %v27141_v58  ;;  %v22686_v6 = vsub.f32 %v22635_v11, %v27146_v57  ;;  %v22705_v57 = vld [vmem:[%s26518_s11 + $0x170] sm:$0xff]  ;;  %27150 = vst [vmem:[#allocation138_spill] sm:$0xff] %v22710_v16 }
 0x22b   :  { %27149 = vst [vmem:[#allocation137_spill] sm:$0xff] %v22705_v57 }
 0x22d   :  { %18784 = vmatpush3.bf16.msra.mxu0 %v22466_v30  ;;  %18824 = vmatpush3.bf16.msra.mxu1 %v22406_v63  ;;  %v27152_v30 = vand.u32 4294901760, %v22650_v60 }
 0x22e   :  { %18786 = vmatprep.subr.bf16.mxu0 %v22470_v21  ;;  %18826 = vmatprep.subr.bf16.mxu1 %v22394_v59  ;;  %v22714_v21 = vmax.f32 %v22581_v4, 0.0  ;;  %v27154_v4 = vand.u32 4294901760, %v22667_v10 }
 0x22f   :  { %v22724_v40 = vsub.f32 %v22650_v60, %v27152_v30  ;;  %v22754_v30 = vsub.f32 %v22672_v26, %v27155_v29  ;;  %v22772_v29 = vld [vmem:[%s26518_s11 + $0x108] sm:$0xff] }
 0x230   :  { %27151 = vst [vmem:[#allocation139_spill] sm:$0xff] %v22714_v21  ;;  %v22749_v61 = vsub.f32 %v22667_v10, %v27154_v4  ;;  %v1710_v15 = vadd.f32 %v1709_v19, %v22714_v21  ;;  %v22767_v4 = vld [vmem:[%s26518_s11 + $0x100] sm:$0xff]  ;;  %v27159_v21 = vand.u32 4294901760, %v22691_v34  ;;  %v27161_v19 = vand.u32 4294901760, %v22705_v57 }
 0x231   :  { %18788 = vmatpush3.bf16.msra.mxu0 %v22474_v43  ;;  %18828 = vmatpush3.bf16.msra.mxu1 %v22414_v3  ;;  %v27157_v43 = vand.u32 4294901760, %v22686_v6  ;;  %v27162_v10 = vand.u32 4294901760, %v22710_v16 }
 0x232   :  { %18790 = vmatprep.subr.bf16.mxu0 %v22478_v44  ;;  %18830 = vmatprep.subr.bf16.mxu1 %v22417_v41  ;;  %v27156_v44 = vand.u32 4294901760, %v22681_v28  ;;  %v22779_v26 = vsub.f32 %v22691_v34, %v27159_v21  ;;  %v22792_v23 = vsub.f32 %v22705_v57, %v27161_v19  ;;  %v27163_v19 = vand.u32 4294901760, %v22724_v40 }
 0x233   :  { %v22797_v21 = vsub.f32 %v22710_v16, %v27162_v10  ;;  %v27164_v57 = vand.u32 4294901760, %v22729_v7  ;;  %v1711_v10 = vrot.slane %v1710_v15, 4  ;;  %v22819_v16 = vld [vmem:[%s26518_s11 + $0x198] sm:$0xff] }
 0x234   :  { %v22762_v12 = vpack.c.bf16 %v27157_v43, %v27156_v44  ;;  %v27160_v43 = vand.u32 4294901760, %v22696_v18 }
 0x235   :  { %18792 = vmatpush3.bf16.msra.mxu0 %v22482_v17  ;;  %18832 = vmatpush3.bf16.msra.mxu1 %v22423_v55  ;;  %v27167_v17 = vand.u32 4294901760, %v22719_v27 }
 0x236   :  { %27158 = vst [vmem:[#allocation140_spill] sm:$0xff] %v22762_v12  ;;  %v22784_v44 = vsub.f32 %v22696_v18, %v27160_v43  ;;  %18794 = vmatprep.subr.bf16.mxu0 %v22486_v8  ;;  %18866 = vmatprep.subr.bf16.mxu1 %v22113_v2  ;;  %v22804_v43 = vld [vmem:[%s26518_s11 + $0x190] sm:$0xff]  ;;  %v22812_v18 = vpack.c.bf16 %v27164_v57, %v27163_v19  ;;  %v27166_v12 = vand.u32 4294901760, %v22606_v39  ;;  %v27169_v8 = vand.u32 4294901760, %v22749_v61 }
 0x237   :  { %v22826_v34 = vsub.f32 %v22719_v27, %v27167_v17  ;;  %v27170_v2 = vand.u32 4294901760, %v22754_v30  ;;  %v27177_v17 = vand.u32 4294901760, %v22779_v26 }
 0x238   :  { %27165 = vst [vmem:[#allocation141_spill] sm:$0xff] %v22812_v18  ;;  %2418 = vmatmul.mubr.f32.vlgmr.msra.gmra.mrb[18].mxu1 %v27166_v12  ;;  %v27172_v12 = vand.u32 4294901760, %v22744_v25  ;;  %v27178_v19 = vand.u32 4294901760, %v22784_v44 }
 0x239   :  { %27168 = vst [vmem:[#allocation142_spill] sm:$0xff] %v22826_v34  ;;  %v22834_v18 = vpack.c.bf16 %v27170_v2, %v27169_v8  ;;  %18796 = vmatpush3.bf16.msra.mxu0 %v22490_v13  ;;  %18868 = vmatpush3.bf16.msra.mxu1 %v22137_v0  ;;  %v27174_v2 = vand.u32 4294901760, %v21935_v35  ;;  %v27175_v8 = vand.u32 4294901760, %v21940_v36  ;;  %v27180_v35 = vand.u32 4294901760, %v22767_v4  ;;  %v22880_v0 = vld [vmem:[%s26518_s11 + $0x118] sm:$0xff] }
 0x23a   :  { %v22841_v33 = vsub.f32 %v22744_v25, %v27172_v12  ;;  %2688 = vmatprep.mubr.f32.mxu1 %v22603_v31  ;;  %18798 = vmatprep.subr.bf16.mxu0 %v22493_v1  ;;  %v22858_v12 = vld [vmem:[%s26518_s11 + $0x110] sm:$0xff]  ;;  %v22864_v57 = vpack.c.bf16 %v27178_v19, %v27177_v17  ;;  %v1712_v1 = vadd.f32 %v1711_v10, %v1710_v15  ;;  %v27184_v19 = vand.u32 4294901760, %v22792_v23 }
 0x23b   :  { %27171 = vst [vmem:[#allocation143_spill] sm:$0xff] %v22834_v18  ;;  %v22852_v13 = vpack.c.bf16 %v27175_v8, %v27174_v2  ;;  %18870 = vmatprep.subr.bf16.mxu1 %v22177_v56  ;;  %v22870_v36 = vsub.f32 %v22767_v4, %v27180_v35  ;;  %v27182_v2 = vand.u32 4294901760, %v22772_v29  ;;  %v27185_v15 = vand.u32 4294901760, %v22797_v21 }
 0x23c   :  { %27173 = vst [vmem:[#allocation144_spill] sm:$0xff] %v22841_v33  ;;  %27179 = vst [vmem:[#allocation146_spill] sm:$0xff] %v22864_v57  ;;  %v27187_v17 = vand.u32 4294901760, %v21945_v37  ;;  %v27188_v35 = vand.u32 4294901760, %v21950_v38  ;;  %v27190_v18 = vand.u32 4294901760, %v22804_v43  ;;  %v27192_v37 = vand.u32 4294901760, %v21988_v50 }
 0x23d   :  { %27176 = vst [vmem:[#allocation145_spill] sm:$0xff] %v22852_v13  ;;  %27181 = vst [vmem:[#allocation147_spill] sm:$0xff] %v22870_v36  ;;  %v22875_v8 = vsub.f32 %v22772_v29, %v27182_v2  ;;  %v22886_v10 = vpack.c.bf16 %v27185_v15, %v27184_v19  ;;  %18800 = vmatpush3.bf16.msra.mxu0 %v22495_v53  ;;  %18872 = vmatpush3.bf16.msra.mxu1 %v22188_v48  ;;  %v27193_v38 = vand.u32 4294901760, %v21993_v51  ;;  %v27204_v53 = vld [vmem:[#allocation33_spill] sm:$0xff] }
 0x23e   :  { %v22892_v56 = vpack.c.bf16 %v27188_v35, %v27187_v17  ;;  %v22901_v60 = vsub.f32 %v22804_v43, %v27190_v18  ;;  %18834 = vmatprep.subr.bf16.mxu0 %v22852_v13  ;;  %18874 = vmatprep.subr.bf16.mxu1 %v22215_v42  ;;  %v27195_v17 = vand.u32 4294901760, %v22819_v16  ;;  %v1713_v57 = vrot.slane %v1712_v1, 2 }
 0x23f   :  { %27183 = vst [vmem:[#allocation148_spill] sm:$0xff] %v22875_v8  ;;  %27186 = vst [vmem:[#allocation149_spill] sm:$0xff] %v22886_v10  ;;  %v22910_v15 = vpack.c.bf16 %v27193_v38, %v27192_v37  ;;  %v27197_v50 = vand.u32 4294901760, %v22017_v62  ;;  %v27198_v51 = vand.u32 4294901760, %v22038_v9  ;;  %v27200_v38 = vand.u32 4294901760, %v22069_v5 }
 0x240   :  { %27189 = vst [vmem:[#allocation150_spill] sm:$0xff] %v22892_v56  ;;  %27191 = vst [vmem:[#allocation151_spill] sm:$0xff] %v22901_v60  ;;  %v22915_v35 = vsub.f32 %v22819_v16, %v27195_v17  ;;  %2310 = vmatmul.mubr.f32.vlgmr.msra.gmra.mrb[18].mxu0 %v22606_v39  ;;  %v27201_v17 = vand.u32 4294901760, %v22079_v49  ;;  %v27203_v18 = vand.u32 4294901760, %v22084_v52  ;;  %v27205_v19 = vand.u32 4294901760, %v27204_v53 }
 0x241   :  { %27194 = vst [vmem:[#allocation152_spill] sm:$0xff] %v22910_v15  ;;  %v22925_v37 = vpack.c.bf16 %v27198_v51, %v27197_v50  ;;  %18836 = vmatpush3.bf16.msra.mxu0 %v22892_v56  ;;  %2584 = vmatprep.mubr.f32.mxu0 %v22603_v31  ;;  %v27207_v62 = vand.u32 4294901760, %v22826_v34  ;;  %v27208_v5 = vand.u32 4294901760, %v22841_v33  ;;  %v27209_v52 = vand.u32 4294901760, %v22858_v12  ;;  %v22961_v31 = vld [vmem:[%s26518_s11 + $0x1a8] sm:$0xff]  ;;  %v27213_v51 = vld [vmem:[#allocation36_spill] sm:$0xff] }
 0x242   :  { %27196 = vst [vmem:[#allocation153_spill] sm:$0xff] %v22915_v35  ;;  %v22931_v13 = vpack.c.bf16 %v27201_v17, %v27200_v38  ;;  %v22937_v42 = vpack.c.bf16 %v27205_v19, %v27203_v18  ;;  %v22956_v19 = vld [vmem:[%s26518_s11 + $0x1a0] sm:$0xff]  ;;  %18876 = vmatpush3.bf16.msra.mxu1 %v22239_v46  ;;  %18838 = vmatprep.subr.bf16.mxu0 %v22910_v15  ;;  %v27211_v18 = vld [vmem:[#allocation34_spill] sm:$0xff]  ;;  %v27214_v38 = vand.u32 4294901760, %v27213_v51  ;;  %v27221_v48 = vand.u32 4294901760, %v22880_v0 }
 0x243   :  { %27199 = vst [vmem:[#allocation154_spill] sm:$0xff] %v22925_v37  ;;  %v2923_v9 = vsub.f32 %v22826_v34, %v27207_v62  ;;  %v2930_v49 = vsub.f32 %v22841_v33, %v27208_v5  ;;  %v22951_v53 = vsub.f32 %v22858_v12, %v27209_v52  ;;  %v27212_v50 = vand.u32 4294901760, %v27211_v18  ;;  %v27216_v62 = vld [vmem:[#allocation42_spill] sm:$0xff]  ;;  %v27218_v52 = vld [vmem:[#allocation43_spill] sm:$0xff]  ;;  %18878 = vmatprep.subr.bf16.mxu1 %v27131_v54  ;;  %v27237_v34 = vld [vmem:[#allocation57_spill] sm:$0xff] }
 0x244   :  { %27202 = vst [vmem:[#allocation155_spill] sm:$0xff] %v22931_v13  ;;  %27206 = vst [vmem:[#allocation33_spill] sm:$0xff] %v22937_v42  ;;  %v27217_v5 = vand.u32 4294901760, %v27216_v62  ;;  %v27219_v39 = vand.u32 4294901760, %v27218_v52  ;;  %v22981_v46 = vsub.f32 %v22880_v0, %v27221_v48  ;;  %v1714_v15 = vadd.f32 %v1713_v57, %v1712_v1  ;;  %v27223_v18 = vld [vmem:[#allocation47_spill] sm:$0xff]  ;;  %v27230_v56 = vld [vmem:[#allocation50_spill] sm:$0xff] }
 0x245   :  { %27210 = vst [vmem:[#allocation156_spill] sm:$0xff] %v22951_v53  ;;  %v22969_v17 = vpack.c.bf16 %v27214_v38, %v27212_v50  ;;  %v27224_v51 = vand.u32 4294901760, %v27223_v18  ;;  %v27225_v50 = vld [vmem:[#allocation48_spill] sm:$0xff]  ;;  %v27228_v62 = vand.u32 4294901760, %v22870_v36  ;;  %v27231_v48 = vand.u32 4294901760, %v27230_v56  ;;  %v27232_v33 = vld [vmem:[#allocation51_spill] sm:$0xff]  ;;  %18840 = vmatpush3.bf16.msra.mxu0 %v22925_v37 }
 0x246   :  { %v22975_v2 = vpack.c.bf16 %v27219_v39, %v27217_v5  ;;  %27222 = vst [vmem:[#allocation42_spill] sm:$0xff] %v22981_v46  ;;  %v27226_v38 = vand.u32 4294901760, %v27225_v50  ;;  %v27229_v5 = vand.u32 4294901760, %v22875_v8  ;;  %v27233_v1 = vand.u32 4294901760, %v27232_v33  ;;  %v27235_v54 = vld [vmem:[#allocation54_spill] sm:$0xff]  ;;  %18880 = vmatpush3.bf16.msra.mxu1 %v27132_v32  ;;  %18842 = vmatprep.subr.bf16.mxu0 %v22931_v13 }
 0x247   :  { %27215 = vst [vmem:[#allocation34_spill] sm:$0xff] %v22969_v17  ;;  %v2811_v39 = vsub.f32 %v22870_v36, %v27228_v62  ;;  %v27236_v18 = vand.u32 4294901760, %v27235_v54  ;;  %v27238_v50 = vand.u32 4294901760, %v27237_v34  ;;  %v2924_v36 = vand.u32 4294901760, %v2923_v9  ;;  %v23018_v54 = vld [vmem:[%s26518_s11 + $0x120] sm:$0xff]  ;;  %v23023_v34 = vld [vmem:[%s26518_s11 + $0x128] sm:$0xff]  ;;  %18882 = vmatprep.subr.bf16.mxu1 %v27133_v47 }
 0x248   :  { %27220 = vst [vmem:[#allocation36_spill] sm:$0xff] %v22975_v2  ;;  %v22988_v10 = vpack.c.bf16 %v27226_v38, %v27224_v51  ;;  %v2818_v52 = vsub.f32 %v22875_v8, %v27229_v5  ;;  %v23000_v57 = vpack.c.bf16 %v27233_v1, %v27231_v48  ;;  %v2931_v5 = vand.u32 4294901760, %v2930_v49  ;;  %v27241_v1 = vld [vmem:[#allocation100_spill] sm:$0xff]  ;;  %v27243_v9 = vld [vmem:[#allocation101_spill] sm:$0xff]  ;;  %v23040_v62 = vld [vmem:[%s26518_s11 + $0x1b0] sm:$0xff] }
 0x249   :  { %v23006_v51 = vpack.c.bf16 %v27238_v50, %v27236_v18  ;;  %v27240_v56 = vand.u32 4294901760, %v22901_v60  ;;  %v23026_v18 = vmax.f32 %v27241_v1, 0.0  ;;  %v23029_v49 = vmax.f32 %v27243_v9, 0.0  ;;  %v27246_v1 = vld [vmem:[#allocation62_spill] sm:$0xff]  ;;  %v27248_v38 = vld [vmem:[#allocation63_spill] sm:$0xff]  ;;  %18844 = vmatpush3.bf16.msra.mxu0 %v22937_v42 }
 0x24a   :  { %27227 = vst [vmem:[#allocation43_spill] sm:$0xff] %v22988_v10  ;;  %27234 = vst [vmem:[#allocation47_spill] sm:$0xff] %v23000_v57  ;;  %v27245_v50 = vand.u32 4294901760, %v22915_v35  ;;  %v27247_v9 = vand.u32 4294901760, %v27246_v1  ;;  %v27249_v37 = vand.u32 4294901760, %v27248_v38  ;;  %v2812_v13 = vand.u32 4294901760, %v2811_v39  ;;  %18884 = vmatpush3.bf16.msra.mxu1 %v27138_v24  ;;  %18846 = vmatprep.subr.bf16.mxu0 %v22969_v17 }
 0x24b   :  { %27239 = vst [vmem:[#allocation48_spill] sm:$0xff] %v23006_v51  ;;  %v2937_v33 = vsub.f32 %v22901_v60, %v27240_v56  ;;  %27242 = vst [vmem:[#allocation50_spill] sm:$0xff] %v23026_v18  ;;  %v2819_v60 = vand.u32 4294901760, %v2818_v52  ;;  %v1715_v8 = vrot.slane %v1714_v15, 1  ;;  %v23067_v39 = vpack.c.bf16 %v2931_v5, %v2924_v36  ;;  %18886 = vmatprep.subr.bf16.mxu1 %v27141_v58 }
 0x24c   :  { %27244 = vst [vmem:[#allocation51_spill] sm:$0xff] %v23029_v49  ;;  %v2944_v56 = vsub.f32 %v22915_v35, %v27245_v50  ;;  %v23047_v32 = vpack.c.bf16 %v27249_v37, %v27247_v9  ;;  %v27251_v50 = vand.u32 4294901760, %v22956_v19  ;;  %v27253_v35 = vand.u32 4294901760, %v22961_v31  ;;  %v23064_v37 = vld [vmem:[%s26518_s11 + $0x1b8] sm:$0xff] }
 0x24d   :  { %27255 = vst [vmem:[#allocation101_spill] sm:$0xff] %v23067_v39  ;;  %v2938_v52 = vand.u32 4294901760, %v2937_v33  ;;  %v27256_v38 = vand.u32 4294901760, %v22951_v53  ;;  %v23078_v1 = vmax.f32 %v22549_v14, 0.0  ;;  %v27258_v5 = vand.u32 4294901760, %v22981_v46  ;;  %v23095_v14 = vld [vmem:[%s26518_s11 + $0x138] sm:$0xff]  ;;  %18848 = vmatpush3.bf16.msra.mxu0 %v22975_v2 }
 0x24e   :  { %27250 = vst [vmem:[#allocation54_spill] sm:$0xff] %v23047_v32  ;;  %v23052_v48 = vsub.f32 %v22956_v19, %v27251_v50  ;;  %v23057_v11 = vsub.f32 %v22961_v31, %v27253_v35  ;;  %v1699_v50 = vadd.f32 %v23029_v49, %v23026_v18  ;;  %v2945_v36 = vand.u32 4294901760, %v2944_v56  ;;  %18888 = vmatpush3.bf16.msra.mxu1 %v22406_v63 }
 0x24f   :  { %v23072_v9 = vsub.f32 %v22951_v53, %v27256_v38  ;;  %27257 = vst [vmem:[#allocation62_spill] sm:$0xff] %v23078_v1  ;;  %v23085_v33 = vsub.f32 %v22981_v46, %v27258_v5  ;;  %v23090_v38 = vld [vmem:[%s26518_s11 + $0x130] sm:$0xff]  ;;  %v27259_v35 = vand.u32 4294901760, %v22719_v27  ;;  %v27260_v56 = vand.u32 4294901760, %v22744_v25  ;;  %18850 = vmatprep.subr.bf16.mxu0 %v22988_v10  ;;  %18890 = vmatprep.subr.bf16.mxu1 %v22394_v59 }
 0x250   :  { %27252 = vst [vmem:[#allocation57_spill] sm:$0xff] %v23052_v48  ;;  %27254 = vst [vmem:[#allocation100_spill] sm:$0xff] %v23057_v11  ;;  %v23104_v5 = vpack.c.bf16 %v2819_v60, %v2812_v13  ;;  %v1716_v17 = vadd.f32 %v1715_v8, %v1714_v15  ;;  %v26704_v42 = vand.u32 4294901760, %v23064_v37  ;;  %v27262_v24 = vand.u32 4294901760, %v23018_v54  ;;  %v23122_v13 = vld [vmem:[%s26518_s11 + $0x1c0] sm:$0xff]  ;;  %v23127_v60 = vld [vmem:[%s26518_s11 + $0x1c8] sm:$0xff] }
 0x251   :  { %v23102_v47 = vpack.c.bf16 %v27260_v56, %v27259_v35  ;;  %v27264_v27 = vand.u32 4294901760, %v23023_v34  ;;  %v27266_v8 = vand.u32 4294901760, %v23040_v62  ;;  %v23140_v18 = vmax.f32 %v22577_v20, 0.0  ;;  %v23175_v35 = vld [vmem:[%s26518_s11 + $0x1d8] sm:$0xff]  ;;  %18852 = vmatpush3.bf16.msra.mxu0 %v23000_v57 }
 0x252   :  { %27261 = vst [vmem:[#allocation63_spill] sm:$0xff] %v23104_v5  ;;  %v23112_v46 = vsub.f32 %v23018_v54, %v27262_v24  ;;  %v2826_v24 = vand.u32 4294901760, %v23072_v9  ;;  %v23144_v49 = vpack.c.bf16 %v2945_v36, %v2938_v52  ;;  %v2833_v9 = vand.u32 4294901760, %v23085_v33  ;;  %v23165_v36 = vld [vmem:[%s26518_s11 + $0x148] sm:$0xff]  ;;  %v23170_v33 = vld [vmem:[%s26518_s11 + $0x1d0] sm:$0xff]  ;;  %18892 = vmatpush3.bf16.msra.mxu1 %v22414_v3  ;;  %18854 = vmatprep.subr.bf16.mxu0 %v23006_v51 }
 0x253   :  { %v23117_v25 = vsub.f32 %v23023_v34, %v27264_v27  ;;  %v23134_v15 = vsub.f32 %v23040_v62, %v27266_v8  ;;  %v1700_v27 = vadd.f32 %v1699_v50, %v23078_v1  ;;  %27268 = vst [vmem:[#allocation160_spill] sm:$0xff] %v23140_v18  ;;  %v23150_v8 = vld [vmem:[%s26518_s11 + $0x140] sm:$0xff]  ;;  %v23153_v56 = vand.u32 4294901760, %v1716_v17  ;;  %27272 = vst [vmem:[#allocation164_spill] sm:$0xff] %v23165_v36  ;;  %v27281_v3 = vld [vmem:[#allocation91_spill] sm:$0xff] }
 0x254   :  { %27263 = vst [vmem:[#allocation157_spill] sm:$0xff] %v23112_v46  ;;  %27269 = vst [vmem:[#allocation161_spill] sm:$0xff] %v23144_v49  ;;  %v23158_v20 = vsub.f32 %v23064_v37, %v26704_v42  ;;  %v27273_v42 = vand.u32 4294901760, %v23052_v48  ;;  %v27274_v52 = vand.u32 4294901760, %v23057_v11  ;;  %v27275_v63 = vand.u32 4294901760, %v23090_v38  ;;  %18894 = vmatprep.subr.bf16.mxu1 %v22417_v41 }
 0x255   :  { %27265 = vst [vmem:[#allocation158_spill] sm:$0xff] %v23117_v25  ;;  %27267 = vst [vmem:[#allocation159_spill] sm:$0xff] %v23134_v15  ;;  %v27276_v53 = vand.u32 4294901760, %v23095_v14  ;;  %v1701_v2 = vadd.f32 %v1700_v27, %v23140_v18  ;;  %v23206_v57 = vsub.f32 %v1716_v17, %v23153_v56  ;;  %v27278_v51 = vand.u32 4294901760, %v23127_v60  ;;  %18856 = vmatpush3.bf16.msra.mxu0 %v27281_v3 }
 0x256   :  { %27270 = vst [vmem:[#allocation162_spill] sm:$0xff] %v23150_v8  ;;  %27271 = vst [vmem:[#allocation163_spill] sm:$0xff] %v23153_v56  ;;  %v2951_v50 = vsub.f32 %v23052_v48, %v27273_v42  ;;  %v2958_v10 = vsub.f32 %v23057_v11, %v27274_v52  ;;  %v23190_v58 = vsub.f32 %v23090_v38, %v27275_v63  ;;  %v27277_v52 = vand.u32 4294901760, %v23122_v13 }
 0x257   :  { %v23195_v42 = vsub.f32 %v23095_v14, %v27276_v53  ;;  %v23217_v59 = vsub.f32 %v23127_v60, %v27278_v51  ;;  %v27279_v63 = vand.u32 4294901760, %v23112_v46  ;;  %v27280_v17 = vand.u32 4294901760, %v23117_v25  ;;  %18896 = vmatpush3.bf16.msra.mxu1 %v22423_v55  ;;  %18858 = vmatprep.subr.bf16.mxu0 %v23047_v32 }
 0x258   :  { %v23212_v27 = vsub.f32 %v23122_v13, %v27277_v52  ;;  %v2952_v1 = vand.u32 4294901760, %v2951_v50  ;;  %v2959_v18 = vand.u32 4294901760, %v2958_v10  ;;  %v27282_v52 = vand.u32 4294901760, %v23134_v15  ;;  %18930 = vmatprep.subr.bf16.mxu1 %v23067_v39 }
 0x259   :  { %v2839_v41 = vsub.f32 %v23112_v46, %v27279_v63  ;;  %v2846_v53 = vsub.f32 %v23117_v25, %v27280_v17  ;;  %v27283_v10 = vand.u32 4294901760, %v23150_v8  ;;  %v1702_v63 = vrot.slane %v1701_v2, 4 }
 0x25a   :  { %v2965_v11 = vsub.f32 %v23134_v15, %v27282_v52  ;;  %v27284_v17 = vand.u32 4294901760, %v23165_v36  ;;  %v27285_v52 = vand.u32 4294901760, %v23170_v33  ;;  %v27286_v51 = vand.u32 4294901760, %v23175_v35  ;;  %2690 = vmatmul.mubr.f32.vlgmr.msra.gmra.mrb[20].mxu1 %v22599_v45 }
 0x25b   :  { %v23234_v50 = vsub.f32 %v23150_v8, %v27283_v10  ;;  %v27287_v32 = vand.u32 4294901760, %v23158_v20  ;;  %v26743_v25 = vand.u32 4294901760, %v23217_v59  ;;  %v23260_v46 = vpack.c.bf16 %v2833_v9, %v2826_v24  ;;  %18932 = vmatpush3.bf16.msra.mxu1 %v23104_v5  ;;  %3032 = vmatprep.mubr.f32.mxu1 %v23153_v56 }
 0x25c   :  { %v23241_v3 = vsub.f32 %v23165_v36, %v27284_v17  ;;  %v23246_v48 = vsub.f32 %v23170_v33, %v27285_v52  ;;  %v23251_v10 = vsub.f32 %v23175_v35, %v27286_v51  ;;  %v23262_v52 = vpack.c.bf16 %v2959_v18, %v2952_v1  ;;  %v27289_v51 = vld [vmem:[#allocation92_spill] sm:$0xff]  ;;  %v27292_v1 = vld [vmem:[#allocation93_spill] sm:$0xff]  ;;  %18934 = vmatprep.subr.bf16.mxu1 %v23144_v49 }
 0x25d   :  { %v2972_v15 = vsub.f32 %v23158_v20, %v27287_v32  ;;  %27288 = vst [vmem:[#allocation165_spill] sm:$0xff] %v23260_v46  ;;  %v2840_v22 = vand.u32 4294901760, %v2839_v41  ;;  %v2847_v36 = vand.u32 4294901760, %v2846_v53  ;;  %18860 = vmatpush3.bf16.msra.mxu0 %v27289_v51  ;;  %v2966_v39 = vand.u32 4294901760, %v2965_v11 }
 0x25e   :  { %v27290_v55 = vand.u32 4294901760, %v23190_v58  ;;  %v27291_v32 = vand.u32 4294901760, %v23195_v42  ;;  %v1703_v9 = vadd.f32 %v1702_v63, %v1701_v2  ;;  %18862 = vmatprep.subr.bf16.mxu0 %v27292_v1  ;;  %v27294_v2 = vand.u32 4294901760, %v23212_v27 }
 0x25f   :  { %v2986_v41 = vsub.f32 %v23217_v59, %v26743_v25  ;;  %v27295_v18 = vand.u32 4294901760, %v22804_v43  ;;  %v27296_v11 = vand.u32 4294901760, %v22819_v16  ;;  %v27297_v49 = vand.u32 4294901760, %v22767_v4  ;;  %18936 = vmatpush3.bf16.msra.mxu1 %v23260_v46 }
 0x260   :  { %v2853_v8 = vsub.f32 %v23190_v58, %v27290_v55  ;;  %v2860_v17 = vsub.f32 %v23195_v42, %v27291_v32  ;;  %v27293_v55 = vand.u32 4294901760, %v23206_v57  ;;  %v2973_v32 = vand.u32 4294901760, %v2972_v15  ;;  %v27299_v15 = vld [vmem:[#allocation94_spill] sm:$0xff]  ;;  %18938 = vmatprep.subr.bf16.mxu1 %v23262_v52 }
 0x261   :  { %v2979_v63 = vsub.f32 %v23212_v27, %v27294_v2  ;;  %v23293_v24 = vpack.c.bf16 %v27296_v11, %v27295_v18  ;;  %v27298_v1 = vand.u32 4294901760, %v22772_v29  ;;  %18864 = vmatpush3.bf16.msra.mxu0 %v27299_v15  ;;  %v23302_v5 = vpack.c.bf16 %v2847_v36, %v2840_v22 }
 0x262   :  { %v2794_v53 = vsub.f32 %v23206_v57, %v27293_v55  ;;  %v2854_v2 = vand.u32 4294901760, %v2853_v8  ;;  %v2861_v51 = vand.u32 4294901760, %v2860_v17  ;;  %v27300_v25 = vand.u32 4294901760, %v23234_v50  ;;  %18898 = vmatprep.subr.bf16.mxu0 %v23102_v47 }
 0x263   :  { %v23299_v55 = vpack.c.bf16 %v27298_v1, %v27297_v49  ;;  %v1704_v56 = vrot.slane %v1703_v9, 2  ;;  %v27301_v16 = vand.u32 4294901760, %v23241_v3  ;;  %v27302_v29 = vand.u32 4294901760, %v23246_v48  ;;  %18940 = vmatpush3.bf16.msra.mxu1 %v23302_v5 }
 0x264   :  { %v2867_v43 = vsub.f32 %v23234_v50, %v27300_v25  ;;  %v27303_v49 = vand.u32 4294901760, %v23251_v10  ;;  %v2795_v25 = vand.u32 4294901760, %v2794_v53  ;;  %v23319_v36 = vpack.c.bf16 %v2973_v32, %v2966_v39  ;;  %2586 = vmatmul.mubr.f32.vlgmr.msra.gmra.mrb[20].mxu0 %v22599_v45 }
 0x265   :  { %v2874_v4 = vsub.f32 %v23241_v3, %v27301_v16  ;;  %v2993_v22 = vsub.f32 %v23246_v48, %v27302_v29  ;;  %v2980_v17 = vand.u32 4294901760, %v2979_v63  ;;  %v2987_v18 = vand.u32 4294901760, %v2986_v41  ;;  %18900 = vmatpush3.bf16.msra.mxu0 %v23299_v55 }
 0x266   :  { %v3000_v8 = vsub.f32 %v23251_v10, %v27303_v49  ;;  %27304 = vst [vmem:[#allocation94_spill] sm:$0xff] %v23319_v36  ;;  %v27305_v11 = vand.u32 4294901760, %v22956_v19  ;;  %v27306_v1 = vand.u32 4294901760, %v22961_v31  ;;  %v27307_v29 = vand.u32 4294901760, %v22858_v12  ;;  %2796 = vmatprep.mubr.f32.mxu0 %v2795_v25  ;;  %18902 = vmatprep.subr.bf16.mxu0 %v23293_v24 }
 0x267   :  { %v27308_v46 = vand.u32 4294901760, %v22880_v0  ;;  %v23335_v39 = vpack.c.bf16 %v2861_v51, %v2854_v2  ;;  %v2868_v41 = vand.u32 4294901760, %v2867_v43  ;;  %v27310_v45 = vand.u32 4294901760, %v22681_v28  ;;  %18942 = vmatprep.subr.bf16.mxu1 %v23319_v36  ;;  %v27386_v36 = vld [vmem:[#allocation109_spill] sm:$0xff] }
 0x268   :  { %v23326_v16 = vpack.c.bf16 %v27306_v1, %v27305_v11  ;;  %v27311_v31 = vand.u32 4294901760, %v22686_v6  ;;  %v1705_v32 = vadd.f32 %v1704_v56, %v1703_v9  ;;  %v2875_v0 = vand.u32 4294901760, %v2874_v4 }
 0x269   :  { %v23332_v49 = vpack.c.bf16 %v27308_v46, %v27307_v29  ;;  %27309 = vst [vmem:[#allocation166_spill] sm:$0xff] %v23335_v39  ;;  %v2881_v19 = vsub.f32 %v22681_v28, %v27310_v45  ;;  %v2994_v46 = vand.u32 4294901760, %v2993_v22  ;;  %v3001_v12 = vand.u32 4294901760, %v3000_v8  ;;  %18944 = vmatpush3.bf16.msra.mxu1 %v23335_v39 }
 0x26a   :  { %v2888_v53 = vsub.f32 %v22686_v6, %v27311_v31  ;;  %v23346_v51 = vpack.c.bf16 %v2987_v18, %v2980_v17  ;;  %v27313_v63 = vand.u32 4294901760, %v22724_v40  ;;  %v27314_v43 = vand.u32 4294901760, %v22729_v7 }
 0x26b   :  { %v27315_v56 = vand.u32 4294901760, %v23040_v62  ;;  %v27316_v9 = vand.u32 4294901760, %v23064_v37  ;;  %18904 = vmatpush3.bf16.msra.mxu0 %v23332_v49  ;;  %v27317_v4 = vand.u32 4294901760, %v23018_v54  ;;  %v27318_v22 = vand.u32 4294901760, %v23023_v34 }
 0x26c   :  { %27312 = vst [vmem:[#allocation167_spill] sm:$0xff] %v23346_v51  ;;  %v3007_v2 = vsub.f32 %v22724_v40, %v27313_v63  ;;  %v3014_v25 = vsub.f32 %v22729_v7, %v27314_v43  ;;  %v2882_v17 = vand.u32 4294901760, %v2881_v19  ;;  %v2889_v18 = vand.u32 4294901760, %v2888_v53  ;;  %18906 = vmatprep.subr.bf16.mxu0 %v23326_v16  ;;  %18946 = vmatprep.subr.bf16.mxu1 %v23346_v51  ;;  %v27385_v51 = vld [vmem:[#allocation107_spill] sm:$0xff] }
 0x26d   :  { %v23358_v11 = vpack.c.bf16 %v27316_v9, %v27315_v56  ;;  %v23365_v8 = vpack.c.bf16 %v27318_v22, %v27317_v4  ;;  %v27319_v1 = vand.u32 4294901760, %v22749_v61  ;;  %v23372_v62 = vpack.c.bf16 %v2875_v0, %v2868_v41 }
 0x26e   :  { %v23374_v37 = vpack.c.bf16 %v3001_v12, %v2994_v46  ;;  %v27322_v54 = vand.u32 4294901760, %v22754_v30  ;;  %v1706_v45 = vrot.slane %v1705_v32, 1  ;;  %v3008_v19 = vand.u32 4294901760, %v3007_v2 }
 0x26f   :  { %v2895_v29 = vsub.f32 %v22749_v61, %v27319_v1  ;;  %27320 = vst [vmem:[#allocation168_spill] sm:$0xff] %v23372_v62  ;;  %v3015_v31 = vand.u32 4294901760, %v3014_v25  ;;  %v27323_v53 = vand.u32 4294901760, %v22779_v26  ;;  %v27324_v43 = vand.u32 4294901760, %v22784_v44  ;;  %18908 = vmatpush3.bf16.msra.mxu0 %v23365_v8  ;;  %18948 = vmatpush3.bf16.msra.mxu1 %v23372_v62 }
 0x270   :  { %27321 = vst [vmem:[#allocation169_spill] sm:$0xff] %v23374_v37  ;;  %v2902_v34 = vsub.f32 %v22754_v30, %v27322_v54  ;;  %v27325_v0 = vand.u32 4294901760, %v23122_v13  ;;  %v27326_v46 = vand.u32 4294901760, %v23127_v60  ;;  %v27327_v56 = vand.u32 4294901760, %v23090_v38  ;;  %18910 = vmatprep.subr.bf16.mxu0 %v23358_v11  ;;  %18950 = vmatprep.subr.bf16.mxu1 %v23374_v37  ;;  %v27384_v37 = vld [vmem:[#allocation105_spill] sm:$0xff] }
 0x271   :  { %v3021_v63 = vsub.f32 %v22779_v26, %v27323_v53  ;;  %v3028_v41 = vsub.f32 %v22784_v44, %v27324_v43  ;;  %v27328_v2 = vand.u32 4294901760, %v23095_v14  ;;  %v23399_v9 = vpack.c.bf16 %v2889_v18, %v2882_v17  ;;  %v27335_v43 = vld [vmem:[#allocation162_spill] sm:$0xff] }
 0x272   :  { %v23390_v12 = vpack.c.bf16 %v27326_v46, %v27325_v0  ;;  %v2896_v4 = vand.u32 4294901760, %v2895_v29  ;;  %v2903_v13 = vand.u32 4294901760, %v2902_v34  ;;  %v27330_v60 = vand.u32 4294901760, %v22792_v23  ;;  %v27337_v46 = vld [vmem:[#allocation164_spill] sm:$0xff] }
 0x273   :  { %v23397_v25 = vpack.c.bf16 %v27328_v2, %v27327_v56  ;;  %27329 = vst [vmem:[#allocation170_spill] sm:$0xff] %v23399_v9  ;;  %v27331_v1 = vand.u32 4294901760, %v22797_v21  ;;  %v1707_v54 = vadd.f32 %v1706_v45, %v1705_v32  ;;  %v23410_v14 = vpack.c.bf16 %v3015_v31, %v3008_v19  ;;  %18952 = vmatpush3.bf16.msra.mxu1 %v23399_v9  ;;  %v27341_v31 = vld [vmem:[#allocation126_spill] sm:$0xff] }
 0x274   :  { %v2909_v22 = vsub.f32 %v22792_v23, %v27330_v60  ;;  %v3022_v17 = vand.u32 4294901760, %v3021_v63  ;;  %v3029_v18 = vand.u32 4294901760, %v3028_v41  ;;  %v27333_v29 = vand.u32 4294901760, %v23170_v33  ;;  %v27343_v41 = vld [vmem:[#allocation127_spill] sm:$0xff] }
 0x275   :  { %v2916_v38 = vsub.f32 %v22797_v21, %v27331_v1  ;;  %27332 = vst [vmem:[#allocation171_spill] sm:$0xff] %v23410_v14  ;;  %v27334_v53 = vand.u32 4294901760, %v23175_v35  ;;  %18912 = vmatpush3.bf16.msra.mxu0 %v23397_v25  ;;  %v27336_v0 = vand.u32 4294901760, %v27335_v43  ;;  %v27338_v56 = vand.u32 4294901760, %v27337_v46  ;;  %18954 = vmatprep.subr.bf16.mxu1 %v23410_v14 }
 0x276   :  { %18914 = vmatprep.subr.bf16.mxu0 %v23390_v12  ;;  %v23427_v32 = vpack.c.bf16 %v2903_v13, %v2896_v4  ;;  %v2910_v45 = vand.u32 4294901760, %v2909_v22  ;;  %v23429_v19 = vand.u32 4294901760, %v1707_v54  ;;  %v23432_v35 = vpack.c.bf16 %v3029_v18, %v3022_v17  ;;  %v27347_v4 = vld [vmem:[#allocation131_spill] sm:$0xff]  ;;  %v27350_v18 = vld [vmem:[#allocation133_spill] sm:$0xff] }
 0x277   :  { %v23416_v34 = vpack.c.bf16 %v27334_v53, %v27333_v29  ;;  %v23423_v2 = vpack.c.bf16 %v27338_v56, %v27336_v0  ;;  %v2917_v33 = vand.u32 4294901760, %v2916_v38  ;;  %v27342_v63 = vand.u32 4294901760, %v27341_v31  ;;  %v27345_v29 = vld [vmem:[#allocation130_spill] sm:$0xff] }
 0x278   :  { %27339 = vst [vmem:[#allocation162_spill] sm:$0xff] %v23427_v32  ;;  %27340 = vst [vmem:[#allocation164_spill] sm:$0xff] %v23432_v35  ;;  %v27344_v60 = vand.u32 4294901760, %v27343_v41  ;;  %v27346_v53 = vand.u32 4294901760, %v27345_v29  ;;  %v27348_v13 = vand.u32 4294901760, %v27347_v4  ;;  %18956 = vmatpush3.bf16.msra.mxu1 %v23427_v32  ;;  %v23452_v17 = vsub.f32 %v1707_v54, %v23429_v19  ;;  %v27352_v0 = vld [vmem:[#allocation134_spill] sm:$0xff] }
 0x279   :  { %18916 = vmatpush3.bf16.msra.mxu0 %v23423_v2  ;;  %v23449_v38 = vpack.c.bf16 %v2917_v33, %v2910_v45  ;;  %18958 = vmatprep.subr.bf16.mxu1 %v23432_v35  ;;  %v27351_v43 = vand.u32 4294901760, %v27350_v18  ;;  %v27353_v46 = vand.u32 4294901760, %v27352_v0  ;;  %v27354_v33 = vld [vmem:[#allocation135_spill] sm:$0xff]  ;;  %v27356_v54 = vld [vmem:[#allocation136_spill] sm:$0xff]  ;;  %v27362_v18 = vand.u32 4294901760, %v23206_v57  ;;  %v27363_v0 = vld [vmem:[#allocation142_spill] sm:$0xff] }
 0x27a   :  { %v23439_v1 = vpack.c.bf16 %v27344_v60, %v27342_v63  ;;  %v23445_v22 = vpack.c.bf16 %v27348_v13, %v27346_v53  ;;  %18918 = vmatprep.subr.bf16.mxu0 %v23416_v34  ;;  %v26747_v45 = vand.u32 4294901760, %v23452_v17  ;;  %v27355_v31 = vand.u32 4294901760, %v27354_v33  ;;  %v27358_v60 = vld [vmem:[#allocation137_spill] sm:$0xff]  ;;  %v27360_v53 = vld [vmem:[#allocation138_spill] sm:$0xff] }
 0x27b   :  { %27349 = vst [vmem:[#allocation126_spill] sm:$0xff] %v23449_v38  ;;  %v23460_v56 = vpack.c.bf16 %v27353_v46, %v27351_v43  ;;  %v27357_v63 = vand.u32 4294901760, %v27356_v54  ;;  %v27359_v29 = vand.u32 4294901760, %v27358_v60  ;;  %v27361_v4 = vand.u32 4294901760, %v27360_v53  ;;  %v27364_v46 = vld [vmem:[#allocation144_spill] sm:$0xff]  ;;  %v27370_v53 = vld [vmem:[#allocation153_spill] sm:$0xff] }
 0x27c   :  { %18960 = vmatpush3.bf16.msra.mxu1 %v23449_v38  ;;  %v2800_v43 = vsub.f32 %v23452_v17, %v26747_v45  ;;  %v23488_v33 = vpack.c.bf16 %v27364_v46, %v27363_v0  ;;  %v27367_v54 = vld [vmem:[#allocation148_spill] sm:$0xff]  ;;  %v27373_v45 = vld [vmem:[#allocation42_spill] sm:$0xff]  ;;  %v1718_v62 = vmul.f32 %v27384_v37, %v27384_v37  ;;  %v23550_v39 = vpack.c.bf16 %v23241_v3, %v23234_v50 }
 0x27d   :  { %18920 = vmatpush3.bf16.msra.mxu0 %v23439_v1  ;;  %v23469_v41 = vpack.c.bf16 %v27357_v63, %v27355_v31  ;;  %18994 = vmatprep.subr.bf16.mxu1 %v23102_v47  ;;  %v23478_v13 = vpack.c.bf16 %v27361_v4, %v27359_v29  ;;  %v27366_v31 = vld [vmem:[#allocation147_spill] sm:$0xff] }
 0x27e   :  { %18922 = vmatprep.subr.bf16.mxu0 %v23445_v22  ;;  %27365 = vst [vmem:[#allocation127_spill] sm:$0xff] %v23488_v33  ;;  %v23495_v63 = vpack.c.bf16 %v27367_v54, %v27366_v31  ;;  %v2801_v60 = vand.u32 4294901760, %v2800_v43  ;;  %v27369_v29 = vld [vmem:[#allocation151_spill] sm:$0xff]  ;;  %v27375_v43 = vld [vmem:[#allocation57_spill] sm:$0xff] }
 0x27f   :  { %3034 = vmatmul.mubr.f32.vlgmr.msra.gmra.mrb[22].mxu1 %v23429_v19  ;;  %v23501_v4 = vpack.c.bf16 %v27370_v53, %v27369_v29 }
 0x280   :  { %18996 = vmatpush3.bf16.msra.mxu1 %v23299_v55  ;;  %3276 = vmatprep.mubr.f32.mxu1 %v27362_v18  ;;  %27368 = vst [vmem:[#allocation130_spill] sm:$0xff] %v23495_v63  ;;  %v27372_v18 = vld [vmem:[#allocation156_spill] sm:$0xff] }
 0x281   :  { %18924 = vmatpush3.bf16.msra.mxu0 %v23460_v56  ;;  %18998 = vmatprep.subr.bf16.mxu1 %v23293_v24  ;;  %27371 = vst [vmem:[#allocation131_spill] sm:$0xff] %v23501_v4  ;;  %v23508_v38 = vpack.c.bf16 %v27373_v45, %v27372_v18 }
 0x282   :  { %18926 = vmatprep.subr.bf16.mxu0 %v23469_v41 }
 0x283   :  { %27374 = vst [vmem:[#allocation133_spill] sm:$0xff] %v23508_v38 }
 0x284   :  { %19000 = vmatpush3.bf16.msra.mxu1 %v23332_v49 }
 0x285   :  { %18928 = vmatpush3.bf16.msra.mxu0 %v23478_v13  ;;  %19002 = vmatprep.subr.bf16.mxu1 %v23326_v16 }
 0x286   :  { %18962 = vmatprep.subr.bf16.mxu0 %v23488_v33  ;;  %v27376_v33 = vld [vmem:[#allocation100_spill] sm:$0xff] }
 0x287   :  { %v23514_v35 = vpack.c.bf16 %v27376_v33, %v27375_v43 }
 0x288   :  { %2802 = vmatmul.mubr.f32.vlgmr.msra.gmra.mrb[22].mxu0 %v2801_v60  ;;  %19004 = vmatpush3.bf16.msra.mxu1 %v23365_v8  ;;  %v27378_v60 = vld [vmem:[#allocation157_spill] sm:$0xff] }
 0x289   :  { %18964 = vmatpush3.bf16.msra.mxu0 %v23495_v63  ;;  %3169 = vmatprep.mubr.f32.mxu0 %v23206_v57  ;;  %27377 = vst [vmem:[#allocation134_spill] sm:$0xff] %v23514_v35  ;;  %v27379_v63 = vld [vmem:[#allocation158_spill] sm:$0xff]  ;;  %v27381_v57 = vld [vmem:[#allocation159_spill] sm:$0xff] }
 0x28a   :  { %18966 = vmatprep.subr.bf16.mxu0 %v23501_v4  ;;  %19006 = vmatprep.subr.bf16.mxu1 %v23358_v11  ;;  %v23520_v32 = vpack.c.bf16 %v27379_v63, %v27378_v60  ;;  %v23526_v14 = vpack.c.bf16 %v23158_v20, %v27381_v57  ;;  %v27383_v4 = vld [vmem:[#allocation103_spill] sm:$0xff] }
 0x28b   :  { %v1722_v9 = vmul.f32 %v27383_v4, %v27383_v4  ;;  %v1726_v4 = vmul.f32 %v27385_v51, %v27385_v51  ;;  %v1730_v51 = vmul.f32 %v27386_v36, %v27386_v36  ;;  %v27438_v36 = vld [vmem:[#allocation46_spill] sm:$0xff] }
 0x28c   :  { %27380 = vst [vmem:[#allocation135_spill] sm:$0xff] %v23520_v32  ;;  %19008 = vmatpush3.bf16.msra.mxu1 %v23397_v25  ;;  %27382 = vst [vmem:[#allocation136_spill] sm:$0xff] %v23526_v14 }
 0x28d   :  { %18968 = vmatpush3.bf16.msra.mxu0 %v23508_v38  ;;  %19010 = vmatprep.subr.bf16.mxu1 %v23390_v12  ;;  %v23534_v38 = vpack.c.bf16 %v23195_v42, %v23190_v58 }
 0x28e   :  { %18970 = vmatprep.subr.bf16.mxu0 %v23514_v35  ;;  %v23540_v35 = vpack.c.bf16 %v23217_v59, %v23212_v27 }
 0x290   :  { %19012 = vmatpush3.bf16.msra.mxu1 %v23423_v2 }
 0x291   :  { %18972 = vmatpush3.bf16.msra.mxu0 %v23520_v32  ;;  %19014 = vmatprep.subr.bf16.mxu1 %v23416_v34  ;;  %v1742_v32 = vadd.f32 %v1722_v9, %v1718_v62  ;;  %v23564_v62 = vpack.c.bf16 %v22686_v6, %v22681_v28  ;;  %v23570_v9 = vpack.c.bf16 %v22729_v7, %v22724_v40  ;;  %v27387_v28 = vand.u32 4294901760, %v23452_v17 }
 0x292   :  { %18974 = vmatprep.subr.bf16.mxu0 %v23526_v14  ;;  %v23556_v14 = vpack.c.bf16 %v23251_v10, %v23246_v48  ;;  %v23583_v7 = vpack.c.bf16 %v22784_v44, %v22779_v26  ;;  %v23590_v40 = vpack.c.bf16 %v22797_v21, %v22792_v23  ;;  %v27391_v23 = vand.u32 4294901760, %v27366_v31 }
 0x293   :  { %v1743_v37 = vadd.f32 %v1742_v32, %v1726_v4  ;;  %v23576_v4 = vpack.c.bf16 %v22754_v30, %v22749_v61  ;;  %v27388_v61 = vld [vmem:[#allocation163_spill] sm:$0xff]  ;;  %v27389_v30 = vand.u32 4294901760, %v27363_v0  ;;  %v27392_v44 = vand.u32 4294901760, %v27367_v54 }
 0x294   :  { %19016 = vmatpush3.bf16.msra.mxu1 %v23439_v1  ;;  %v27393_v0 = vand.u32 4294901760, %v27369_v29  ;;  %v27396_v31 = vand.u32 4294901760, %v27372_v18  ;;  %v27397_v54 = vand.u32 4294901760, %v27373_v45  ;;  %v27399_v29 = vand.u32 4294901760, %v27375_v43 }
 0x295   :  { %18976 = vmatpush3.bf16.msra.mxu0 %v23534_v38  ;;  %19018 = vmatprep.subr.bf16.mxu1 %v23445_v22  ;;  %v1744_v32 = vadd.f32 %v1743_v37, %v1730_v51  ;;  %v27390_v51 = vand.u32 4294901760, %v27364_v46  ;;  %v23607_v21 = vpack.c.bf16 %v27392_v44, %v27391_v23  ;;  %v27394_v46 = vand.u32 4294901760, %v27370_v53  ;;  %v27408_v23 = vld [vmem:[#allocation102_spill] sm:$0xff] }
 0x296   :  { %18978 = vmatprep.subr.bf16.mxu0 %v23540_v35  ;;  %v27400_v53 = vand.u32 4294901760, %v27376_v33  ;;  %v27402_v18 = vand.u32 4294901760, %v27378_v60  ;;  %v27403_v45 = vand.u32 4294901760, %v27379_v63  ;;  %v27405_v43 = vand.u32 4294901760, %v27381_v57 }
 0x297   :  { %v1745_v6 = vrot.slane %v1744_v32, 4  ;;  %v23598_v37 = vpack.c.bf16 %v27390_v51, %v27389_v30  ;;  %v27406_v33 = vand.u32 4294901760, %v23158_v20  ;;  %v1721_v60 = vmul.f32 %v27408_v23, %v27408_v23  ;;  %v27413_v20 = vld [vmem:[#allocation106_spill] sm:$0xff]  ;;  %v27444_v23 = vld [vmem:[#allocation59_spill] sm:$0xff] }
 0x298   :  { %19020 = vmatpush3.bf16.msra.mxu1 %v23460_v56  ;;  %v23633_v30 = vpack.c.bf16 %v27400_v53, %v27399_v29  ;;  %v27409_v63 = vand.u32 4294901760, %v23190_v58  ;;  %v27410_v44 = vand.u32 4294901760, %v23195_v42  ;;  %v27417_v53 = vand.u32 4294901760, %v23234_v50 }
 0x299   :  { %18980 = vmatpush3.bf16.msra.mxu0 %v23550_v39  ;;  %19022 = vmatprep.subr.bf16.mxu1 %v23469_v41  ;;  %v1746_v26 = vadd.f32 %v1745_v6, %v1744_v32  ;;  %v23615_v32 = vpack.c.bf16 %v27394_v46, %v27393_v0  ;;  %v23649_v51 = vpack.c.bf16 %v27406_v33, %v27405_v43  ;;  %v27412_v46 = vld [vmem:[#allocation104_spill] sm:$0xff] }
 0x29a   :  { %18982 = vmatprep.subr.bf16.mxu0 %v23556_v14  ;;  %27401 = vst [vmem:[#allocation142_spill] sm:$0xff] %v23633_v30  ;;  %v23659_v0 = vpack.c.bf16 %v27410_v44, %v27409_v63  ;;  %v1717_v57 = vmul.f32 %v27412_v46, %v27412_v46  ;;  %v27420_v33 = vld [vmem:[#allocation108_spill] sm:$0xff]  ;;  %v27425_v63 = vld [vmem:[#allocation141_spill] sm:$0xff]  ;;  %v27426_v44 = vld [vmem:[#allocation30_spill] sm:$0xff] }
 0x29b   :  { %27395 = vst [vmem:[#allocation137_spill] sm:$0xff] %v23615_v32  ;;  %v1747_v6 = vrot.slane %v1746_v26, 2  ;;  %27407 = vst [vmem:[#allocation147_spill] sm:$0xff] %v23649_v51  ;;  %v27446_v46 = vld [vmem:[#allocation64_spill] sm:$0xff] }
 0x29c   :  { %19024 = vmatpush3.bf16.msra.mxu1 %v23478_v13  ;;  %27411 = vst [vmem:[#allocation148_spill] sm:$0xff] %v23659_v0  ;;  %v1733_v42 = vadd.f32 %v1721_v60, %v1717_v57 }
 0x29d   :  { %18984 = vmatpush3.bf16.msra.mxu0 %v23564_v62  ;;  %19058 = vmatprep.subr.bf16.mxu1 %v23102_v47 }
 0x29e   :  { %18986 = vmatprep.subr.bf16.mxu0 %v23570_v9 }
 0x29f   :  { %3280 = vmatmul.mubr.f32.vlgmr.msra.gmra.mrb[24].mxu1 %v27387_v28  ;;  %v23625_v28 = vpack.c.bf16 %v27397_v54, %v27396_v31  ;;  %v27414_v31 = vand.u32 4294901760, %v23212_v27  ;;  %v27415_v54 = vand.u32 4294901760, %v23217_v59  ;;  %v1729_v27 = vmul.f32 %v27420_v33, %v27420_v33  ;;  %v27439_v33 = vld [vmem:[#allocation41_spill] sm:$0xff] }
 0x2a0   :  { %19060 = vmatpush3.bf16.msra.mxu1 %v23299_v55  ;;  %3550 = vmatprep.mubr.f32.mxu1 %v27388_v61  ;;  %v27421_v59 = vand.u32 4294901760, %v23246_v48  ;;  %v27424_v48 = vld [vmem:[#allocation140_spill] sm:$0xff] }
 0x2a1   :  { %18988 = vmatpush3.bf16.msra.mxu0 %v23576_v4  ;;  %19062 = vmatprep.subr.bf16.mxu1 %v23293_v24  ;;  %27398 = vst [vmem:[#allocation138_spill] sm:$0xff] %v23625_v28  ;;  %v23671_v29 = vpack.c.bf16 %v27415_v54, %v27414_v31  ;;  %v27428_v54 = vld [vmem:[#allocation31_spill] sm:$0xff] }
 0x2a2   :  { %18990 = vmatprep.subr.bf16.mxu0 %v23583_v7 }
 0x2a3   :  { %27416 = vst [vmem:[#allocation151_spill] sm:$0xff] %v23671_v29 }
 0x2a4   :  { %19064 = vmatpush3.bf16.msra.mxu1 %v23332_v49 }
 0x2a5   :  { %18992 = vmatpush3.bf16.msra.mxu0 %v23590_v40  ;;  %19066 = vmatprep.subr.bf16.mxu1 %v23326_v16 }
 0x2a6   :  { %19026 = vmatprep.subr.bf16.mxu0 %v23598_v37 }
 0x2a8   :  { %3172 = vmatmul.mubr.f32.vlgmr.msra.gmra.mrb[24].mxu0 %v23452_v17  ;;  %19068 = vmatpush3.bf16.msra.mxu1 %v23365_v8  ;;  %v1748_v17 = vadd.f32 %v1747_v6, %v1746_v26  ;;  %v1725_v6 = vmul.f32 %v27413_v20, %v27413_v20  ;;  %v27441_v20 = vld [vmem:[#allocation45_spill] sm:$0xff] }
 0x2a9   :  { %19028 = vmatpush3.bf16.msra.mxu0 %v23607_v21  ;;  %3446 = vmatprep.mubr.f32.mxu0 %v27388_v61  ;;  %v23641_v61 = vpack.c.bf16 %v27403_v45, %v27402_v18  ;;  %v27418_v18 = vand.u32 4294901760, %v23241_v3 }
 0x2aa   :  { %19030 = vmatprep.subr.bf16.mxu0 %v23615_v32  ;;  %19070 = vmatprep.subr.bf16.mxu1 %v23358_v11  ;;  %v1749_v26 = vrot.slane %v1748_v17, 1  ;;  %v1734_v43 = vadd.f32 %v1733_v42, %v1725_v6  ;;  %v27427_v6 = vld [vmem:[#allocation143_spill] sm:$0xff]  ;;  %v27430_v42 = vld [vmem:[#allocation32_spill] sm:$0xff] }
 0x2ab   :  { %27404 = vst [vmem:[#allocation144_spill] sm:$0xff] %v23641_v61  ;;  %v23679_v45 = vpack.c.bf16 %v27418_v18, %v27417_v53  ;;  %v27431_v18 = vld [vmem:[#allocation149_spill] sm:$0xff] }
 0x2ac   :  { %19072 = vmatpush3.bf16.msra.mxu1 %v23397_v25  ;;  %v1750_v58 = vadd.f32 %v1749_v26, %v1748_v17  ;;  %v27422_v17 = vand.u32 4294901760, %v23251_v10  ;;  %v1735_v3 = vadd.f32 %v1734_v43, %v1729_v27  ;;  %v27432_v27 = vld [vmem:[#allocation37_spill] sm:$0xff] }
 0x2ad   :  { %19032 = vmatpush3.bf16.msra.mxu0 %v23625_v28  ;;  %19074 = vmatprep.subr.bf16.mxu1 %v23390_v12  ;;  %27419 = vst [vmem:[#allocation153_spill] sm:$0xff] %v23679_v45  ;;  %v27473_v28 = vld [vmem:[#allocation139_spill] sm:$0xff] }
 0x2ae   :  { %19034 = vmatprep.subr.bf16.mxu0 %v23633_v30  ;;  %v23689_v26 = vpack.c.bf16 %v27422_v17, %v27421_v59  ;;  %v23692_v50 = vand.u32 4294901760, %v1750_v58  ;;  %v1736_v10 = vrot.slane %v1735_v3, 4  ;;  %v27433_v59 = vld [vmem:[#allocation35_spill] sm:$0xff]  ;;  %v27434_v17 = vld [vmem:[#allocation40_spill] sm:$0xff]  ;;  %v27471_v30 = vld [vmem:[#allocation82_spill] sm:$0xff]  ;;  %v1732_v32 = vmul.f32 %v27473_v28, %v27473_v28 }
 0x2b0   :  { %19076 = vmatpush3.bf16.msra.mxu1 %v23423_v2  ;;  %27423 = vst [vmem:[#allocation156_spill] sm:$0xff] %v23689_v26  ;;  %v23699_v60 = vsub.f32 %v1750_v58, %v23692_v50  ;;  %v1737_v31 = vadd.f32 %v1736_v10, %v1735_v3  ;;  %v27429_v58 = vld [vmem:[#allocation146_spill] sm:$0xff] }
 0x2b1   :  { %19036 = vmatpush3.bf16.msra.mxu0 %v23641_v61  ;;  %19078 = vmatprep.subr.bf16.mxu1 %v23416_v34  ;;  %v27435_v10 = vld [vmem:[#allocation38_spill] sm:$0xff] }
 0x2b2   :  { %19038 = vmatprep.subr.bf16.mxu0 %v23649_v51  ;;  %v3656_v57 = vand.u32 4294901760, %v23699_v60  ;;  %v1738_v43 = vrot.slane %v1737_v31, 2 }
 0x2b4   :  { %19080 = vmatpush3.bf16.msra.mxu1 %v23439_v1  ;;  %v3657_v53 = vsub.f32 %v23699_v60, %v3656_v57 }
 0x2b5   :  { %19040 = vmatpush3.bf16.msra.mxu0 %v23659_v0  ;;  %19082 = vmatprep.subr.bf16.mxu1 %v23445_v22 }
 0x2b6   :  { %19042 = vmatprep.subr.bf16.mxu0 %v23671_v29  ;;  %v3658_v3 = vand.u32 4294901760, %v3657_v53  ;;  %v27442_v53 = vld [vmem:[#allocation56_spill] sm:$0xff] }
 0x2b8   :  { %19084 = vmatpush3.bf16.msra.mxu1 %v23460_v56 }
 0x2b9   :  { %19044 = vmatpush3.bf16.msra.mxu0 %v23679_v45  ;;  %19086 = vmatprep.subr.bf16.mxu1 %v23469_v41  ;;  %v27464_v45 = vld [vmem:[#allocation77_spill] sm:$0xff] }
 0x2ba   :  { %19046 = vmatprep.subr.bf16.mxu0 %v23689_v26  ;;  %v27462_v26 = vld [vmem:[#allocation73_spill] sm:$0xff] }
 0x2bc   :  { %19088 = vmatpush3.bf16.msra.mxu1 %v23478_v13 }
 0x2bd   :  { %19048 = vmatpush3.bf16.msra.mxu0 %v27424_v48  ;;  %19122 = vmatprep.subr.bf16.mxu1 %v27426_v44  ;;  %v27436_v44 = vld [vmem:[#allocation44_spill] sm:$0xff]  ;;  %v27461_v48 = vld [vmem:[#allocation75_spill] sm:$0xff] }
 0x2be   :  { %19050 = vmatprep.subr.bf16.mxu0 %v27425_v63 }
 0x2bf   :  { %3552 = vmatmul.mubr.f32.vlgmr.msra.gmra.mrb[26].mxu1 %v23429_v19 }
 0x2c0   :  { %19124 = vmatpush3.bf16.msra.mxu1 %v27428_v54  ;;  %3895 = vmatprep.mubr.f32.mxu1 %v23692_v50  ;;  %v27437_v54 = vld [vmem:[#allocation39_spill] sm:$0xff] }
 0x2c1   :  { %19052 = vmatpush3.bf16.msra.mxu0 %v27427_v6  ;;  %19126 = vmatprep.subr.bf16.mxu1 %v27430_v42  ;;  %v1739_v42 = vadd.f32 %v1738_v43, %v1737_v31  ;;  %v27447_v31 = vld [vmem:[#allocation58_spill] sm:$0xff]  ;;  %v27449_v43 = vld [vmem:[#allocation55_spill] sm:$0xff]  ;;  %v27457_v6 = vld [vmem:[#allocation65_spill] sm:$0xff] }
 0x2c2   :  { %19054 = vmatprep.subr.bf16.mxu0 %v27429_v58  ;;  %v27452_v58 = vld [vmem:[#allocation71_spill] sm:$0xff] }
 0x2c4   :  { %19128 = vmatpush3.bf16.msra.mxu1 %v27432_v27  ;;  %v27440_v27 = vld [vmem:[#allocation53_spill] sm:$0xff] }
 0x2c5   :  { %19056 = vmatpush3.bf16.msra.mxu0 %v27431_v18  ;;  %19130 = vmatprep.subr.bf16.mxu1 %v27434_v17  ;;  %v1740_v17 = vrot.slane %v1739_v42, 1  ;;  %v27450_v18 = vld [vmem:[#allocation68_spill] sm:$0xff] }
 0x2c6   :  { %19090 = vmatprep.subr.bf16.mxu0 %v27433_v59 }
 0x2c8   :  { %3448 = vmatmul.mubr.f32.vlgmr.msra.gmra.mrb[26].mxu0 %v23429_v19  ;;  %19132 = vmatpush3.bf16.msra.mxu1 %v27436_v44  ;;  %v27443_v19 = vld [vmem:[#allocation49_spill] sm:$0xff]  ;;  %v1741_v44 = vadd.f32 %v1740_v17, %v1739_v42  ;;  %v27455_v17 = vld [vmem:[#allocation67_spill] sm:$0xff] }
 0x2c9   :  { %19092 = vmatpush3.bf16.msra.mxu0 %v27435_v10  ;;  %3659 = vmatprep.mubr.f32.mxu0 %v3658_v3  ;;  %v27445_v3 = vld [vmem:[#allocation52_spill] sm:$0xff] }
 0x2ca   :  { %19094 = vmatprep.subr.bf16.mxu0 %v27437_v54  ;;  %19134 = vmatprep.subr.bf16.mxu1 %v27438_v36  ;;  %v27448_v36 = vld [vmem:[#allocation66_spill] sm:$0xff] }
 0x2cc   :  { %19136 = vmatpush3.bf16.msra.mxu1 %v27440_v27  ;;  %v23733_v27 = vand.u32 4294901760, %v1741_v44 }
 0x2cd   :  { %19096 = vmatpush3.bf16.msra.mxu0 %v27439_v33  ;;  %19138 = vmatprep.subr.bf16.mxu1 %v27442_v53  ;;  %v27451_v53 = vld [vmem:[#allocation60_spill] sm:$0xff] }
 0x2ce   :  { %19098 = vmatprep.subr.bf16.mxu0 %v27441_v20  ;;  %v23740_v42 = vsub.f32 %v1741_v44, %v23733_v27  ;;  %v27459_v44 = vld [vmem:[#allocation70_spill] sm:$0xff] }
 0x2d0   :  { %19140 = vmatpush3.bf16.msra.mxu1 %v27444_v23  ;;  %v27453_v23 = vld [vmem:[#allocation61_spill] sm:$0xff]  ;;  %v3662_v63 = vand.u32 4294901760, %v23740_v42 }
 0x2d1   :  { %19100 = vmatpush3.bf16.msra.mxu0 %v27443_v19  ;;  %19142 = vmatprep.subr.bf16.mxu1 %v27446_v46  ;;  %v27454_v46 = vld [vmem:[#allocation74_spill] sm:$0xff] }
 0x2d2   :  { %19102 = vmatprep.subr.bf16.mxu0 %v27445_v3 }
 0x2d4   :  { %19144 = vmatpush3.bf16.msra.mxu1 %v27448_v36  ;;  %v27456_v36 = vld [vmem:[#allocation78_spill] sm:$0xff] }
 0x2d5   :  { %19104 = vmatpush3.bf16.msra.mxu0 %v27447_v31  ;;  %19146 = vmatprep.subr.bf16.mxu1 %v27450_v18  ;;  %v3663_v18 = vsub.f32 %v23740_v42, %v3662_v63 }
 0x2d6   :  { %19106 = vmatprep.subr.bf16.mxu0 %v27449_v43 }
 0x2d8   :  { %19148 = vmatpush3.bf16.msra.mxu1 %v27452_v58  ;;  %v27458_v58 = vld [vmem:[#allocation69_spill] sm:$0xff] }
 0x2d9   :  { %19108 = vmatpush3.bf16.msra.mxu0 %v27451_v53  ;;  %19150 = vmatprep.subr.bf16.mxu1 %v27454_v46  ;;  %v27460_v46 = vld [vmem:[#allocation72_spill] sm:$0xff] }
 0x2da   :  { %19110 = vmatprep.subr.bf16.mxu0 %v27453_v23 }
 0x2dc   :  { %19152 = vmatpush3.bf16.msra.mxu1 %v27456_v36  ;;  %v3664_v36 = vand.u32 4294901760, %v3663_v18  ;;  %v27465_v18 = vld [vmem:[#allocation79_spill] sm:$0xff] }
 0x2dd   :  { %19112 = vmatpush3.bf16.msra.mxu0 %v27455_v17  ;;  %19186 = vmatprep.subr.bf16.mxu1 %v27433_v59 }
 0x2de   :  { %19114 = vmatprep.subr.bf16.mxu0 %v27457_v6 }
 0x2df   :  { %3897 = vmatmul.mubr.f32.vlgmr.msra.gmra.mrb[28].mxu1 %v23733_v27 }
 0x2e0   :  { %19188 = vmatpush3.bf16.msra.mxu1 %v27435_v10  ;;  %4139 = vmatprep.mubr.f32.mxu1 %v3656_v57  ;;  %v27463_v57 = vld [vmem:[#allocation76_spill] sm:$0xff] }
 0x2e1   :  { %19116 = vmatpush3.bf16.msra.mxu0 %v27458_v58  ;;  %19190 = vmatprep.subr.bf16.mxu1 %v27437_v54 }
 0x2e2   :  { %19118 = vmatprep.subr.bf16.mxu0 %v27459_v44 }
 0x2e4   :  { %19192 = vmatpush3.bf16.msra.mxu1 %v27439_v33 }
 0x2e5   :  { %19120 = vmatpush3.bf16.msra.mxu0 %v27460_v46  ;;  %19194 = vmatprep.subr.bf16.mxu1 %v27441_v20 }
 0x2e6   :  { %19154 = vmatprep.subr.bf16.mxu0 %v27461_v48  ;;  %v27466_v48 = vld [vmem:[#allocation128_spill] sm:$0xff] }
 0x2e7   :  { %v1720_v29 = vmul.f32 %v27466_v48, %v27466_v48 }
 0x2e8   :  { %3665 = vmatmul.mubr.f32.vlgmr.msra.gmra.mrb[28].mxu0 %v3664_v36  ;;  %19196 = vmatpush3.bf16.msra.mxu1 %v27443_v19  ;;  %v27467_v36 = vld [vmem:[#allocation129_spill] sm:$0xff] }
 0x2e9   :  { %19156 = vmatpush3.bf16.msra.mxu0 %v27462_v26  ;;  %4032 = vmatprep.mubr.f32.mxu0 %v23699_v60  ;;  %v1724_v26 = vmul.f32 %v27467_v36, %v27467_v36  ;;  %v27468_v60 = vld [vmem:[#allocation80_spill] sm:$0xff]  ;;  %v27472_v36 = vld [vmem:[#allocation83_spill] sm:$0xff] }
 0x2ea   :  { %19158 = vmatprep.subr.bf16.mxu0 %v27463_v57  ;;  %19198 = vmatprep.subr.bf16.mxu1 %v27445_v3  ;;  %v27469_v57 = vld [vmem:[#allocation81_spill] sm:$0xff] }
 0x2eb   :  { %v1760_v0 = vadd.f32 %v1724_v26, %v1720_v29  ;;  %v17092_v61 = vpop.f32.mrb[16].mxu1  ;;  %v27474_v29 = vld [vmem:[#allocation84_spill] sm:$0xff]  ;;  %v27475_v26 = vld [vmem:[#allocation85_spill] sm:$0xff] }
 0x2ec   :  { %19200 = vmatpush3.bf16.msra.mxu1 %v27447_v31 }
 0x2ed   :  { %19160 = vmatpush3.bf16.msra.mxu0 %v27464_v45  ;;  %19202 = vmatprep.subr.bf16.mxu1 %v27449_v43  ;;  %v27470_v45 = vld [vmem:[#allocation132_spill] sm:$0xff] }
 0x2ee   :  { %19162 = vmatprep.subr.bf16.mxu0 %v27465_v18  ;;  %v1728_v51 = vmul.f32 %v27470_v45, %v27470_v45  ;;  %v17093_v18 = vpop.f32.mrb[17].mxu1  ;;  %v27476_v45 = vld [vmem:[#allocation86_spill] sm:$0xff] }
 0x2ef   :  { %v17094_v48 = vadd.f32 %v17093_v18, %v17092_v61 }
 0x2f0   :  { %19204 = vmatpush3.bf16.msra.mxu1 %v27451_v53 }
 0x2f1   :  { %19164 = vmatpush3.bf16.msra.mxu0 %v27468_v60  ;;  %19206 = vmatprep.subr.bf16.mxu1 %v27453_v23  ;;  %v1761_v60 = vadd.f32 %v1760_v0, %v1728_v51  ;;  %v27477_v51 = vld [vmem:[#allocation87_spill] sm:$0xff] }
 0x2f2   :  { %19166 = vmatprep.subr.bf16.mxu0 %v27469_v57 }
 0x2f3   :  { %v1762_v57 = vadd.f32 %v1761_v60, %v1732_v32  ;;  %v17057_v61 = vpop.f32.mrb[16].mxu0  ;;  %v27479_v60 = vld [vmem:[#allocation89_spill] sm:$0xff] }
 0x2f4   :  { %19208 = vmatpush3.bf16.msra.mxu1 %v27455_v17 }
 0x2f5   :  { %19168 = vmatpush3.bf16.msra.mxu0 %v27471_v30  ;;  %19210 = vmatprep.subr.bf16.mxu1 %v27457_v6  ;;  %v17058_v30 = vpop.f32.mrb[17].mxu0  ;;  %v1763_v0 = vrot.slane %v1762_v57, 4 }
 0x2f6   :  { %19170 = vmatprep.subr.bf16.mxu0 %v27472_v36  ;;  %v17059_v18 = vadd.f32 %v17058_v30, %v17057_v61  ;;  %v27486_v61 = vld [vmem:[#allocation51_spill] sm:$0xff] }
 0x2f7   :  { %v1764_v32 = vadd.f32 %v1763_v0, %v1762_v57 }
 0x2f8   :  { %19212 = vmatpush3.bf16.msra.mxu1 %v27458_v58  ;;  %v2174_v36 = vadd.f32 %v17094_v48, %v17059_v18 }
 0x2f9   :  { %19172 = vmatpush3.bf16.msra.mxu0 %v27474_v29  ;;  %19214 = vmatprep.subr.bf16.mxu1 %v27459_v44  ;;  %v27478_v29 = vld [vmem:[#allocation88_spill] sm:$0xff]  ;;  %v1765_v48 = vrot.slane %v1764_v32, 2 }
 0x2fa   :  { %19174 = vmatprep.subr.bf16.mxu0 %v27475_v26  ;;  %v27481_v26 = vld [vmem:[#allocation145_spill] sm:$0xff] }
 0x2fc   :  { %19216 = vmatpush3.bf16.msra.mxu1 %v27460_v46 }
 0x2fd   :  { %19176 = vmatpush3.bf16.msra.mxu0 %v27476_v45  ;;  %19250 = vmatprep.subr.bf16.mxu1 %v27433_v59  ;;  %v27480_v45 = vld [vmem:[#allocation90_spill] sm:$0xff]  ;;  %v27483_v59 = vld [vmem:[#allocation152_spill] sm:$0xff] }
 0x2fe   :  { %19178 = vmatprep.subr.bf16.mxu0 %v27477_v51  ;;  %v27490_v51 = vld [vmem:[#allocation34_spill] sm:$0xff] }
 0x2ff   :  { %4143 = vmatmul.mubr.f32.vlgmr.msra.gmra.mrb[30].mxu1 %v3662_v63  ;;  %v27482_v63 = vld [vmem:[#allocation150_spill] sm:$0xff] }
 0x300   :  { %19252 = vmatpush3.bf16.msra.mxu1 %v27435_v10  ;;  %4413 = vmatprep.mubr.f32.mxu1 %v23692_v50  ;;  %v1766_v10 = vadd.f32 %v1765_v48, %v1764_v32  ;;  %v27493_v48 = vld [vmem:[#allocation43_spill] sm:$0xff] }
 0x301   :  { %19180 = vmatpush3.bf16.msra.mxu0 %v27478_v29  ;;  %19254 = vmatprep.subr.bf16.mxu1 %v27437_v54  ;;  %v27484_v54 = vld [vmem:[#allocation154_spill] sm:$0xff] }
 0x302   :  { %19182 = vmatprep.subr.bf16.mxu0 %v27479_v60  ;;  %v27491_v60 = vld [vmem:[#allocation36_spill] sm:$0xff] }
 0x304   :  { %19256 = vmatpush3.bf16.msra.mxu1 %v27439_v33  ;;  %v27485_v33 = vld [vmem:[#allocation50_spill] sm:$0xff] }
 0x305   :  { %19184 = vmatpush3.bf16.msra.mxu0 %v27480_v45  ;;  %19258 = vmatprep.subr.bf16.mxu1 %v27441_v20  ;;  %v1719_v57 = vmul.f32 %v27485_v33, %v27485_v33  ;;  %v1723_v20 = vmul.f32 %v27486_v61, %v27486_v61  ;;  %v27492_v45 = vld [vmem:[#allocation160_spill] sm:$0xff] }
 0x306   :  { %19218 = vmatprep.subr.bf16.mxu0 %v27481_v26  ;;  %v1731_v26 = vmul.f32 %v27492_v45, %v27492_v45 }
 0x307   :  { %v1751_v30 = vadd.f32 %v1723_v20, %v1719_v57  ;;  %v27496_v20 = vld [vmem:[#allocation91_spill] sm:$0xff] }
 0x308   :  { %4035 = vmatmul.mubr.f32.vlgmr.msra.gmra.mrb[30].mxu0 %v23740_v42  ;;  %19260 = vmatpush3.bf16.msra.mxu1 %v27443_v19  ;;  %v27487_v42 = vld [vmem:[#allocation155_spill] sm:$0xff]  ;;  %v27488_v19 = vld [vmem:[#allocation33_spill] sm:$0xff] }
 0x309   :  { %19220 = vmatpush3.bf16.msra.mxu0 %v27482_v63  ;;  %4309 = vmatprep.mubr.f32.mxu0 %v23692_v50  ;;  %v1767_v50 = vrot.slane %v1766_v10, 1  ;;  %v27494_v63 = vld [vmem:[#allocation47_spill] sm:$0xff] }
 0x30a   :  { %19222 = vmatprep.subr.bf16.mxu0 %v27483_v59  ;;  %19262 = vmatprep.subr.bf16.mxu1 %v27445_v3  ;;  %v27489_v3 = vld [vmem:[#allocation62_spill] sm:$0xff]  ;;  %v27495_v59 = vld [vmem:[#allocation48_spill] sm:$0xff] }
 0x30b   :  { %v1727_v18 = vmul.f32 %v27489_v3, %v27489_v3  ;;  %v17162_v0 = vpop.f32.mrb[18].mxu1  ;;  %v1768_v29 = vadd.f32 %v1767_v50, %v1766_v10 }
 0x30c   :  { %19264 = vmatpush3.bf16.msra.mxu1 %v27447_v31  ;;  %v17163_v31 = vpop.f32.mrb[19].mxu1 }
 0x30d   :  { %19224 = vmatpush3.bf16.msra.mxu0 %v27484_v54  ;;  %19266 = vmatprep.subr.bf16.mxu1 %v27449_v43  ;;  %v17164_v32 = vadd.f32 %v17163_v31, %v17162_v0  ;;  %v1752_v43 = vadd.f32 %v1751_v30, %v1727_v18  ;;  %v27501_v0 = vld [vmem:[#allocation93_spill] sm:$0xff] }
 0x30e   :  { %19226 = vmatprep.subr.bf16.mxu0 %v27487_v42  ;;  %v27497_v42 = vld [vmem:[#allocation54_spill] sm:$0xff]  ;;  %v27503_v31 = vld [vmem:[#allocation165_spill] sm:$0xff] }
 0x310   :  { %19268 = vmatpush3.bf16.msra.mxu1 %v27451_v53  ;;  %v23826_v53 = vand.u32 4294901760, %v1768_v29 }
 0x311   :  { %19228 = vmatpush3.bf16.msra.mxu0 %v27488_v19  ;;  %19270 = vmatprep.subr.bf16.mxu1 %v27453_v23  ;;  %v1753_v23 = vadd.f32 %v1752_v43, %v1731_v26  ;;  %v27498_v19 = vld [vmem:[#allocation101_spill] sm:$0xff]  ;;  %v27504_v43 = vld [vmem:[#allocation94_spill] sm:$0xff]  ;;  %v27506_v26 = vld [vmem:[#allocation167_spill] sm:$0xff] }
 0x312   :  { %19230 = vmatprep.subr.bf16.mxu0 %v27490_v51  ;;  %v23833_v54 = vsub.f32 %v1768_v29, %v23826_v53  ;;  %v27500_v51 = vld [vmem:[#allocation63_spill] sm:$0xff] }
 0x313   :  { %v17127_v10 = vpop.f32.mrb[18].mxu0 }
 0x314   :  { %19272 = vmatpush3.bf16.msra.mxu1 %v27455_v17  ;;  %v17128_v17 = vpop.f32.mrb[19].mxu0 }
 0x315   :  { %19232 = vmatpush3.bf16.msra.mxu0 %v27491_v60  ;;  %19274 = vmatprep.subr.bf16.mxu1 %v27457_v6  ;;  %v17129_v57 = vadd.f32 %v17128_v17, %v17127_v10  ;;  %v1754_v6 = vrot.slane %v1753_v23, 4  ;;  %v27509_v10 = vld [vmem:[#allocation170_spill] sm:$0xff] }
 0x316   :  { %19234 = vmatprep.subr.bf16.mxu0 %v27493_v48  ;;  %v27508_v48 = vld [vmem:[#allocation169_spill] sm:$0xff] }
 0x317   :  { %v2312_v50 = vadd.f32 %v17129_v57, %v2174_v36  ;;  %v1755_v18 = vadd.f32 %v1754_v6, %v1753_v23  ;;  %v27510_v57 = vld [vmem:[#allocation171_spill] sm:$0xff] }
 0x318   :  { %19276 = vmatpush3.bf16.msra.mxu1 %v27458_v58  ;;  %v4518_v58 = vand.u32 4294901760, %v23833_v54 }
 0x319   :  { %19236 = vmatpush3.bf16.msra.mxu0 %v27494_v63  ;;  %19278 = vmatprep.subr.bf16.mxu1 %v27459_v44  ;;  %v27499_v44 = vld [vmem:[#allocation92_spill] sm:$0xff]  ;;  %v2420_v30 = vadd.f32 %v17164_v32, %v2312_v50  ;;  %v1756_v29 = vrot.slane %v1755_v18, 2 }
 0x31a   :  { %19238 = vmatprep.subr.bf16.mxu0 %v27495_v59  ;;  %v4519_v36 = vsub.f32 %v23833_v54, %v4518_v58  ;;  %v27512_v50 = vld [vmem:[#allocation164_spill] sm:$0xff] }
 0x31b   :  { %v1757_v60 = vadd.f32 %v1756_v29, %v1755_v18  ;;  %v27513_v18 = vld [vmem:[#allocation126_spill] sm:$0xff]  ;;  %v27514_v29 = vld [vmem:[#allocation127_spill] sm:$0xff] }
 0x31c   :  { %19280 = vmatpush3.bf16.msra.mxu1 %v27460_v46  ;;  %v27502_v46 = vld [vmem:[#allocation161_spill] sm:$0xff]  ;;  %v4520_v32 = vand.u32 4294901760, %v4519_v36 }
 0x31d   :  { %19240 = vmatpush3.bf16.msra.mxu0 %v27496_v20  ;;  %19314 = vmatprep.subr.bf16.mxu1 %v27498_v19  ;;  %v27511_v20 = vld [vmem:[#allocation162_spill] sm:$0xff] }
 0x31e   :  { %19242 = vmatprep.subr.bf16.mxu0 %v27497_v42 }
 0x31f   :  { %4415 = vmatmul.mubr.f32.vlgmr.msra.gmra.mrb[32].mxu1 %v23733_v27 }
 0x320   :  { %19316 = vmatpush3.bf16.msra.mxu1 %v27500_v51  ;;  %4757 = vmatprep.mubr.f32.mxu1 %v23826_v53 }
 0x321   :  { %19244 = vmatpush3.bf16.msra.mxu0 %v27499_v44  ;;  %19318 = vmatprep.subr.bf16.mxu1 %v27502_v46 }
 0x322   :  { %19246 = vmatprep.subr.bf16.mxu0 %v27501_v0 }
 0x324   :  { %19320 = vmatpush3.bf16.msra.mxu1 %v27503_v31  ;;  %v27515_v31 = vld [vmem:[#allocation130_spill] sm:$0xff] }
 0x325   :  { %19248 = vmatpush3.bf16.msra.mxu0 %v27299_v15  ;;  %19322 = vmatprep.subr.bf16.mxu1 %v23262_v52  ;;  %v27505_v15 = vld [vmem:[#allocation166_spill] sm:$0xff]  ;;  %v1758_v52 = vrot.slane %v1757_v60, 1 }
 0x326   :  { %19282 = vmatprep.subr.bf16.mxu0 %v23102_v47 }
 0x328   :  { %4311 = vmatmul.mubr.f32.vlgmr.msra.gmra.mrb[32].mxu0 %v23733_v27  ;;  %19324 = vmatpush3.bf16.msra.mxu1 %v23302_v5  ;;  %v27507_v27 = vld [vmem:[#allocation168_spill] sm:$0xff]  ;;  %v1759_v5 = vadd.f32 %v1758_v52, %v1757_v60  ;;  %v27518_v60 = vld [vmem:[#allocation134_spill] sm:$0xff] }
 0x329   :  { %19284 = vmatpush3.bf16.msra.mxu0 %v23299_v55  ;;  %4521 = vmatprep.mubr.f32.mxu0 %v4520_v32  ;;  %v27517_v32 = vld [vmem:[#allocation133_spill] sm:$0xff] }
 0x32a   :  { %19286 = vmatprep.subr.bf16.mxu0 %v23293_v24  ;;  %19326 = vmatprep.subr.bf16.mxu1 %v27504_v43  ;;  %v23867_v17 = vand.u32 4294901760, %v1759_v5  ;;  %v27519_v43 = vld [vmem:[#allocation135_spill] sm:$0xff] }
 0x32c   :  { %19328 = vmatpush3.bf16.msra.mxu1 %v27505_v15  ;;  %v23874_v6 = vsub.f32 %v1759_v5, %v23867_v17  ;;  %v27520_v15 = vld [vmem:[#allocation136_spill] sm:$0xff] }
 0x32d   :  { %19288 = vmatpush3.bf16.msra.mxu0 %v23332_v49  ;;  %19330 = vmatprep.subr.bf16.mxu1 %v27506_v26  ;;  %v17232_v63 = vpop.f32.mrb[20].mxu1 }
 0x32e   :  { %19290 = vmatprep.subr.bf16.mxu0 %v23326_v16  ;;  %v17233_v23 = vpop.f32.mrb[21].mxu1  ;;  %v4524_v51 = vand.u32 4294901760, %v23874_v6 }
 0x32f   :  { %v17234_v59 = vadd.f32 %v17233_v23, %v17232_v63  ;;  %v27530_v23 = vld [vmem:[#allocation140_spill] sm:$0xff] }
 0x330   :  { %19332 = vmatpush3.bf16.msra.mxu1 %v27507_v27  ;;  %v4525_v36 = vsub.f32 %v23874_v6, %v4524_v51 }
 0x331   :  { %19292 = vmatpush3.bf16.msra.mxu0 %v23365_v8  ;;  %19334 = vmatprep.subr.bf16.mxu1 %v27508_v48 }
 0x332   :  { %19294 = vmatprep.subr.bf16.mxu0 %v23358_v11 }
 0x334   :  { %19336 = vmatpush3.bf16.msra.mxu1 %v27509_v10 }
 0x335   :  { %19296 = vmatpush3.bf16.msra.mxu0 %v23397_v25  ;;  %19338 = vmatprep.subr.bf16.mxu1 %v27510_v57 }
 0x336   :  { %19298 = vmatprep.subr.bf16.mxu0 %v23390_v12 }
 0x337   :  { %v17197_v42 = vpop.f32.mrb[20].mxu0 }
 0x338   :  { %19340 = vmatpush3.bf16.msra.mxu1 %v27511_v20  ;;  %v17198_v19 = vpop.f32.mrb[21].mxu0  ;;  %v27532_v20 = vld [vmem:[#allocation143_spill] sm:$0xff] }
 0x339   :  { %19300 = vmatpush3.bf16.msra.mxu0 %v23423_v2  ;;  %19342 = vmatprep.subr.bf16.mxu1 %v27512_v50  ;;  %v17199_v44 = vadd.f32 %v17198_v19, %v17197_v42  ;;  %v27533_v42 = vld [vmem:[#allocation146_spill] sm:$0xff]  ;;  %v26774_v19 = vmov 0.0  }
 0x33a   :  { %19302 = vmatprep.subr.bf16.mxu0 %v23416_v34 }
 0x33b   :  { %v2588_v0 = vadd.f32 %v17199_v44, %v2420_v30  ;;  %v4526_v30 = vand.u32 4294901760, %v4525_v36  ;;  %v27534_v44 = vld [vmem:[#allocation149_spill] sm:$0xff] }
 0x33c   :  { %19344 = vmatpush3.bf16.msra.mxu1 %v27513_v18 }
 0x33d   :  { %19304 = vmatpush3.bf16.msra.mxu0 %v23439_v1  ;;  %19378 = vmatprep.subr.bf16.mxu1 %v23102_v47  ;;  %v2692_v46 = vadd.f32 %v17234_v59, %v2588_v0  ;;  %v27531_v59 = vld [vmem:[#allocation141_spill] sm:$0xff] }
 0x33e   :  { %19306 = vmatprep.subr.bf16.mxu0 %v23445_v22 }
 0x33f   :  { %4759 = vmatmul.mubr.f32.vlgmr.msra.gmra.mrb[34].mxu1 %v23867_v17 }
 0x340   :  { %19380 = vmatpush3.bf16.msra.mxu1 %v23299_v55  ;;  %5001 = vmatprep.mubr.f32.mxu1 %v4518_v58  ;;  %v27516_v58 = vld [vmem:[#allocation131_spill] sm:$0xff] }
 0x341   :  { %19308 = vmatpush3.bf16.msra.mxu0 %v23460_v56  ;;  %19382 = vmatprep.subr.bf16.mxu1 %v23293_v24 }
 0x342   :  { %19310 = vmatprep.subr.bf16.mxu0 %v23469_v41 }
 0x344   :  { %19384 = vmatpush3.bf16.msra.mxu1 %v23332_v49 }
 0x345   :  { %19312 = vmatpush3.bf16.msra.mxu0 %v23478_v13  ;;  %19386 = vmatprep.subr.bf16.mxu1 %v23326_v16 }
 0x346   :  { %19346 = vmatprep.subr.bf16.mxu0 %v27514_v29 }
 0x348   :  { %4527 = vmatmul.mubr.f32.vlgmr.msra.gmra.mrb[34].mxu0 %v4526_v30  ;;  %19388 = vmatpush3.bf16.msra.mxu1 %v23365_v8 }
 0x349   :  { %19348 = vmatpush3.bf16.msra.mxu0 %v27515_v31  ;;  %4894 = vmatprep.mubr.f32.mxu0 %v23833_v54 }
 0x34a   :  { %19350 = vmatprep.subr.bf16.mxu0 %v27516_v58  ;;  %19390 = vmatprep.subr.bf16.mxu1 %v23358_v11 }
 0x34c   :  { %19392 = vmatpush3.bf16.msra.mxu1 %v23397_v25 }
 0x34d   :  { %19352 = vmatpush3.bf16.msra.mxu0 %v27517_v32  ;;  %19394 = vmatprep.subr.bf16.mxu1 %v23390_v12 }
 0x34e   :  { %19354 = vmatprep.subr.bf16.mxu0 %v27518_v60 }
 0x350   :  { %19396 = vmatpush3.bf16.msra.mxu1 %v23423_v2 }
 0x351   :  { %19356 = vmatpush3.bf16.msra.mxu0 %v27519_v43  ;;  %19398 = vmatprep.subr.bf16.mxu1 %v23416_v34 }
 0x352   :  { %19358 = vmatprep.subr.bf16.mxu0 %v27520_v15  ;;  %v17302_v54 = vpop.f32.mrb[22].mxu1 }
 0x353   :  { %v17303_v52 = vpop.f32.mrb[23].mxu1 }
 0x354   :  { %v17304_v26 = vadd.f32 %v17303_v52, %v17302_v54  ;;  %19400 = vmatpush3.bf16.msra.mxu1 %v23439_v1 }
 0x355   :  { %19360 = vmatpush3.bf16.msra.mxu0 %v23534_v38  ;;  %19402 = vmatprep.subr.bf16.mxu1 %v23445_v22 }
 0x356   :  { %19362 = vmatprep.subr.bf16.mxu0 %v23540_v35 }
 0x358   :  { %19404 = vmatpush3.bf16.msra.mxu1 %v23460_v56 }
 0x359   :  { %19364 = vmatpush3.bf16.msra.mxu0 %v23550_v39  ;;  %19406 = vmatprep.subr.bf16.mxu1 %v23469_v41 }
 0x35a   :  { %19366 = vmatprep.subr.bf16.mxu0 %v23556_v14  ;;  %v27524_v14 = vld [vmem:[#allocation144_spill] sm:$0xff] }
 0x35b   :  { %v17267_v27 = vpop.f32.mrb[22].mxu0 }
 0x35c   :  { %v17268_v5 = vpop.f32.mrb[23].mxu0  ;;  %19408 = vmatpush3.bf16.msra.mxu1 %v23478_v13 }
 0x35d   :  { %v17269_v48 = vadd.f32 %v17268_v5, %v17267_v27  ;;  %19368 = vmatpush3.bf16.msra.mxu0 %v23564_v62  ;;  %19442 = vmatprep.subr.bf16.mxu1 %v23102_v47  ;;  %v27521_v47 = vld [vmem:[#allocation137_spill] sm:$0xff] }
 0x35e   :  { %19370 = vmatprep.subr.bf16.mxu0 %v23570_v9  ;;  %v27526_v9 = vld [vmem:[#allocation148_spill] sm:$0xff] }
 0x35f   :  { %v2804_v35 = vadd.f32 %v17269_v48, %v2692_v46  ;;  %5005 = vmatmul.mubr.f32.vlgmr.msra.gmra.mrb[36].mxu1 %v4524_v51 }
 0x360   :  { %19444 = vmatpush3.bf16.msra.mxu1 %v23299_v55  ;;  %5275 = vmatprep.mubr.f32.mxu1 %v23826_v53  ;;  %v27522_v55 = vld [vmem:[#allocation138_spill] sm:$0xff] }
 0x361   :  { %19372 = vmatpush3.bf16.msra.mxu0 %v23576_v4  ;;  %v3036_v39 = vadd.f32 %v17304_v26, %v2804_v35  ;;  %19446 = vmatprep.subr.bf16.mxu1 %v23293_v24  ;;  %v5286_v24 = vld [vmem:[#allocation20 + $0x18] sm:$0xff] }
 0x362   :  { %19374 = vmatprep.subr.bf16.mxu0 %v23583_v7 }
 0x364   :  { %19448 = vmatpush3.bf16.msra.mxu1 %v23332_v49  ;;  %v27523_v49 = vld [vmem:[#allocation142_spill] sm:$0xff] }
 0x365   :  { %19376 = vmatpush3.bf16.msra.mxu0 %v23590_v40  ;;  %19450 = vmatprep.subr.bf16.mxu1 %v23326_v16  ;;  %v23936_v16 = vand.u32 4294901760, %v5286_v24  ;;  %v27529_v40 = vld [vmem:[#allocation156_spill] sm:$0xff] }
 0x366   :  { %19410 = vmatprep.subr.bf16.mxu0 %v23598_v37 }
 0x367   :  { %v23943_v38 = vsub.f32 %v5286_v24, %v23936_v16 }
 0x368   :  { %4897 = vmatmul.mubr.f32.vlgmr.msra.gmra.mrb[36].mxu0 %v23874_v6  ;;  %19452 = vmatpush3.bf16.msra.mxu1 %v23365_v8  ;;  %v27525_v8 = vld [vmem:[#allocation147_spill] sm:$0xff] }
 0x369   :  { %19412 = vmatpush3.bf16.msra.mxu0 %v23607_v21  ;;  %5171 = vmatprep.mubr.f32.mxu0 %v23826_v53 }
 0x36a   :  { %19414 = vmatprep.subr.bf16.mxu0 %v27521_v47  ;;  %19454 = vmatprep.subr.bf16.mxu1 %v23358_v11  ;;  %v5284_v11 = vld [vmem:[#allocation20 + $0x8] sm:$0xff] }
 0x36b   :  { %v23948_v7 = vand.u32 4294901760, %v5284_v11 }
 0x36c   :  { %19456 = vmatpush3.bf16.msra.mxu1 %v23397_v25 }
 0x36d   :  { %19416 = vmatpush3.bf16.msra.mxu0 %v27522_v55  ;;  %19458 = vmatprep.subr.bf16.mxu1 %v23390_v12  ;;  %v27527_v12 = vld [vmem:[#allocation151_spill] sm:$0xff]  ;;  %v23958_v37 = vsub.f32 %v5284_v11, %v23948_v7 }
 0x36e   :  { %19418 = vmatprep.subr.bf16.mxu0 %v27523_v49 }
 0x36f   :  { %v23969_v10 = vand.u32 4294901760, %v23958_v37 }
 0x370   :  { %19460 = vmatpush3.bf16.msra.mxu1 %v23423_v2  ;;  %v23952_v2 = vand.u32 4294901760, %v23943_v38 }
 0x371   :  { %19420 = vmatpush3.bf16.msra.mxu0 %v27524_v14  ;;  %19462 = vmatprep.subr.bf16.mxu1 %v23416_v34  ;;  %v27528_v34 = vld [vmem:[#allocation153_spill] sm:$0xff]  ;;  %v5372_v50 = vsub.f32 %v23958_v37, %v23969_v10 }
 0x372   :  { %19422 = vmatprep.subr.bf16.mxu0 %v27525_v8  ;;  %v17372_v62 = vpop.f32.mrb[24].mxu1  ;;  %v5837_v53 = vsub.f32 %v23943_v38, %v23952_v2 }
 0x373   :  { %v17373_v25 = vpop.f32.mrb[25].mxu1  ;;  %v23986_v51 = vand.u32 4294901760, %v5372_v50 }
 0x374   :  { %v17374_v4 = vadd.f32 %v17373_v25, %v17372_v62  ;;  %19464 = vmatpush3.bf16.msra.mxu1 %v23439_v1  ;;  %v5285_v1 = vld [vmem:[#allocation20 + $0x10] sm:$0xff] }
 0x375   :  { %19424 = vmatpush3.bf16.msra.mxu0 %v27526_v9  ;;  %19466 = vmatprep.subr.bf16.mxu1 %v23445_v22 }
 0x376   :  { %19426 = vmatprep.subr.bf16.mxu0 %v27527_v12 }
 0x378   :  { %19468 = vmatpush3.bf16.msra.mxu1 %v23460_v56  ;;  %v23966_v56 = vand.u32 4294901760, %v5285_v1 }
 0x379   :  { %19428 = vmatpush3.bf16.msra.mxu0 %v27528_v34  ;;  %19470 = vmatprep.subr.bf16.mxu1 %v23469_v41  ;;  %v23972_v41 = vand.u32 4294901760, %v5837_v53 }
 0x37a   :  { %19430 = vmatprep.subr.bf16.mxu0 %v27529_v40 }
 0x37b   :  { %v17337_v21 = vpop.f32.mrb[24].mxu0 }
 0x37c   :  { %v17338_v22 = vpop.f32.mrb[25].mxu0  ;;  %19472 = vmatpush3.bf16.msra.mxu1 %v23478_v13  ;;  %v5283_v13 = vld [vmem:[#allocation20] sm:$0xff] }
 0x37d   :  { %v17339_v63 = vadd.f32 %v17338_v22, %v17337_v21  ;;  %19432 = vmatpush3.bf16.msra.mxu0 %v27530_v23  ;;  %5757 = vmatprep.subr.mxu1 %v23936_v16  ;;  %v23983_v18 = vand.u32 4294901760, %v5283_v13 }
 0x37e   :  { %19434 = vmatprep.subr.bf16.mxu0 %v27531_v59 }
 0x37f   :  { %v3174_v57 = vadd.f32 %v17339_v63, %v3036_v39  ;;  %5277 = vmatmul.mubr.f32.vlgmr.msra.gmra.mrb[38].mxu1 %v23867_v17  ;;  %v23993_v60 = vsub.f32 %v5283_v13, %v23983_v18 }
 0x380   :  { %5759 = vmatpush1.msra.mxu1 %v23966_v56  ;;  %5822 = vmatprep.mubr.f32.mxu1 %v26774_v19 }
 0x381   :  { %19436 = vmatpush3.bf16.msra.mxu0 %v27532_v20  ;;  %v3282_v6 = vadd.f32 %v17374_v4, %v3174_v57  ;;  %5839 = vmatprep.subr.mxu1 %v23972_v41  ;;  %v24000_v54 = vand.u32 4294901760, %v23993_v60 }
 0x382   :  { %19438 = vmatprep.subr.bf16.mxu0 %v27533_v42 }
 0x383   :  { %v5378_v5 = vsub.f32 %v23993_v60, %v24000_v54 }
 0x385   :  { %19440 = vmatpush3.bf16.msra.mxu0 %v27534_v44  ;;  %v24009_v47 = vand.u32 4294901760, %v5378_v5 }
 0x386   :  { %5292 = vmatprep.subr.mxu0 %v23948_v7 }
 0x388   :  { %5173 = vmatmul.mubr.f32.vlgmr.msra.gmra.mrb[38].mxu0 %v23867_v17  ;;  %v23996_v17 = vsub.f32 %v5285_v1, %v23966_v56 }
 0x389   :  { %5294 = vmatpush1.msra.mxu0 %v23983_v18  ;;  %5357 = vmatprep.mubr.f32.mxu0 %v26774_v19 }
 0x38a   :  { %5374 = vmatprep.subr.mxu0 %v23986_v51  ;;  %v24003_v26 = vand.u32 4294901760, %v23996_v17 }
 0x38c   :  { %v5843_v35 = vsub.f32 %v23996_v17, %v24003_v26 }
 0x38e   :  { %v24011_v55 = vand.u32 4294901760, %v5843_v35 }
 0x392   :  { %v17442_v0 = vpop.f32.mrb[26].mxu1 }
 0x393   :  { %v17443_v46 = vpop.f32.mrb[27].mxu1 }
 0x394   :  { %v17444_v36 = vadd.f32 %v17443_v46, %v17442_v0 }
 0x39b   :  { %v17407_v30 = vpop.f32.mrb[26].mxu0 }
 0x39c   :  { %v17408_v29 = vpop.f32.mrb[27].mxu0 }
 0x39d   :  { %v17409_v31 = vadd.f32 %v17408_v29, %v17407_v30 }
 0x39f   :  { %v3450_v58 = vadd.f32 %v17409_v31, %v3282_v6 }
 0x3a1   :  { %v3554_v32 = vadd.f32 %v17444_v36, %v3450_v58 }
 0x3a3   :  { %v3557_v43 = vmul.f32 0.00048828125, %v3554_v32 }
 0x3a5   :  { %v5289_v15 = vsel %vm5287_vm0, %v3557_v43, 0 }
 0x3a6   :  { %v5358_v52 = vand.u32 4294901760, %v5289_v15 }
 0x3a8   :  { %v5359_v27 = vsub.f32 %v5289_v15, %v5358_v52 }
 0x3aa   :  { %v5360_v48 = vand.u32 4294901760, %v5359_v27 }
 0x3ac   :  { %v5361_v39 = vsub.f32 %v5359_v27, %v5360_v48 }
 0x3ae   :  { %v5362_v24 = vand.u32 4294901760, %v5361_v39 }
 0x3b0   :  { %5363 = vmatmul.mubr.f32.vlgmr.msra.gmra.mrb[40].mxu0 %v5362_v24  ;;  %5828 = vmatmul.mubr.f32.vlgmr.msra.gmra.mrb[40].mxu1 %v5362_v24 }
 0x3b1   :  { %5380 = vmatpush1.msra.mxu0 %v24009_v47  ;;  %5443 = vmatprep.mubr.f32.mxu0 %v26774_v19 }
 0x3b2   :  { %5845 = vmatpush1.msra.mxu1 %v24011_v55  ;;  %5908 = vmatprep.mubr.f32.mxu1 %v26774_v19  ;;  %v17512_v49 = vpop.f32.mrb[28].mxu1 }
 0x3b3   :  { %5453 = vmatprep.subr.mxu0 %v23958_v37  ;;  %5918 = vmatprep.subr.mxu1 %v23943_v38  ;;  %v17513_v14 = vpop.f32.mrb[29].mxu1 }
 0x3b4   :  { %v17514_v8 = vadd.f32 %v17513_v14, %v17512_v49 }
 0x3b8   :  { %5445 = vmatmul.mubr.f32.vlgmr.msra.gmra.mrb[40].mxu0 %v5358_v52  ;;  %5910 = vmatmul.mubr.f32.vlgmr.msra.gmra.mrb[40].mxu1 %v5358_v52 }
 0x3b9   :  { %5456 = vmatpush1.msra.mxu0 %v23993_v60  ;;  %5519 = vmatprep.mubr.f32.mxu0 %v26774_v19 }
 0x3ba   :  { %5921 = vmatpush1.msra.mxu1 %v23996_v17  ;;  %5984 = vmatprep.mubr.f32.mxu1 %v26774_v19 }
 0x3bb   :  { %v17477_v11 = vpop.f32.mrb[28].mxu0  ;;  %5529 = vmatprep.subr.mxu0 %v23948_v7  ;;  %5994 = vmatprep.subr.mxu1 %v23936_v16 }
 0x3bc   :  { %v17478_v62 = vpop.f32.mrb[29].mxu0 }
 0x3bd   :  { %v17479_v25 = vadd.f32 %v17478_v62, %v17477_v11 }
 0x3bf   :  { %v3899_v9 = vadd.f32 %v17514_v8, %v17479_v25 }
 0x3c0   :  { %5522 = vmatmul.mubr.f32.vlgmr.msra.gmra.mrb[40].mxu0 %v5359_v27  ;;  %5987 = vmatmul.mubr.f32.vlgmr.msra.gmra.mrb[40].mxu1 %v5359_v27 }
 0x3c1   :  { %5531 = vmatpush1.msra.mxu0 %v23983_v18  ;;  %5594 = vmatprep.mubr.f32.mxu0 %v26774_v19 }
 0x3c2   :  { %5996 = vmatpush1.msra.mxu1 %v23966_v56  ;;  %6059 = vmatprep.mubr.f32.mxu1 %v26774_v19 }
 0x3c3   :  { %5607 = vmatprep.subr.mxu0 %v23969_v10  ;;  %6072 = vmatprep.subr.mxu1 %v23952_v2 }
 0x3c8   :  { %5598 = vmatmul.mubr.f32.vlgmr.msra.gmra.mrb[40].mxu0 %v5360_v48  ;;  %6063 = vmatmul.mubr.f32.vlgmr.msra.gmra.mrb[40].mxu1 %v5360_v48 }
 0x3c9   :  { %5611 = vmatpush1.msra.mxu0 %v24000_v54  ;;  %5674 = vmatprep.mubr.f32.mxu0 %v26774_v19 }
 0x3ca   :  { %6076 = vmatpush1.msra.mxu1 %v24003_v26  ;;  %6139 = vmatprep.mubr.f32.mxu1 %v26774_v19 }
 0x3cb   :  { %5683 = vmatprep.subr.mxu0 %v23948_v7  ;;  %6148 = vmatprep.subr.mxu1 %v23936_v16 }
 0x3d0   :  { %5676 = vmatmul.mubr.f32.vlgmr.msra.gmra.mrb[40].mxu0 %v5358_v52  ;;  %6141 = vmatmul.mubr.f32.vlgmr.msra.gmra.mrb[40].mxu1 %v5358_v52 }
 0x3d1   :  { %5685 = vmatpush1.msra.mxu0 %v23983_v18  ;;  %5748 = vmatprep.mubr.f32.mxu0 %v26774_v19 }
 0x3d2   :  { %6150 = vmatpush1.msra.mxu1 %v23966_v56  ;;  %6213 = vmatprep.mubr.f32.mxu1 %v26774_v19  ;;  %v17582_v4 = vpop.f32.mrb[30].mxu1 }
 0x3d3   :  { %6225 = vmatprep.subr.mxu0 %v23948_v7  ;;  %6690 = vmatprep.subr.mxu1 %v23936_v16  ;;  %v17583_v12 = vpop.f32.mrb[31].mxu1 }
 0x3d4   :  { %v17584_v34 = vadd.f32 %v17583_v12, %v17582_v4 }
 0x3d8   :  { %5750 = vmatmul.mubr.f32.vlgmr.msra.gmra.mrb[40].mxu0 %v5358_v52  ;;  %6215 = vmatmul.mubr.f32.vlgmr.msra.gmra.mrb[40].mxu1 %v5358_v52 }
 0x3d9   :  { %6227 = vmatpush1.msra.mxu0 %v23983_v18  ;;  %6692 = vmatpush1.msra.mxu1 %v23966_v56 }
 0x3da   :  { %6290 = vmatprep.mubr.f32.mxu0 %v26774_v19  ;;  %6307 = vmatprep.subr.mxu0 %v23986_v51 }
 0x3db   :  { %v17547_v40 = vpop.f32.mrb[30].mxu0  ;;  %6755 = vmatprep.mubr.f32.mxu1 %v26774_v19  ;;  %6772 = vmatprep.subr.mxu1 %v23972_v41 }
 0x3dc   :  { %v17548_v21 = vpop.f32.mrb[31].mxu0 }
 0x3dd   :  { %v17549_v1 = vadd.f32 %v17548_v21, %v17547_v40  ;;  %v20636_v40 = vld [vmem:[#allocation8 + $0x440] ss:$16 sps:$4 sm:$0xff]   ;;  %v20639_v21 = vld [vmem:[#allocation8 + $0x448] ss:$16 sps:$4 sm:$0xff]  }
 0x3df   :  { %v4037_v53 = vadd.f32 %v17549_v1, %v3899_v9  ;;  %v20644_v1 = vld [vmem:[#allocation8 + $0x464] ss:$16 sps:$4 sm:$0xff]  }
 0x3e1   :  { %v4145_v22 = vadd.f32 %v17584_v34, %v4037_v53  ;;  %v20647_v53 = vld [vmem:[#allocation8 + $0x46c] ss:$16 sps:$4 sm:$0xff]  }
 0x3f2   :  { %v17652_v63 = vpop.f32.mrb[32].mxu1 }
 0x3f3   :  { %v17653_v23 = vpop.f32.mrb[33].mxu1 }
 0x3f4   :  { %v17654_v59 = vadd.f32 %v17653_v23, %v17652_v63  ;;  %v20645_v63 = vld [vmem:[#allocation8 + $0x468] ss:$16 sps:$4 sm:$0xff]   ;;  %v20650_v23 = vld [vmem:[#allocation8 + $0x484] ss:$16 sps:$4 sm:$0xff]  }
 0x3fb   :  { %v17617_v57 = vpop.f32.mrb[32].mxu0 }
 0x3fc   :  { %v17618_v20 = vpop.f32.mrb[33].mxu0 }
 0x3fd   :  { %v17619_v6 = vadd.f32 %v17618_v20, %v17617_v57  ;;  %v20648_v57 = vld [vmem:[#allocation8 + $0x480] ss:$16 sps:$4 sm:$0xff]   ;;  %v20651_v20 = vld [vmem:[#allocation8 + $0x488] ss:$16 sps:$4 sm:$0xff]  }
 0x3ff   :  { %v4313_v42 = vadd.f32 %v17619_v6, %v4145_v22  ;;  %v20642_v22 = vld [vmem:[#allocation8 + $0x460] ss:$16 sps:$4 sm:$0xff]  }
 0x400   :  { %v7316_v6 = vld [vmem:[#allocation3] sm:$0x11] }
 0x401   :  { %v4417_v13 = vadd.f32 %v17654_v59, %v4313_v42  ;;  %v20653_v59 = vld [vmem:[#allocation8 + $0x48c] ss:$16 sps:$4 sm:$0xff]  }
 0x402   :  { %v7319_v42 = vld [vmem:[#allocation3 + $0x8] sm:$0x11] }
 0x412   :  { %v17722_v50 = vpop.f32.mrb[34].mxu1 }
 0x413   :  { %v17723_v44 = vpop.f32.mrb[35].mxu1 }
 0x414   :  { %v17724_v51 = vadd.f32 %v17723_v44, %v17722_v50  ;;  %v7325_v50 = vld [vmem:[#allocation3 + $0x38] sm:$0x11]  ;;  %v20654_v44 = vld [vmem:[#allocation8 + $0x4a0] ss:$16 sps:$4 sm:$0xff]  }
 0x41b   :  { %v17687_v0 = vpop.f32.mrb[34].mxu0 }
 0x41c   :  { %v17688_v46 = vpop.f32.mrb[35].mxu0 }
 0x41d   :  { %v17689_v36 = vadd.f32 %v17688_v46, %v17687_v0  ;;  %v20656_v0 = vld [vmem:[#allocation8 + $0x4a4] ss:$16 sps:$4 sm:$0xff]   ;;  %v20657_v46 = vld [vmem:[#allocation8 + $0x4a8] ss:$16 sps:$4 sm:$0xff]  }
 0x41f   :  { %v4529_v30 = vadd.f32 %v17689_v36, %v4417_v13  ;;  %v7322_v13 = vld [vmem:[#allocation3 + $0x30] sm:$0x11]  ;;  %v7317_v36 = vsel %vm24089_vm9, 0, %v7316_v6  ;;  %v20713_v6 = vld [vmem:[#allocation8 + $0x5cc] ss:$16 sps:$4 sm:$0xff]  }
 0x420   :  { %7318 = vst [vmem:[#allocation3] sm:$0x11] %v7317_v36  ;;  %v20722_v36 = vld [vmem:[#allocation8 + $0x604] ss:$16 sps:$4 sm:$0xff]  }
 0x421   :  { %v4761_v41 = vadd.f32 %v17724_v51, %v4529_v30  ;;  %v7320_v30 = vsel %vm24089_vm9, 0, %v7319_v42  ;;  %v20708_v42 = vld [vmem:[#allocation8 + $0x5c0] ss:$16 sps:$4 sm:$0xff]  }
 0x422   :  { %7321 = vst [vmem:[#allocation3 + $0x8] sm:$0x11] %v7320_v30  ;;  %v20725_v30 = vld [vmem:[#allocation8 + $0x60c] ss:$16 sps:$4 sm:$0xff]  }
 0x432   :  { %v17792_v29 = vpop.f32.mrb[36].mxu1 }
 0x433   :  { %v17793_v31 = vpop.f32.mrb[37].mxu1 }
 0x434   :  { %v17794_v58 = vadd.f32 %v17793_v31, %v17792_v29  ;;  %v7326_v29 = vsel %vm24089_vm9, 0, %v7325_v50  ;;  %v20659_v31 = vld [vmem:[#allocation8 + $0x4ac] ss:$16 sps:$4 sm:$0xff]   ;;  %v20716_v50 = vld [vmem:[#allocation8 + $0x5e4] ss:$16 sps:$4 sm:$0xff]  }
 0x435   :  { %7327 = vst [vmem:[#allocation3 + $0x38] sm:$0x11] %v7326_v29 }
 0x43b   :  { %v17757_v32 = vpop.f32.mrb[36].mxu0 }
 0x43c   :  { %v17758_v43 = vpop.f32.mrb[37].mxu0 }
 0x43d   :  { %v17759_v15 = vadd.f32 %v17758_v43, %v17757_v32  ;;  %v20660_v32 = vld [vmem:[#allocation8 + $0x4c0] ss:$16 sps:$4 sm:$0xff]   ;;  %v20665_v43 = vld [vmem:[#allocation8 + $0x4cc] ss:$16 sps:$4 sm:$0xff]  }
 0x43f   :  { %v4899_v52 = vadd.f32 %v17759_v15, %v4761_v41  ;;  %v7323_v41 = vsel %vm24089_vm9, 0, %v7322_v13  ;;  %v20663_v15 = vld [vmem:[#allocation8 + $0x4c8] ss:$16 sps:$4 sm:$0xff]  }
 0x440   :  { %7324 = vst [vmem:[#allocation3 + $0x30] sm:$0x11] %v7323_v41  ;;  %v20711_v13 = vld [vmem:[#allocation8 + $0x5c8] ss:$16 sps:$4 sm:$0xff]  }
 0x441   :  { %v5007_v27 = vadd.f32 %v17794_v58, %v4899_v52  ;;  %v20662_v58 = vld [vmem:[#allocation8 + $0x4c4] ss:$16 sps:$4 sm:$0xff]  }
 0x442   :  { %v20668_v52 = vld [vmem:[#allocation8 + $0x4e4] ss:$16 sps:$4 sm:$0xff]  }
 0x452   :  { %v17862_v5 = vpop.f32.mrb[38].mxu1 }
 0x453   :  { %v17863_v48 = vpop.f32.mrb[39].mxu1 }
 0x454   :  { %v17864_v35 = vadd.f32 %v17863_v48, %v17862_v5  ;;  %v20666_v5 = vld [vmem:[#allocation8 + $0x4e0] ss:$16 sps:$4 sm:$0xff]   ;;  %v20669_v48 = vld [vmem:[#allocation8 + $0x4e8] ss:$16 sps:$4 sm:$0xff]  }
 0x45b   :  { %v17827_v39 = vpop.f32.mrb[38].mxu0 }
 0x45c   :  { %v17828_v24 = vpop.f32.mrb[39].mxu0 }
 0x45d   :  { %v17829_v49 = vadd.f32 %v17828_v24, %v17827_v39  ;;  %v20677_v39 = vld [vmem:[#allocation8 + $0x50c] ss:$16 sps:$4 sm:$0xff]   ;;  %v20672_v24 = vld [vmem:[#allocation8 + $0x500] ss:$16 sps:$4 sm:$0xff]  }
 0x45f   :  { %v5175_v14 = vadd.f32 %v17829_v49, %v5007_v27  ;;  %v20671_v27 = vld [vmem:[#allocation8 + $0x4ec] ss:$16 sps:$4 sm:$0xff]   ;;  %v20675_v49 = vld [vmem:[#allocation8 + $0x508] ss:$16 sps:$4 sm:$0xff]  }
 0x461   :  { %v5279_v8 = vadd.f32 %v17864_v35, %v5175_v14  ;;  %v20674_v35 = vld [vmem:[#allocation8 + $0x504] ss:$16 sps:$4 sm:$0xff]  }
 0x462   :  { %v20680_v14 = vld [vmem:[#allocation8 + $0x524] ss:$16 sps:$4 sm:$0xff]  }
 0x463   :  { %v5282_v11 = vmul.f32 0.00048828125, %v5279_v8  ;;  %v20683_v8 = vld [vmem:[#allocation8 + $0x52c] ss:$16 sps:$4 sm:$0xff]  }
 0x465   :  { %v6222_v62 = vsel %vm5287_vm0, %v5282_v11, 0  ;;  %v20678_v11 = vld [vmem:[#allocation8 + $0x520] ss:$16 sps:$4 sm:$0xff]  }
 0x466   :  { %v6291_v25 = vand.u32 4294901760, %v6222_v62 }
 0x468   :  { %v6292_v9 = vsub.f32 %v6222_v62, %v6291_v25  ;;  %v20681_v62 = vld [vmem:[#allocation8 + $0x528] ss:$16 sps:$4 sm:$0xff]  }
 0x46a   :  { %v6293_v4 = vand.u32 4294901760, %v6292_v9 }
 0x46c   :  { %v6294_v12 = vsub.f32 %v6292_v9, %v6293_v4 }
 0x46e   :  { %v6295_v34 = vand.u32 4294901760, %v6294_v12  ;;  %v20687_v12 = vld [vmem:[#allocation8 + $0x548] ss:$16 sps:$4 sm:$0xff]  }
 0x470   :  { %6296 = vmatmul.mubr.f32.vlgmr.msra.gmra.mrb[42].mxu0 %v6295_v34  ;;  %6761 = vmatmul.mubr.f32.vlgmr.msra.gmra.mrb[42].mxu1 %v6295_v34  ;;  %v20692_v34 = vld [vmem:[#allocation8 + $0x564] ss:$16 sps:$4 sm:$0xff]  }
 0x471   :  { %6313 = vmatpush1.msra.mxu0 %v24009_v47  ;;  %6778 = vmatpush1.msra.mxu1 %v24011_v55  ;;  %v20638_v47 = vld [vmem:[#allocation8 + $0x444] ss:$16 sps:$4 sm:$0xff]   ;;  %v20641_v55 = vld [vmem:[#allocation8 + $0x44c] ss:$16 sps:$4 sm:$0xff]  }
 0x472   :  { %6376 = vmatprep.mubr.f32.mxu0 %v26774_v19  ;;  %6386 = vmatprep.subr.mxu0 %v23958_v37 }
 0x473   :  { %6841 = vmatprep.mubr.f32.mxu1 %v26774_v19  ;;  %6851 = vmatprep.subr.mxu1 %v23943_v38 }
 0x478   :  { %6378 = vmatmul.mubr.f32.vlgmr.msra.gmra.mrb[42].mxu0 %v6291_v25  ;;  %6843 = vmatmul.mubr.f32.vlgmr.msra.gmra.mrb[42].mxu1 %v6291_v25 }
 0x479   :  { %6389 = vmatpush1.msra.mxu0 %v23993_v60  ;;  %6854 = vmatpush1.msra.mxu1 %v23996_v17  ;;  %v20624_v60 = vld [vmem:[#allocation8 + $0x400] ss:$16 sps:$4 sm:$0xff]   ;;  %v20635_v17 = vld [vmem:[#allocation8 + $0x42c] ss:$16 sps:$4 sm:$0xff]  }
 0x47a   :  { %6452 = vmatprep.mubr.f32.mxu0 %v26774_v19  ;;  %6462 = vmatprep.subr.mxu0 %v23948_v7 }
 0x47b   :  { %6917 = vmatprep.mubr.f32.mxu1 %v26774_v19  ;;  %6927 = vmatprep.subr.mxu1 %v23936_v16 }
 0x480   :  { %6455 = vmatmul.mubr.f32.vlgmr.msra.gmra.mrb[42].mxu0 %v6292_v9  ;;  %6920 = vmatmul.mubr.f32.vlgmr.msra.gmra.mrb[42].mxu1 %v6292_v9  ;;  %v20689_v9 = vld [vmem:[#allocation8 + $0x54c] ss:$16 sps:$4 sm:$0xff]  }
 0x481   :  { %6464 = vmatpush1.msra.mxu0 %v23983_v18  ;;  %6929 = vmatpush1.msra.mxu1 %v23966_v56 }
 0x482   :  { %6527 = vmatprep.mubr.f32.mxu0 %v26774_v19  ;;  %6540 = vmatprep.subr.mxu0 %v23969_v10  ;;  %v20629_v10 = vld [vmem:[#allocation8 + $0x40c] ss:$16 sps:$4 sm:$0xff]  }
 0x483   :  { %6992 = vmatprep.mubr.f32.mxu1 %v26774_v19  ;;  %7005 = vmatprep.subr.mxu1 %v23952_v2 }
 0x488   :  { %6531 = vmatmul.mubr.f32.vlgmr.msra.gmra.mrb[42].mxu0 %v6293_v4  ;;  %6996 = vmatmul.mubr.f32.vlgmr.msra.gmra.mrb[42].mxu1 %v6293_v4  ;;  %v20684_v4 = vld [vmem:[#allocation8 + $0x540] ss:$16 sps:$4 sm:$0xff]  }
 0x489   :  { %6544 = vmatpush1.msra.mxu0 %v24000_v54  ;;  %7009 = vmatpush1.msra.mxu1 %v24003_v26  ;;  %v20630_v54 = vld [vmem:[#allocation8 + $0x420] ss:$16 sps:$4 sm:$0xff]   ;;  %v20633_v26 = vld [vmem:[#allocation8 + $0x428] ss:$16 sps:$4 sm:$0xff]  }
 0x48a   :  { %6607 = vmatprep.mubr.f32.mxu0 %v26774_v19  ;;  %6616 = vmatprep.subr.mxu0 %v23948_v7 }
 0x48b   :  { %7072 = vmatprep.mubr.f32.mxu1 %v26774_v19  ;;  %7081 = vmatprep.subr.mxu1 %v23936_v16  ;;  %v20626_v16 = vld [vmem:[#allocation8 + $0x404] ss:$16 sps:$4 sm:$0xff]  }
 0x490   :  { %6609 = vmatmul.mubr.f32.vlgmr.msra.gmra.mrb[42].mxu0 %v6291_v25  ;;  %7074 = vmatmul.mubr.f32.vlgmr.msra.gmra.mrb[42].mxu1 %v6291_v25 }
 0x491   :  { %6618 = vmatpush1.msra.mxu0 %v23983_v18  ;;  %7083 = vmatpush1.msra.mxu1 %v23966_v56  ;;  %v20627_v18 = vld [vmem:[#allocation8 + $0x408] ss:$16 sps:$4 sm:$0xff]   ;;  %v20632_v56 = vld [vmem:[#allocation8 + $0x424] ss:$16 sps:$4 sm:$0xff]  }
 0x492   :  { %6681 = vmatprep.mubr.f32.mxu0 %v26774_v19  ;;  %7146 = vmatprep.mubr.f32.mxu1 %v26774_v19 }
 0x493   :  { %8534 = vmatprep.subr.bf16.mxu0 %v20626_v16  ;;  %8640 = vmatprep.subr.bf16.mxu1 %v20629_v10  ;;  %v20690_v16 = vld [vmem:[#allocation8 + $0x560] ss:$16 sps:$4 sm:$0xff]   ;;  %v20695_v10 = vld [vmem:[#allocation8 + $0x56c] ss:$16 sps:$4 sm:$0xff]  }
 0x498   :  { %6683 = vmatmul.mubr.f32.vlgmr.msra.gmra.mrb[42].mxu0 %v6291_v25  ;;  %7148 = vmatmul.mubr.f32.vlgmr.msra.gmra.mrb[42].mxu1 %v6291_v25  ;;  %v20686_v25 = vld [vmem:[#allocation8 + $0x544] ss:$16 sps:$4 sm:$0xff]  }
 0x499   :  { %8535 = vmatpush1.bf16.msra.mxu0 %v20624_v60  ;;  %8641 = vmatpush1.bf16.msra.mxu1 %v20627_v18  ;;  %v20693_v60 = vld [vmem:[#allocation8 + $0x568] ss:$16 sps:$4 sm:$0xff]   ;;  %v20698_v18 = vld [vmem:[#allocation8 + $0x584] ss:$16 sps:$4 sm:$0xff]  }
 0x49a   :  { %8536 = vmatprep.subr.bf16.mxu0 %v20632_v56  ;;  %8642 = vmatprep.subr.bf16.mxu1 %v20635_v17  ;;  %v7332_v56 = vld [vmem:[#allocation3 + $0x20] sm:$0x11]  ;;  %v7338_v17 = vld [vmem:[#allocation3 + $0x50] sm:$0x11] }
 0x49d   :  { %8537 = vmatpush1.bf16.msra.mxu0 %v20630_v54  ;;  %8643 = vmatpush1.bf16.msra.mxu1 %v20633_v26  ;;  %v7335_v54 = vld [vmem:[#allocation3 + $0x28] sm:$0x11]  ;;  %v7341_v26 = vld [vmem:[#allocation3 + $0x58] sm:$0x11] }
 0x49e   :  { %8538 = vmatprep.subr.bf16.mxu0 %v20638_v47  ;;  %8644 = vmatprep.subr.bf16.mxu1 %v20641_v55  ;;  %v20701_v47 = vld [vmem:[#allocation8 + $0x58c] ss:$16 sps:$4 sm:$0xff]   ;;  %v7333_v55 = vsel %vm7331_vm12, 0, %v7332_v56 }
 0x49f   :  { %7334 = vst [vmem:[#allocation3 + $0x20] sm:$0x11] %v7333_v55  ;;  %v27539_v55 = vld [vmem:[#allocation98_spill] sm:$0xff] }
 0x4a1   :  { %8539 = vmatpush1.bf16.msra.mxu0 %v20636_v40  ;;  %8645 = vmatpush1.bf16.msra.mxu1 %v20639_v21  ;;  %v7339_v40 = vsel %vm7331_vm12, 0, %v7338_v17  ;;  %v7336_v21 = vsel %vm7331_vm12, 0, %v7335_v54  ;;  %v7162_v54 = vld [vmem:[#allocation11] sm:$0xf] }
 0x4a2   :  { %8540 = vmatprep.subr.bf16.mxu0 %v20644_v1  ;;  %8646 = vmatprep.subr.bf16.mxu1 %v20647_v53  ;;  %7340 = vst [vmem:[#allocation3 + $0x50] sm:$0x11] %v7339_v40  ;;  %v7342_v1 = vsel %vm7331_vm12, 0, %v7341_v26  ;;  %v20696_v53 = vld [vmem:[#allocation8 + $0x580] ss:$16 sps:$4 sm:$0xff]  }
 0x4a3   :  { %7337 = vst [vmem:[#allocation3 + $0x28] sm:$0x11] %v7336_v21  ;;  %7343 = vst [vmem:[#allocation3 + $0x58] sm:$0x11] %v7342_v1  ;;  %v27540_v21 = vld [vmem:[#allocation99_spill] sm:$0xff] }
 0x4a5   :  { %8541 = vmatpush1.bf16.msra.mxu0 %v20642_v22  ;;  %8647 = vmatpush1.bf16.msra.mxu1 %v20645_v63  ;;  %v20699_v22 = vld [vmem:[#allocation8 + $0x588] ss:$16 sps:$4 sm:$0xff]   ;;  %v20704_v63 = vld [vmem:[#allocation8 + $0x5a4] ss:$16 sps:$4 sm:$0xff]  }
 0x4a6   :  { %8542 = vmatprep.subr.bf16.mxu0 %v20650_v23  ;;  %8648 = vmatprep.subr.bf16.mxu1 %v20653_v59  ;;  %v20707_v23 = vld [vmem:[#allocation8 + $0x5ac] ss:$16 sps:$4 sm:$0xff]   ;;  %v20702_v59 = vld [vmem:[#allocation8 + $0x5a0] ss:$16 sps:$4 sm:$0xff]  }
 0x4a9   :  { %8543 = vmatpush1.bf16.msra.mxu0 %v20648_v57  ;;  %8649 = vmatpush1.bf16.msra.mxu1 %v20651_v20  ;;  %v20705_v57 = vld [vmem:[#allocation8 + $0x5a8] ss:$16 sps:$4 sm:$0xff]   ;;  %v20710_v20 = vld [vmem:[#allocation8 + $0x5c4] ss:$16 sps:$4 sm:$0xff]  }
 0x4aa   :  { %8544 = vmatprep.subr.bf16.mxu0 %v20656_v0  ;;  %8650 = vmatprep.subr.bf16.mxu1 %v20659_v31  ;;  %v20714_v0 = vld [vmem:[#allocation8 + $0x5e0] ss:$16 sps:$4 sm:$0xff]  }
 0x4ab   :  { %v24078_v38 = vpop.f32.mrb[40].mxu0  ;;  %v24080_v2 = vpop.f32.mrb[40].mxu1 }
 0x4ac   :  { %v24082_v7 = vpop.f32.mrb[41].mxu0  ;;  %v24084_v37 = vpop.f32.mrb[41].mxu1  ;;  %v7154_v41 = vmul.f32 %v24078_v38, %v24078_v38  ;;  %v7156_v29 = vmul.f32 %v24080_v2, %v24080_v2 }
 0x4ad   :  { %8545 = vmatpush1.bf16.msra.mxu0 %v20654_v44  ;;  %8651 = vmatpush1.bf16.msra.mxu1 %v20657_v46  ;;  %v20719_v44 = vld [vmem:[#allocation8 + $0x5ec] ss:$16 sps:$4 sm:$0xff]   ;;  %v20717_v46 = vld [vmem:[#allocation8 + $0x5e8] ss:$16 sps:$4 sm:$0xff]   ;;  %v7155_v31 = vmul.f32 %v24082_v7, %v24082_v7 }
 0x4ae   :  { %8546 = vmatprep.subr.bf16.mxu0 %v20662_v58  ;;  %8652 = vmatprep.subr.bf16.mxu1 %v20665_v43  ;;  %v7157_v58 = vmul.f32 %v24084_v37, %v24084_v37 }
 0x4b1   :  { %8547 = vmatpush1.bf16.msra.mxu0 %v20660_v32  ;;  %8653 = vmatpush1.bf16.msra.mxu1 %v20663_v15 }
 0x4b2   :  { %8548 = vmatprep.subr.bf16.mxu0 %v20668_v52  ;;  %8654 = vmatprep.subr.bf16.mxu1 %v20671_v27 }
 0x4b5   :  { %8549 = vmatpush1.bf16.msra.mxu0 %v20666_v5  ;;  %8655 = vmatpush1.bf16.msra.mxu1 %v20669_v48 }
 0x4b6   :  { %8550 = vmatprep.subr.bf16.mxu0 %v20674_v35  ;;  %8656 = vmatprep.subr.bf16.mxu1 %v20677_v39 }
 0x4b9   :  { %8551 = vmatpush1.bf16.msra.mxu0 %v20672_v24  ;;  %8657 = vmatpush1.bf16.msra.mxu1 %v20675_v49 }
 0x4ba   :  { %8552 = vmatprep.subr.bf16.mxu0 %v20680_v14  ;;  %8658 = vmatprep.subr.bf16.mxu1 %v20683_v8  ;;  %v21485_v8 = vmov 1966171168  }
 0x4bd   :  { %8553 = vmatpush1.bf16.msra.mxu0 %v20678_v11  ;;  %8659 = vmatpush1.bf16.msra.mxu1 %v20681_v62  ;;  %v7178_v11 = vunpack.c.l.s4 %v21485_v8 }
 0x4be   :  { %8554 = vmatprep.subr.bf16.mxu0 %v20686_v25  ;;  %8660 = vmatprep.subr.bf16.mxu1 %v20689_v9 }
 0x4bf   :  { %v7179_v62 = vunpack.c.0.s8 %v7178_v11 }
 0x4c1   :  { %8555 = vmatpush1.bf16.msra.mxu0 %v20684_v4  ;;  %8661 = vmatpush1.bf16.msra.mxu1 %v20687_v12  ;;  %v27537_v4 = vld [vmem:[#allocation95_spill] sm:$0xff] }
 0x4c2   :  { %8556 = vmatprep.subr.bf16.mxu0 %v20692_v34  ;;  %8662 = vmatprep.subr.bf16.mxu1 %v20695_v10  ;;  %v24114_v12 = vsub.s32 %v7179_v62, %v27537_v4  ;;  %v27553_v4 = vld [vmem:[#allocation109_spill] sm:$0xff] }
 0x4c4   :  { %27538 = vst [vmem:[#allocation42_spill] sm:$0xff] %v24114_v12 }
 0x4c5   :  { %8557 = vmatpush1.bf16.msra.mxu0 %v20690_v16  ;;  %8663 = vmatpush1.bf16.msra.mxu1 %v20693_v60 }
 0x4c6   :  { %8558 = vmatprep.subr.bf16.mxu0 %v20698_v18  ;;  %8664 = vmatprep.subr.bf16.mxu1 %v20701_v47 }
 0x4c9   :  { %8559 = vmatpush1.bf16.msra.mxu0 %v20696_v53  ;;  %8665 = vmatpush1.bf16.msra.mxu1 %v20699_v22  ;;  %v27541_v53 = vld [vmem:[#allocation96_spill] sm:$0xff] }
 0x4ca   :  { %8560 = vmatprep.subr.bf16.mxu0 %v20704_v63  ;;  %8666 = vmatprep.subr.bf16.mxu1 %v20707_v23  ;;  %v27542_v63 = vld [vmem:[#allocation97_spill] sm:$0xff] }
 0x4cd   :  { %8561 = vmatpush1.bf16.msra.mxu0 %v20702_v59  ;;  %8667 = vmatpush1.bf16.msra.mxu1 %v20705_v57 }
 0x4ce   :  { %8562 = vmatprep.subr.bf16.mxu0 %v20710_v20  ;;  %8668 = vmatprep.subr.bf16.mxu1 %v20713_v6 }
 0x4d1   :  { %8563 = vmatpush1.bf16.msra.mxu0 %v20708_v42  ;;  %8669 = vmatpush1.bf16.msra.mxu1 %v20711_v13 }
 0x4d2   :  { %8564 = vmatprep.subr.bf16.mxu0 %v20716_v50  ;;  %8670 = vmatprep.subr.bf16.mxu1 %v20719_v44 }
 0x4d5   :  { %8565 = vmatpush1.bf16.msra.mxu0 %v20714_v0  ;;  %8671 = vmatpush1.bf16.msra.mxu1 %v20717_v46  ;;  %v7201_v46 = vld [vmem:[#allocation12] sm:$0xf] }
 0x4d6   :  { %8587 = vmatprep.subr.bf16.mxu0 %v20722_v36  ;;  %8693 = vmatprep.subr.bf16.mxu1 %v20725_v30  ;;  %v27543_v30 = vld [vmem:[#allocation104_spill] sm:$0xff] }
 0x56b   :  { %v6684_v32 = vpop.f32.mrb[42].mxu0  ;;  %v7149_v43 = vpop.f32.mrb[42].mxu1 }
 0x56c   :  { %v7158_v15 = vsub.f32 %v6684_v32, %v7154_v41  ;;  %v7160_v52 = vsub.f32 %v7149_v43, %v7156_v29  ;;  %v6686_v27 = vpop.f32.mrb[43].mxu0  ;;  %v7151_v5 = vpop.f32.mrb[43].mxu1  ;;  %v27544_v29 = vld [vmem:[#allocation105_spill] sm:$0xff]  ;;  %v27547_v43 = vld [vmem:[#allocation103_spill] sm:$0xff] }
 0x56d   :  { %v7159_v48 = vsub.f32 %v6686_v27, %v7155_v31  ;;  %v7161_v35 = vsub.f32 %v7151_v5, %v7157_v58  ;;  %v27545_v31 = vld [vmem:[#allocation128_spill] sm:$0xff]  ;;  %v27546_v58 = vld [vmem:[#allocation102_spill] sm:$0xff]  ;;  %v27548_v27 = vld [vmem:[#allocation129_spill] sm:$0xff] }
 0x56e   :  { %v7163_v39 = vadd.f32 1e-05, %v7158_v15  ;;  %v7165_v24 = vadd.f32 1e-05, %v7160_v52 }
 0x56f   :  { %v7164_v49 = vadd.f32 1e-05, %v7159_v48  ;;  %v7166_v14 = vadd.f32 1e-05, %v7161_v35  ;;  %v27549_v48 = vld [vmem:[#allocation106_spill] sm:$0xff] }
 0x570   :  { %21200 = vrsqrt.f32 %v7163_v39  ;;  %v27550_v39 = vld [vmem:[#allocation107_spill] sm:$0xff] }
 0x571   :  { %21202 = vrsqrt.f32 %v7165_v24 }
 0x572   :  { %21204 = vrsqrt.f32 %v7164_v49 }
 0x573   :  { %21206 = vrsqrt.f32 %v7166_v14 }
 0x57a   :  { %v21201_v25 = vpop.eup %21200 }
 0x57b   :  { %v21203_v9 = vpop.eup %21202 }
 0x57c   :  { %v21205_v34 = vpop.eup %21204 }
 0x57d   :  { %v21207_v16 = vpop.eup %21206  ;;  %v7175_v10 = vcombine.low %v21201_v25, %v21205_v34 }
 0x57e   :  { %v7176_v60 = vcombine.low %v21203_v9, %v21207_v16 }
 0x57f   :  { %v7183_v18 = vrot.slane %v7175_v10, %v24114_v12 }
 0x580   :  { %v7190_v56 = vrot.slane %v7176_v60, %v24114_v12 }
 0x582   :  { %v7191_v17 = vcombine.low %v7183_v18, %v7190_v56 }
 0x584   :  { %v7198_v26 = vrot.slane %v7191_v17, %v24114_v12 }
 0x586   :  { %v7200_v47 = vmul.f32 %v7198_v26, %v7162_v54 }
 0x588   :  { %v7206_v40 = vrot.slane %v7200_v47, %v27539_v55  ;;  %v7210_v1 = vrot.slane %v7200_v47, %v27540_v21  ;;  %v7214_v22 = vrot.slane %v7200_v47, %v27541_v53  ;;  %v7218_v23 = vrot.slane %v7200_v47, %v27542_v63 }
 0x58a   :  { %v7223_v59 = vmul.f32 %v7206_v40, %v24078_v38  ;;  %v7224_v57 = vmul.f32 %v7210_v1, %v24082_v7  ;;  %v7225_v20 = vmul.f32 %v7214_v22, %v24080_v2  ;;  %v7226_v6 = vmul.f32 %v7218_v23, %v24084_v37 }
 0x58b   :  { %v7257_v41 = vmul.f32 %v7206_v40, %v27543_v30  ;;  %v7258_v38 = vmul.f32 %v7210_v1, %v27544_v29  ;;  %v7259_v7 = vmul.f32 %v7214_v22, %v27485_v33  ;;  %v7260_v2 = vmul.f32 %v7218_v23, %v27545_v31  ;;  %v27551_v33 = vld [vmem:[#allocation132_spill] sm:$0xff] }
 0x58c   :  { %v7231_v42 = vcombine.low %v7223_v59, %v7224_v57  ;;  %v7232_v13 = vcombine.low %v7225_v20, %v7226_v6  ;;  %v7261_v37 = vmul.f32 %v7206_v40, %v27546_v58  ;;  %v7262_v15 = vmul.f32 %v7210_v1, %v27547_v43 }
 0x58d   :  { %v7263_v52 = vmul.f32 %v7214_v22, %v27486_v61  ;;  %v7264_v5 = vmul.f32 %v7218_v23, %v27548_v27  ;;  %v7265_v35 = vmul.f32 %v7206_v40, %v27549_v48  ;;  %v7266_v24 = vmul.f32 %v7210_v1, %v27550_v39  ;;  %v27552_v61 = vld [vmem:[#allocation108_spill] sm:$0xff] }
 0x58e   :  { %v7239_v50 = vrot.slane %v7231_v42, %v24114_v12  ;;  %v7246_v44 = vrot.slane %v7232_v13, %v24114_v12  ;;  %v7267_v49 = vmul.f32 %v7214_v22, %v27489_v3  ;;  %v7268_v14 = vmul.f32 %v7218_v23, %v27551_v33 }
 0x58f   :  { %v7269_v9 = vmul.f32 %v7206_v40, %v27552_v61  ;;  %v7270_v34 = vmul.f32 %v7210_v1, %v27553_v4  ;;  %v7271_v16 = vmul.f32 %v7214_v22, %v27492_v45  ;;  %v7272_v10 = vmul.f32 %v7218_v23, %v27473_v28 }
 0x590   :  { %v7247_v0 = vcombine.low %v7239_v50, %v7246_v44 }
 0x592   :  { %v7254_v36 = vrot.slane %v7247_v0, %v24114_v12 }
 0x594   :  { %v7256_v32 = vsub.f32 %v7201_v46, %v7254_v36 }
 0x596   :  { %v7277_v8 = vrot.slane %v7256_v32, %v27539_v55  ;;  %v7281_v11 = vrot.slane %v7256_v32, %v27540_v21  ;;  %v7285_v62 = vrot.slane %v7256_v32, %v27541_v53  ;;  %v7289_v25 = vrot.slane %v7256_v32, %v27542_v63 }
 0x598   :  { %v7294_v60 = vadd.f32 %v7277_v8, %v7257_v41  ;;  %v7295_v3 = vadd.f32 %v7281_v11, %v7258_v38  ;;  %v7296_v18 = vadd.f32 %v7285_v62, %v7259_v7  ;;  %v7297_v56 = vadd.f32 %v7289_v25, %v7260_v2 }
 0x599   :  { %v7298_v17 = vadd.f32 %v7277_v8, %v7261_v37  ;;  %v7299_v54 = vadd.f32 %v7281_v11, %v7262_v15  ;;  %v7300_v26 = vadd.f32 %v7285_v62, %v7263_v52  ;;  %v7301_v47 = vadd.f32 %v7289_v25, %v7264_v5 }
 0x59a   :  { %v7302_v59 = vadd.f32 %v7277_v8, %v7265_v35  ;;  %v7303_v57 = vadd.f32 %v7281_v11, %v7266_v24  ;;  %v7304_v20 = vadd.f32 %v7285_v62, %v7267_v49  ;;  %v7305_v6 = vadd.f32 %v7289_v25, %v7268_v14  ;;  %v7469_v14 = vld [vmem:[#allocation3] sm:$0xff] }
 0x59b   :  { %v7306_v42 = vadd.f32 %v7277_v8, %v7269_v9  ;;  %v7307_v40 = vadd.f32 %v7281_v11, %v7270_v34  ;;  %v7308_v13 = vadd.f32 %v7285_v62, %v7271_v16  ;;  %v7309_v1 = vadd.f32 %v7289_v25, %v7272_v10  ;;  %v7472_v8 = vld [vmem:[#allocation3 + $0x8] sm:$0xff]  ;;  %v7477_v10 = vld [vmem:[#allocation3 + $0x20] sm:$0x11] }
 0x59c   :  { %v17017_v50 = vpack.c.bf16 %v7295_v3, %v7294_v60  ;;  %v17018_v45 = vpack.c.bf16 %v7297_v56, %v7296_v18  ;;  %v17019_v22 = vpack.c.bf16 %v7299_v54, %v7298_v17  ;;  %v17020_v28 = vpack.c.bf16 %v7301_v47, %v7300_v26  ;;  %v7483_v17 = vld [vmem:[#allocation3 + $0x30] sm:$0xff]  ;;  %v7486_v54 = vld [vmem:[#allocation3 + $0x38] sm:$0xff] }
 0x59d   :  { %v17021_v23 = vpack.c.bf16 %v7303_v57, %v7302_v59  ;;  %v17022_v44 = vpack.c.bf16 %v7305_v6, %v7304_v20  ;;  %v17023_v0 = vpack.c.bf16 %v7307_v40, %v7306_v42  ;;  %v17024_v46 = vpack.c.bf16 %v7309_v1, %v7308_v13  ;;  %v7491_v1 = vld [vmem:[#allocation3 + $0x50] sm:$0x11] }
 0x59e   :  { %v7385_v36 = vshrl.u32 %v17017_v50, 16  ;;  %v7388_v30 = vshll.u32 %v17017_v50, 16  ;;  %v7392_v41 = vshrl.u32 %v17018_v45, 16  ;;  %v7395_v29 = vshll.u32 %v17018_v45, 16 }
 0x59f   :  { %v7400_v7 = vshrl.u32 %v17019_v22, 16  ;;  %v7403_v31 = vshll.u32 %v17019_v22, 16  ;;  %v7409_v2 = vshrl.u32 %v17020_v28, 16  ;;  %v7412_v58 = vshll.u32 %v17020_v28, 16 }
 0x5a0   :  { %v7387_v37 = vrot.slane %v7385_v36, 7  ;;  %v24158_v32 = vrot.slane %v7392_v41, 7  ;;  %v7419_v43 = vshrl.u32 %v17021_v23, 16  ;;  %v7422_v15 = vshll.u32 %v17021_v23, 16 }
 0x5a1   :  { %v7402_v52 = vrot.slane %v7400_v7, 7  ;;  %v24160_v27 = vrot.slane %v7409_v2, 7  ;;  %v7426_v5 = vshrl.u32 %v17022_v44, 16  ;;  %v7429_v48 = vshll.u32 %v17022_v44, 16 }
 0x5a2   :  { %v7390_v35 = vor.u32 %v7388_v30, %v7387_v37  ;;  %v7397_v39 = vor.u32 %v7395_v29, %v24158_v32  ;;  %v7398_v24 = vrot.slane %v7387_v37, 4  ;;  %v7407_v49 = vrot.slane %v24158_v32, 4 }
 0x5a3   :  { %v7405_v11 = vor.u32 %v7403_v31, %v7402_v52  ;;  %v7414_v62 = vor.u32 %v7412_v58, %v24160_v27  ;;  %v7416_v25 = vrot.slane %v7402_v52, 4  ;;  %v7417_v61 = vrot.slane %v24160_v27, 4  ;;  %v7480_v58 = vld [vmem:[#allocation3 + $0x28] sm:$0x11] }
 0x5a4   :  { %v7421_v9 = vrot.slane %v7419_v43, 7  ;;  %v24172_v4 = vrot.slane %v7426_v5, 7  ;;  %v7434_v34 = vshrl.u32 %v17023_v0, 16  ;;  %v7437_v16 = vshll.u32 %v17023_v0, 16 }
 0x5a5   :  { %v7443_v60 = vshrl.u32 %v17024_v46, 16  ;;  %v7446_v3 = vshll.u32 %v17024_v46, 16  ;;  %v24176_v18 = vsel %vm24166_vm2, %v7390_v35, %v7469_v14  ;;  %v24180_v56 = vsel %vm24166_vm2, %v7397_v39, %v7472_v8 }
 0x5a6   :  { %v7424_v26 = vor.u32 %v7422_v15, %v7421_v9  ;;  %v7431_v47 = vor.u32 %v7429_v48, %v24172_v4  ;;  %v7432_v59 = vrot.slane %v7421_v9, 4  ;;  %v7436_v57 = vrot.slane %v7434_v34, 7  ;;  %7471 = vst [vmem:[#allocation3] sm:$0xff] %v24176_v18  ;;  %7474 = vst [vmem:[#allocation3 + $0x8] sm:$0xff] %v24180_v56 }
 0x5a7   :  { %v7441_v20 = vrot.slane %v24172_v4, 4  ;;  %v24186_v6 = vrot.slane %v7443_v60, 7  ;;  %v24190_v40 = vsel %vm21733_vm7, %v7398_v24, %v7405_v11  ;;  %v7478_v13 = vsel %vm24089_vm9, %v7416_v25, %v7477_v10 }
 0x5a8   :  { %v7439_v50 = vor.u32 %v7437_v16, %v7436_v57  ;;  %v7450_v45 = vrot.slane %v7436_v57, 4  ;;  %v24196_v22 = vsel %vm24166_vm2, %v7424_v26, %v7483_v17  ;;  %v24200_v28 = vsel %vm24166_vm2, %v7431_v47, %v7486_v54  ;;  %7479 = vst [vmem:[#allocation3 + $0x20] sm:$0x11] %v7478_v13  ;;  %v7494_v17 = vld [vmem:[#allocation3 + $0x58] sm:$0x11] }
 0x5a9   :  { %v7448_v23 = vor.u32 %v7446_v3, %v24186_v6  ;;  %v7451_v44 = vrot.slane %v24186_v6, 4  ;;  %7485 = vst [vmem:[#allocation3 + $0x30] sm:$0xff] %v24196_v22  ;;  %7488 = vst [vmem:[#allocation3 + $0x38] sm:$0xff] %v24200_v28  ;;  %v7638_v0 = vshrl.u32 %v24176_v18, 16  ;;  %v7641_v46 = vshll.u32 %v24176_v18, 16 }
 0x5aa   :  { %v7647_v36 = vshll.u32 %v24190_v40, 16  ;;  %v7665_v30 = vshrl.u32 %v24190_v40, 16  ;;  %v24212_v41 = vsel %vm21733_vm7, %v7432_v59, %v7439_v50  ;;  %v7492_v29 = vsel %vm24089_vm9, %v7450_v45, %v7491_v1 }
 0x5ab   :  { %v7640_v38 = vrot.slane %v7638_v0, 4  ;;  %v7643_v7 = vrot.slane %v7641_v46, 5  ;;  %7493 = vst [vmem:[#allocation3 + $0x50] sm:$0x11] %v7492_v29  ;;  %v7686_v31 = vshrl.u32 %v24196_v22, 16  ;;  %v7689_v2 = vshll.u32 %v24196_v22, 16 }
 0x5ac   :  { %v7649_v37 = vrot.slane %v7647_v36, 5  ;;  %v7667_v32 = vrot.slane %v7665_v30, 4  ;;  %v7695_v43 = vshll.u32 %v24212_v41, 16  ;;  %v7713_v15 = vshrl.u32 %v24212_v41, 16 }
 0x5ad   :  { %v7644_v52 = vor.u32 %v7643_v7, %v7640_v38  ;;  %v7688_v27 = vrot.slane %v7686_v31, 4  ;;  %v7691_v5 = vrot.slane %v7689_v2, 5  ;;  %v24222_v48 = vsel %vm21733_vm7, %v7407_v49, %v7414_v62  ;;  %v20720_v38 = vld [vmem:[#allocation8 + $0x600] ss:$16 sps:$4 sm:$0xff]   ;;  %v20723_v7 = vld [vmem:[#allocation8 + $0x608] ss:$16 sps:$4 sm:$0xff]  }
 0x5ae   :  { %v7668_v35 = vor.u32 %v7667_v32, %v7649_v37  ;;  %v7697_v39 = vrot.slane %v7695_v43, 5  ;;  %v7715_v24 = vrot.slane %v7713_v15, 4  ;;  %v7481_v33 = vsel %vm24089_vm9, %v7417_v61, %v7480_v58  ;;  %v20731_v32 = vld [vmem:[#allocation8 + $0x62c] ss:$16 sps:$4 sm:$0xff]  }
 0x5af   :  { %v24226_v14 = vld [vmem:[#allocation3 + $0x20] sm:$0x11]  ;;  %v7645_v8 = vrot.slane %v7644_v52, 4  ;;  %v7692_v11 = vor.u32 %v7691_v5, %v7688_v27  ;;  %7482 = vst [vmem:[#allocation3 + $0x28] sm:$0x11] %v7481_v33  ;;  %v7652_v25 = vshrl.u32 %v24180_v56, 16  ;;  %v24242_v50 = vsel %vm21733_vm7, %v7441_v20, %v7448_v23 }
 0x5b0   :  { %v7655_v9 = vshll.u32 %v24180_v56, 16  ;;  %v7669_v4 = vrot.slane %v7668_v35, 4  ;;  %v7671_v34 = vshll.u32 %v24226_v14, 16  ;;  %v7716_v49 = vor.u32 %v7715_v24, %v7697_v39  ;;  %v20726_v5 = vld [vmem:[#allocation8 + $0x620] ss:$16 sps:$4 sm:$0xff]  }
 0x5b1   :  { %v7661_v62 = vshll.u32 %v24222_v48, 16  ;;  %v7650_v10 = vsel %vm21777_vm13, %v7645_v8, %v7649_v37  ;;  %v7693_v60 = vrot.slane %v7692_v11, 4  ;;  %v7654_v61 = vrot.slane %v7652_v25, 4  ;;  %v9638_v33 = vld [vmem:[#allocation3] sm:$0xee] }
 0x5b2   :  { %v7657_v3 = vrot.slane %v7655_v9, 5  ;;  %v7673_v54 = vrot.slane %v7671_v34, 5  ;;  %v24234_v26 = vld [vmem:[#allocation3 + $0x50] sm:$0x11]  ;;  %v7717_v47 = vrot.slane %v7716_v49, 4  ;;  %v7675_v57 = vshrl.u32 %v24222_v48, 16 }
 0x5b3   :  { %v7663_v59 = vrot.slane %v7661_v62, 5  ;;  %v7698_v6 = vsel %vm21777_vm13, %v7693_v60, %v7697_v39  ;;  %v7719_v13 = vshll.u32 %v24234_v26, 16  ;;  %v7495_v46 = vsel %vm24089_vm9, %v7451_v44, %v7494_v17  ;;  %v20728_v44 = vld [vmem:[#allocation8 + $0x624] ss:$16 sps:$4 sm:$0xff]   ;;  %v20729_v8 = vld [vmem:[#allocation8 + $0x628] ss:$16 sps:$4 sm:$0xff]  }
 0x5b4   :  { %v7658_v1 = vor.u32 %v7657_v3, %v7654_v61  ;;  %v7674_v45 = vsel %vm21777_vm13, %v7669_v4, %v7673_v54  ;;  %v7677_v0 = vrot.slane %v7675_v57, 4  ;;  %v7700_v36 = vshrl.u32 %v24200_v28, 16  ;;  %7496 = vst [vmem:[#allocation3 + $0x58] sm:$0x11] %v7495_v46  ;;  %v20734_v34 = vld [vmem:[#allocation8 + $0x644] ss:$16 sps:$4 sm:$0xff]  }
 0x5b5   :  { %v16605_v30 = vcombine.low %v7650_v10, %v7674_v45  ;;  %v16606_v29 = vcombine.high %v7650_v10, %v7674_v45  ;;  %v7721_v31 = vrot.slane %v7719_v13, 5  ;;  %v7703_v23 = vshll.u32 %v24200_v28, 16  ;;  %v20737_v49 = vld [vmem:[#allocation8 + $0x64c] ss:$16 sps:$4 sm:$0xff]   ;;  %v20732_v61 = vld [vmem:[#allocation8 + $0x640] ss:$16 sps:$4 sm:$0xff]  }
 0x5b6   :  { %v7659_v2 = vrot.slane %v7658_v1, 4  ;;  %v24249_v58 = vld [vmem:[#allocation3 + $0x28] sm:$0x11]  ;;  %v7678_v20 = vor.u32 %v7677_v0, %v7663_v59  ;;  %v7702_v42 = vrot.slane %v7700_v36, 4  ;;  %v7709_v37 = vshll.u32 %v24242_v50, 16 }
 0x5b7   :  { %8566 = vmatprep.mubr.bf16.mxu0 %v16606_v29  ;;  %8672 = vmatprep.mubr.bf16.mxu1 %v16606_v29  ;;  %v7722_v51 = vsel %vm21777_vm13, %v7717_v47, %v7721_v31  ;;  %v7681_v15 = vshll.u32 %v24249_v58, 16  ;;  %v7723_v52 = vshrl.u32 %v24242_v50, 16  ;;  %v7705_v24 = vrot.slane %v7703_v23, 5  ;;  %v9640_v1 = vld [vmem:[#allocation3 + $0x30] sm:$0xee] }
 0x5b8   :  { %v7664_v43 = vsel %vm21777_vm13, %v7659_v2, %v7663_v59  ;;  %8567 = vmatmul.mubr.bf16.vlgmr.msra.gmra.mrb[44].mxu0 %v16605_v30  ;;  %8673 = vmatmul.mubr.bf16.vlgmr.msra.gmra.mrb[44].mxu1 %v16605_v30  ;;  %v16610_v27 = vcombine.high %v7698_v6, %v7722_v51  ;;  %v16609_v35 = vcombine.low %v7698_v6, %v7722_v51  ;;  %v7679_v39 = vrot.slane %v7678_v20, 4  ;;  %v20735_v45 = vld [vmem:[#allocation8 + $0x648] ss:$16 sps:$4 sm:$0xff]   ;;  %v20740_v29 = vld [vmem:[#allocation8 + $0x664] ss:$16 sps:$4 sm:$0xff]  }
 0x5b9   :  { %8588 = vmatpush1.bf16.msra.mxu0 %v20720_v38  ;;  %8694 = vmatpush1.bf16.msra.mxu1 %v20723_v7  ;;  %v7683_v11 = vrot.slane %v7681_v15, 5  ;;  %v7711_v25 = vrot.slane %v7709_v37, 5  ;;  %v7725_v9 = vrot.slane %v7723_v52, 4  ;;  %v24261_v4 = vcombine.high %v24176_v18, %v24190_v40  ;;  %v9639_v30 = vld [vmem:[#allocation3 + $0x8] sm:$0xee] }
 0x5ba   :  { %8576 = vmatprep.mubr.bf16.mxu0 %v16610_v27  ;;  %8682 = vmatprep.mubr.bf16.mxu1 %v16610_v27  ;;  %v7706_v62 = vor.u32 %v7705_v24, %v7702_v42  ;;  %v24265_v10 = vcombine.low %v24176_v18, %v24190_v40  ;;  %v24269_v60 = vcombine.high %v24196_v22, %v24212_v41  ;;  %v16877_v47 = vrot.slane %v9638_v33, 9  ;;  %v20743_v2 = vld [vmem:[#allocation8 + $0x66c] ss:$16 sps:$4 sm:$0xff]   ;;  %v20746_v52 = vld [vmem:[#allocation8 + $0x684] ss:$16 sps:$4 sm:$0xff]  }
 0x5bb   :  { %8589 = vmatprep.subr.bf16.mxu0 %v20728_v44  ;;  %8695 = vmatprep.subr.bf16.mxu1 %v20731_v32  ;;  %v7684_v3 = vsel %vm21777_vm13, %v7679_v39, %v7683_v11  ;;  %v7726_v17 = vor.u32 %v7725_v9, %v7711_v25  ;;  %v24275_v54 = vcombine.low %v24196_v22, %v24212_v41  ;;  %v24279_v57 = vld [vmem:[#allocation3 + $0x58] sm:$0x11]  ;;  %v9652_v31 = vrot.slane %v24190_v40, 5  ;;  %v20738_v40 = vld [vmem:[#allocation8 + $0x660] ss:$16 sps:$4 sm:$0xff]  }
 0x5bc   :  { %v24277_v59 = vcombine.low %v7664_v43, %v7684_v3  ;;  %v16608_v18 = vcombine.high %v7664_v43, %v7684_v3  ;;  %v7707_v6 = vrot.slane %v7706_v62, 4  ;;  %v24283_v13 = vcombine.high %v24180_v56, %v24222_v48  ;;  %v20749_v27 = vld [vmem:[#allocation8 + $0x68c] ss:$16 sps:$4 sm:$0xff]   ;;  %v20770_v51 = vld [vmem:[#allocation8 + $0x704] ss:$16 sps:$4 sm:$0xff]  }
 0x5bd   :  { %8590 = vmatpush1.bf16.msra.mxu0 %v20726_v5  ;;  %8696 = vmatpush1.bf16.msra.mxu1 %v20729_v8  ;;  %v7727_v0 = vrot.slane %v7726_v17, 4  ;;  %v7729_v46 = vshll.u32 %v24279_v57, 16  ;;  %v24288_v22 = vcombine.low %v24180_v56, %v24222_v48  ;;  %v24292_v36 = vcombine.high %v24200_v28, %v24242_v50  ;;  %v20752_v17 = vld [vmem:[#allocation8 + $0x6a4] ss:$16 sps:$4 sm:$0xff]  }
 0x5be   :  { %8591 = vmatprep.subr.bf16.mxu0 %v20734_v34  ;;  %8697 = vmatprep.subr.bf16.mxu1 %v20737_v49  ;;  %v7712_v38 = vsel %vm21777_vm13, %v7707_v6, %v7711_v25  ;;  %v24298_v7 = vcombine.low %v24200_v28, %v24242_v50  ;;  %v9659_v56 = vrot.slane %v24226_v14, 5  ;;  %v16879_v42 = vrot.slane %v9640_v1, 9  ;;  %v20741_v14 = vld [vmem:[#allocation8 + $0x668] ss:$16 sps:$4 sm:$0xff]   ;;  %v20744_v34 = vld [vmem:[#allocation8 + $0x680] ss:$16 sps:$4 sm:$0xff]  }
 0x5bf   :  { %v7731_v20 = vrot.slane %v7729_v46, 5  ;;  %v9666_v23 = vrot.slane %v24212_v41, 5  ;;  %v9673_v37 = vrot.slane %v24234_v26, 5  ;;  %v9653_v44 = vsel %vm21783_vm14, %v16877_v47, %v9652_v31  ;;  %v9641_v26 = vld [vmem:[#allocation3 + $0x38] sm:$0xee] }
 0x5c0   :  { %8577 = vmatmul.mubr.bf16.gmra.mrb[48].mxu0 %v16609_v35  ;;  %8683 = vmatmul.mubr.bf16.gmra.mrb[48].mxu1 %v16609_v35  ;;  %v9658_v32 = vrot.slane %v9652_v31, 4  ;;  %v16878_v43 = vrot.slane %v9639_v30, 9  ;;  %v9656_v28 = vrot.slane %v24222_v48, 5  ;;  %v9662_v25 = vrot.slane %v24249_v58, 5  ;;  %v20747_v49 = vld [vmem:[#allocation8 + $0x688] ss:$16 sps:$4 sm:$0xff]  }
 0x5c1   :  { %8592 = vmatpush1.bf16.msra.mxu0 %v20732_v61  ;;  %8698 = vmatpush1.bf16.msra.mxu1 %v20735_v45  ;;  %v7732_v15 = vsel %vm21777_vm13, %v7727_v0, %v7731_v20  ;;  %v9667_v41 = vsel %vm21783_vm14, %v16879_v42, %v9666_v23  ;;  %v9672_v39 = vrot.slane %v9666_v23, 4  ;;  %v16880_v9 = vrot.slane %v9641_v26, 9  ;;  %v20755_v47 = vld [vmem:[#allocation8 + $0x6ac] ss:$16 sps:$4 sm:$0xff]   ;;  %v20753_v46 = vld [vmem:[#allocation8 + $0x6a8] ss:$16 sps:$4 sm:$0xff]  }
 0x5c2   :  { %8619 = vmatprep.mubr.bf16.mxu0 %v16608_v18  ;;  %8725 = vmatprep.mubr.bf16.mxu1 %v16608_v18  ;;  %v24311_v5 = vcombine.high %v7712_v38, %v7732_v15  ;;  %v24313_v35 = vcombine.low %v7712_v38, %v7732_v15  ;;  %v9660_v48 = vsel %vm21783_vm14, %v9658_v32, %v9659_v56  ;;  %v9661_v11 = vrot.slane %v9656_v28, 4  ;;  %v20758_v30 = vld [vmem:[#allocation8 + $0x6c4] ss:$16 sps:$4 sm:$0xff]   ;;  %v20756_v56 = vld [vmem:[#allocation8 + $0x6c0] ss:$16 sps:$4 sm:$0xff]  }
 0x5c3   :  { %8593 = vmatprep.subr.bf16.mxu0 %v20740_v29  ;;  %8699 = vmatprep.subr.bf16.mxu1 %v20743_v2  ;;  %v24317_v16 = vcombine.low %v9653_v44, %v9660_v48  ;;  %v24319_v24 = vcombine.high %v9653_v44, %v9660_v48  ;;  %v9657_v33 = vsel %vm21783_vm14, %v16878_v43, %v9656_v28  ;;  %v9670_v3 = vrot.slane %v24242_v50, 5  ;;  %v20750_v50 = vld [vmem:[#allocation8 + $0x6a0] ss:$16 sps:$4 sm:$0xff]   ;;  %v20761_v29 = vld [vmem:[#allocation8 + $0x6cc] ss:$16 sps:$4 sm:$0xff]  }
 0x5c4   :  { %v9674_v8 = vsel %vm21783_vm14, %v9672_v39, %v9673_v37  ;;  %v9663_v18 = vsel %vm21783_vm14, %v9661_v11, %v9662_v25  ;;  %v9676_v58 = vrot.slane %v24279_v57, 5  ;;  %v20759_v2 = vld [vmem:[#allocation8 + $0x6c8] ss:$16 sps:$4 sm:$0xff]   ;;  %v20764_v20 = vld [vmem:[#allocation8 + $0x6e4] ss:$16 sps:$4 sm:$0xff]  }
 0x5c5   :  { %8594 = vmatpush1.bf16.msra.mxu0 %v20738_v40  ;;  %8700 = vmatpush1.bf16.msra.mxu1 %v20741_v14  ;;  %v24326_v62 = vcombine.high %v9667_v41, %v9674_v8  ;;  %v24328_v61 = vcombine.low %v9667_v41, %v9674_v8  ;;  %v24334_v6 = vcombine.low %v9657_v33, %v9663_v18  ;;  %v9675_v0 = vrot.slane %v9670_v3, 4  ;;  %v20767_v42 = vld [vmem:[#allocation8 + $0x6ec] ss:$16 sps:$4 sm:$0xff]   ;;  %v20762_v23 = vld [vmem:[#allocation8 + $0x6e0] ss:$16 sps:$4 sm:$0xff]  }
 0x5c6   :  { %8595 = vmatprep.subr.bf16.mxu0 %v20746_v52  ;;  %8701 = vmatprep.subr.bf16.mxu1 %v20749_v27  ;;  %v24336_v1 = vcombine.high %v9657_v33, %v9663_v18  ;;  %v9671_v45 = vsel %vm21783_vm14, %v16880_v9, %v9670_v3  ;;  %v20765_v37 = vld [vmem:[#allocation8 + $0x6e8] ss:$16 sps:$4 sm:$0xff]   ;;  %v20773_v44 = vld [vmem:[#allocation8 + $0x70c] ss:$16 sps:$4 sm:$0xff]   ;;  %v20768_v32 = vld [vmem:[#allocation8 + $0x700] ss:$16 sps:$4 sm:$0xff]  }
 0x5c7   :  { %v9677_v38 = vsel %vm21783_vm14, %v9675_v0, %v9676_v58  ;;  %v20771_v43 = vld [vmem:[#allocation8 + $0x708] ss:$16 sps:$4 sm:$0xff]   ;;  %v20776_v28 = vld [vmem:[#allocation8 + $0x724] ss:$16 sps:$4 sm:$0xff]   ;;  %v20779_v40 = vld [vmem:[#allocation8 + $0x72c] ss:$16 sps:$4 sm:$0xff]  }
 0x5c8   :  { %v24342_v57 = vcombine.high %v9671_v45, %v9677_v38  ;;  %v24344_v31 = vcombine.low %v9671_v45, %v9677_v38  ;;  %v20774_v14 = vld [vmem:[#allocation8 + $0x720] ss:$16 sps:$4 sm:$0xff]   ;;  %v20777_v15 = vld [vmem:[#allocation8 + $0x728] ss:$16 sps:$4 sm:$0xff]   ;;  %v20782_v41 = vld [vmem:[#allocation8 + $0x744] ss:$16 sps:$4 sm:$0xff]  }
 0x5c9   :  { %8596 = vmatpush1.bf16.msra.mxu0 %v20744_v34  ;;  %8702 = vmatpush1.bf16.msra.mxu1 %v20747_v49  ;;  %v20785_v26 = vld [vmem:[#allocation8 + $0x74c] ss:$16 sps:$4 sm:$0xff]   ;;  %v20780_v52 = vld [vmem:[#allocation8 + $0x740] ss:$16 sps:$4 sm:$0xff]   ;;  %v20783_v27 = vld [vmem:[#allocation8 + $0x748] ss:$16 sps:$4 sm:$0xff]  }
 0x5ca   :  { %8597 = vmatprep.subr.bf16.mxu0 %v20752_v17  ;;  %8703 = vmatprep.subr.bf16.mxu1 %v20755_v47  ;;  %v20788_v48 = vld [vmem:[#allocation8 + $0x764] ss:$16 sps:$4 sm:$0xff]   ;;  %v20791_v39 = vld [vmem:[#allocation8 + $0x76c] ss:$16 sps:$4 sm:$0xff]   ;;  %v20786_v33 = vld [vmem:[#allocation8 + $0x760] ss:$16 sps:$4 sm:$0xff]  }
 0x5cb   :  { %v20789_v8 = vld [vmem:[#allocation8 + $0x768] ss:$16 sps:$4 sm:$0xff]   ;;  %v20794_v11 = vld [vmem:[#allocation8 + $0x784] ss:$16 sps:$4 sm:$0xff]   ;;  %v20797_v25 = vld [vmem:[#allocation8 + $0x78c] ss:$16 sps:$4 sm:$0xff]  }
 0x5cc   :  { %v20792_v9 = vld [vmem:[#allocation8 + $0x780] ss:$16 sps:$4 sm:$0xff]   ;;  %v20795_v34 = vld [vmem:[#allocation8 + $0x788] ss:$16 sps:$4 sm:$0xff]   ;;  %v20800_v49 = vld [vmem:[#allocation8 + $0x7a4] ss:$16 sps:$4 sm:$0xff]  }
 0x5cd   :  { %8598 = vmatpush1.bf16.msra.mxu0 %v20750_v50  ;;  %8704 = vmatpush1.bf16.msra.mxu1 %v20753_v46  ;;  %v20803_v3 = vld [vmem:[#allocation8 + $0x7ac] ss:$16 sps:$4 sm:$0xff]   ;;  %v20798_v17 = vld [vmem:[#allocation8 + $0x7a0] ss:$16 sps:$4 sm:$0xff]   ;;  %v20801_v47 = vld [vmem:[#allocation8 + $0x7a8] ss:$16 sps:$4 sm:$0xff]  }
 0x5ce   :  { %8599 = vmatprep.subr.bf16.mxu0 %v20758_v30  ;;  %8705 = vmatprep.subr.bf16.mxu1 %v20761_v29  ;;  %v20806_v18 = vld [vmem:[#allocation8 + $0x7c4] ss:$16 sps:$4 sm:$0xff]   ;;  %v20809_v58 = vld [vmem:[#allocation8 + $0x7cc] ss:$16 sps:$4 sm:$0xff]   ;;  %v20804_v45 = vld [vmem:[#allocation8 + $0x7c0] ss:$16 sps:$4 sm:$0xff]  }
 0x5cf   :  { %v20807_v0 = vld [vmem:[#allocation8 + $0x7c8] ss:$16 sps:$4 sm:$0xff]   ;;  %v20812_v50 = vld [vmem:[#allocation8 + $0x7e4] ss:$16 sps:$4 sm:$0xff]   ;;  %v20815_v46 = vld [vmem:[#allocation8 + $0x7ec] ss:$16 sps:$4 sm:$0xff]  }
 0x5d0   :  { %v20810_v30 = vld [vmem:[#allocation8 + $0x7e0] ss:$16 sps:$4 sm:$0xff]   ;;  %v20813_v29 = vld [vmem:[#allocation8 + $0x7e8] ss:$16 sps:$4 sm:$0xff]   ;;  %v20818_v38 = vld [vmem:[#allocation8 + $0x4] ss:$16 sps:$4 sm:$0xff]  }
 0x5d1   :  { %8600 = vmatpush1.bf16.msra.mxu0 %v20756_v56  ;;  %8706 = vmatpush1.bf16.msra.mxu1 %v20759_v2  ;;  %v20821_v56 = vld [vmem:[#allocation8 + $0xc] ss:$16 sps:$4 sm:$0xff]   ;;  %v20816_v2 = vld [vmem:[#allocation8] ss:$16 sps:$4 sm:$0xff]  }
 0x5d2   :  { %8601 = vmatprep.subr.bf16.mxu0 %v20764_v20  ;;  %8707 = vmatprep.subr.bf16.mxu1 %v20767_v42  ;;  %v20819_v20 = vld [vmem:[#allocation8 + $0x8] ss:$16 sps:$4 sm:$0xff]   ;;  %v20824_v42 = vld [vmem:[#allocation8 + $0x24] ss:$16 sps:$4 sm:$0xff]  }
 0x5d5   :  { %8602 = vmatpush1.bf16.msra.mxu0 %v20762_v23  ;;  %8708 = vmatpush1.bf16.msra.mxu1 %v20765_v37  ;;  %v20827_v23 = vld [vmem:[#allocation8 + $0x2c] ss:$16 sps:$4 sm:$0xff]   ;;  %v20822_v37 = vld [vmem:[#allocation8 + $0x20] ss:$16 sps:$4 sm:$0xff]  }
 0x5d6   :  { %8603 = vmatprep.subr.bf16.mxu0 %v20770_v51  ;;  %8709 = vmatprep.subr.bf16.mxu1 %v20773_v44  ;;  %v20825_v51 = vld [vmem:[#allocation8 + $0x28] ss:$16 sps:$4 sm:$0xff]   ;;  %v20830_v44 = vld [vmem:[#allocation8 + $0x44] ss:$16 sps:$4 sm:$0xff]  }
 0x5d9   :  { %8604 = vmatpush1.bf16.msra.mxu0 %v20768_v32  ;;  %8710 = vmatpush1.bf16.msra.mxu1 %v20771_v43  ;;  %v20833_v32 = vld [vmem:[#allocation8 + $0x4c] ss:$16 sps:$4 sm:$0xff]   ;;  %v20828_v43 = vld [vmem:[#allocation8 + $0x40] ss:$16 sps:$4 sm:$0xff]  }
 0x5da   :  { %8605 = vmatprep.subr.bf16.mxu0 %v20776_v28  ;;  %8711 = vmatprep.subr.bf16.mxu1 %v20779_v40  ;;  %v20831_v28 = vld [vmem:[#allocation8 + $0x48] ss:$16 sps:$4 sm:$0xff]   ;;  %v20836_v40 = vld [vmem:[#allocation8 + $0x64] ss:$16 sps:$4 sm:$0xff]  }
 0x5dd   :  { %8606 = vmatpush1.bf16.msra.mxu0 %v20774_v14  ;;  %8712 = vmatpush1.bf16.msra.mxu1 %v20777_v15  ;;  %v20837_v14 = vld [vmem:[#allocation8 + $0x68] ss:$16 sps:$4 sm:$0xff]   ;;  %v20842_v15 = vld [vmem:[#allocation8 + $0x84] ss:$16 sps:$4 sm:$0xff]  }
 0x5de   :  { %8607 = vmatprep.subr.bf16.mxu0 %v20782_v41  ;;  %8713 = vmatprep.subr.bf16.mxu1 %v20785_v26  ;;  %v20845_v41 = vld [vmem:[#allocation8 + $0x8c] ss:$16 sps:$4 sm:$0xff]   ;;  %v20840_v26 = vld [vmem:[#allocation8 + $0x80] ss:$16 sps:$4 sm:$0xff]  }
 0x5e1   :  { %8608 = vmatpush1.bf16.msra.mxu0 %v20780_v52  ;;  %8714 = vmatpush1.bf16.msra.mxu1 %v20783_v27  ;;  %v20843_v52 = vld [vmem:[#allocation8 + $0x88] ss:$16 sps:$4 sm:$0xff]   ;;  %v20848_v27 = vld [vmem:[#allocation8 + $0xa4] ss:$16 sps:$4 sm:$0xff]  }
 0x5e2   :  { %8609 = vmatprep.subr.bf16.mxu0 %v20788_v48  ;;  %8715 = vmatprep.subr.bf16.mxu1 %v20791_v39  ;;  %v20846_v48 = vld [vmem:[#allocation8 + $0xa0] ss:$16 sps:$4 sm:$0xff]   ;;  %v20854_v39 = vld [vmem:[#allocation8 + $0xc4] ss:$16 sps:$4 sm:$0xff]  }
 0x5e5   :  { %8610 = vmatpush1.bf16.msra.mxu0 %v20786_v33  ;;  %8716 = vmatpush1.bf16.msra.mxu1 %v20789_v8  ;;  %v20857_v33 = vld [vmem:[#allocation8 + $0xcc] ss:$16 sps:$4 sm:$0xff]   ;;  %v20852_v8 = vld [vmem:[#allocation8 + $0xc0] ss:$16 sps:$4 sm:$0xff]  }
 0x5e6   :  { %8611 = vmatprep.subr.bf16.mxu0 %v20794_v11  ;;  %8717 = vmatprep.subr.bf16.mxu1 %v20797_v25  ;;  %v20855_v11 = vld [vmem:[#allocation8 + $0xc8] ss:$16 sps:$4 sm:$0xff]   ;;  %v20860_v25 = vld [vmem:[#allocation8 + $0xe4] ss:$16 sps:$4 sm:$0xff]  }
 0x5e9   :  { %8612 = vmatpush1.bf16.msra.mxu0 %v20792_v9  ;;  %8718 = vmatpush1.bf16.msra.mxu1 %v20795_v34  ;;  %v20863_v9 = vld [vmem:[#allocation8 + $0xec] ss:$16 sps:$4 sm:$0xff]   ;;  %v20858_v34 = vld [vmem:[#allocation8 + $0xe0] ss:$16 sps:$4 sm:$0xff]  }
 0x5ea   :  { %8613 = vmatprep.subr.bf16.mxu0 %v20800_v49  ;;  %8719 = vmatprep.subr.bf16.mxu1 %v20803_v3  ;;  %v20861_v49 = vld [vmem:[#allocation8 + $0xe8] ss:$16 sps:$4 sm:$0xff]   ;;  %v20866_v3 = vld [vmem:[#allocation8 + $0x104] ss:$16 sps:$4 sm:$0xff]  }
 0x5ed   :  { %8614 = vmatpush1.bf16.msra.mxu0 %v20798_v17  ;;  %8720 = vmatpush1.bf16.msra.mxu1 %v20801_v47  ;;  %v20869_v17 = vld [vmem:[#allocation8 + $0x10c] ss:$16 sps:$4 sm:$0xff]   ;;  %v20864_v47 = vld [vmem:[#allocation8 + $0x100] ss:$16 sps:$4 sm:$0xff]  }
 0x5ee   :  { %8615 = vmatprep.subr.bf16.mxu0 %v20806_v18  ;;  %8721 = vmatprep.subr.bf16.mxu1 %v20809_v58  ;;  %v20867_v18 = vld [vmem:[#allocation8 + $0x108] ss:$16 sps:$4 sm:$0xff]   ;;  %v20872_v58 = vld [vmem:[#allocation8 + $0x124] ss:$16 sps:$4 sm:$0xff]  }
 0x5f1   :  { %8616 = vmatpush1.bf16.msra.mxu0 %v20804_v45  ;;  %8722 = vmatpush1.bf16.msra.mxu1 %v20807_v0  ;;  %v20875_v45 = vld [vmem:[#allocation8 + $0x12c] ss:$16 sps:$4 sm:$0xff]   ;;  %v20870_v0 = vld [vmem:[#allocation8 + $0x120] ss:$16 sps:$4 sm:$0xff]  }
 0x5f2   :  { %8617 = vmatprep.subr.bf16.mxu0 %v20812_v50  ;;  %8723 = vmatprep.subr.bf16.mxu1 %v20815_v46  ;;  %v20873_v50 = vld [vmem:[#allocation8 + $0x128] ss:$16 sps:$4 sm:$0xff]   ;;  %v20878_v46 = vld [vmem:[#allocation8 + $0x144] ss:$16 sps:$4 sm:$0xff]  }
 0x5f5   :  { %8618 = vmatpush1.bf16.msra.mxu0 %v20810_v30  ;;  %8724 = vmatpush1.bf16.msra.mxu1 %v20813_v29  ;;  %v20881_v30 = vld [vmem:[#allocation8 + $0x14c] ss:$16 sps:$4 sm:$0xff]   ;;  %v20876_v29 = vld [vmem:[#allocation8 + $0x140] ss:$16 sps:$4 sm:$0xff]  }
 0x5f6   :  { %9426 = vmatprep.subr.bf16.mxu0 %v20818_v38  ;;  %9532 = vmatprep.subr.bf16.mxu1 %v20821_v56  ;;  %v20879_v38 = vld [vmem:[#allocation8 + $0x148] ss:$16 sps:$4 sm:$0xff]   ;;  %v20884_v56 = vld [vmem:[#allocation8 + $0x164] ss:$16 sps:$4 sm:$0xff]  }
 0x5f8   :  { %8620 = vmatmul.mubr.bf16.vlgmr.msra.gmra.mrb[44].mxu0 %v24277_v59  ;;  %8726 = vmatmul.mubr.bf16.vlgmr.msra.gmra.mrb[44].mxu1 %v24277_v59  ;;  %v20839_v59 = vld [vmem:[#allocation8 + $0x6c] ss:$16 sps:$4 sm:$0xff]  }
 0x5f9   :  { %8629 = vmatprep.mubr.bf16.mxu0 %v24311_v5  ;;  %8735 = vmatprep.mubr.bf16.mxu1 %v24311_v5  ;;  %v20834_v5 = vld [vmem:[#allocation8 + $0x60] ss:$16 sps:$4 sm:$0xff]  }
 0x5fa   :  { %9427 = vmatpush1.bf16.msra.mxu0 %v20816_v2  ;;  %9533 = vmatpush1.bf16.msra.mxu1 %v20819_v20  ;;  %v20887_v2 = vld [vmem:[#allocation8 + $0x16c] ss:$16 sps:$4 sm:$0xff]   ;;  %v20882_v20 = vld [vmem:[#allocation8 + $0x160] ss:$16 sps:$4 sm:$0xff]  }
 0x5fb   :  { %9428 = vmatprep.subr.bf16.mxu0 %v20824_v42  ;;  %9534 = vmatprep.subr.bf16.mxu1 %v20827_v23  ;;  %v20885_v42 = vld [vmem:[#allocation8 + $0x168] ss:$16 sps:$4 sm:$0xff]   ;;  %v20890_v23 = vld [vmem:[#allocation8 + $0x184] ss:$16 sps:$4 sm:$0xff]  }
 0x5fe   :  { %9429 = vmatpush1.bf16.msra.mxu0 %v20822_v37  ;;  %9535 = vmatpush1.bf16.msra.mxu1 %v20825_v51  ;;  %v20893_v37 = vld [vmem:[#allocation8 + $0x18c] ss:$16 sps:$4 sm:$0xff]   ;;  %v20888_v51 = vld [vmem:[#allocation8 + $0x180] ss:$16 sps:$4 sm:$0xff]  }
 0x5ff   :  { %9430 = vmatprep.subr.bf16.mxu0 %v20830_v44  ;;  %9536 = vmatprep.subr.bf16.mxu1 %v20833_v32  ;;  %v20891_v44 = vld [vmem:[#allocation8 + $0x188] ss:$16 sps:$4 sm:$0xff]   ;;  %v20896_v32 = vld [vmem:[#allocation8 + $0x1a4] ss:$16 sps:$4 sm:$0xff]  }
 0x600   :  { %8630 = vmatmul.mubr.bf16.gmra.mrb[48].mxu0 %v24313_v35  ;;  %8736 = vmatmul.mubr.bf16.gmra.mrb[48].mxu1 %v24313_v35  ;;  %v20851_v35 = vld [vmem:[#allocation8 + $0xac] ss:$16 sps:$4 sm:$0xff]  }
 0x601   :  { %9458 = vmatprep.mubr.bf16.mxu0 %v24261_v4  ;;  %9564 = vmatprep.mubr.bf16.mxu1 %v24261_v4  ;;  %v20849_v4 = vld [vmem:[#allocation8 + $0xa8] ss:$16 sps:$4 sm:$0xff]  }
 0x602   :  { %9431 = vmatpush1.bf16.msra.mxu0 %v20828_v43  ;;  %9537 = vmatpush1.bf16.msra.mxu1 %v20831_v28  ;;  %v20899_v43 = vld [vmem:[#allocation8 + $0x1ac] ss:$16 sps:$4 sm:$0xff]   ;;  %v20894_v28 = vld [vmem:[#allocation8 + $0x1a0] ss:$16 sps:$4 sm:$0xff]  }
 0x603   :  { %9432 = vmatprep.subr.bf16.mxu0 %v20836_v40  ;;  %9538 = vmatprep.subr.bf16.mxu1 %v20839_v59  ;;  %v20897_v40 = vld [vmem:[#allocation8 + $0x1a8] ss:$16 sps:$4 sm:$0xff]   ;;  %v20902_v59 = vld [vmem:[#allocation8 + $0x1c4] ss:$16 sps:$4 sm:$0xff]  }
 0x606   :  { %9433 = vmatpush1.bf16.msra.mxu0 %v20834_v5  ;;  %9539 = vmatpush1.bf16.msra.mxu1 %v20837_v14  ;;  %v20905_v5 = vld [vmem:[#allocation8 + $0x1cc] ss:$16 sps:$4 sm:$0xff]   ;;  %v20900_v14 = vld [vmem:[#allocation8 + $0x1c0] ss:$16 sps:$4 sm:$0xff]  }
 0x607   :  { %9434 = vmatprep.subr.bf16.mxu0 %v20842_v15  ;;  %9540 = vmatprep.subr.bf16.mxu1 %v20845_v41  ;;  %v20903_v15 = vld [vmem:[#allocation8 + $0x1c8] ss:$16 sps:$4 sm:$0xff]   ;;  %v20908_v41 = vld [vmem:[#allocation8 + $0x1e4] ss:$16 sps:$4 sm:$0xff]  }
 0x60a   :  { %9435 = vmatpush1.bf16.msra.mxu0 %v20840_v26  ;;  %9541 = vmatpush1.bf16.msra.mxu1 %v20843_v52  ;;  %v20911_v26 = vld [vmem:[#allocation8 + $0x1ec] ss:$16 sps:$4 sm:$0xff]   ;;  %v20906_v52 = vld [vmem:[#allocation8 + $0x1e0] ss:$16 sps:$4 sm:$0xff]  }
 0x60b   :  { %9436 = vmatprep.subr.bf16.mxu0 %v20848_v27  ;;  %9542 = vmatprep.subr.bf16.mxu1 %v20851_v35  ;;  %v20909_v27 = vld [vmem:[#allocation8 + $0x1e8] ss:$16 sps:$4 sm:$0xff]   ;;  %v20914_v35 = vld [vmem:[#allocation8 + $0x204] ss:$16 sps:$4 sm:$0xff]  }
 0x60e   :  { %9437 = vmatpush1.bf16.msra.mxu0 %v20846_v48  ;;  %9543 = vmatpush1.bf16.msra.mxu1 %v20849_v4  ;;  %v20917_v48 = vld [vmem:[#allocation8 + $0x20c] ss:$16 sps:$4 sm:$0xff]   ;;  %v20912_v4 = vld [vmem:[#allocation8 + $0x200] ss:$16 sps:$4 sm:$0xff]  }
 0x60f   :  { %9438 = vmatprep.subr.bf16.mxu0 %v20854_v39  ;;  %9544 = vmatprep.subr.bf16.mxu1 %v20857_v33  ;;  %v20915_v39 = vld [vmem:[#allocation8 + $0x208] ss:$16 sps:$4 sm:$0xff]   ;;  %v20920_v33 = vld [vmem:[#allocation8 + $0x224] ss:$16 sps:$4 sm:$0xff]  }
 0x612   :  { %9439 = vmatpush1.bf16.msra.mxu0 %v20852_v8  ;;  %9545 = vmatpush1.bf16.msra.mxu1 %v20855_v11  ;;  %v20923_v8 = vld [vmem:[#allocation8 + $0x22c] ss:$16 sps:$4 sm:$0xff]   ;;  %v20918_v11 = vld [vmem:[#allocation8 + $0x220] ss:$16 sps:$4 sm:$0xff]  }
 0x613   :  { %9440 = vmatprep.subr.bf16.mxu0 %v20860_v25  ;;  %9546 = vmatprep.subr.bf16.mxu1 %v20863_v9  ;;  %v20921_v25 = vld [vmem:[#allocation8 + $0x228] ss:$16 sps:$4 sm:$0xff]   ;;  %v20926_v9 = vld [vmem:[#allocation8 + $0x244] ss:$16 sps:$4 sm:$0xff]  }
 0x616   :  { %9441 = vmatpush1.bf16.msra.mxu0 %v20858_v34  ;;  %9547 = vmatpush1.bf16.msra.mxu1 %v20861_v49  ;;  %v20929_v34 = vld [vmem:[#allocation8 + $0x24c] ss:$16 sps:$4 sm:$0xff]   ;;  %v20924_v49 = vld [vmem:[#allocation8 + $0x240] ss:$16 sps:$4 sm:$0xff]  }
 0x617   :  { %9442 = vmatprep.subr.bf16.mxu0 %v20866_v3  ;;  %9548 = vmatprep.subr.bf16.mxu1 %v20869_v17  ;;  %v20927_v3 = vld [vmem:[#allocation8 + $0x248] ss:$16 sps:$4 sm:$0xff]   ;;  %v20932_v17 = vld [vmem:[#allocation8 + $0x264] ss:$16 sps:$4 sm:$0xff]  }
 0x61a   :  { %9443 = vmatpush1.bf16.msra.mxu0 %v20864_v47  ;;  %9549 = vmatpush1.bf16.msra.mxu1 %v20867_v18  ;;  %v20933_v47 = vld [vmem:[#allocation8 + $0x268] ss:$16 sps:$4 sm:$0xff]   ;;  %v20938_v18 = vld [vmem:[#allocation8 + $0x284] ss:$16 sps:$4 sm:$0xff]  }
 0x61b   :  { %9444 = vmatprep.subr.bf16.mxu0 %v20872_v58  ;;  %9550 = vmatprep.subr.bf16.mxu1 %v20875_v45  ;;  %v20941_v58 = vld [vmem:[#allocation8 + $0x28c] ss:$16 sps:$4 sm:$0xff]   ;;  %v20936_v45 = vld [vmem:[#allocation8 + $0x280] ss:$16 sps:$4 sm:$0xff]  }
 0x61e   :  { %9445 = vmatpush1.bf16.msra.mxu0 %v20870_v0  ;;  %9551 = vmatpush1.bf16.msra.mxu1 %v20873_v50  ;;  %v20939_v0 = vld [vmem:[#allocation8 + $0x288] ss:$16 sps:$4 sm:$0xff]   ;;  %v20944_v50 = vld [vmem:[#allocation8 + $0x2a4] ss:$16 sps:$4 sm:$0xff]  }
 0x61f   :  { %9446 = vmatprep.subr.bf16.mxu0 %v20878_v46  ;;  %9552 = vmatprep.subr.bf16.mxu1 %v20881_v30  ;;  %v20942_v46 = vld [vmem:[#allocation8 + $0x2a0] ss:$16 sps:$4 sm:$0xff]   ;;  %v20945_v30 = vld [vmem:[#allocation8 + $0x2a8] ss:$16 sps:$4 sm:$0xff]  }
 0x622   :  { %9447 = vmatpush1.bf16.msra.mxu0 %v20876_v29  ;;  %9553 = vmatpush1.bf16.msra.mxu1 %v20879_v38  ;;  %v20950_v29 = vld [vmem:[#allocation8 + $0x2c4] ss:$16 sps:$4 sm:$0xff]   ;;  %v20948_v38 = vld [vmem:[#allocation8 + $0x2c0] ss:$16 sps:$4 sm:$0xff]  }
 0x623   :  { %9448 = vmatprep.subr.bf16.mxu0 %v20884_v56  ;;  %9554 = vmatprep.subr.bf16.mxu1 %v20887_v2  ;;  %v20951_v56 = vld [vmem:[#allocation8 + $0x2c8] ss:$16 sps:$4 sm:$0xff]   ;;  %v20956_v2 = vld [vmem:[#allocation8 + $0x2e4] ss:$16 sps:$4 sm:$0xff]  }
 0x626   :  { %9449 = vmatpush1.bf16.msra.mxu0 %v20882_v20  ;;  %9555 = vmatpush1.bf16.msra.mxu1 %v20885_v42  ;;  %v20959_v20 = vld [vmem:[#allocation8 + $0x2ec] ss:$16 sps:$4 sm:$0xff]   ;;  %v20954_v42 = vld [vmem:[#allocation8 + $0x2e0] ss:$16 sps:$4 sm:$0xff]  }
 0x627   :  { %9450 = vmatprep.subr.bf16.mxu0 %v20890_v23  ;;  %9556 = vmatprep.subr.bf16.mxu1 %v20893_v37  ;;  %v20957_v23 = vld [vmem:[#allocation8 + $0x2e8] ss:$16 sps:$4 sm:$0xff]   ;;  %v20962_v37 = vld [vmem:[#allocation8 + $0x304] ss:$16 sps:$4 sm:$0xff]  }
 0x62a   :  { %9451 = vmatpush1.bf16.msra.mxu0 %v20888_v51  ;;  %9557 = vmatpush1.bf16.msra.mxu1 %v20891_v44  ;;  %v20965_v51 = vld [vmem:[#allocation8 + $0x30c] ss:$16 sps:$4 sm:$0xff]   ;;  %v20960_v44 = vld [vmem:[#allocation8 + $0x300] ss:$16 sps:$4 sm:$0xff]  }
 0x62b   :  { %9452 = vmatprep.subr.bf16.mxu0 %v20896_v32  ;;  %9558 = vmatprep.subr.bf16.mxu1 %v20899_v43  ;;  %v20963_v32 = vld [vmem:[#allocation8 + $0x308] ss:$16 sps:$4 sm:$0xff]   ;;  %v20968_v43 = vld [vmem:[#allocation8 + $0x324] ss:$16 sps:$4 sm:$0xff]  }
 0x62e   :  { %9453 = vmatpush1.bf16.msra.mxu0 %v20894_v28  ;;  %9559 = vmatpush1.bf16.msra.mxu1 %v20897_v40  ;;  %v20971_v28 = vld [vmem:[#allocation8 + $0x32c] ss:$16 sps:$4 sm:$0xff]   ;;  %v20966_v40 = vld [vmem:[#allocation8 + $0x320] ss:$16 sps:$4 sm:$0xff]  }
 0x62f   :  { %9454 = vmatprep.subr.bf16.mxu0 %v20902_v59  ;;  %9560 = vmatprep.subr.bf16.mxu1 %v20905_v5  ;;  %v20969_v59 = vld [vmem:[#allocation8 + $0x328] ss:$16 sps:$4 sm:$0xff]   ;;  %v20974_v5 = vld [vmem:[#allocation8 + $0x344] ss:$16 sps:$4 sm:$0xff]  }
 0x632   :  { %9455 = vmatpush1.bf16.msra.mxu0 %v20900_v14  ;;  %9561 = vmatpush1.bf16.msra.mxu1 %v20903_v15  ;;  %v20977_v14 = vld [vmem:[#allocation8 + $0x34c] ss:$16 sps:$4 sm:$0xff]   ;;  %v20972_v15 = vld [vmem:[#allocation8 + $0x340] ss:$16 sps:$4 sm:$0xff]  }
 0x633   :  { %9456 = vmatprep.subr.bf16.mxu0 %v20908_v41  ;;  %9562 = vmatprep.subr.bf16.mxu1 %v20911_v26  ;;  %v20975_v41 = vld [vmem:[#allocation8 + $0x348] ss:$16 sps:$4 sm:$0xff]   ;;  %v20980_v26 = vld [vmem:[#allocation8 + $0x364] ss:$16 sps:$4 sm:$0xff]  }
 0x636   :  { %9457 = vmatpush1.bf16.msra.mxu0 %v20906_v52  ;;  %9563 = vmatpush1.bf16.msra.mxu1 %v20909_v27  ;;  %v20983_v52 = vld [vmem:[#allocation8 + $0x36c] ss:$16 sps:$4 sm:$0xff]   ;;  %v20978_v27 = vld [vmem:[#allocation8 + $0x360] ss:$16 sps:$4 sm:$0xff]  }
 0x637   :  { %9479 = vmatprep.subr.bf16.mxu0 %v20914_v35  ;;  %9585 = vmatprep.subr.bf16.mxu1 %v20917_v48  ;;  %v20981_v35 = vld [vmem:[#allocation8 + $0x368] ss:$16 sps:$4 sm:$0xff]   ;;  %v20986_v48 = vld [vmem:[#allocation8 + $0x384] ss:$16 sps:$4 sm:$0xff]  }
 0x639   :  { %9459 = vmatmul.mubr.bf16.vlgmr.msra.gmra.mrb[44].mxu0 %v24265_v10  ;;  %9565 = vmatmul.mubr.bf16.vlgmr.msra.gmra.mrb[44].mxu1 %v24265_v10  ;;  %v20935_v10 = vld [vmem:[#allocation8 + $0x26c] ss:$16 sps:$4 sm:$0xff]  }
 0x63a   :  { %9468 = vmatprep.mubr.bf16.mxu0 %v24269_v60  ;;  %9480 = vmatpush1.bf16.msra.mxu0 %v20912_v4  ;;  %v20989_v4 = vld [vmem:[#allocation8 + $0x38c] ss:$16 sps:$4 sm:$0xff]  }
 0x63b   :  { %9574 = vmatprep.mubr.bf16.mxu1 %v24269_v60  ;;  %9586 = vmatpush1.bf16.msra.mxu1 %v20915_v39  ;;  %v20930_v60 = vld [vmem:[#allocation8 + $0x260] ss:$16 sps:$4 sm:$0xff]  }
 0x63c   :  { %9481 = vmatprep.subr.bf16.mxu0 %v20920_v33  ;;  %9587 = vmatprep.subr.bf16.mxu1 %v20923_v8  ;;  %v20984_v39 = vld [vmem:[#allocation8 + $0x380] ss:$16 sps:$4 sm:$0xff]   ;;  %v20987_v33 = vld [vmem:[#allocation8 + $0x388] ss:$16 sps:$4 sm:$0xff]   ;;  %v20992_v8 = vld [vmem:[#allocation8 + $0x3a4] ss:$16 sps:$4 sm:$0xff]  }
 0x63e   :  { %9482 = vmatpush1.bf16.msra.mxu0 %v20918_v11  ;;  %v20995_v11 = vld [vmem:[#allocation8 + $0x3ac] ss:$16 sps:$4 sm:$0xff]  }
 0x63f   :  { %9588 = vmatpush1.bf16.msra.mxu1 %v20921_v25  ;;  %9483 = vmatprep.subr.bf16.mxu0 %v20926_v9  ;;  %v20990_v25 = vld [vmem:[#allocation8 + $0x3a0] ss:$16 sps:$4 sm:$0xff]   ;;  %v20993_v9 = vld [vmem:[#allocation8 + $0x3a8] ss:$16 sps:$4 sm:$0xff]  }
 0x640   :  { %9589 = vmatprep.subr.bf16.mxu1 %v20929_v34  ;;  %v20998_v34 = vld [vmem:[#allocation8 + $0x3c4] ss:$16 sps:$4 sm:$0xff]  }
 0x641   :  { %9469 = vmatmul.mubr.bf16.gmra.mrb[48].mxu0 %v24275_v54  ;;  %9575 = vmatmul.mubr.bf16.gmra.mrb[48].mxu1 %v24275_v54  ;;  %v20947_v54 = vld [vmem:[#allocation8 + $0x2ac] ss:$16 sps:$4 sm:$0xff]  }
 0x642   :  { %9484 = vmatpush1.bf16.msra.mxu0 %v20924_v49  ;;  %9511 = vmatprep.mubr.bf16.mxu0 %v24283_v13  ;;  %v21001_v49 = vld [vmem:[#allocation8 + $0x3cc] ss:$16 sps:$4 sm:$0xff]  }
 0x643   :  { %9590 = vmatpush1.bf16.msra.mxu1 %v20927_v3  ;;  %9617 = vmatprep.mubr.bf16.mxu1 %v24283_v13  ;;  %v20953_v13 = vld [vmem:[#allocation8 + $0x2cc] ss:$16 sps:$4 sm:$0xff]   ;;  %v20996_v3 = vld [vmem:[#allocation8 + $0x3c0] ss:$16 sps:$4 sm:$0xff]  }
 0x644   :  { %9485 = vmatprep.subr.bf16.mxu0 %v20932_v17  ;;  %9591 = vmatprep.subr.bf16.mxu1 %v20935_v10  ;;  %v20999_v17 = vld [vmem:[#allocation8 + $0x3c8] ss:$16 sps:$4 sm:$0xff]   ;;  %v21004_v10 = vld [vmem:[#allocation8 + $0x3e4] ss:$16 sps:$4 sm:$0xff]  }
 0x646   :  { %9486 = vmatpush1.bf16.msra.mxu0 %v20930_v60  ;;  %v21007_v60 = vld [vmem:[#allocation8 + $0x3ec] ss:$16 sps:$4 sm:$0xff]  }
 0x647   :  { %9592 = vmatpush1.bf16.msra.mxu1 %v20933_v47  ;;  %9487 = vmatprep.subr.bf16.mxu0 %v20938_v18  ;;  %v21002_v47 = vld [vmem:[#allocation8 + $0x3e0] ss:$16 sps:$4 sm:$0xff]   ;;  %v21005_v18 = vld [vmem:[#allocation8 + $0x3e8] ss:$16 sps:$4 sm:$0xff]  }
 0x648   :  { %9593 = vmatprep.subr.bf16.mxu1 %v20941_v58  ;;  %v21010_v58 = vld [vmem:[#allocation8 + $0x804] ss:$16 sps:$4 sm:$0xff]  }
 0x64a   :  { %9488 = vmatpush1.bf16.msra.mxu0 %v20936_v45  ;;  %v21013_v45 = vld [vmem:[#allocation8 + $0x80c] ss:$16 sps:$4 sm:$0xff]  }
 0x64b   :  { %9594 = vmatpush1.bf16.msra.mxu1 %v20939_v0  ;;  %9489 = vmatprep.subr.bf16.mxu0 %v20944_v50  ;;  %v21008_v0 = vld [vmem:[#allocation8 + $0x800] ss:$16 sps:$4 sm:$0xff]   ;;  %v21011_v50 = vld [vmem:[#allocation8 + $0x808] ss:$16 sps:$4 sm:$0xff]  }
 0x64c   :  { %9595 = vmatprep.subr.bf16.mxu1 %v20947_v54  ;;  %v21016_v54 = vld [vmem:[#allocation8 + $0x824] ss:$16 sps:$4 sm:$0xff]  }
 0x64e   :  { %9490 = vmatpush1.bf16.msra.mxu0 %v20942_v46  ;;  %v21019_v46 = vld [vmem:[#allocation8 + $0x82c] ss:$16 sps:$4 sm:$0xff]  }
 0x64f   :  { %9596 = vmatpush1.bf16.msra.mxu1 %v20945_v30  ;;  %9491 = vmatprep.subr.bf16.mxu0 %v20950_v29  ;;  %v21014_v30 = vld [vmem:[#allocation8 + $0x820] ss:$16 sps:$4 sm:$0xff]   ;;  %v21017_v29 = vld [vmem:[#allocation8 + $0x828] ss:$16 sps:$4 sm:$0xff]  }
 0x650   :  { %9597 = vmatprep.subr.bf16.mxu1 %v20953_v13  ;;  %v21022_v13 = vld [vmem:[#allocation8 + $0x844] ss:$16 sps:$4 sm:$0xff]  }
 0x652   :  { %9492 = vmatpush1.bf16.msra.mxu0 %v20948_v38  ;;  %v21025_v38 = vld [vmem:[#allocation8 + $0x84c] ss:$16 sps:$4 sm:$0xff]  }
 0x653   :  { %9598 = vmatpush1.bf16.msra.mxu1 %v20951_v56  ;;  %9493 = vmatprep.subr.bf16.mxu0 %v20956_v2  ;;  %v21020_v56 = vld [vmem:[#allocation8 + $0x840] ss:$16 sps:$4 sm:$0xff]   ;;  %v21023_v2 = vld [vmem:[#allocation8 + $0x848] ss:$16 sps:$4 sm:$0xff]  }
 0x654   :  { %9599 = vmatprep.subr.bf16.mxu1 %v20959_v20  ;;  %v21028_v20 = vld [vmem:[#allocation8 + $0x864] ss:$16 sps:$4 sm:$0xff]  }
 0x656   :  { %9494 = vmatpush1.bf16.msra.mxu0 %v20954_v42  ;;  %v21029_v42 = vld [vmem:[#allocation8 + $0x868] ss:$16 sps:$4 sm:$0xff]  }
 0x657   :  { %9600 = vmatpush1.bf16.msra.mxu1 %v20957_v23  ;;  %9495 = vmatprep.subr.bf16.mxu0 %v20962_v37  ;;  %v21034_v23 = vld [vmem:[#allocation8 + $0x884] ss:$16 sps:$4 sm:$0xff]   ;;  %v21037_v37 = vld [vmem:[#allocation8 + $0x88c] ss:$16 sps:$4 sm:$0xff]  }
 0x658   :  { %9601 = vmatprep.subr.bf16.mxu1 %v20965_v51  ;;  %v21032_v51 = vld [vmem:[#allocation8 + $0x880] ss:$16 sps:$4 sm:$0xff]  }
 0x65a   :  { %9496 = vmatpush1.bf16.msra.mxu0 %v20960_v44  ;;  %v21035_v44 = vld [vmem:[#allocation8 + $0x888] ss:$16 sps:$4 sm:$0xff]  }
 0x65b   :  { %9602 = vmatpush1.bf16.msra.mxu1 %v20963_v32  ;;  %9497 = vmatprep.subr.bf16.mxu0 %v20968_v43  ;;  %v21040_v32 = vld [vmem:[#allocation8 + $0x8a4] ss:$16 sps:$4 sm:$0xff]   ;;  %v21038_v43 = vld [vmem:[#allocation8 + $0x8a0] ss:$16 sps:$4 sm:$0xff]  }
 0x65c   :  { %9603 = vmatprep.subr.bf16.mxu1 %v20971_v28  ;;  %v21046_v28 = vld [vmem:[#allocation8 + $0x8c4] ss:$16 sps:$4 sm:$0xff]  }
 0x65e   :  { %9498 = vmatpush1.bf16.msra.mxu0 %v20966_v40  ;;  %v21049_v40 = vld [vmem:[#allocation8 + $0x8cc] ss:$16 sps:$4 sm:$0xff]  }
 0x65f   :  { %9604 = vmatpush1.bf16.msra.mxu1 %v20969_v59  ;;  %9499 = vmatprep.subr.bf16.mxu0 %v20974_v5  ;;  %v21044_v59 = vld [vmem:[#allocation8 + $0x8c0] ss:$16 sps:$4 sm:$0xff]   ;;  %v21047_v5 = vld [vmem:[#allocation8 + $0x8c8] ss:$16 sps:$4 sm:$0xff]  }
 0x660   :  { %9605 = vmatprep.subr.bf16.mxu1 %v20977_v14  ;;  %v21052_v14 = vld [vmem:[#allocation8 + $0x8e4] ss:$16 sps:$4 sm:$0xff]  }
 0x662   :  { %9500 = vmatpush1.bf16.msra.mxu0 %v20972_v15  ;;  %v21055_v15 = vld [vmem:[#allocation8 + $0x8ec] ss:$16 sps:$4 sm:$0xff]  }
 0x663   :  { %9606 = vmatpush1.bf16.msra.mxu1 %v20975_v41  ;;  %9501 = vmatprep.subr.bf16.mxu0 %v20980_v26  ;;  %v21050_v41 = vld [vmem:[#allocation8 + $0x8e0] ss:$16 sps:$4 sm:$0xff]   ;;  %v21053_v26 = vld [vmem:[#allocation8 + $0x8e8] ss:$16 sps:$4 sm:$0xff]  }
 0x664   :  { %9607 = vmatprep.subr.bf16.mxu1 %v20983_v52  ;;  %v21058_v52 = vld [vmem:[#allocation8 + $0x904] ss:$16 sps:$4 sm:$0xff]  }
 0x666   :  { %9502 = vmatpush1.bf16.msra.mxu0 %v20978_v27  ;;  %v21061_v27 = vld [vmem:[#allocation8 + $0x90c] ss:$16 sps:$4 sm:$0xff]  }
 0x667   :  { %9608 = vmatpush1.bf16.msra.mxu1 %v20981_v35  ;;  %9503 = vmatprep.subr.bf16.mxu0 %v20986_v48  ;;  %v21056_v35 = vld [vmem:[#allocation8 + $0x900] ss:$16 sps:$4 sm:$0xff]   ;;  %v21059_v48 = vld [vmem:[#allocation8 + $0x908] ss:$16 sps:$4 sm:$0xff]  }
 0x668   :  { %9609 = vmatprep.subr.bf16.mxu1 %v20989_v4  ;;  %v21064_v4 = vld [vmem:[#allocation8 + $0x924] ss:$16 sps:$4 sm:$0xff]  }
 0x66a   :  { %9504 = vmatpush1.bf16.msra.mxu0 %v20984_v39  ;;  %v21067_v39 = vld [vmem:[#allocation8 + $0x92c] ss:$16 sps:$4 sm:$0xff]  }
 0x66b   :  { %9610 = vmatpush1.bf16.msra.mxu1 %v20987_v33  ;;  %9505 = vmatprep.subr.bf16.mxu0 %v20992_v8  ;;  %v21062_v33 = vld [vmem:[#allocation8 + $0x920] ss:$16 sps:$4 sm:$0xff]   ;;  %v21065_v8 = vld [vmem:[#allocation8 + $0x928] ss:$16 sps:$4 sm:$0xff]  }
 0x66c   :  { %9611 = vmatprep.subr.bf16.mxu1 %v20995_v11  ;;  %v21070_v11 = vld [vmem:[#allocation8 + $0x944] ss:$16 sps:$4 sm:$0xff]  }
 0x66e   :  { %9506 = vmatpush1.bf16.msra.mxu0 %v20990_v25  ;;  %v21073_v25 = vld [vmem:[#allocation8 + $0x94c] ss:$16 sps:$4 sm:$0xff]  }
 0x66f   :  { %9612 = vmatpush1.bf16.msra.mxu1 %v20993_v9  ;;  %9507 = vmatprep.subr.bf16.mxu0 %v20998_v34  ;;  %v21068_v9 = vld [vmem:[#allocation8 + $0x940] ss:$16 sps:$4 sm:$0xff]   ;;  %v21071_v34 = vld [vmem:[#allocation8 + $0x948] ss:$16 sps:$4 sm:$0xff]  }
 0x670   :  { %9613 = vmatprep.subr.bf16.mxu1 %v21001_v49  ;;  %v21076_v49 = vld [vmem:[#allocation8 + $0x964] ss:$16 sps:$4 sm:$0xff]  }
 0x672   :  { %9508 = vmatpush1.bf16.msra.mxu0 %v20996_v3  ;;  %v21079_v3 = vld [vmem:[#allocation8 + $0x96c] ss:$16 sps:$4 sm:$0xff]  }
 0x673   :  { %9614 = vmatpush1.bf16.msra.mxu1 %v20999_v17  ;;  %9509 = vmatprep.subr.bf16.mxu0 %v21004_v10  ;;  %v21074_v17 = vld [vmem:[#allocation8 + $0x960] ss:$16 sps:$4 sm:$0xff]   ;;  %v21077_v10 = vld [vmem:[#allocation8 + $0x968] ss:$16 sps:$4 sm:$0xff]  }
 0x674   :  { %9615 = vmatprep.subr.bf16.mxu1 %v21007_v60  ;;  %v21082_v60 = vld [vmem:[#allocation8 + $0x984] ss:$16 sps:$4 sm:$0xff]  }
 0x676   :  { %9510 = vmatpush1.bf16.msra.mxu0 %v21002_v47  ;;  %v21085_v47 = vld [vmem:[#allocation8 + $0x98c] ss:$16 sps:$4 sm:$0xff]  }
 0x677   :  { %9616 = vmatpush1.bf16.msra.mxu1 %v21005_v18  ;;  %10479 = vmatprep.subr.bf16.mxu0 %v21010_v58  ;;  %v21080_v18 = vld [vmem:[#allocation8 + $0x980] ss:$16 sps:$4 sm:$0xff]   ;;  %v21083_v58 = vld [vmem:[#allocation8 + $0x988] ss:$16 sps:$4 sm:$0xff]  }
 0x678   :  { %10585 = vmatprep.subr.bf16.mxu1 %v21013_v45  ;;  %v21088_v45 = vld [vmem:[#allocation8 + $0x9a4] ss:$16 sps:$4 sm:$0xff]  }
 0x679   :  { %9512 = vmatmul.mubr.bf16.vlgmr.msra.gmra.mrb[44].mxu0 %v24288_v22 }
 0x67a   :  { %9618 = vmatmul.mubr.bf16.vlgmr.msra.gmra.mrb[44].mxu1 %v24288_v22  ;;  %9521 = vmatprep.mubr.bf16.mxu0 %v24292_v36  ;;  %v21031_v22 = vld [vmem:[#allocation8 + $0x86c] ss:$16 sps:$4 sm:$0xff]  }
 0x67b   :  { %9627 = vmatprep.mubr.bf16.mxu1 %v24292_v36  ;;  %10480 = vmatpush1.bf16.msra.mxu0 %v21008_v0  ;;  %v21026_v36 = vld [vmem:[#allocation8 + $0x860] ss:$16 sps:$4 sm:$0xff]   ;;  %v21091_v0 = vld [vmem:[#allocation8 + $0x9ac] ss:$16 sps:$4 sm:$0xff]  }
 0x67c   :  { %10586 = vmatpush1.bf16.msra.mxu1 %v21011_v50  ;;  %10481 = vmatprep.subr.bf16.mxu0 %v21016_v54  ;;  %v21086_v50 = vld [vmem:[#allocation8 + $0x9a0] ss:$16 sps:$4 sm:$0xff]   ;;  %v21089_v54 = vld [vmem:[#allocation8 + $0x9a8] ss:$16 sps:$4 sm:$0xff]  }
 0x67d   :  { %10587 = vmatprep.subr.bf16.mxu1 %v21019_v46  ;;  %v21094_v46 = vld [vmem:[#allocation8 + $0x9c4] ss:$16 sps:$4 sm:$0xff]  }
 0x67f   :  { %10482 = vmatpush1.bf16.msra.mxu0 %v21014_v30  ;;  %v21097_v30 = vld [vmem:[#allocation8 + $0x9cc] ss:$16 sps:$4 sm:$0xff]  }
 0x680   :  { %10588 = vmatpush1.bf16.msra.mxu1 %v21017_v29  ;;  %10483 = vmatprep.subr.bf16.mxu0 %v21022_v13  ;;  %v21092_v29 = vld [vmem:[#allocation8 + $0x9c0] ss:$16 sps:$4 sm:$0xff]   ;;  %v21095_v13 = vld [vmem:[#allocation8 + $0x9c8] ss:$16 sps:$4 sm:$0xff]  }
 0x681   :  { %9522 = vmatmul.mubr.bf16.gmra.mrb[48].mxu0 %v24298_v7  ;;  %10589 = vmatprep.subr.bf16.mxu1 %v21025_v38  ;;  %v21100_v38 = vld [vmem:[#allocation8 + $0x9e4] ss:$16 sps:$4 sm:$0xff]  }
 0x682   :  { %9628 = vmatmul.mubr.bf16.gmra.mrb[48].mxu1 %v24298_v7  ;;  %10511 = vmatprep.mubr.bf16.mxu0 %v24319_v24  ;;  %v21043_v7 = vld [vmem:[#allocation8 + $0x8ac] ss:$16 sps:$4 sm:$0xff]  }
 0x683   :  { %10484 = vmatpush1.bf16.msra.mxu0 %v21020_v56  ;;  %10617 = vmatprep.mubr.bf16.mxu1 %v24319_v24  ;;  %v21041_v24 = vld [vmem:[#allocation8 + $0x8a8] ss:$16 sps:$4 sm:$0xff]   ;;  %v21103_v56 = vld [vmem:[#allocation8 + $0x9ec] ss:$16 sps:$4 sm:$0xff]  }
 0x684   :  { %10590 = vmatpush1.bf16.msra.mxu1 %v21023_v2  ;;  %10485 = vmatprep.subr.bf16.mxu0 %v21028_v20  ;;  %v21098_v2 = vld [vmem:[#allocation8 + $0x9e0] ss:$16 sps:$4 sm:$0xff]   ;;  %v21101_v20 = vld [vmem:[#allocation8 + $0x9e8] ss:$16 sps:$4 sm:$0xff]  }
 0x685   :  { %10591 = vmatprep.subr.bf16.mxu1 %v21031_v22  ;;  %v21106_v22 = vld [vmem:[#allocation8 + $0xa04] ss:$16 sps:$4 sm:$0xff]  }
 0x687   :  { %10486 = vmatpush1.bf16.msra.mxu0 %v21026_v36  ;;  %v21109_v36 = vld [vmem:[#allocation8 + $0xa0c] ss:$16 sps:$4 sm:$0xff]  }
 0x688   :  { %10592 = vmatpush1.bf16.msra.mxu1 %v21029_v42  ;;  %10487 = vmatprep.subr.bf16.mxu0 %v21034_v23  ;;  %v21104_v42 = vld [vmem:[#allocation8 + $0xa00] ss:$16 sps:$4 sm:$0xff]   ;;  %v21107_v23 = vld [vmem:[#allocation8 + $0xa08] ss:$16 sps:$4 sm:$0xff]  }
 0x689   :  { %10593 = vmatprep.subr.bf16.mxu1 %v21037_v37  ;;  %v21112_v37 = vld [vmem:[#allocation8 + $0xa24] ss:$16 sps:$4 sm:$0xff]  }
 0x68b   :  { %10488 = vmatpush1.bf16.msra.mxu0 %v21032_v51  ;;  %v21115_v51 = vld [vmem:[#allocation8 + $0xa2c] ss:$16 sps:$4 sm:$0xff]  }
 0x68c   :  { %10594 = vmatpush1.bf16.msra.mxu1 %v21035_v44  ;;  %10489 = vmatprep.subr.bf16.mxu0 %v21040_v32  ;;  %v21110_v44 = vld [vmem:[#allocation8 + $0xa20] ss:$16 sps:$4 sm:$0xff]   ;;  %v21113_v32 = vld [vmem:[#allocation8 + $0xa28] ss:$16 sps:$4 sm:$0xff]  }
 0x68d   :  { %10595 = vmatprep.subr.bf16.mxu1 %v21043_v7  ;;  %v21118_v7 = vld [vmem:[#allocation8 + $0xa44] ss:$16 sps:$4 sm:$0xff]  }
 0x68f   :  { %10490 = vmatpush1.bf16.msra.mxu0 %v21038_v43  ;;  %v21121_v43 = vld [vmem:[#allocation8 + $0xa4c] ss:$16 sps:$4 sm:$0xff]  }
 0x690   :  { %10596 = vmatpush1.bf16.msra.mxu1 %v21041_v24  ;;  %10491 = vmatprep.subr.bf16.mxu0 %v21046_v28  ;;  %v21116_v24 = vld [vmem:[#allocation8 + $0xa40] ss:$16 sps:$4 sm:$0xff]   ;;  %v21119_v28 = vld [vmem:[#allocation8 + $0xa48] ss:$16 sps:$4 sm:$0xff]  }
 0x691   :  { %10597 = vmatprep.subr.bf16.mxu1 %v21049_v40  ;;  %v21124_v40 = vld [vmem:[#allocation8 + $0xa64] ss:$16 sps:$4 sm:$0xff]  }
 0x693   :  { %10492 = vmatpush1.bf16.msra.mxu0 %v21044_v59  ;;  %v21125_v59 = vld [vmem:[#allocation8 + $0xa68] ss:$16 sps:$4 sm:$0xff]  }
 0x694   :  { %10598 = vmatpush1.bf16.msra.mxu1 %v21047_v5  ;;  %10493 = vmatprep.subr.bf16.mxu0 %v21052_v14  ;;  %v21130_v5 = vld [vmem:[#allocation8 + $0xa84] ss:$16 sps:$4 sm:$0xff]   ;;  %v21133_v14 = vld [vmem:[#allocation8 + $0xa8c] ss:$16 sps:$4 sm:$0xff]  }
 0x695   :  { %10599 = vmatprep.subr.bf16.mxu1 %v21055_v15  ;;  %v21128_v15 = vld [vmem:[#allocation8 + $0xa80] ss:$16 sps:$4 sm:$0xff]  }
 0x697   :  { %10494 = vmatpush1.bf16.msra.mxu0 %v21050_v41  ;;  %v21131_v41 = vld [vmem:[#allocation8 + $0xa88] ss:$16 sps:$4 sm:$0xff]  }
 0x698   :  { %10600 = vmatpush1.bf16.msra.mxu1 %v21053_v26  ;;  %10495 = vmatprep.subr.bf16.mxu0 %v21058_v52  ;;  %v21136_v26 = vld [vmem:[#allocation8 + $0xaa4] ss:$16 sps:$4 sm:$0xff]   ;;  %v21134_v52 = vld [vmem:[#allocation8 + $0xaa0] ss:$16 sps:$4 sm:$0xff]  }
 0x699   :  { %10601 = vmatprep.subr.bf16.mxu1 %v21061_v27  ;;  %v21142_v27 = vld [vmem:[#allocation8 + $0xac4] ss:$16 sps:$4 sm:$0xff]  }
 0x69b   :  { %10496 = vmatpush1.bf16.msra.mxu0 %v21056_v35  ;;  %v21145_v35 = vld [vmem:[#allocation8 + $0xacc] ss:$16 sps:$4 sm:$0xff]  }
 0x69c   :  { %10602 = vmatpush1.bf16.msra.mxu1 %v21059_v48  ;;  %10497 = vmatprep.subr.bf16.mxu0 %v21064_v4  ;;  %v21140_v48 = vld [vmem:[#allocation8 + $0xac0] ss:$16 sps:$4 sm:$0xff]   ;;  %v21143_v4 = vld [vmem:[#allocation8 + $0xac8] ss:$16 sps:$4 sm:$0xff]  }
 0x69d   :  { %10603 = vmatprep.subr.bf16.mxu1 %v21067_v39  ;;  %v21148_v39 = vld [vmem:[#allocation8 + $0xae4] ss:$16 sps:$4 sm:$0xff]  }
 0x69f   :  { %10498 = vmatpush1.bf16.msra.mxu0 %v21062_v33  ;;  %v21151_v33 = vld [vmem:[#allocation8 + $0xaec] ss:$16 sps:$4 sm:$0xff]  }
 0x6a0   :  { %10604 = vmatpush1.bf16.msra.mxu1 %v21065_v8  ;;  %10499 = vmatprep.subr.bf16.mxu0 %v21070_v11  ;;  %v21146_v8 = vld [vmem:[#allocation8 + $0xae0] ss:$16 sps:$4 sm:$0xff]   ;;  %v21149_v11 = vld [vmem:[#allocation8 + $0xae8] ss:$16 sps:$4 sm:$0xff]  }
 0x6a1   :  { %10605 = vmatprep.subr.bf16.mxu1 %v21073_v25  ;;  %v21154_v25 = vld [vmem:[#allocation8 + $0xb04] ss:$16 sps:$4 sm:$0xff]  }
 0x6a3   :  { %10500 = vmatpush1.bf16.msra.mxu0 %v21068_v9  ;;  %v21157_v9 = vld [vmem:[#allocation8 + $0xb0c] ss:$16 sps:$4 sm:$0xff]  }
 0x6a4   :  { %10606 = vmatpush1.bf16.msra.mxu1 %v21071_v34  ;;  %10501 = vmatprep.subr.bf16.mxu0 %v21076_v49  ;;  %v21152_v34 = vld [vmem:[#allocation8 + $0xb00] ss:$16 sps:$4 sm:$0xff]   ;;  %v21155_v49 = vld [vmem:[#allocation8 + $0xb08] ss:$16 sps:$4 sm:$0xff]  }
 0x6a5   :  { %10607 = vmatprep.subr.bf16.mxu1 %v21079_v3  ;;  %v21160_v3 = vld [vmem:[#allocation8 + $0xb24] ss:$16 sps:$4 sm:$0xff]  }
 0x6a7   :  { %10502 = vmatpush1.bf16.msra.mxu0 %v21074_v17  ;;  %v21163_v17 = vld [vmem:[#allocation8 + $0xb2c] ss:$16 sps:$4 sm:$0xff]  }
 0x6a8   :  { %10608 = vmatpush1.bf16.msra.mxu1 %v21077_v10  ;;  %10503 = vmatprep.subr.bf16.mxu0 %v21082_v60  ;;  %v21158_v10 = vld [vmem:[#allocation8 + $0xb20] ss:$16 sps:$4 sm:$0xff]   ;;  %v21161_v60 = vld [vmem:[#allocation8 + $0xb28] ss:$16 sps:$4 sm:$0xff]  }
 0x6a9   :  { %10609 = vmatprep.subr.bf16.mxu1 %v21085_v47  ;;  %v21166_v47 = vld [vmem:[#allocation8 + $0xb44] ss:$16 sps:$4 sm:$0xff]  }
 0x6ab   :  { %10504 = vmatpush1.bf16.msra.mxu0 %v21080_v18  ;;  %v21169_v18 = vld [vmem:[#allocation8 + $0xb4c] ss:$16 sps:$4 sm:$0xff]  }
 0x6ac   :  { %10610 = vmatpush1.bf16.msra.mxu1 %v21083_v58  ;;  %10505 = vmatprep.subr.bf16.mxu0 %v21088_v45  ;;  %v21164_v58 = vld [vmem:[#allocation8 + $0xb40] ss:$16 sps:$4 sm:$0xff]   ;;  %v21167_v45 = vld [vmem:[#allocation8 + $0xb48] ss:$16 sps:$4 sm:$0xff]  }
 0x6ad   :  { %10611 = vmatprep.subr.bf16.mxu1 %v21091_v0  ;;  %v21172_v0 = vld [vmem:[#allocation8 + $0xb64] ss:$16 sps:$4 sm:$0xff]  }
 0x6af   :  { %10506 = vmatpush1.bf16.msra.mxu0 %v21086_v50  ;;  %v21175_v50 = vld [vmem:[#allocation8 + $0xb6c] ss:$16 sps:$4 sm:$0xff]  }
 0x6b0   :  { %10612 = vmatpush1.bf16.msra.mxu1 %v21089_v54  ;;  %10507 = vmatprep.subr.bf16.mxu0 %v21094_v46  ;;  %v21170_v54 = vld [vmem:[#allocation8 + $0xb60] ss:$16 sps:$4 sm:$0xff]   ;;  %v21173_v46 = vld [vmem:[#allocation8 + $0xb68] ss:$16 sps:$4 sm:$0xff]  }
 0x6b1   :  { %10613 = vmatprep.subr.bf16.mxu1 %v21097_v30  ;;  %v21178_v30 = vld [vmem:[#allocation8 + $0xb84] ss:$16 sps:$4 sm:$0xff]  }
 0x6b3   :  { %10508 = vmatpush1.bf16.msra.mxu0 %v21092_v29  ;;  %v21181_v29 = vld [vmem:[#allocation8 + $0xb8c] ss:$16 sps:$4 sm:$0xff]  }
 0x6b4   :  { %10614 = vmatpush1.bf16.msra.mxu1 %v21095_v13  ;;  %10509 = vmatprep.subr.bf16.mxu0 %v21100_v38  ;;  %v21176_v13 = vld [vmem:[#allocation8 + $0xb80] ss:$16 sps:$4 sm:$0xff]   ;;  %v21179_v38 = vld [vmem:[#allocation8 + $0xb88] ss:$16 sps:$4 sm:$0xff]  }
 0x6b5   :  { %10615 = vmatprep.subr.bf16.mxu1 %v21103_v56  ;;  %v21184_v56 = vld [vmem:[#allocation8 + $0xba4] ss:$16 sps:$4 sm:$0xff]  }
 0x6b7   :  { %10510 = vmatpush1.bf16.msra.mxu0 %v21098_v2  ;;  %v21187_v2 = vld [vmem:[#allocation8 + $0xbac] ss:$16 sps:$4 sm:$0xff]  }
 0x6b8   :  { %10616 = vmatpush1.bf16.msra.mxu1 %v21101_v20  ;;  %10532 = vmatprep.subr.bf16.mxu0 %v21106_v22  ;;  %v21182_v20 = vld [vmem:[#allocation8 + $0xba0] ss:$16 sps:$4 sm:$0xff]   ;;  %v21185_v22 = vld [vmem:[#allocation8 + $0xba8] ss:$16 sps:$4 sm:$0xff]  }
 0x6b9   :  { %10638 = vmatprep.subr.bf16.mxu1 %v21109_v36  ;;  %v21190_v36 = vld [vmem:[#allocation8 + $0xbc4] ss:$16 sps:$4 sm:$0xff]  }
 0x6ba   :  { %10512 = vmatmul.mubr.bf16.vlgmr.msra.gmra.mrb[44].mxu0 %v24317_v16 }
 0x6bb   :  { %10618 = vmatmul.mubr.bf16.vlgmr.msra.gmra.mrb[44].mxu1 %v24317_v16  ;;  %10521 = vmatprep.mubr.bf16.mxu0 %v24326_v62  ;;  %v21127_v16 = vld [vmem:[#allocation8 + $0xa6c] ss:$16 sps:$4 sm:$0xff]  }
 0x6bc   :  { %10533 = vmatpush1.bf16.msra.mxu0 %v21104_v42  ;;  %10627 = vmatprep.mubr.bf16.mxu1 %v24326_v62  ;;  %v21122_v62 = vld [vmem:[#allocation8 + $0xa60] ss:$16 sps:$4 sm:$0xff]   ;;  %v21193_v42 = vld [vmem:[#allocation8 + $0xbcc] ss:$16 sps:$4 sm:$0xff]  }
 0x6bd   :  { %10639 = vmatpush1.bf16.msra.mxu1 %v21107_v23  ;;  %10534 = vmatprep.subr.bf16.mxu0 %v21112_v37  ;;  %v21188_v23 = vld [vmem:[#allocation8 + $0xbc0] ss:$16 sps:$4 sm:$0xff]   ;;  %v21191_v37 = vld [vmem:[#allocation8 + $0xbc8] ss:$16 sps:$4 sm:$0xff]  }
 0x6be   :  { %10640 = vmatprep.subr.bf16.mxu1 %v21115_v51  ;;  %v21196_v51 = vld [vmem:[#allocation8 + $0xbe4] ss:$16 sps:$4 sm:$0xff]  }
 0x6c0   :  { %10535 = vmatpush1.bf16.msra.mxu0 %v21110_v44  ;;  %v21199_v44 = vld [vmem:[#allocation8 + $0xbec] ss:$16 sps:$4 sm:$0xff]  }
 0x6c1   :  { %10641 = vmatpush1.bf16.msra.mxu1 %v21113_v32  ;;  %10536 = vmatprep.subr.bf16.mxu0 %v21118_v7  ;;  %v21194_v32 = vld [vmem:[#allocation8 + $0xbe0] ss:$16 sps:$4 sm:$0xff]   ;;  %v21197_v7 = vld [vmem:[#allocation8 + $0xbe8] ss:$16 sps:$4 sm:$0xff]  }
 0x6c2   :  { %10522 = vmatmul.mubr.bf16.gmra.mrb[48].mxu0 %v24328_v61  ;;  %10642 = vmatprep.subr.bf16.mxu1 %v21121_v43  ;;  %v10865_v43 = vld [vmem:[%s26518_s11 + $0x80] sm:$0xff] }
 0x6c3   :  { %10628 = vmatmul.mubr.bf16.gmra.mrb[48].mxu1 %v24328_v61  ;;  %10564 = vmatprep.mubr.bf16.mxu0 %v24336_v1  ;;  %v21139_v61 = vld [vmem:[#allocation8 + $0xaac] ss:$16 sps:$4 sm:$0xff]  }
 0x6c4   :  { %10537 = vmatpush1.bf16.msra.mxu0 %v21116_v24  ;;  %10670 = vmatprep.mubr.bf16.mxu1 %v24336_v1  ;;  %v21137_v1 = vld [vmem:[#allocation8 + $0xaa8] ss:$16 sps:$4 sm:$0xff]   ;;  %v10866_v24 = vld [vmem:[%s26518_s11 + $0x88] sm:$0xff] }
 0x6c5   :  { %10643 = vmatpush1.bf16.msra.mxu1 %v21119_v28  ;;  %10538 = vmatprep.subr.bf16.mxu0 %v21124_v40  ;;  %v10962_v28 = vand.u32 4294901760, %v10865_v43  ;;  %v10965_v40 = vand.u32 4294901760, %v10866_v24 }
 0x6c6   :  { %10644 = vmatprep.subr.bf16.mxu1 %v21127_v16 }
 0x6c8   :  { %10539 = vmatpush1.bf16.msra.mxu0 %v21122_v62  ;;  %v24396_v62 = vpack.c.bf16 %v10965_v40, %v10962_v28 }
 0x6c9   :  { %10645 = vmatpush1.bf16.msra.mxu1 %v21125_v59  ;;  %10540 = vmatprep.subr.bf16.mxu0 %v21130_v5  ;;  %v24398_v59 = vsub.f32 %v10865_v43, %v10962_v28  ;;  %v24400_v5 = vsub.f32 %v10866_v24, %v10965_v40 }
 0x6ca   :  { %10646 = vmatprep.subr.bf16.mxu1 %v21133_v14  ;;  %27561 = vst [vmem:[#allocation57_spill] sm:$0xff] %v24396_v62 }
 0x6cc   :  { %10541 = vmatpush1.bf16.msra.mxu0 %v21128_v15 }
 0x6cd   :  { %10647 = vmatpush1.bf16.msra.mxu1 %v21131_v41  ;;  %10542 = vmatprep.subr.bf16.mxu0 %v21136_v26  ;;  %v26793_v41 = vand.u32 4294901760, %v24398_v59  ;;  %v26792_v26 = vand.u32 4294901760, %v24400_v5 }
 0x6ce   :  { %10648 = vmatprep.subr.bf16.mxu1 %v21139_v61  ;;  %v10867_v61 = vld [vmem:[%s26518_s11 + $0x90] sm:$0xff] }
 0x6d0   :  { %10543 = vmatpush1.bf16.msra.mxu0 %v21134_v52  ;;  %v10868_v52 = vld [vmem:[%s26518_s11 + $0x98] sm:$0xff] }
 0x6d1   :  { %10649 = vmatpush1.bf16.msra.mxu1 %v21137_v1  ;;  %10544 = vmatprep.subr.bf16.mxu0 %v21142_v27  ;;  %v24417_v1 = vld [vmem:[%s26518_s11 + $0x10] sm:$0xff] }
 0x6d2   :  { %10650 = vmatprep.subr.bf16.mxu1 %v21145_v35 }
 0x6d4   :  { %10545 = vmatpush1.bf16.msra.mxu0 %v21140_v48  ;;  %v10968_v48 = vand.u32 4294901760, %v10867_v61 }
 0x6d5   :  { %10651 = vmatpush1.bf16.msra.mxu1 %v21143_v4  ;;  %10546 = vmatprep.subr.bf16.mxu0 %v21148_v39  ;;  %v10971_v4 = vand.u32 4294901760, %v10868_v52  ;;  %v24425_v39 = vld [vmem:[%s26518_s11 + $0x18] sm:$0xff] }
 0x6d6   :  { %10652 = vmatprep.subr.bf16.mxu1 %v21151_v33  ;;  %v11141_v33 = vsub.f32 %v24398_v59, %v26793_v41 }
 0x6d8   :  { %10547 = vmatpush1.bf16.msra.mxu0 %v21146_v8  ;;  %v11148_v8 = vsub.f32 %v24400_v5, %v26792_v26 }
 0x6d9   :  { %10653 = vmatpush1.bf16.msra.mxu1 %v21149_v11  ;;  %10548 = vmatprep.subr.bf16.mxu0 %v21154_v25  ;;  %v10920_v11 = vand.u32 4294901760, %v24417_v1  ;;  %v10923_v25 = vand.u32 4294901760, %v24425_v39 }
 0x6da   :  { %10654 = vmatprep.subr.bf16.mxu1 %v21157_v9 }
 0x6dc   :  { %10549 = vmatpush1.bf16.msra.mxu0 %v21152_v34 }
 0x6dd   :  { %10655 = vmatpush1.bf16.msra.mxu1 %v21155_v49  ;;  %10550 = vmatprep.subr.bf16.mxu0 %v21160_v3  ;;  %v24441_v49 = vpack.c.bf16 %v10971_v4, %v10968_v48  ;;  %v24443_v3 = vsub.f32 %v10867_v61, %v10968_v48 }
 0x6de   :  { %10656 = vmatprep.subr.bf16.mxu1 %v21163_v17  ;;  %v11142_v17 = vand.u32 4294901760, %v11141_v33 }
 0x6df   :  { %27562 = vst [vmem:[#allocation100_spill] sm:$0xff] %v24441_v49 }
 0x6e0   :  { %10551 = vmatpush1.bf16.msra.mxu0 %v21158_v10  ;;  %v11149_v10 = vand.u32 4294901760, %v11148_v8 }
 0x6e1   :  { %10657 = vmatpush1.bf16.msra.mxu1 %v21161_v60  ;;  %10552 = vmatprep.subr.bf16.mxu0 %v21166_v47  ;;  %v24445_v60 = vsub.f32 %v10868_v52, %v10971_v4  ;;  %v24450_v47 = vsub.f32 %v24417_v1, %v10920_v11 }
 0x6e2   :  { %10658 = vmatprep.subr.bf16.mxu1 %v21169_v18 }
 0x6e4   :  { %10553 = vmatpush1.bf16.msra.mxu0 %v21164_v58 }
 0x6e5   :  { %10659 = vmatpush1.bf16.msra.mxu1 %v21167_v45  ;;  %10554 = vmatprep.subr.bf16.mxu0 %v21172_v0  ;;  %v26787_v45 = vand.u32 4294901760, %v24443_v3  ;;  %v24456_v0 = vsub.f32 %v24425_v39, %v10923_v25  ;;  %v24599_v39 = vld [vmem:[%s26518_s11 + $0x40] sm:$0xff] }
 0x6e6   :  { %10660 = vmatprep.subr.bf16.mxu1 %v21175_v50  ;;  %v10869_v50 = vld [vmem:[%s26518_s11 + $0xa0] sm:$0xff] }
 0x6e8   :  { %10555 = vmatpush1.bf16.msra.mxu0 %v21170_v54  ;;  %v10870_v54 = vld [vmem:[%s26518_s11 + $0xa8] sm:$0xff] }
 0x6e9   :  { %10661 = vmatpush1.bf16.msra.mxu1 %v21173_v46  ;;  %10556 = vmatprep.subr.bf16.mxu0 %v21178_v30  ;;  %v24464_v46 = vpack.c.bf16 %v11149_v10, %v11142_v17  ;;  %v26786_v30 = vand.u32 4294901760, %v24445_v60  ;;  %v10872_v17 = vld [vmem:[%s26518_s11 + $0xb8] sm:$0xff] }
 0x6ea   :  { %10662 = vmatprep.subr.bf16.mxu1 %v21181_v29  ;;  %v26785_v29 = vand.u32 4294901760, %v24450_v47 }
 0x6eb   :  { %27563 = vst [vmem:[#allocation157_spill] sm:$0xff] %v24464_v46 }
 0x6ec   :  { %10557 = vmatpush1.bf16.msra.mxu0 %v21176_v13  ;;  %v10974_v13 = vand.u32 4294901760, %v10869_v50 }
 0x6ed   :  { %10663 = vmatpush1.bf16.msra.mxu1 %v21179_v38  ;;  %10558 = vmatprep.subr.bf16.mxu0 %v21184_v56  ;;  %v11155_v56 = vsub.f32 %v24443_v3, %v26787_v45 }
 0x6ee   :  { %10664 = vmatprep.subr.bf16.mxu1 %v21187_v2  ;;  %v26784_v2 = vand.u32 4294901760, %v24456_v0 }
 0x6f0   :  { %10559 = vmatpush1.bf16.msra.mxu0 %v21182_v20  ;;  %v10977_v20 = vand.u32 4294901760, %v10870_v54 }
 0x6f1   :  { %10665 = vmatpush1.bf16.msra.mxu1 %v21185_v22  ;;  %10560 = vmatprep.subr.bf16.mxu0 %v21190_v36  ;;  %v24477_v22 = vld [vmem:[%s26518_s11 + $0x20] sm:$0xff]  ;;  %v11162_v36 = vsub.f32 %v24445_v60, %v26786_v30 }
 0x6f2   :  { %10666 = vmatprep.subr.bf16.mxu1 %v21193_v42  ;;  %v11043_v42 = vsub.f32 %v24450_v47, %v26785_v29  ;;  %v10926_v40 = vand.u32 4294901760, %v24477_v22  ;;  %v10938_v29 = vand.u32 4294901760, %v24599_v39 }
 0x6f3   :  { %v11163_v43 = vand.u32 4294901760, %v11162_v36 }
 0x6f4   :  { %10561 = vmatpush1.bf16.msra.mxu0 %v21188_v23  ;;  %v24486_v23 = vsub.f32 %v10869_v50, %v10974_v13  ;;  %v11044_v24 = vand.u32 4294901760, %v11043_v42  ;;  %v24513_v52 = vsub.f32 %v24477_v22, %v10926_v40  ;;  %v10983_v50 = vand.u32 4294901760, %v10872_v17 }
 0x6f5   :  { %10667 = vmatpush1.bf16.msra.mxu1 %v21191_v37  ;;  %10562 = vmatprep.subr.bf16.mxu0 %v21196_v51  ;;  %v24493_v51 = vld [vmem:[%s26518_s11 + $0x28] sm:$0xff] }
 0x6f6   :  { %10668 = vmatprep.subr.bf16.mxu1 %v21199_v44  ;;  %v11156_v44 = vand.u32 4294901760, %v11155_v56  ;;  %v26783_v28 = vand.u32 4294901760, %v24486_v23  ;;  %v24541_v56 = vld [vmem:[%s26518_s11 + $0x38] sm:$0xff] }
 0x6f7   :  { %v10935_v42 = vand.u32 4294901760, %v24541_v56 }
 0x6f8   :  { %10563 = vmatpush1.bf16.msra.mxu0 %v21194_v32  ;;  %v11050_v32 = vsub.f32 %v24456_v0, %v26784_v2  ;;  %v11169_v61 = vsub.f32 %v24486_v23, %v26783_v28 }
 0x6f9   :  { %10669 = vmatpush1.bf16.msra.mxu1 %v21197_v7  ;;  %19474 = vmatprep.subr.bf16.mxu0 %v24396_v62  ;;  %v24499_v7 = vsub.f32 %v10870_v54, %v10977_v20  ;;  %v24536_v54 = vld [vmem:[%s26518_s11 + $0x30] sm:$0xff] }
 0x6fa   :  { %19506 = vmatprep.subr.bf16.mxu1 %v24464_v46  ;;  %v11170_v8 = vand.u32 4294901760, %v11169_v61  ;;  %v10932_v36 = vand.u32 4294901760, %v24536_v54 }
 0x6fb   :  { %10565 = vmatmul.mubr.bf16.vlgmr.msra.gmra.mrb[44].mxu0 %v24334_v6 }
 0x6fc   :  { %10671 = vmatmul.mubr.bf16.vlgmr.msra.gmra.mrb[44].mxu1 %v24334_v6  ;;  %10574 = vmatprep.mubr.bf16.mxu0 %v24342_v57  ;;  %v10849_v6 = vld [vmem:[%s26518_s11] sm:$0xff]  ;;  %v24562_v61 = vsub.f32 %v24536_v54, %v10932_v36 }
 0x6fd   :  { %10680 = vmatprep.mubr.bf16.mxu1 %v24342_v57  ;;  %v10850_v57 = vld [vmem:[%s26518_s11 + $0x8] sm:$0xff]  ;;  %v10914_v16 = vand.u32 4294901760, %v10849_v6 }
 0x6fe   :  { %v26780_v19 = vand.u32 4294901760, %v24562_v61 }
 0x6ff   :  { %v24402_v14 = vsub.f32 %v10849_v6, %v10914_v16  ;;  %v11051_v6 = vand.u32 4294901760, %v11050_v32 }
 0x701   :  { %v26790_v27 = vand.u32 4294901760, %v24402_v14  ;;  %v24515_v48 = vpack.c.bf16 %v11051_v6, %v11044_v24  ;;  %v24557_v24 = vpack.c.bf16 %v10977_v20, %v10974_v13  ;;  %v10874_v13 = vld [vmem:[%s26518_s11 + $0xc8] sm:$0xff] }
 0x702   :  { %v10989_v1 = vand.u32 4294901760, %v10874_v13 }
 0x703   :  { %10575 = vmatmul.mubr.bf16.gmra.mrb[48].mxu0 %v24344_v31  ;;  %v11029_v9 = vsub.f32 %v24402_v14, %v26790_v27  ;;  %27567 = vst [vmem:[#allocation30_spill] sm:$0xff] %v24515_v48  ;;  %27569 = vst [vmem:[#allocation32_spill] sm:$0xff] %v24557_v24 }
 0x704   :  { %10681 = vmatmul.mubr.bf16.gmra.mrb[48].mxu1 %v24344_v31  ;;  %v10917_v31 = vand.u32 4294901760, %v10850_v57 }
 0x705   :  { %v11030_v18 = vand.u32 4294901760, %v11029_v9  ;;  %v26777_v9 = vand.u32 4294901760, %v24513_v52 }
 0x706   :  { %v24404_v15 = vsub.f32 %v10850_v57, %v10917_v31  ;;  %v24488_v37 = vpack.c.bf16 %v10917_v31, %v10914_v16  ;;  %v26778_v57 = vand.u32 4294901760, %v24499_v7  ;;  %v10929_v16 = vand.u32 4294901760, %v24493_v51 }
 0x707   :  { %v24507_v31 = vpack.c.bf16 %v11163_v43, %v11156_v44  ;;  %v11057_v22 = vsub.f32 %v24513_v52, %v26777_v9  ;;  %v24555_v43 = vsub.f32 %v10872_v17, %v10983_v50 }
 0x708   :  { %v26789_v35 = vand.u32 4294901760, %v24404_v15  ;;  %27565 = vst [vmem:[#allocation159_spill] sm:$0xff] %v24488_v37  ;;  %19476 = vmatpush3.bf16.msra.mxu0 %v24488_v37  ;;  %v11176_v4 = vsub.f32 %v24499_v7, %v26778_v57  ;;  %v24521_v33 = vsub.f32 %v24493_v51, %v10929_v16 }
 0x709   :  { %19478 = vmatprep.subr.bf16.mxu0 %v24441_v49  ;;  %27566 = vst [vmem:[#allocation163_spill] sm:$0xff] %v24507_v31  ;;  %v11058_v6 = vand.u32 4294901760, %v11057_v22  ;;  %v24584_v22 = vpack.c.bf16 %v10923_v25, %v10920_v11  ;;  %v11071_v11 = vsub.f32 %v24562_v61, %v26780_v19 }
 0x70a   :  { %v11036_v34 = vsub.f32 %v24404_v15, %v26789_v35  ;;  %v11177_v10 = vand.u32 4294901760, %v11176_v4  ;;  %v24567_v4 = vsub.f32 %v24541_v56, %v10935_v42 }
 0x70b   :  { %27571 = vst [vmem:[#allocation35_spill] sm:$0xff] %v24584_v22 }
 0x70c   :  { %v11037_v58 = vand.u32 4294901760, %v11036_v34  ;;  %v10871_v34 = vld [vmem:[%s26518_s11 + $0xb0] sm:$0xff]  ;;  %v24548_v51 = vpack.c.bf16 %v11177_v10, %v11170_v8  ;;  %v10873_v8 = vld [vmem:[%s26518_s11 + $0xc0] sm:$0xff]  ;;  %v26779_v10 = vand.u32 4294901760, %v24555_v43  ;;  %19480 = vmatpush3.bf16.msra.mxu0 %v24584_v22 }
 0x70d   :  { %v10986_v9 = vand.u32 4294901760, %v10873_v8  ;;  %19482 = vmatprep.subr.bf16.mxu0 %v24557_v24 }
 0x70e   :  { %v24468_v38 = vpack.c.bf16 %v11037_v58, %v11030_v18  ;;  %v26776_v18 = vand.u32 4294901760, %v24521_v33  ;;  %v10980_v58 = vand.u32 4294901760, %v10871_v34  ;;  %27568 = vst [vmem:[#allocation31_spill] sm:$0xff] %v24548_v51 }
 0x710   :  { %27564 = vst [vmem:[#allocation158_spill] sm:$0xff] %v24468_v38  ;;  %19508 = vmatpush3.bf16.msra.mxu1 %v24468_v38  ;;  %v11064_v44 = vsub.f32 %v24521_v33, %v26776_v18  ;;  %v24553_v32 = vsub.f32 %v10871_v34, %v10980_v58  ;;  %v24576_v34 = vpack.c.bf16 %v10983_v50, %v10980_v58  ;;  %v26782_v18 = vand.u32 4294901760, %v24567_v4 }
 0x711   :  { %19510 = vmatprep.subr.bf16.mxu1 %v24507_v31  ;;  %v11190_v50 = vsub.f32 %v24555_v43, %v26779_v10  ;;  %v10875_v10 = vld [vmem:[%s26518_s11 + $0xd0] sm:$0xff] }
 0x712   :  { %v11065_v20 = vand.u32 4294901760, %v11064_v44  ;;  %27570 = vst [vmem:[#allocation37_spill] sm:$0xff] %v24576_v34  ;;  %v26781_v17 = vand.u32 4294901760, %v24553_v32  ;;  %v11078_v25 = vsub.f32 %v24567_v4, %v26782_v18  ;;  %v24608_v44 = vsub.f32 %v10873_v8, %v10986_v9 }
 0x713   :  { %v24622_v18 = vpack.c.bf16 %v10989_v1, %v10986_v9  ;;  %v24624_v8 = vsub.f32 %v10874_v13, %v10989_v1  ;;  %v10992_v1 = vand.u32 4294901760, %v10875_v10 }
 0x714   :  { %19512 = vmatpush3.bf16.msra.mxu1 %v24515_v48  ;;  %v24588_v57 = vpack.c.bf16 %v11065_v20, %v11058_v6  ;;  %v11183_v58 = vsub.f32 %v24553_v32, %v26781_v17  ;;  %v24610_v6 = vpack.c.bf16 %v10929_v16, %v10926_v40  ;;  %v24615_v20 = vld [vmem:[%s26518_s11 + $0x48] sm:$0xff]  ;;  %v11191_v17 = vand.u32 4294901760, %v11190_v50  ;;  %v10876_v40 = vld [vmem:[%s26518_s11 + $0xd8] sm:$0xff] }
 0x715   :  { %19514 = vmatprep.subr.bf16.mxu1 %v24548_v51  ;;  %27574 = vst [vmem:[#allocation44_spill] sm:$0xff] %v24622_v18  ;;  %v11072_v16 = vand.u32 4294901760, %v11071_v11  ;;  %v11079_v28 = vand.u32 4294901760, %v11078_v25  ;;  %v26788_v2 = vand.u32 4294901760, %v24608_v44  ;;  %v26791_v9 = vand.u32 4294901760, %v24624_v8 }
 0x716   :  { %27572 = vst [vmem:[#allocation40_spill] sm:$0xff] %v24588_v57  ;;  %27573 = vst [vmem:[#allocation38_spill] sm:$0xff] %v24610_v6  ;;  %v11184_v19 = vand.u32 4294901760, %v11183_v58  ;;  %v24634_v58 = vld [vmem:[%s26518_s11 + $0x50] sm:$0xff]  ;;  %v10941_v13 = vand.u32 4294901760, %v24615_v20  ;;  %19484 = vmatpush3.bf16.msra.mxu0 %v24610_v6  ;;  %v24647_v25 = vsub.f32 %v24599_v39, %v10938_v29  ;;  %v10995_v45 = vand.u32 4294901760, %v10876_v40 }
 0x717   :  { %v24640_v30 = vpack.c.bf16 %v11079_v28, %v11072_v16  ;;  %v11197_v11 = vsub.f32 %v24608_v44, %v26788_v2  ;;  %19486 = vmatprep.subr.bf16.mxu0 %v24576_v34  ;;  %v24657_v28 = vsub.f32 %v10875_v10, %v10992_v1  ;;  %v10860_v16 = vld [vmem:[%s26518_s11 + $0x58] sm:$0xff]  ;;  %v10944_v39 = vand.u32 4294901760, %v24634_v58  ;;  %v10877_v10 = vld [vmem:[%s26518_s11 + $0xe0] sm:$0xff] }
 0x718   :  { %19516 = vmatpush3.bf16.msra.mxu1 %v24588_v57  ;;  %v24636_v50 = vpack.c.bf16 %v11191_v17, %v11184_v19  ;;  %v11204_v19 = vsub.f32 %v24624_v8, %v26791_v9  ;;  %v24654_v17 = vsub.f32 %v24615_v20, %v10941_v13  ;;  %v26796_v35 = vand.u32 4294901760, %v24647_v25 }
 0x719   :  { %27576 = vst [vmem:[#allocation46_spill] sm:$0xff] %v24640_v30  ;;  %v11198_v2 = vand.u32 4294901760, %v11197_v11  ;;  %v24665_v27 = vpack.c.bf16 %v10995_v45, %v10992_v1  ;;  %v24667_v9 = vsub.f32 %v10876_v40, %v10995_v45  ;;  %v24678_v11 = vpack.c.bf16 %v10935_v42, %v10932_v36 }
 0x71a   :  { %27575 = vst [vmem:[#allocation39_spill] sm:$0xff] %v24636_v50  ;;  %19518 = vmatprep.subr.bf16.mxu1 %v24636_v50  ;;  %v11205_v20 = vand.u32 4294901760, %v11204_v19  ;;  %v26798_v26 = vand.u32 4294901760, %v24654_v17  ;;  %v11085_v45 = vsub.f32 %v24647_v25, %v26796_v35  ;;  %v10947_v1 = vand.u32 4294901760, %v10860_v16  ;;  %v10878_v19 = vld [vmem:[%s26518_s11 + $0xe8] sm:$0xff] }
 0x71b   :  { %27577 = vst [vmem:[#allocation41_spill] sm:$0xff] %v24665_v27  ;;  %27578 = vst [vmem:[#allocation53_spill] sm:$0xff] %v24678_v11  ;;  %v26801_v40 = vand.u32 4294901760, %v24667_v9  ;;  %v24685_v12 = vsub.f32 %v24634_v58, %v10944_v39  ;;  %v27580_v56 = vand.u32 4294901760, %v24657_v28  ;;  %19488 = vmatpush3.bf16.msra.mxu0 %v24678_v11  ;;  %v10998_v42 = vand.u32 4294901760, %v10877_v10 }
 0x71c   :  { %19520 = vmatpush3.bf16.msra.mxu1 %v24640_v30  ;;  %v24690_v41 = vpack.c.bf16 %v11205_v20, %v11198_v2  ;;  %v11092_v54 = vsub.f32 %v24654_v17, %v26798_v26  ;;  %v11086_v35 = vand.u32 4294901760, %v11085_v45  ;;  %v24703_v2 = vsub.f32 %v10860_v16, %v10947_v1  ;;  %19490 = vmatprep.subr.bf16.mxu0 %v24622_v18  ;;  %v10861_v45 = vld [vmem:[%s26518_s11 + $0x60] sm:$0xff] }
 0x71d   :  { %v11211_v36 = vsub.f32 %v24657_v28, %v27580_v56  ;;  %v11218_v58 = vsub.f32 %v24667_v9, %v26801_v40  ;;  %v26805_v30 = vand.u32 4294901760, %v24685_v12  ;;  %v11001_v50 = vand.u32 4294901760, %v10878_v19 }
 0x71e   :  { %27579 = vst [vmem:[#allocation45_spill] sm:$0xff] %v24690_v41  ;;  %19522 = vmatprep.subr.bf16.mxu1 %v24690_v41  ;;  %v11093_v20 = vand.u32 4294901760, %v11092_v54  ;;  %v24707_v56 = vsub.f32 %v10877_v10, %v10998_v42  ;;  %v26807_v16 = vand.u32 4294901760, %v24703_v2  ;;  %v24716_v51 = vpack.c.bf16 %v10941_v13, %v10938_v29  ;;  %v10862_v54 = vld [vmem:[%s26518_s11 + $0x68] sm:$0xff]  ;;  %v10879_v10 = vld [vmem:[%s26518_s11 + $0xf0] sm:$0xff]  ;;  %v10880_v29 = vld [vmem:[%s26518_s11 + $0xf8] sm:$0xff] }
 0x71f   :  { %v11212_v26 = vand.u32 4294901760, %v11211_v36  ;;  %v11219_v57 = vand.u32 4294901760, %v11218_v58  ;;  %v11099_v40 = vsub.f32 %v24685_v12, %v26805_v30  ;;  %v24726_v41 = vpack.c.bf16 %v11001_v50, %v10998_v42 }
 0x720   :  { %27581 = vst [vmem:[#allocation56_spill] sm:$0xff] %v24716_v51  ;;  %v24724_v36 = vpack.c.bf16 %v11093_v20, %v11086_v35  ;;  %v26810_v58 = vand.u32 4294901760, %v24707_v56  ;;  %v24729_v48 = vsub.f32 %v10878_v19, %v11001_v50  ;;  %v11106_v31 = vsub.f32 %v24703_v2, %v26807_v16  ;;  %19492 = vmatpush3.bf16.msra.mxu0 %v24716_v51 }
 0x721   :  { %27583 = vst [vmem:[#allocation59_spill] sm:$0xff] %v24726_v41  ;;  %v24734_v13 = vpack.c.bf16 %v11219_v57, %v11212_v26  ;;  %v11100_v30 = vand.u32 4294901760, %v11099_v40  ;;  %v10950_v35 = vand.u32 4294901760, %v10861_v45  ;;  %v10953_v42 = vand.u32 4294901760, %v10862_v54  ;;  %19494 = vmatprep.subr.bf16.mxu0 %v24665_v27 }
 0x722   :  { %27582 = vst [vmem:[#allocation49_spill] sm:$0xff] %v24724_v36  ;;  %19524 = vmatpush3.bf16.msra.mxu1 %v24724_v36  ;;  %v11225_v50 = vsub.f32 %v24707_v56, %v26810_v58  ;;  %v26815_v19 = vand.u32 4294901760, %v24729_v48  ;;  %v11004_v26 = vand.u32 4294901760, %v10879_v10  ;;  %v11107_v57 = vand.u32 4294901760, %v11106_v31  ;;  %v10863_v36 = vld [vmem:[%s26518_s11 + $0x70] sm:$0xff]  ;;  %v10864_v31 = vld [vmem:[%s26518_s11 + $0x78] sm:$0xff] }
 0x723   :  { %27584 = vst [vmem:[#allocation52_spill] sm:$0xff] %v24734_v13  ;;  %19526 = vmatprep.subr.bf16.mxu1 %v24734_v13  ;;  %v24747_v40 = vsub.f32 %v10861_v45, %v10950_v35  ;;  %v11007_v20 = vand.u32 4294901760, %v10880_v29  ;;  %v24749_v16 = vpack.c.bf16 %v10947_v1, %v10944_v39  ;;  %v24757_v46 = vsub.f32 %v10862_v54, %v10953_v42 }
 0x724   :  { %v11226_v38 = vand.u32 4294901760, %v11225_v50  ;;  %v11232_v58 = vsub.f32 %v24729_v48, %v26815_v19  ;;  %v24759_v27 = vsub.f32 %v10879_v10, %v11004_v26  ;;  %v24764_v45 = vpack.c.bf16 %v11107_v57, %v11100_v30 }
 0x725   :  { %27585 = vst [vmem:[#allocation64_spill] sm:$0xff] %v24749_v16  ;;  %v26823_v39 = vand.u32 4294901760, %v24747_v40  ;;  %v24767_v1 = vpack.c.bf16 %v11007_v20, %v11004_v26  ;;  %v24769_v13 = vsub.f32 %v10880_v29, %v11007_v20  ;;  %19496 = vmatpush3.bf16.msra.mxu0 %v24749_v16  ;;  %v26827_v54 = vand.u32 4294901760, %v24757_v46 }
 0x726   :  { %27586 = vst [vmem:[#allocation58_spill] sm:$0xff] %v24764_v45  ;;  %v11233_v50 = vand.u32 4294901760, %v11232_v58  ;;  %v26826_v10 = vand.u32 4294901760, %v24759_v27  ;;  %v10956_v19 = vand.u32 4294901760, %v10863_v36  ;;  %19498 = vmatprep.subr.bf16.mxu0 %v24726_v41  ;;  %19528 = vmatpush3.bf16.msra.mxu1 %v24764_v45  ;;  %v10959_v29 = vand.u32 4294901760, %v10864_v31 }
 0x727   :  { %27587 = vst [vmem:[#allocation66_spill] sm:$0xff] %v24767_v1  ;;  %v11113_v30 = vsub.f32 %v24747_v40, %v26823_v39  ;;  %v11245_v26 = vand.u32 4294901760, %v24769_v13  ;;  %v24780_v57 = vpack.c.bf16 %v10953_v42, %v10950_v35  ;;  %v11120_v58 = vsub.f32 %v24757_v46, %v26827_v54 }
 0x728   :  { %v24782_v20 = vpack.c.bf16 %v11233_v50, %v11226_v38  ;;  %v11239_v41 = vsub.f32 %v24759_v27, %v26826_v10  ;;  %v11125_v45 = vsub.f32 %v10863_v36, %v10956_v19  ;;  %v11132_v39 = vsub.f32 %v10864_v31, %v10959_v29 }
 0x729   :  { %27588 = vst [vmem:[#allocation55_spill] sm:$0xff] %v24780_v57  ;;  %v11114_v16 = vand.u32 4294901760, %v11113_v30  ;;  %v11246_v51 = vsub.f32 %v24769_v13, %v11245_v26  ;;  %19500 = vmatpush3.bf16.msra.mxu0 %v24780_v57  ;;  %v24792_v18 = vpack.c.bf16 %v10959_v29, %v10956_v19  ;;  %v11121_v38 = vand.u32 4294901760, %v11120_v58 }
 0x72a   :  { %27589 = vst [vmem:[#allocation68_spill] sm:$0xff] %v24782_v20  ;;  %19530 = vmatprep.subr.bf16.mxu1 %v24782_v20  ;;  %v11240_v35 = vand.u32 4294901760, %v11239_v41  ;;  %v11126_v42 = vand.u32 4294901760, %v11125_v45  ;;  %19502 = vmatprep.subr.bf16.mxu0 %v24767_v1  ;;  %v24798_v50 = vpack.c.bf16 %v24400_v5, %v24398_v59  ;;  %v11133_v30 = vand.u32 4294901760, %v11132_v39 }
 0x72b   :  { %27590 = vst [vmem:[#allocation60_spill] sm:$0xff] %v24792_v18  ;;  %v11247_v36 = vand.u32 4294901760, %v11246_v51  ;;  %v24802_v31 = vpack.c.bf16 %v24404_v15, %v24402_v14  ;;  %v24806_v19 = vpack.c.bf16 %v24445_v60, %v24443_v3  ;;  %v24808_v29 = vpack.c.bf16 %v11121_v38, %v11114_v16 }
 0x72c   :  { %27591 = vst [vmem:[#allocation71_spill] sm:$0xff] %v24798_v50  ;;  %v11127_v41 = vsub.f32 %v11125_v45, %v11126_v42  ;;  %v24812_v58 = vpack.c.bf16 %v24456_v0, %v24450_v47  ;;  %v24816_v10 = vpack.c.bf16 %v24499_v7, %v24486_v23  ;;  %v11134_v54 = vsub.f32 %v11132_v39, %v11133_v30 }
 0x72d   :  { %27592 = vst [vmem:[#allocation61_spill] sm:$0xff] %v24802_v31  ;;  %27593 = vst [vmem:[#allocation74_spill] sm:$0xff] %v24806_v19  ;;  %v24818_v51 = vpack.c.bf16 %v11247_v36, %v11240_v35  ;;  %19504 = vmatpush3.bf16.msra.mxu0 %v24792_v18  ;;  %v24823_v20 = vpack.c.bf16 %v24521_v33, %v24513_v52  ;;  %v24827_v16 = vpack.c.bf16 %v24555_v43, %v24553_v32 }
 0x72e   :  { %27594 = vst [vmem:[#allocation67_spill] sm:$0xff] %v24808_v29  ;;  %27595 = vst [vmem:[#allocation78_spill] sm:$0xff] %v24812_v58  ;;  %19532 = vmatpush3.bf16.msra.mxu1 %v24808_v29  ;;  %v11128_v38 = vand.u32 4294901760, %v11127_v41  ;;  %19538 = vmatprep.subr.bf16.mxu0 %v24798_v50  ;;  %v24833_v35 = vpack.c.bf16 %v24567_v4, %v24562_v61  ;;  %v24837_v36 = vpack.c.bf16 %v24624_v8, %v24608_v44 }
 0x72f   :  { %27596 = vst [vmem:[#allocation65_spill] sm:$0xff] %v24816_v10  ;;  %27597 = vst [vmem:[#allocation69_spill] sm:$0xff] %v24818_v51  ;;  %v24841_v18 = vpack.c.bf16 %v24654_v17, %v24647_v25  ;;  %19534 = vmatprep.subr.bf16.mxu1 %v24818_v51  ;;  %v11135_v1 = vand.u32 4294901760, %v11134_v54  ;;  %v24846_v41 = vpack.c.bf16 %v24667_v9, %v24657_v28 }
 0x730   :  { %27598 = vst [vmem:[#allocation70_spill] sm:$0xff] %v24823_v20  ;;  %27599 = vst [vmem:[#allocation72_spill] sm:$0xff] %v24827_v16  ;;  %v24850_v50 = vpack.c.bf16 %v24703_v2, %v24685_v12  ;;  %v24857_v57 = vpack.c.bf16 %v24729_v48, %v24707_v56  ;;  %v24862_v54 = vpack.c.bf16 %v24757_v46, %v24747_v40 }
 0x731   :  { %27600 = vst [vmem:[#allocation75_spill] sm:$0xff] %v24833_v35  ;;  %27601 = vst [vmem:[#allocation73_spill] sm:$0xff] %v24837_v36  ;;  %v24852_v29 = vpack.c.bf16 %v11135_v1, %v11128_v38  ;;  %v24866_v51 = vpack.c.bf16 %v24769_v13, %v24759_v27  ;;  %v27610_v1 = vand.u32 4294901760, %v24398_v59  ;;  %v27611_v38 = vand.u32 4294901760, %v24400_v5 }
 0x732   :  { %27602 = vst [vmem:[#allocation76_spill] sm:$0xff] %v24841_v18  ;;  %27603 = vst [vmem:[#allocation77_spill] sm:$0xff] %v24846_v41  ;;  %v24868_v41 = vpack.c.bf16 %v11132_v39, %v11125_v45  ;;  %v27617_v18 = vand.u32 4294901760, %v24445_v60  ;;  %v27619_v45 = vand.u32 4294901760, %v24450_v47  ;;  %v27620_v59 = vand.u32 4294901760, %v24456_v0 }
 0x733   :  { %27604 = vst [vmem:[#allocation79_spill] sm:$0xff] %v24850_v50  ;;  %27605 = vst [vmem:[#allocation80_spill] sm:$0xff] %v24852_v29  ;;  %19536 = vmatpush3.bf16.msra.mxu1 %v24852_v29  ;;  %v24874_v29 = vpack.c.bf16 %v27611_v38, %v27610_v1  ;;  %v27622_v5 = vand.u32 4294901760, %v24486_v23  ;;  %v27628_v60 = vand.u32 4294901760, %v24553_v32  ;;  %v27629_v47 = vand.u32 4294901760, %v24555_v43 }
 0x734   :  { %27606 = vst [vmem:[#allocation81_spill] sm:$0xff] %v24857_v57  ;;  %19570 = vmatprep.subr.bf16.mxu1 %v24396_v62  ;;  %27607 = vst [vmem:[#allocation82_spill] sm:$0xff] %v24862_v54  ;;  %v27613_v57 = vand.u32 4294901760, %v24402_v14  ;;  %v27614_v62 = vand.u32 4294901760, %v24404_v15  ;;  %v27616_v54 = vand.u32 4294901760, %v24443_v3  ;;  %v24892_v39 = vpack.c.bf16 %v27620_v59, %v27619_v45 }
 0x735   :  { %27608 = vst [vmem:[#allocation83_spill] sm:$0xff] %v24866_v51  ;;  %27609 = vst [vmem:[#allocation139_spill] sm:$0xff] %v24868_v41  ;;  %v27623_v14 = vand.u32 4294901760, %v24499_v7  ;;  %v27626_v15 = vand.u32 4294901760, %v24521_v33  ;;  %v27631_v0 = vand.u32 4294901760, %v24562_v61  ;;  %v27632_v23 = vand.u32 4294901760, %v24567_v4 }
 0x736   :  { %27612 = vst [vmem:[#allocation84_spill] sm:$0xff] %v24874_v29  ;;  %v24880_v50 = vpack.c.bf16 %v27614_v62, %v27613_v57  ;;  %v24886_v13 = vpack.c.bf16 %v27617_v18, %v27616_v54  ;;  %27621 = vst [vmem:[#allocation87_spill] sm:$0xff] %v24892_v39  ;;  %v27625_v62 = vand.u32 4294901760, %v24513_v52  ;;  %v24910_v18 = vpack.c.bf16 %v27629_v47, %v27628_v60 }
 0x737   :  { %v24898_v1 = vpack.c.bf16 %v27623_v14, %v27622_v5  ;;  %v24916_v57 = vpack.c.bf16 %v27632_v23, %v27631_v0  ;;  %v27634_v7 = vand.u32 4294901760, %v24608_v44  ;;  %v27635_v52 = vand.u32 4294901760, %v24624_v8 }
 0x738   :  { %27615 = vst [vmem:[#allocation85_spill] sm:$0xff] %v24880_v50  ;;  %27618 = vst [vmem:[#allocation86_spill] sm:$0xff] %v24886_v13  ;;  %v24904_v3 = vpack.c.bf16 %v27626_v15, %v27625_v62  ;;  %v27637_v33 = vand.u32 4294901760, %v24647_v25  ;;  %v27638_v32 = vand.u32 4294901760, %v24654_v17  ;;  %v27640_v43 = vand.u32 4294901760, %v24657_v28 }
 0x739   :  { %27624 = vst [vmem:[#allocation88_spill] sm:$0xff] %v24898_v1  ;;  %27630 = vst [vmem:[#allocation90_spill] sm:$0xff] %v24910_v18  ;;  %v24922_v54 = vpack.c.bf16 %v27635_v52, %v27634_v7  ;;  %v27641_v61 = vand.u32 4294901760, %v24667_v9  ;;  %v27643_v4 = vand.u32 4294901760, %v24685_v12  ;;  %v27644_v44 = vand.u32 4294901760, %v24703_v2 }
 0x73a   :  { %27627 = vst [vmem:[#allocation89_spill] sm:$0xff] %v24904_v3  ;;  %27633 = vst [vmem:[#allocation145_spill] sm:$0xff] %v24916_v57  ;;  %v24928_v38 = vpack.c.bf16 %v27638_v32, %v27637_v33  ;;  %v27646_v8 = vand.u32 4294901760, %v24707_v56  ;;  %v27647_v25 = vand.u32 4294901760, %v24729_v48  ;;  %v27649_v17 = vand.u32 4294901760, %v24747_v40 }
 0x73b   :  { %27636 = vst [vmem:[#allocation150_spill] sm:$0xff] %v24922_v54  ;;  %v24934_v45 = vpack.c.bf16 %v27641_v61, %v27640_v43  ;;  %v24940_v59 = vpack.c.bf16 %v27644_v44, %v27643_v4  ;;  %v27650_v28 = vand.u32 4294901760, %v24757_v46  ;;  %v27652_v9 = vand.u32 4294901760, %v24759_v27  ;;  %v10707_v2 = vld [vmem:[#allocation14] sm:$0xf] }
 0x73c   :  { %27639 = vst [vmem:[#allocation152_spill] sm:$0xff] %v24928_v38  ;;  %v24946_v5 = vpack.c.bf16 %v27647_v25, %v27646_v8  ;;  %v24958_v12 = vpack.c.bf16 %v11133_v30, %v11126_v42  ;;  %v10720_v15 = vrot.slane %v10707_v2, %v27541_v53  ;;  %v10724_v56 = vrot.slane %v10707_v2, %v27542_v63 }
 0x73d   :  { %27642 = vst [vmem:[#allocation154_spill] sm:$0xff] %v24934_v45  ;;  %27645 = vst [vmem:[#allocation50_spill] sm:$0xff] %v24940_v59  ;;  %v24952_v14 = vpack.c.bf16 %v27650_v28, %v27649_v17  ;;  %v24956_v62 = vpack.c.bf16 %v11245_v26, %v27652_v9  ;;  %v10712_v60 = vrot.slane %v10707_v2, %v27539_v55 }
 0x73e   :  { %27648 = vst [vmem:[#allocation51_spill] sm:$0xff] %v24946_v5  ;;  %27654 = vst [vmem:[#allocation62_spill] sm:$0xff] %v24958_v12  ;;  %v10716_v46 = vrot.slane %v10707_v2, %v27540_v21 }
 0x73f   :  { %27651 = vst [vmem:[#allocation155_spill] sm:$0xff] %v24952_v14  ;;  %27653 = vst [vmem:[#allocation33_spill] sm:$0xff] %v24956_v62  ;;  %v27706_v62 = vld [vmem:[#allocation76_spill] sm:$0xff]  ;;  %v27708_v14 = vld [vmem:[#allocation77_spill] sm:$0xff] }
 0x7ce   :  { %v10566_v48 = vpop.f32.mrb[44].mxu0 }
 0x7cf   :  { %v10672_v47 = vpop.f32.mrb[44].mxu1  ;;  %v10568_v40 = vpop.f32.mrb[45].mxu0  ;;  %v10729_v32 = vadd.f32 %v10712_v60, %v10566_v48 }
 0x7d0   :  { %v24963_v0 = vadd.f32 %v10720_v15, %v10672_v47  ;;  %v10674_v23 = vpop.f32.mrb[45].mxu1  ;;  %v10570_v27 = vpop.f32.mrb[46].mxu0  ;;  %v10730_v4 = vadd.f32 %v10716_v46, %v10568_v40 }
 0x7d1   :  { %v24966_v26 = vadd.f32 %v10724_v56, %v10674_v23  ;;  %v10733_v42 = vadd.f32 %v10712_v60, %v10570_v27  ;;  %v10676_v30 = vpop.f32.mrb[46].mxu1  ;;  %v10572_v7 = vpop.f32.mrb[47].mxu0  ;;  %v24974_v25 = vmax.f32 %v10729_v32, 0.0 }
 0x7d2   :  { %v24968_v52 = vadd.f32 %v10720_v15, %v10676_v30  ;;  %v10678_v33 = vpop.f32.mrb[47].mxu1  ;;  %v10734_v43 = vadd.f32 %v10716_v46, %v10572_v7  ;;  %v24978_v47 = vmax.f32 %v10730_v4, 0.0 }
 0x7d3   :  { %v24970_v61 = vadd.f32 %v10724_v56, %v10678_v33  ;;  %v24972_v44 = vmax.f32 %v10733_v42, 0.0  ;;  %27656 = vst [vmem:[#allocation36_spill] sm:$0xff] %v24974_v25 }
 0x7d4   :  { %v24976_v17 = vmax.f32 %v10734_v43, 0.0  ;;  %27658 = vst [vmem:[#allocation43_spill] sm:$0xff] %v24978_v47 }
 0x7d5   :  { %27655 = vst [vmem:[#allocation34_spill] sm:$0xff] %v24972_v44  ;;  %v10761_v40 = vadd.f32 %v24972_v44, %v24974_v25 }
 0x7d6   :  { %v10576_v8 = vpop.f32.mrb[48].mxu0  ;;  %27657 = vst [vmem:[#allocation160_spill] sm:$0xff] %v24976_v17 }
 0x7d7   :  { %v10737_v28 = vadd.f32 %v10712_v60, %v10576_v8  ;;  %v10682_v9 = vpop.f32.mrb[48].mxu1  ;;  %v10578_v2 = vpop.f32.mrb[49].mxu0 }
 0x7d8   :  { %v24980_v23 = vadd.f32 %v10720_v15, %v10682_v9  ;;  %v10738_v27 = vadd.f32 %v10716_v46, %v10578_v2  ;;  %v10684_v48 = vpop.f32.mrb[49].mxu1  ;;  %v10580_v30 = vpop.f32.mrb[50].mxu0  ;;  %v10770_v9 = vadd.f32 %v24976_v17, %v24978_v47 }
 0x7d9   :  { %v24984_v42 = vmax.f32 %v10737_v28, 0.0  ;;  %v24986_v7 = vadd.f32 %v10724_v56, %v10684_v48  ;;  %v10741_v33 = vadd.f32 %v10712_v60, %v10580_v30  ;;  %v10686_v32 = vpop.f32.mrb[50].mxu1  ;;  %v10582_v43 = vpop.f32.mrb[51].mxu0 }
 0x7da   :  { %v24988_v8 = vmax.f32 %v10738_v27, 0.0  ;;  %v24990_v63 = vadd.f32 %v10720_v15, %v10686_v32  ;;  %v10688_v4 = vpop.f32.mrb[51].mxu1  ;;  %v10742_v21 = vadd.f32 %v10716_v46, %v10582_v43 }
 0x7db   :  { %27659 = vst [vmem:[#allocation47_spill] sm:$0xff] %v24984_v42  ;;  %v10762_v2 = vadd.f32 %v10761_v40, %v24984_v42  ;;  %v24995_v53 = vmax.f32 %v10741_v33, 0.0  ;;  %v25001_v27 = vadd.f32 %v10724_v56, %v10688_v4 }
 0x7dc   :  { %27660 = vst [vmem:[#allocation48_spill] sm:$0xff] %v24988_v8  ;;  %v10771_v28 = vadd.f32 %v10770_v9, %v24988_v8  ;;  %v24999_v30 = vmax.f32 %v10742_v21, 0.0 }
 0x7dd   :  { %27661 = vst [vmem:[#allocation91_spill] sm:$0xff] %v24995_v53  ;;  %v10763_v48 = vadd.f32 %v10762_v2, %v24995_v53 }
 0x7de   :  { %27662 = vst [vmem:[#allocation54_spill] sm:$0xff] %v24999_v30  ;;  %v10772_v32 = vadd.f32 %v10771_v28, %v24999_v30 }
 0x7df   :  { %v10764_v60 = vrot.slane %v10763_v48, 4 }
 0x7e0   :  { %v10773_v25 = vrot.slane %v10772_v32, 4 }
 0x7e1   :  { %v10765_v15 = vadd.f32 %v10764_v60, %v10763_v48  ;;  %v25027_v48 = vld [vmem:[%s26518_s11 + $0x130] sm:$0xff]  ;;  %v25033_v60 = vld [vmem:[%s26518_s11 + $0x138] sm:$0xff] }
 0x7e2   :  { %v10774_v47 = vadd.f32 %v10773_v25, %v10772_v32  ;;  %27664 = vst [vmem:[#allocation92_spill] sm:$0xff] %v25027_v48  ;;  %27665 = vst [vmem:[#allocation63_spill] sm:$0xff] %v25033_v60  ;;  %v25044_v32 = vld [vmem:[%s26518_s11 + $0x1c8] sm:$0xff] }
 0x7e3   :  { %v10766_v55 = vrot.slane %v10765_v15, 2  ;;  %27667 = vst [vmem:[#allocation161_spill] sm:$0xff] %v25044_v32 }
 0x7e4   :  { %v10775_v33 = vrot.slane %v10774_v47, 2 }
 0x7e5   :  { %v10767_v44 = vadd.f32 %v10766_v55, %v10765_v15  ;;  %v25038_v15 = vld [vmem:[%s26518_s11 + $0x1c0] sm:$0xff] }
 0x7e6   :  { %v10776_v46 = vadd.f32 %v10775_v33, %v10774_v47  ;;  %27666 = vst [vmem:[#allocation93_spill] sm:$0xff] %v25038_v15  ;;  %v25052_v33 = vmax.f32 %v24970_v61, 0.0  ;;  %v25087_v61 = vld [vmem:[%s26518_s11 + $0x150] sm:$0xff] }
 0x7e7   :  { %v10768_v40 = vrot.slane %v10767_v44, 1  ;;  %27676 = vst [vmem:[#allocation171_spill] sm:$0xff] %v25087_v61 }
 0x7e8   :  { %v10777_v43 = vrot.slane %v10776_v46, 1  ;;  %27669 = vst [vmem:[#allocation94_spill] sm:$0xff] %v25052_v33 }
 0x7e9   :  { %v10769_v42 = vadd.f32 %v10768_v40, %v10767_v44  ;;  %v25049_v40 = vld [vmem:[%s26518_s11 + $0x140] sm:$0xff] }
 0x7ea   :  { %v10778_v2 = vadd.f32 %v10777_v43, %v10776_v46  ;;  %27668 = vst [vmem:[#allocation165_spill] sm:$0xff] %v25049_v40  ;;  %v25058_v43 = vld [vmem:[%s26518_s11 + $0x148] sm:$0xff]  ;;  %v27688_v53 = vand.u32 4294901760, %v25049_v40 }
 0x7eb   :  { %v25004_v9 = vand.u32 4294901760, %v10769_v42  ;;  %27670 = vst [vmem:[#allocation166_spill] sm:$0xff] %v25058_v43  ;;  %v27689_v8 = vand.u32 4294901760, %v25058_v43 }
 0x7ec   :  { %v25009_v56 = vand.u32 4294901760, %v10778_v2  ;;  %v25142_v30 = vsub.f32 %v25049_v40, %v27688_v53  ;;  %v25162_v53 = vld [vmem:[%s26518_s11 + $0x160] sm:$0xff]  ;;  %v25194_v40 = vld [vmem:[%s26518_s11 + $0x1f8] sm:$0xff] }
 0x7ed   :  { %27663 = vst [vmem:[#allocation101_spill] sm:$0xff] %v25004_v9  ;;  %v25007_v21 = vsub.f32 %v10769_v42, %v25004_v9  ;;  %27693 = vst [vmem:[#allocation133_spill] sm:$0xff] %v25162_v53  ;;  %v27710_v12 = vand.u32 4294901760, %v25162_v53 }
 0x7ee   :  { %11250 = vmatprep.mubr.f32.mxu1 %v25009_v56  ;;  %v11010_v55 = vsub.f32 %v10778_v2, %v25009_v56  ;;  %v25063_v2 = vld [vmem:[%s26518_s11 + $0x1d0] sm:$0xff]  ;;  %27699 = vst [vmem:[#allocation136_spill] sm:$0xff] %v25194_v40 }
 0x7ef   :  { %v26858_v4 = vand.u32 4294901760, %v25007_v21  ;;  %11252 = vmatmul.mubr.f32.vlgmr.msra.gmra.mrb[52].mxu1 %v25004_v9  ;;  %27671 = vst [vmem:[#allocation167_spill] sm:$0xff] %v25063_v2 }
 0x7f0   :  { %19572 = vmatpush3.bf16.msra.mxu1 %v24488_v37  ;;  %v11011_v44 = vand.u32 4294901760, %v11010_v55 }
 0x7f1   :  { %19574 = vmatprep.subr.bf16.mxu1 %v24441_v49  ;;  %v11018_v25 = vsub.f32 %v25007_v21, %v26858_v4  ;;  %v27678_v4 = vand.u32 4294901760, %v25027_v48 }
 0x7f2   :  { %11494 = vmatprep.mubr.f32.mxu1 %v11011_v44  ;;  %v11012_v47 = vsub.f32 %v11010_v55, %v11011_v44  ;;  %v27682_v44 = vand.u32 4294901760, %v25038_v15 }
 0x7f3   :  { %v11019_v28 = vand.u32 4294901760, %v11018_v25  ;;  %v25075_v25 = vmax.f32 %v24966_v26, 0.0  ;;  %v25092_v26 = vld [vmem:[%s26518_s11 + $0x158] sm:$0xff] }
 0x7f4   :  { %19576 = vmatpush3.bf16.msra.mxu1 %v24584_v22  ;;  %v11013_v42 = vand.u32 4294901760, %v11012_v47  ;;  %v25078_v47 = vmax.f32 %v24986_v7, 0.0  ;;  %27677 = vst [vmem:[#allocation162_spill] sm:$0xff] %v25092_v26  ;;  %v25114_v46 = vsub.f32 %v25038_v15, %v27682_v44  ;;  %v27686_v44 = vld [vmem:[#allocation41_spill] sm:$0xff] }
 0x7f5   :  { %19578 = vmatprep.subr.bf16.mxu1 %v24557_v24  ;;  %27673 = vst [vmem:[#allocation169_spill] sm:$0xff] %v25075_v25 }
 0x7f6   :  { %11014 = vmatprep.mubr.f32.mxu0 %v11013_v42  ;;  %27674 = vst [vmem:[#allocation170_spill] sm:$0xff] %v25078_v47  ;;  %v27675_v42 = vld [vmem:[#allocation44_spill] sm:$0xff] }
 0x7f7   :  { %11020 = vmatmul.mubr.f32.vlgmr.msra.gmra.mrb[52].mxu0 %v11019_v28  ;;  %v10788_v28 = vadd.f32 %v25052_v33, %v25075_v25  ;;  %v27687_v33 = vand.u32 4294901760, %v25044_v32 }
 0x7f8   :  { %19540 = vmatpush3.bf16.msra.mxu0 %v24802_v31  ;;  %19580 = vmatpush3.bf16.msra.mxu1 %v24610_v6  ;;  %v25130_v31 = vmax.f32 %v25001_v27, 0.0  ;;  %v27691_v27 = vand.u32 4294901760, %v25063_v2 }
 0x7f9   :  { %11387 = vmatprep.mubr.f32.mxu0 %v11010_v55  ;;  %19542 = vmatprep.subr.bf16.mxu0 %v24806_v19  ;;  %v25068_v55 = vld [vmem:[%s26518_s11 + $0x1d8] sm:$0xff]  ;;  %v27681_v19 = vand.u32 4294901760, %v25033_v60  ;;  %v25137_v25 = vsub.f32 %v25044_v32, %v27687_v33 }
 0x7fa   :  { %19582 = vmatprep.subr.bf16.mxu1 %v24576_v34  ;;  %27672 = vst [vmem:[#allocation168_spill] sm:$0xff] %v25068_v55  ;;  %27685 = vst [vmem:[#allocation130_spill] sm:$0xff] %v25130_v31 }
 0x7fb   :  { %v25109_v7 = vsub.f32 %v25033_v60, %v27681_v19  ;;  %v10789_v19 = vadd.f32 %v10788_v28, %v25078_v47  ;;  %v25147_v28 = vsub.f32 %v25058_v43, %v27689_v8  ;;  %v25152_v47 = vsub.f32 %v25063_v2, %v27691_v27  ;;  %v25170_v27 = vld [vmem:[%s26518_s11 + $0x168] sm:$0xff]  ;;  %v25205_v60 = vld [vmem:[%s26518_s11 + $0x170] sm:$0xff] }
 0x7fc   :  { %19544 = vmatpush3.bf16.msra.mxu0 %v24812_v58  ;;  %19584 = vmatpush3.bf16.msra.mxu1 %v24678_v11  ;;  %v27680_v58 = vld [vmem:[#allocation56_spill] sm:$0xff]  ;;  %27694 = vst [vmem:[#allocation134_spill] sm:$0xff] %v25170_v27  ;;  %v27696_v2 = vand.u32 4294901760, %v25087_v61  ;;  %v27697_v43 = vand.u32 4294901760, %v25092_v26  ;;  %27701 = vst [vmem:[#allocation137_spill] sm:$0xff] %v25205_v60 }
 0x7fd   :  { %19546 = vmatprep.subr.bf16.mxu0 %v24816_v10  ;;  %19586 = vmatprep.subr.bf16.mxu1 %v27675_v42  ;;  %v25102_v10 = vsub.f32 %v25027_v48, %v27678_v4  ;;  %v25121_v4 = vld [vmem:[%s26518_s11 + $0x1e0] sm:$0xff]  ;;  %27690 = vst [vmem:[#allocation131_spill] sm:$0xff] %v25147_v28  ;;  %v25210_v48 = vld [vmem:[%s26518_s11 + $0x178] sm:$0xff] }
 0x7fe   :  { %27683 = vst [vmem:[#allocation126_spill] sm:$0xff] %v25121_v4  ;;  %v25179_v17 = vsub.f32 %v25087_v61, %v27696_v2  ;;  %v25184_v8 = vsub.f32 %v25092_v26, %v27697_v43  ;;  %v27700_v2 = vld [vmem:[#allocation59_spill] sm:$0xff]  ;;  %27702 = vst [vmem:[#allocation138_spill] sm:$0xff] %v25210_v48  ;;  %v27703_v26 = vand.u32 4294901760, %v25121_v4  ;;  %v27714_v43 = vand.u32 4294901760, %v25114_v46 }
 0x7ff   :  { %27679 = vst [vmem:[#allocation164_spill] sm:$0xff] %v25102_v10 }
 0x800   :  { %19548 = vmatpush3.bf16.msra.mxu0 %v24823_v20  ;;  %19588 = vmatpush3.bf16.msra.mxu1 %v27680_v58  ;;  %v25126_v20 = vld [vmem:[%s26518_s11 + $0x1e8] sm:$0xff] }
 0x801   :  { %27684 = vst [vmem:[#allocation127_spill] sm:$0xff] %v25126_v20  ;;  %19550 = vmatprep.subr.bf16.mxu0 %v24827_v16  ;;  %19590 = vmatprep.subr.bf16.mxu1 %v27686_v44  ;;  %v27692_v16 = vand.u32 4294901760, %v25068_v55  ;;  %v27704_v32 = vand.u32 4294901760, %v25126_v20 }
 0x803   :  { %v25157_v33 = vsub.f32 %v25068_v55, %v27692_v16  ;;  %v27695_v16 = vld [vmem:[#allocation64_spill] sm:$0xff]  ;;  %v10790_v55 = vadd.f32 %v10789_v19, %v25130_v31  ;;  %v25224_v15 = vsub.f32 %v25126_v20, %v27704_v32  ;;  %v27707_v31 = vld [vmem:[#allocation55_spill] sm:$0xff]  ;;  %v27709_v32 = vld [vmem:[#allocation66_spill] sm:$0xff]  ;;  %v25239_v19 = vsub.f32 %v25162_v53, %v27710_v12 }
 0x804   :  { %19552 = vmatpush3.bf16.msra.mxu0 %v24833_v35  ;;  %19592 = vmatpush3.bf16.msra.mxu1 %v27695_v16  ;;  %v25189_v35 = vld [vmem:[%s26518_s11 + $0x1f0] sm:$0xff]  ;;  %v27712_v20 = vand.u32 4294901760, %v25109_v7  ;;  %v27718_v12 = vand.u32 4294901760, %v25142_v30  ;;  %v27719_v53 = vand.u32 4294901760, %v25147_v28 }
 0x805   :  { %27698 = vst [vmem:[#allocation135_spill] sm:$0xff] %v25189_v35  ;;  %19554 = vmatprep.subr.bf16.mxu0 %v24837_v36  ;;  %19594 = vmatprep.subr.bf16.mxu1 %v27700_v2  ;;  %v25219_v36 = vsub.f32 %v25121_v4, %v27703_v26  ;;  %27705 = vst [vmem:[#allocation142_spill] sm:$0xff] %v25224_v15  ;;  %v27715_v26 = vand.u32 4294901760, %v25137_v25  ;;  %v27727_v28 = vand.u32 4294901760, %v25189_v35 }
 0x807   :  { %v25251_v4 = vpack.c.bf16 %v27715_v26, %v27714_v43  ;;  %v27724_v43 = vand.u32 4294901760, %v25179_v17  ;;  %v27725_v26 = vand.u32 4294901760, %v25184_v8 }
 0x808   :  { %19556 = vmatpush3.bf16.msra.mxu0 %v27706_v62  ;;  %19596 = vmatpush3.bf16.msra.mxu1 %v27707_v31  ;;  %v27711_v62 = vand.u32 4294901760, %v25102_v10  ;;  %v25262_v10 = vpack.c.bf16 %v27719_v53, %v27718_v12  ;;  %v25281_v53 = vsub.f32 %v25189_v35, %v27727_v28  ;;  %v27729_v12 = vand.u32 4294901760, %v25194_v40  ;;  %v27737_v28 = vld [vmem:[#allocation81_spill] sm:$0xff] }
 0x809   :  { %19558 = vmatprep.subr.bf16.mxu0 %v27708_v14  ;;  %19598 = vmatprep.subr.bf16.mxu1 %v27709_v32  ;;  %27716 = vst [vmem:[#allocation147_spill] sm:$0xff] %v25251_v4  ;;  %v27717_v14 = vand.u32 4294901760, %v25170_v27  ;;  %v25274_v4 = vpack.c.bf16 %v27725_v26, %v27724_v43  ;;  %v27733_v43 = vand.u32 4294901760, %v25205_v60  ;;  %v26921_v35 = vand.u32 4294901760, %v25239_v19 }
 0x80a   :  { %v25245_v61 = vpack.c.bf16 %v27712_v20, %v27711_v62  ;;  %27720 = vst [vmem:[#allocation148_spill] sm:$0xff] %v25262_v10  ;;  %v27721_v20 = vand.u32 4294901760, %v25152_v47  ;;  %v27722_v62 = vand.u32 4294901760, %v25157_v33  ;;  %27728 = vst [vmem:[#allocation156_spill] sm:$0xff] %v25281_v53 }
 0x80b   :  { %v25256_v9 = vsub.f32 %v25170_v27, %v27717_v14  ;;  %27726 = vst [vmem:[#allocation153_spill] sm:$0xff] %v25274_v4  ;;  %v25293_v26 = vsub.f32 %v25205_v60, %v27733_v43  ;;  %v27735_v27 = vand.u32 4294901760, %v25210_v48  ;;  %v27738_v4 = vld [vmem:[#allocation57_spill] sm:$0xff]  ;;  %v27742_v60 = vand.u32 4294901760, %v25007_v21 }
 0x80c   :  { %27713 = vst [vmem:[#allocation144_spill] sm:$0xff] %v25245_v61  ;;  %v25268_v61 = vpack.c.bf16 %v27722_v62, %v27721_v20  ;;  %v25286_v20 = vsub.f32 %v25194_v40, %v27729_v12  ;;  %v27731_v62 = vld [vmem:[#allocation79_spill] sm:$0xff]  ;;  %v27739_v12 = vand.u32 4294901760, %v25219_v36  ;;  %v10791_v40 = vrot.slane %v10790_v55, 4 }
 0x80d   :  { %19560 = vmatpush3.bf16.msra.mxu0 %v27731_v62  ;;  %27734 = vst [vmem:[#allocation141_spill] sm:$0xff] %v25293_v26  ;;  %v25298_v14 = vsub.f32 %v25210_v48, %v27735_v27  ;;  %v27740_v62 = vand.u32 4294901760, %v25224_v15  ;;  %v26920_v43 = vand.u32 4294901760, %v25256_v9  ;;  %v25315_v27 = vld [vmem:[%s26518_s11 + $0x180] sm:$0xff]  ;;  %v27743_v48 = vld [vmem:[#allocation82_spill] sm:$0xff] }
 0x80e   :  { %27723 = vst [vmem:[#allocation151_spill] sm:$0xff] %v25268_v61  ;;  %27730 = vst [vmem:[#allocation140_spill] sm:$0xff] %v25286_v20  ;;  %v27732_v61 = vld [vmem:[#allocation60_spill] sm:$0xff]  ;;  %19562 = vmatprep.subr.bf16.mxu0 %v27737_v28  ;;  %v10792_v15 = vadd.f32 %v10791_v40, %v10790_v55  ;;  %v26926_v28 = vand.u32 4294901760, %v25315_v27 }
 0x80f   :  { %19600 = vmatpush3.bf16.msra.mxu1 %v27732_v61  ;;  %27736 = vst [vmem:[#allocation143_spill] sm:$0xff] %v25298_v14  ;;  %v25306_v10 = vpack.c.bf16 %v27740_v62, %v27739_v12  ;;  %v25324_v62 = vld [vmem:[%s26518_s11 + $0x188] sm:$0xff]  ;;  %v26924_v12 = vand.u32 4294901760, %v25293_v26 }
 0x810   :  { %19634 = vmatprep.subr.bf16.mxu1 %v27738_v4  ;;  %v25337_v4 = vpack.c.bf16 %v26920_v43, %v26921_v35  ;;  %v25352_v43 = vld [vmem:[%s26518_s11 + $0x108] sm:$0xff]  ;;  %v27748_v35 = vand.u32 4294901760, %v25298_v14  ;;  %v10793_v40 = vrot.slane %v10792_v15, 2  ;;  %v25375_v55 = vsub.f32 %v25315_v27, %v26926_v28 }
 0x811   :  { %27741 = vst [vmem:[#allocation146_spill] sm:$0xff] %v25306_v10  ;;  %19564 = vmatpush3.bf16.msra.mxu0 %v27743_v48  ;;  %v27745_v48 = vand.u32 4294901760, %v25281_v53  ;;  %v25523_v53 = vmax.f32 %v24990_v63, 0.0 }
 0x812   :  { %11498 = vmatmul.mubr.f32.vlgmr.msra.gmra.mrb[54].mxu1 %v27742_v60  ;;  %v25329_v60 = vld [vmem:[%s26518_s11 + $0x100] sm:$0xff]  ;;  %27744 = vst [vmem:[#allocation149_spill] sm:$0xff] %v25337_v4  ;;  %19566 = vmatprep.subr.bf16.mxu0 %v24866_v51  ;;  %v25358_v51 = vpack.c.bf16 %v27748_v35, %v26924_v12  ;;  %v26928_v4 = vand.u32 4294901760, %v25324_v62  ;;  %27750 = vst [vmem:[#allocation105_spill] sm:$0xff] %v25375_v55  ;;  %v25391_v35 = vld [vmem:[%s26518_s11 + $0x198] sm:$0xff] }
 0x813   :  { %19636 = vmatpush3.bf16.msra.mxu1 %v24488_v37  ;;  %11768 = vmatprep.mubr.f32.mxu1 %v25009_v56  ;;  %v27746_v37 = vand.u32 4294901760, %v25286_v20  ;;  %27767 = vst [vmem:[#allocation107_spill] sm:$0xff] %v25523_v53 }
 0x814   :  { %19638 = vmatprep.subr.bf16.mxu1 %v24441_v49  ;;  %27749 = vst [vmem:[#allocation104_spill] sm:$0xff] %v25358_v51  ;;  %v25381_v12 = vsub.f32 %v25324_v62, %v26928_v4 }
 0x815   :  { %v25345_v10 = vpack.c.bf16 %v27746_v37, %v27745_v48  ;;  %v26927_v37 = vand.u32 4294901760, %v25329_v60  ;;  %19568 = vmatpush3.bf16.msra.mxu0 %v24868_v41  ;;  %v25367_v48 = vld [vmem:[%s26518_s11 + $0x190] sm:$0xff]  ;;  %v10794_v41 = vadd.f32 %v10793_v40, %v10792_v15  ;;  %v25424_v15 = vld [vmem:[%s26518_s11 + $0x1a8] sm:$0xff] }
 0x816   :  { %19602 = vmatprep.subr.bf16.mxu0 %v24874_v29  ;;  %27751 = vst [vmem:[#allocation128_spill] sm:$0xff] %v25381_v12 }
 0x817   :  { %27747 = vst [vmem:[#allocation95_spill] sm:$0xff] %v25345_v10  ;;  %19640 = vmatpush3.bf16.msra.mxu1 %v24584_v22  ;;  %v25386_v29 = vsub.f32 %v25329_v60, %v26927_v37  ;;  %v27753_v37 = vand.u32 4294901760, %v25352_v43  ;;  %v10795_v40 = vrot.slane %v10794_v41, 1  ;;  %v25483_v10 = vld [vmem:[%s26518_s11 + $0x1b8] sm:$0xff] }
 0x818   :  { %19642 = vmatprep.subr.bf16.mxu1 %v24557_v24  ;;  %11390 = vmatmul.mubr.f32.vlgmr.msra.gmra.mrb[54].mxu0 %v25007_v21  ;;  %v25399_v21 = vld [vmem:[%s26518_s11 + $0x110] sm:$0xff]  ;;  %v27757_v24 = vand.u32 4294901760, %v25391_v35  ;;  %v27774_v63 = vand.u32 4294901760, %v25483_v10 }
 0x819   :  { %27752 = vst [vmem:[#allocation102_spill] sm:$0xff] %v25386_v29  ;;  %19604 = vmatpush3.bf16.msra.mxu0 %v24880_v50  ;;  %11664 = vmatprep.mubr.f32.mxu0 %v25009_v56  ;;  %v25406_v4 = vsub.f32 %v25352_v43, %v27753_v37  ;;  %v25414_v50 = vld [vmem:[%s26518_s11 + $0x118] sm:$0xff]  ;;  %v27754_v56 = vand.u32 4294901760, %v25367_v48  ;;  %v27760_v51 = vand.u32 4294901760, %v25399_v21 }
 0x81a   :  { %19606 = vmatprep.subr.bf16.mxu0 %v24886_v13  ;;  %v25419_v13 = vld [vmem:[%s26518_s11 + $0x1a0] sm:$0xff] }
 0x81b   :  { %19644 = vmatpush3.bf16.msra.mxu1 %v24610_v6  ;;  %v25431_v28 = vsub.f32 %v25367_v48, %v27754_v56  ;;  %v25444_v56 = vld [vmem:[%s26518_s11 + $0x120] sm:$0xff]  ;;  %v27756_v6 = vand.u32 4294901760, %v25375_v55  ;;  %v27766_v26 = vand.u32 4294901760, %v25406_v4 }
 0x81c   :  { %19646 = vmatprep.subr.bf16.mxu1 %v24576_v34  ;;  %v25449_v34 = vld [vmem:[%s26518_s11 + $0x128] sm:$0xff] }
 0x81d   :  { %19608 = vmatpush3.bf16.msra.mxu0 %v24892_v39  ;;  %v12003_v37 = vsub.f32 %v25375_v55, %v27756_v6  ;;  %v25461_v39 = vsub.f32 %v25391_v35, %v27757_v24  ;;  %v25478_v24 = vsub.f32 %v25399_v21, %v27760_v51  ;;  %v25486_v55 = vmax.f32 %v24963_v0, 0.0 }
 0x81e   :  { %19610 = vmatprep.subr.bf16.mxu0 %v24898_v1  ;;  %v25452_v1 = vmax.f32 %v24968_v52, 0.0  ;;  %v27758_v52 = vand.u32 4294901760, %v25381_v12  ;;  %v27763_v51 = vand.u32 4294901760, %v25414_v50  ;;  %v27764_v0 = vand.u32 4294901760, %v25419_v13 }
 0x81f   :  { %19648 = vmatpush3.bf16.msra.mxu1 %v24678_v11  ;;  %v25466_v11 = vld [vmem:[%s26518_s11 + $0x1b0] sm:$0xff]  ;;  %27761 = vst [vmem:[#allocation129_spill] sm:$0xff] %v25486_v55  ;;  %v12004_v14 = vand.u32 4294901760, %v12003_v37  ;;  %v11898_v20 = vsub.f32 %v25406_v4, %v27766_v26  ;;  %v25558_v26 = vsub.f32 %v25483_v10, %v27774_v63 }
 0x820   :  { %27755 = vst [vmem:[#allocation103_spill] sm:$0xff] %v25452_v1  ;;  %19650 = vmatprep.subr.bf16.mxu1 %v27675_v42  ;;  %v12010_v22 = vsub.f32 %v25381_v12, %v27758_v52  ;;  %v27759_v42 = vand.u32 4294901760, %v25386_v29  ;;  %v25489_v52 = vmax.f32 %v24980_v23, 0.0  ;;  %v25504_v23 = vsub.f32 %v25419_v13, %v27764_v0 }
 0x821   :  { %19612 = vmatpush3.bf16.msra.mxu0 %v24904_v3  ;;  %v27765_v3 = vand.u32 4294901760, %v25424_v15 }
 0x822   :  { %v11891_v49 = vsub.f32 %v25386_v29, %v27759_v42  ;;  %27762 = vst [vmem:[#allocation106_spill] sm:$0xff] %v25489_v52  ;;  %19614 = vmatprep.subr.bf16.mxu0 %v24910_v18  ;;  %v25499_v29 = vsub.f32 %v25414_v50, %v27763_v51  ;;  %v10779_v18 = vadd.f32 %v25452_v1, %v25486_v55  ;;  %v12011_v0 = vand.u32 4294901760, %v12010_v22 }
 0x823   :  { %19652 = vmatpush3.bf16.msra.mxu1 %v27680_v58  ;;  %v25509_v42 = vsub.f32 %v25424_v15, %v27765_v3  ;;  %v10796_v58 = vadd.f32 %v10795_v40, %v10794_v41  ;;  %v27768_v41 = vand.u32 4294901760, %v25444_v56  ;;  %v27769_v22 = vand.u32 4294901760, %v25449_v34 }
 0x824   :  { %19654 = vmatprep.subr.bf16.mxu1 %v27686_v44  ;;  %v10780_v6 = vadd.f32 %v10779_v18, %v25489_v52  ;;  %v27770_v3 = vand.u32 4294901760, %v25466_v11  ;;  %v11899_v52 = vand.u32 4294901760, %v11898_v20  ;;  %v27776_v1 = vand.u32 4294901760, %v25478_v24 }
 0x825   :  { %19616 = vmatpush3.bf16.msra.mxu0 %v24916_v57  ;;  %v25529_v40 = vsub.f32 %v25444_v56, %v27768_v41  ;;  %v25534_v37 = vsub.f32 %v25449_v34, %v27769_v22  ;;  %v25547_v12 = vand.u32 4294901760, %v10796_v58  ;;  %v27772_v22 = vand.u32 4294901760, %v25431_v28 }
 0x826   :  { %19618 = vmatprep.subr.bf16.mxu0 %v24922_v54  ;;  %v25544_v41 = vsub.f32 %v25466_v11, %v27770_v3  ;;  %v27773_v54 = vand.u32 4294901760, %v25461_v39  ;;  %v25560_v57 = vpack.c.bf16 %v12011_v0, %v12004_v14  ;;  %v11892_v3 = vand.u32 4294901760, %v11891_v49 }
 0x827   :  { %19656 = vmatpush3.bf16.msra.mxu1 %v27695_v16  ;;  %27771 = vst [vmem:[#allocation132_spill] sm:$0xff] %v25547_v12  ;;  %v12017_v51 = vsub.f32 %v25431_v28, %v27772_v22  ;;  %v10781_v55 = vadd.f32 %v10780_v6, %v25523_v53  ;;  %v11905_v22 = vsub.f32 %v25478_v24, %v27776_v1  ;;  %v27777_v14 = vand.u32 4294901760, %v25499_v29 }
 0x828   :  { %19658 = vmatprep.subr.bf16.mxu1 %v27700_v2  ;;  %v12024_v18 = vsub.f32 %v25461_v39, %v27773_v54  ;;  %27775 = vst [vmem:[#allocation108_spill] sm:$0xff] %v25560_v57  ;;  %v27778_v20 = vand.u32 4294901760, %v25504_v23  ;;  %v27779_v0 = vand.u32 4294901760, %v25509_v42  ;;  %v27782_v63 = vand.u32 4294901760, %v25534_v37 }
 0x829   :  { %19620 = vmatpush3.bf16.msra.mxu0 %v24928_v38  ;;  %v11912_v49 = vsub.f32 %v25499_v29, %v27777_v14  ;;  %v12018_v54 = vand.u32 4294901760, %v12017_v51  ;;  %v25586_v14 = vpack.c.bf16 %v11899_v52, %v11892_v3  ;;  %v10782_v53 = vrot.slane %v10781_v55, 4 }
 0x82a   :  { %19622 = vmatprep.subr.bf16.mxu0 %v24934_v45  ;;  %v12031_v6 = vsub.f32 %v25504_v23, %v27778_v20  ;;  %v12038_v1 = vsub.f32 %v25509_v42, %v27779_v0  ;;  %v12025_v2 = vand.u32 4294901760, %v12024_v18  ;;  %v25583_v45 = vsub.f32 %v10796_v58, %v25547_v12 }
 0x82b   :  { %19660 = vmatpush3.bf16.msra.mxu1 %v27707_v31  ;;  %27780 = vst [vmem:[#allocation109_spill] sm:$0xff] %v25586_v14  ;;  %v11906_v20 = vand.u32 4294901760, %v11905_v22  ;;  %v27781_v31 = vand.u32 4294901760, %v25529_v40  ;;  %v11926_v51 = vsub.f32 %v25534_v37, %v27782_v63  ;;  %v11913_v58 = vand.u32 4294901760, %v11912_v49 }
 0x82c   :  { %19662 = vmatprep.subr.bf16.mxu1 %v27709_v32  ;;  %v12032_v18 = vand.u32 4294901760, %v12031_v6  ;;  %v12039_v52 = vand.u32 4294901760, %v12038_v1  ;;  %v27783_v3 = vand.u32 4294901760, %v25544_v41  ;;  %v25601_v22 = vpack.c.bf16 %v12025_v2, %v12018_v54 }
 0x82d   :  { %19624 = vmatpush3.bf16.msra.mxu0 %v24940_v59  ;;  %v11919_v0 = vsub.f32 %v25529_v40, %v27781_v31  ;;  %v27785_v59 = vand.u32 4294901760, %v25558_v26  ;;  %v27788_v6 = vand.u32 4294901760, %v25109_v7  ;;  %v11927_v54 = vand.u32 4294901760, %v11926_v51 }
 0x82e   :  { %19626 = vmatprep.subr.bf16.mxu0 %v24946_v5  ;;  %v12045_v38 = vsub.f32 %v25544_v41, %v27783_v3  ;;  %27784 = vst [vmem:[#allocation27_spill] sm:$0xff] %v25601_v22  ;;  %v10783_v5 = vadd.f32 %v10782_v53, %v10781_v55  ;;  %v27789_v3 = vld [vmem:[#allocation101_spill] sm:$0xff]  ;;  %v27791_v31 = vand.u32 4294901760, %v25315_v27  ;;  %v27792_v16 = vand.u32 4294901760, %v25324_v62 }
 0x82f   :  { %19664 = vmatpush3.bf16.msra.mxu1 %v27732_v61  ;;  %v12052_v63 = vsub.f32 %v25558_v26, %v27785_v59  ;;  %v27786_v61 = vld [vmem:[#allocation164_spill] sm:$0xff]  ;;  %v11940_v1 = vsub.f32 %v25109_v7, %v27788_v6  ;;  %v11920_v2 = vand.u32 4294901760, %v11919_v0  ;;  %v25625_v6 = vpack.c.bf16 %v12039_v52, %v12032_v18  ;;  %v27795_v55 = vld [vmem:[#allocation33_spill] sm:$0xff] }
 0x830   :  { %19698 = vmatprep.subr.bf16.mxu1 %v25560_v57  ;;  %v27787_v32 = vand.u32 4294901760, %v27786_v61  ;;  %v27790_v57 = vld [vmem:[#allocation155_spill] sm:$0xff]  ;;  %v25619_v59 = vpack.c.bf16 %v27792_v16, %v27791_v31  ;;  %v12046_v53 = vand.u32 4294901760, %v12045_v38  ;;  %v27796_v0 = vand.u32 4294901760, %v25583_v45 }
 0x831   :  { %19628 = vmatpush3.bf16.msra.mxu0 %v27790_v57  ;;  %27794 = vst [vmem:[#allocation29_spill] sm:$0xff] %v25625_v6  ;;  %v12053_v62 = vand.u32 4294901760, %v12052_v63  ;;  %v27797_v16 = vand.u32 4294901760, %v25114_v46  ;;  %v27798_v31 = vand.u32 4294901760, %v25137_v25  ;;  %v27800_v38 = vand.u32 4294901760, %v25391_v35  ;;  %v27806_v35 = vld [vmem:[#allocation131_spill] sm:$0xff] }
 0x832   :  { %v11933_v49 = vsub.f32 %v27786_v61, %v27787_v32  ;;  %11770 = vmatmul.mubr.f32.vlgmr.msra.gmra.mrb[56].mxu1 %v27789_v3  ;;  %v25623_v32 = vpack.c.bf16 %v11913_v58, %v11906_v20  ;;  %19630 = vmatprep.subr.bf16.mxu0 %v27795_v55  ;;  %v11874_v27 = vsub.f32 %v25583_v45, %v27796_v0  ;;  %v27799_v58 = vand.u32 4294901760, %v25367_v48 }
 0x833   :  { %19700 = vmatpush3.bf16.msra.mxu1 %v25586_v14  ;;  %12112 = vmatprep.mubr.f32.mxu1 %v25547_v12  ;;  %v12059_v51 = vsub.f32 %v25114_v46, %v27797_v16  ;;  %v12066_v20 = vsub.f32 %v25137_v25, %v27798_v31  ;;  %v10784_v55 = vrot.slane %v10783_v5, 2  ;;  %v27801_v14 = vld [vmem:[#allocation62_spill] sm:$0xff]  ;;  %v27802_v63 = vand.u32 4294901760, %v25329_v60 }
 0x834   :  { %27793 = vst [vmem:[#allocation28_spill] sm:$0xff] %v25623_v32  ;;  %19702 = vmatprep.subr.bf16.mxu1 %v25601_v22  ;;  %v25642_v18 = vpack.c.bf16 %v27800_v38, %v27799_v58  ;;  %v11934_v52 = vand.u32 4294901760, %v11933_v49  ;;  %v11941_v22 = vand.u32 4294901760, %v11940_v1  ;;  %v27803_v0 = vand.u32 4294901760, %v25352_v43  ;;  %v27851_v12 = vld [vmem:[#allocation166_spill] sm:$0xff] }
 0x835   :  { %19632 = vmatpush3.bf16.msra.mxu0 %v27801_v14  ;;  %v25651_v57 = vpack.c.bf16 %v11927_v54, %v11920_v2  ;;  %v27805_v31 = vand.u32 4294901760, %v25142_v30  ;;  %v27807_v49 = vand.u32 4294901760, %v27806_v35  ;;  %v27808_v60 = vand.u32 4294901760, %v25152_v47 }
 0x836   :  { %v25649_v16 = vpack.c.bf16 %v27803_v0, %v27802_v63  ;;  %19666 = vmatprep.subr.bf16.mxu0 %v25619_v59  ;;  %v27809_v58 = vand.u32 4294901760, %v25157_v33  ;;  %v11875_v54 = vand.u32 4294901760, %v11874_v27  ;;  %v25668_v38 = vpack.c.bf16 %v12053_v62, %v12046_v53 }
 0x837   :  { %27804 = vst [vmem:[#allocation164_spill] sm:$0xff] %v25651_v57  ;;  %v11947_v48 = vsub.f32 %v25142_v30, %v27805_v31  ;;  %19704 = vmatpush3.bf16.msra.mxu1 %v25623_v32  ;;  %v11954_v1 = vsub.f32 %v27806_v35, %v27807_v49  ;;  %v12073_v43 = vsub.f32 %v25152_v47, %v27808_v60  ;;  %v12060_v63 = vand.u32 4294901760, %v12059_v51  ;;  %v27820_v51 = vld [vmem:[#allocation142_spill] sm:$0xff] }
 0x838   :  { %v12080_v2 = vsub.f32 %v25157_v33, %v27809_v58  ;;  %19706 = vmatprep.subr.bf16.mxu1 %v25625_v6  ;;  %27810 = vst [vmem:[#allocation101_spill] sm:$0xff] %v25668_v38  ;;  %v12067_v0 = vand.u32 4294901760, %v12066_v20  ;;  %11666 = vmatmul.mubr.f32.vlgmr.msra.gmra.mrb[56].mxu0 %v27789_v3  ;;  %v27811_v31 = vand.u32 4294901760, %v25419_v13  ;;  %v27812_v49 = vand.u32 4294901760, %v25424_v15 }
 0x839   :  { %v27813_v60 = vand.u32 4294901760, %v25399_v21  ;;  %v27814_v14 = vand.u32 4294901760, %v25414_v50  ;;  %v25683_v6 = vpack.c.bf16 %v11941_v22, %v11934_v52  ;;  %v10785_v53 = vadd.f32 %v10784_v55, %v10783_v5  ;;  %19668 = vmatpush3.bf16.msra.mxu0 %v25649_v16  ;;  %11876 = vmatprep.mubr.f32.mxu0 %v11875_v54 }
 0x83a   :  { %v25675_v32 = vpack.c.bf16 %v27812_v49, %v27811_v31  ;;  %v27816_v3 = vand.u32 4294901760, %v25179_v17  ;;  %v27817_v15 = vand.u32 4294901760, %v25184_v8  ;;  %19670 = vmatprep.subr.bf16.mxu0 %v25642_v18  ;;  %v11948_v50 = vand.u32 4294901760, %v11947_v48 }
 0x83b   :  { %v25681_v58 = vpack.c.bf16 %v27814_v14, %v27813_v60  ;;  %27815 = vst [vmem:[#allocation131_spill] sm:$0xff] %v25683_v6  ;;  %19708 = vmatpush3.bf16.msra.mxu1 %v25651_v57  ;;  %v11955_v21 = vand.u32 4294901760, %v11954_v1  ;;  %v12074_v14 = vand.u32 4294901760, %v12073_v43  ;;  %v12081_v22 = vand.u32 4294901760, %v12080_v2 }
 0x83c   :  { %v11961_v13 = vsub.f32 %v25179_v17, %v27816_v3  ;;  %v11968_v27 = vsub.f32 %v25184_v8, %v27817_v15  ;;  %19710 = vmatprep.subr.bf16.mxu1 %v25668_v38  ;;  %v25695_v5 = vpack.c.bf16 %v12067_v0, %v12060_v63  ;;  %v27819_v55 = vand.u32 4294901760, %v25219_v36 }
 0x83d   :  { %v27821_v20 = vand.u32 4294901760, %v27820_v51  ;;  %v27822_v54 = vand.u32 4294901760, %v25466_v11  ;;  %v27823_v31 = vand.u32 4294901760, %v25483_v10  ;;  %19672 = vmatpush3.bf16.msra.mxu0 %v25681_v58  ;;  %v27824_v1 = vand.u32 4294901760, %v25444_v56 }
 0x83e   :  { %27818 = vst [vmem:[#allocation172_spill] sm:$0xff] %v25695_v5  ;;  %v12087_v62 = vsub.f32 %v25219_v36, %v27819_v55  ;;  %v27825_v43 = vand.u32 4294901760, %v25449_v34  ;;  %v11962_v63 = vand.u32 4294901760, %v11961_v13  ;;  %v11969_v0 = vand.u32 4294901760, %v11968_v27  ;;  %19674 = vmatprep.subr.bf16.mxu0 %v25675_v32  ;;  %v27829_v27 = vld [vmem:[#allocation156_spill] sm:$0xff] }
 0x83f   :  { %v12094_v52 = vsub.f32 %v27820_v51, %v27821_v20  ;;  %v25707_v48 = vpack.c.bf16 %v27823_v31, %v27822_v54  ;;  %v27826_v49 = vand.u32 4294901760, %v25239_v19  ;;  %19712 = vmatpush3.bf16.msra.mxu1 %v25683_v6  ;;  %v25721_v11 = vpack.c.bf16 %v11955_v21, %v11948_v50  ;;  %v27831_v54 = vld [vmem:[#allocation140_spill] sm:$0xff]  ;;  %v27833_v21 = vld [vmem:[#allocation93_spill] sm:$0xff] }
 0x840   :  { %v25714_v2 = vpack.c.bf16 %v27825_v43, %v27824_v1  ;;  %v25723_v10 = vpack.c.bf16 %v12081_v22, %v12074_v14  ;;  %v27828_v56 = vand.u32 4294901760, %v25256_v9  ;;  %v10786_v3 = vrot.slane %v10785_v53, 1  ;;  %19714 = vmatprep.subr.bf16.mxu1 %v25695_v5  ;;  %v27835_v22 = vld [vmem:[#allocation161_spill] sm:$0xff] }
 0x841   :  { %v11975_v60 = vsub.f32 %v25239_v19, %v27826_v49  ;;  %27827 = vst [vmem:[#allocation142_spill] sm:$0xff] %v25721_v11  ;;  %v12088_v13 = vand.u32 4294901760, %v12087_v62  ;;  %v12095_v15 = vand.u32 4294901760, %v12094_v52  ;;  %v27830_v55 = vand.u32 4294901760, %v27829_v27  ;;  %v27837_v49 = vld [vmem:[#allocation92_spill] sm:$0xff]  ;;  %v27839_v62 = vld [vmem:[#allocation63_spill] sm:$0xff] }
 0x842   :  { %v11982_v34 = vsub.f32 %v25256_v9, %v27828_v56  ;;  %v27832_v31 = vand.u32 4294901760, %v27831_v54  ;;  %v27834_v14 = vand.u32 4294901760, %v27833_v21  ;;  %v27836_v1 = vand.u32 4294901760, %v27835_v22  ;;  %19676 = vmatpush3.bf16.msra.mxu0 %v25714_v2  ;;  %v27841_v21 = vld [vmem:[#allocation141_spill] sm:$0xff] }
 0x843   :  { %v12101_v20 = vsub.f32 %v27829_v27, %v27830_v55  ;;  %v27838_v56 = vand.u32 4294901760, %v27837_v49  ;;  %v27840_v52 = vand.u32 4294901760, %v27839_v62  ;;  %v25748_v6 = vpack.c.bf16 %v11969_v0, %v11962_v63  ;;  %19716 = vmatpush3.bf16.msra.mxu1 %v25721_v11  ;;  %19678 = vmatprep.subr.bf16.mxu0 %v25707_v48 }
 0x844   :  { %v12108_v50 = vsub.f32 %v27831_v54, %v27832_v31  ;;  %v25739_v43 = vpack.c.bf16 %v27836_v1, %v27834_v14  ;;  %v11976_v55 = vand.u32 4294901760, %v11975_v60  ;;  %v11983_v31 = vand.u32 4294901760, %v11982_v34  ;;  %v27843_v1 = vld [vmem:[#allocation143_spill] sm:$0xff]  ;;  %19718 = vmatprep.subr.bf16.mxu1 %v25723_v10 }
 0x845   :  { %v25746_v5 = vpack.c.bf16 %v27840_v52, %v27838_v56  ;;  %v27842_v22 = vand.u32 4294901760, %v27841_v21  ;;  %v27844_v38 = vand.u32 4294901760, %v27843_v1  ;;  %v10787_v57 = vadd.f32 %v10786_v3, %v10785_v53  ;;  %v27845_v60 = vld [vmem:[#allocation167_spill] sm:$0xff]  ;;  %v27847_v52 = vld [vmem:[#allocation168_spill] sm:$0xff] }
 0x846   :  { %v25759_v56 = vpack.c.bf16 %v12095_v15, %v12088_v13  ;;  %v12102_v63 = vand.u32 4294901760, %v12101_v20  ;;  %v12109_v0 = vand.u32 4294901760, %v12108_v50  ;;  %v27846_v62 = vand.u32 4294901760, %v27845_v60  ;;  %v27853_v20 = vld [vmem:[#allocation171_spill] sm:$0xff]  ;;  %v27857_v60 = vld [vmem:[#allocation126_spill] sm:$0xff] }
 0x847   :  { %v11989_v14 = vsub.f32 %v27841_v21, %v27842_v22  ;;  %v11996_v49 = vsub.f32 %v27843_v1, %v27844_v38  ;;  %v27848_v11 = vand.u32 4294901760, %v27847_v52  ;;  %19680 = vmatpush3.bf16.msra.mxu0 %v25746_v5  ;;  %v27849_v22 = vld [vmem:[#allocation165_spill] sm:$0xff]  ;;  %v27852_v21 = vand.u32 4294901760, %v27851_v12  ;;  %19720 = vmatpush3.bf16.msra.mxu1 %v25748_v6 }
 0x848   :  { %v27850_v44 = vand.u32 4294901760, %v27849_v22  ;;  %19682 = vmatprep.subr.bf16.mxu0 %v25739_v43  ;;  %v25776_v53 = vpack.c.bf16 %v11983_v31, %v11976_v55  ;;  %v25778_v15 = vand.u32 4294901760, %v10787_v57  ;;  %19722 = vmatprep.subr.bf16.mxu1 %v25759_v56  ;;  %v27854_v12 = vand.u32 4294901760, %v27853_v20  ;;  %v27859_v55 = vld [vmem:[#allocation127_spill] sm:$0xff]  ;;  %v27863_v22 = vld [vmem:[#allocation134_spill] sm:$0xff] }
 0x849   :  { %v25765_v34 = vpack.c.bf16 %v27848_v11, %v27846_v62  ;;  %v11990_v3 = vand.u32 4294901760, %v11989_v14  ;;  %v11997_v13 = vand.u32 4294901760, %v11996_v49  ;;  %v25781_v11 = vpack.c.bf16 %v12109_v0, %v12102_v63  ;;  %v27861_v0 = vld [vmem:[#allocation133_spill] sm:$0xff] }
 0x84a   :  { %v25772_v38 = vpack.c.bf16 %v27852_v21, %v27850_v44  ;;  %v27855_v44 = vld [vmem:[#allocation162_spill] sm:$0xff]  ;;  %v27858_v62 = vand.u32 4294901760, %v27857_v60  ;;  %v27860_v31 = vand.u32 4294901760, %v27859_v55  ;;  %v25801_v63 = vsub.f32 %v10787_v57, %v25778_v15  ;;  %v27867_v57 = vld [vmem:[#allocation136_spill] sm:$0xff] }
 0x84b   :  { %v27856_v50 = vand.u32 4294901760, %v27855_v44  ;;  %19724 = vmatpush3.bf16.msra.mxu1 %v25776_v53  ;;  %v25798_v49 = vpack.c.bf16 %v11997_v13, %v11990_v3  ;;  %v27862_v52 = vand.u32 4294901760, %v27861_v0  ;;  %v27864_v20 = vand.u32 4294901760, %v27863_v22  ;;  %v27865_v13 = vld [vmem:[#allocation135_spill] sm:$0xff] }
 0x84c   :  { %19684 = vmatpush3.bf16.msra.mxu0 %v25772_v38  ;;  %v25794_v14 = vpack.c.bf16 %v27860_v31, %v27858_v62  ;;  %19726 = vmatprep.subr.bf16.mxu1 %v25781_v11  ;;  %v26999_v3 = vand.u32 4294901760, %v25801_v63  ;;  %v27866_v44 = vand.u32 4294901760, %v27865_v13  ;;  %v27869_v62 = vld [vmem:[#allocation137_spill] sm:$0xff]  ;;  %v27871_v31 = vld [vmem:[#allocation138_spill] sm:$0xff]  ;;  %v27873_v22 = vand.u32 4294901760, %v25583_v45 }
 0x84d   :  { %v25788_v21 = vpack.c.bf16 %v27856_v50, %v27854_v12  ;;  %19686 = vmatprep.subr.bf16.mxu0 %v25765_v34  ;;  %v25809_v12 = vpack.c.bf16 %v27864_v20, %v27862_v52  ;;  %v27868_v50 = vand.u32 4294901760, %v27867_v57  ;;  %v27870_v55 = vand.u32 4294901760, %v27869_v62  ;;  %v27874_v13 = vld [vmem:[#allocation105_spill] sm:$0xff] }
 0x84e   :  { %v27872_v0 = vand.u32 4294901760, %v27871_v31  ;;  %v11880_v20 = vsub.f32 %v25801_v63, %v26999_v3  ;;  %v25850_v31 = vpack.c.bf16 %v25461_v39, %v25431_v28 }
 0x84f   :  { %19728 = vmatpush3.bf16.msra.mxu1 %v25798_v49  ;;  %v25818_v60 = vpack.c.bf16 %v27868_v50, %v27866_v44  ;;  %v27875_v44 = vld [vmem:[#allocation128_spill] sm:$0xff]  ;;  %v27877_v50 = vld [vmem:[#allocation102_spill] sm:$0xff] }
 0x850   :  { %19688 = vmatpush3.bf16.msra.mxu0 %v25788_v21  ;;  %19762 = vmatprep.subr.bf16.mxu1 %v25619_v59  ;;  %v25827_v52 = vpack.c.bf16 %v27872_v0, %v27870_v55  ;;  %v25837_v57 = vpack.c.bf16 %v27875_v44, %v27874_v13  ;;  %v25844_v62 = vpack.c.bf16 %v25406_v4, %v27877_v50  ;;  %v11881_v55 = vand.u32 4294901760, %v11880_v20 }
 0x851   :  { %19690 = vmatprep.subr.bf16.mxu0 %v25794_v14  ;;  %27879 = vst [vmem:[#allocation93_spill] sm:$0xff] %v25850_v31  ;;  %v25857_v0 = vpack.c.bf16 %v25499_v29, %v25478_v24  ;;  %v25869_v20 = vpack.c.bf16 %v25534_v37, %v25529_v40 }
 0x852   :  { %12114 = vmatmul.mubr.f32.vlgmr.msra.gmra.mrb[58].mxu1 %v25778_v15  ;;  %27876 = vst [vmem:[#allocation156_spill] sm:$0xff] %v25837_v57  ;;  %27878 = vst [vmem:[#allocation140_spill] sm:$0xff] %v25844_v62 }
 0x853   :  { %19764 = vmatpush3.bf16.msra.mxu1 %v25649_v16  ;;  %12356 = vmatprep.mubr.f32.mxu1 %v27873_v22  ;;  %27880 = vst [vmem:[#allocation161_spill] sm:$0xff] %v25857_v0  ;;  %v25863_v22 = vpack.c.bf16 %v25509_v42, %v25504_v23  ;;  %27882 = vst [vmem:[#allocation63_spill] sm:$0xff] %v25869_v20 }
 0x854   :  { %19692 = vmatpush3.bf16.msra.mxu0 %v25809_v12  ;;  %19766 = vmatprep.subr.bf16.mxu1 %v25642_v18 }
 0x855   :  { %19694 = vmatprep.subr.bf16.mxu0 %v25818_v60  ;;  %27881 = vst [vmem:[#allocation92_spill] sm:$0xff] %v25863_v22 }
 0x857   :  { %19768 = vmatpush3.bf16.msra.mxu1 %v25681_v58 }
 0x858   :  { %19696 = vmatpush3.bf16.msra.mxu0 %v25827_v52  ;;  %19770 = vmatprep.subr.bf16.mxu1 %v25675_v32 }
 0x859   :  { %19730 = vmatprep.subr.bf16.mxu0 %v25837_v57  ;;  %v27885_v57 = vld [vmem:[#allocation48_spill] sm:$0xff] }
 0x85b   :  { %11882 = vmatmul.mubr.f32.vlgmr.msra.gmra.mrb[58].mxu0 %v11881_v55  ;;  %19772 = vmatpush3.bf16.msra.mxu1 %v25714_v2  ;;  %v27883_v55 = vld [vmem:[#allocation160_spill] sm:$0xff] }
 0x85c   :  { %19732 = vmatpush3.bf16.msra.mxu0 %v25844_v62  ;;  %12249 = vmatprep.mubr.f32.mxu0 %v25583_v45  ;;  %v25875_v45 = vpack.c.bf16 %v25558_v26, %v25544_v41  ;;  %v10802_v3 = vmul.f32 %v27883_v55, %v27883_v55  ;;  %v10806_v55 = vmul.f32 %v27885_v57, %v27885_v57 }
 0x85d   :  { %19734 = vmatprep.subr.bf16.mxu0 %v25850_v31  ;;  %19774 = vmatprep.subr.bf16.mxu1 %v25707_v48  ;;  %v27884_v31 = vld [vmem:[#allocation43_spill] sm:$0xff] }
 0x85e   :  { %v10798_v62 = vmul.f32 %v27884_v31, %v27884_v31 }
 0x85f   :  { %19776 = vmatpush3.bf16.msra.mxu1 %v25746_v5 }
 0x860   :  { %19736 = vmatpush3.bf16.msra.mxu0 %v25857_v0  ;;  %19778 = vmatprep.subr.bf16.mxu1 %v25739_v43  ;;  %v25883_v0 = vpack.c.bf16 %v25109_v7, %v27786_v61  ;;  %v25899_v61 = vpack.c.bf16 %v27806_v35, %v25142_v30  ;;  %v27886_v7 = vld [vmem:[#allocation54_spill] sm:$0xff]  ;;  %v25913_v30 = vpack.c.bf16 %v25184_v8, %v25179_v17  ;;  %v27888_v8 = vand.u32 4294901760, %v25801_v63 }
 0x861   :  { %19738 = vmatprep.subr.bf16.mxu0 %v25863_v22  ;;  %v25889_v22 = vpack.c.bf16 %v25137_v25, %v25114_v46  ;;  %v25905_v46 = vpack.c.bf16 %v25157_v33, %v25152_v47  ;;  %v10810_v57 = vmul.f32 %v27886_v7, %v27886_v7  ;;  %v25919_v47 = vpack.c.bf16 %v27820_v51, %v25219_v36  ;;  %v27889_v51 = vld [vmem:[#allocation141_spill] sm:$0xff]  ;;  %v27928_v7 = vld [vmem:[#allocation104_spill] sm:$0xff] }
 0x862   :  { %v25925_v35 = vpack.c.bf16 %v25256_v9, %v25239_v19  ;;  %v25932_v36 = vpack.c.bf16 %v27831_v54, %v27829_v27  ;;  %v25939_v9 = vpack.c.bf16 %v27843_v1, %v27889_v51  ;;  %v27891_v19 = vld [vmem:[#allocation132_spill] sm:$0xff]  ;;  %v27895_v54 = vand.u32 4294901760, %v27877_v50 }
 0x863   :  { %19780 = vmatpush3.bf16.msra.mxu1 %v25772_v38  ;;  %v27896_v1 = vand.u32 4294901760, %v25406_v4  ;;  %v27901_v4 = vand.u32 4294901760, %v25478_v24  ;;  %v27902_v50 = vand.u32 4294901760, %v25499_v29  ;;  %v27907_v24 = vand.u32 4294901760, %v25529_v40 }
 0x864   :  { %19740 = vmatpush3.bf16.msra.mxu0 %v25869_v20  ;;  %19782 = vmatprep.subr.bf16.mxu1 %v25765_v34  ;;  %v10822_v20 = vadd.f32 %v10802_v3, %v10798_v62  ;;  %27887 = vst [vmem:[#allocation143_spill] sm:$0xff] %v25932_v36  ;;  %27890 = vst [vmem:[#allocation167_spill] sm:$0xff] %v25939_v9  ;;  %v27892_v3 = vand.u32 4294901760, %v27874_v13  ;;  %v27898_v13 = vand.u32 4294901760, %v25431_v28  ;;  %v27905_v28 = vand.u32 4294901760, %v25509_v42 }
 0x865   :  { %19742 = vmatprep.subr.bf16.mxu0 %v25875_v45  ;;  %v27908_v29 = vand.u32 4294901760, %v25534_v37  ;;  %v27911_v42 = vand.u32 4294901760, %v25558_v26  ;;  %v27914_v37 = vld [vmem:[#allocation36_spill] sm:$0xff] }
 0x866   :  { %v10823_v25 = vadd.f32 %v10822_v20, %v10806_v55  ;;  %v25956_v20 = vpack.c.bf16 %v27896_v1, %v27895_v54  ;;  %v27916_v1 = vld [vmem:[#allocation144_spill] sm:$0xff] }
 0x867   :  { %19784 = vmatpush3.bf16.msra.mxu1 %v25788_v21 }
 0x868   :  { %19744 = vmatpush3.bf16.msra.mxu0 %v25883_v0  ;;  %19786 = vmatprep.subr.bf16.mxu1 %v25794_v14  ;;  %v10824_v33 = vadd.f32 %v10823_v25, %v10810_v57  ;;  %v27893_v57 = vand.u32 4294901760, %v27875_v44  ;;  %27897 = vst [vmem:[#allocation165_spill] sm:$0xff] %v25956_v20  ;;  %v27899_v44 = vand.u32 4294901760, %v25461_v39  ;;  %v27904_v39 = vand.u32 4294901760, %v25504_v23 }
 0x869   :  { %19746 = vmatprep.subr.bf16.mxu0 %v25889_v22  ;;  %v27910_v23 = vand.u32 4294901760, %v25544_v41 }
 0x86a   :  { %v10825_v17 = vrot.slane %v10824_v33, 4  ;;  %v25947_v62 = vpack.c.bf16 %v27893_v57, %v27892_v3  ;;  %v25964_v55 = vpack.c.bf16 %v27899_v44, %v27898_v13  ;;  %v27913_v3 = vld [vmem:[#allocation34_spill] sm:$0xff]  ;;  %v10797_v57 = vmul.f32 %v27914_v37, %v27914_v37  ;;  %v27917_v44 = vld [vmem:[#allocation91_spill] sm:$0xff] }
 0x86b   :  { %19788 = vmatpush3.bf16.msra.mxu1 %v25809_v12  ;;  %v25998_v51 = vpack.c.bf16 %v27911_v42, %v27910_v23  ;;  %v10801_v40 = vmul.f32 %v27913_v3, %v27913_v3  ;;  %v27922_v42 = vld [vmem:[#allocation146_spill] sm:$0xff]  ;;  %v27931_v3 = vld [vmem:[#allocation31_spill] sm:$0xff] }
 0x86c   :  { %19748 = vmatpush3.bf16.msra.mxu0 %v25899_v61  ;;  %19790 = vmatprep.subr.bf16.mxu1 %v25818_v60  ;;  %27894 = vst [vmem:[#allocation168_spill] sm:$0xff] %v25947_v62  ;;  %v10826_v27 = vadd.f32 %v10825_v17, %v10824_v33  ;;  %27900 = vst [vmem:[#allocation166_spill] sm:$0xff] %v25964_v55  ;;  %v25974_v33 = vpack.c.bf16 %v27902_v50, %v27901_v4  ;;  %v27918_v4 = vld [vmem:[#allocation147_spill] sm:$0xff] }
 0x86d   :  { %19750 = vmatprep.subr.bf16.mxu0 %v25905_v46  ;;  %v25982_v17 = vpack.c.bf16 %v27905_v28, %v27904_v39  ;;  %27912 = vst [vmem:[#allocation127_spill] sm:$0xff] %v25998_v51  ;;  %v10813_v41 = vadd.f32 %v10801_v40, %v10797_v57  ;;  %v27919_v39 = vld [vmem:[#allocation148_spill] sm:$0xff]  ;;  %v27924_v57 = vld [vmem:[#allocation149_spill] sm:$0xff]  ;;  %v27935_v37 = vld [vmem:[#allocation39_spill] sm:$0xff] }
 0x86e   :  { %v10827_v25 = vrot.slane %v10826_v27, 2  ;;  %27903 = vst [vmem:[#allocation171_spill] sm:$0xff] %v25974_v33 }
 0x86f   :  { %19792 = vmatpush3.bf16.msra.mxu1 %v25827_v52  ;;  %27906 = vst [vmem:[#allocation162_spill] sm:$0xff] %v25982_v17 }
 0x870   :  { %19752 = vmatpush3.bf16.msra.mxu0 %v25913_v30  ;;  %19826 = vmatprep.subr.bf16.mxu1 %v25619_v59 }
 0x871   :  { %19754 = vmatprep.subr.bf16.mxu0 %v25919_v47 }
 0x872   :  { %12360 = vmatmul.mubr.f32.vlgmr.msra.gmra.mrb[60].mxu1 %v27888_v8  ;;  %v25990_v8 = vpack.c.bf16 %v27908_v29, %v27907_v24  ;;  %v27921_v29 = vld [vmem:[#allocation153_spill] sm:$0xff] }
 0x873   :  { %19828 = vmatpush3.bf16.msra.mxu1 %v25649_v16  ;;  %12630 = vmatprep.mubr.f32.mxu1 %v27891_v19 }
 0x874   :  { %19756 = vmatpush3.bf16.msra.mxu0 %v25925_v35  ;;  %19830 = vmatprep.subr.bf16.mxu1 %v25642_v18  ;;  %27909 = vst [vmem:[#allocation126_spill] sm:$0xff] %v25990_v8 }
 0x875   :  { %19758 = vmatprep.subr.bf16.mxu0 %v25932_v36 }
 0x877   :  { %19832 = vmatpush3.bf16.msra.mxu1 %v25681_v58 }
 0x878   :  { %19760 = vmatpush3.bf16.msra.mxu0 %v25939_v9  ;;  %19834 = vmatprep.subr.bf16.mxu1 %v25675_v32  ;;  %v27968_v9 = vld [vmem:[#allocation75_spill] sm:$0xff] }
 0x879   :  { %19794 = vmatprep.subr.bf16.mxu0 %v25947_v62 }
 0x87b   :  { %12252 = vmatmul.mubr.f32.vlgmr.msra.gmra.mrb[60].mxu0 %v25801_v63  ;;  %19836 = vmatpush3.bf16.msra.mxu1 %v25714_v2  ;;  %v10828_v63 = vadd.f32 %v10827_v25, %v10826_v27  ;;  %v27915_v27 = vld [vmem:[#allocation47_spill] sm:$0xff]  ;;  %v10809_v25 = vmul.f32 %v27917_v44, %v27917_v44  ;;  %v27929_v44 = vld [vmem:[#allocation30_spill] sm:$0xff] }
 0x87c   :  { %19796 = vmatpush3.bf16.msra.mxu0 %v25956_v20  ;;  %12526 = vmatprep.mubr.f32.mxu0 %v27891_v19  ;;  %v10805_v54 = vmul.f32 %v27915_v27, %v27915_v27  ;;  %v27930_v27 = vld [vmem:[#allocation57_spill] sm:$0xff] }
 0x87d   :  { %19798 = vmatprep.subr.bf16.mxu0 %v25964_v55  ;;  %19838 = vmatprep.subr.bf16.mxu1 %v25707_v48  ;;  %v10829_v19 = vrot.slane %v10828_v63, 1 }
 0x87e   :  { %v10814_v13 = vadd.f32 %v10813_v41, %v10805_v54  ;;  %v27925_v41 = vld [vmem:[#allocation158_spill] sm:$0xff] }
 0x87f   :  { %19840 = vmatpush3.bf16.msra.mxu1 %v25746_v5  ;;  %v10830_v26 = vadd.f32 %v10829_v19, %v10828_v63  ;;  %v27920_v63 = vld [vmem:[#allocation151_spill] sm:$0xff]  ;;  %v27923_v19 = vld [vmem:[#allocation157_spill] sm:$0xff] }
 0x880   :  { %19800 = vmatpush3.bf16.msra.mxu0 %v25974_v33  ;;  %19842 = vmatprep.subr.bf16.mxu1 %v25739_v43  ;;  %v10815_v28 = vadd.f32 %v10814_v13, %v10809_v25  ;;  %v27927_v13 = vld [vmem:[#allocation163_spill] sm:$0xff]  ;;  %v27967_v33 = vld [vmem:[#allocation170_spill] sm:$0xff] }
 0x881   :  { %19802 = vmatprep.subr.bf16.mxu0 %v25982_v17  ;;  %v26017_v50 = vand.u32 4294901760, %v10830_v26 }
 0x882   :  { %v10816_v23 = vrot.slane %v10815_v28, 4 }
 0x883   :  { %19844 = vmatpush3.bf16.msra.mxu1 %v25772_v38  ;;  %v26024_v24 = vsub.f32 %v10830_v26, %v26017_v50  ;;  %v27926_v26 = vld [vmem:[#allocation95_spill] sm:$0xff] }
 0x884   :  { %19804 = vmatpush3.bf16.msra.mxu0 %v25990_v8  ;;  %19846 = vmatprep.subr.bf16.mxu1 %v25765_v34  ;;  %v10817_v54 = vadd.f32 %v10816_v23, %v10815_v28  ;;  %v27932_v23 = vld [vmem:[#allocation159_spill] sm:$0xff]  ;;  %v27961_v8 = vld [vmem:[#allocation78_spill] sm:$0xff] }
 0x885   :  { %19806 = vmatprep.subr.bf16.mxu0 %v25998_v51  ;;  %v12736_v40 = vand.u32 4294901760, %v26024_v24  ;;  %v27959_v51 = vld [vmem:[#allocation61_spill] sm:$0xff] }
 0x887   :  { %19848 = vmatpush3.bf16.msra.mxu1 %v25788_v21  ;;  %v12737_v25 = vsub.f32 %v26024_v24, %v12736_v40 }
 0x888   :  { %19808 = vmatpush3.bf16.msra.mxu0 %v27916_v1  ;;  %19850 = vmatprep.subr.bf16.mxu1 %v25794_v14  ;;  %v27958_v1 = vld [vmem:[#allocation71_spill] sm:$0xff] }
 0x889   :  { %19810 = vmatprep.subr.bf16.mxu0 %v27918_v4  ;;  %v12738_v28 = vand.u32 4294901760, %v12737_v25  ;;  %v27939_v25 = vld [vmem:[#allocation45_spill] sm:$0xff] }
 0x88b   :  { %19852 = vmatpush3.bf16.msra.mxu1 %v25809_v12 }
 0x88c   :  { %19812 = vmatpush3.bf16.msra.mxu0 %v27919_v39  ;;  %19854 = vmatprep.subr.bf16.mxu1 %v25818_v60  ;;  %v27954_v39 = vld [vmem:[#allocation59_spill] sm:$0xff] }
 0x88d   :  { %19814 = vmatprep.subr.bf16.mxu0 %v27920_v63  ;;  %v27949_v63 = vld [vmem:[#allocation67_spill] sm:$0xff] }
 0x88f   :  { %19856 = vmatpush3.bf16.msra.mxu1 %v25827_v52 }
 0x890   :  { %19816 = vmatpush3.bf16.msra.mxu0 %v27921_v29  ;;  %19890 = vmatprep.subr.bf16.mxu1 %v27923_v19  ;;  %v10818_v19 = vrot.slane %v10817_v54, 2  ;;  %v27947_v29 = vld [vmem:[#allocation68_spill] sm:$0xff] }
 0x891   :  { %19818 = vmatprep.subr.bf16.mxu0 %v27922_v42  ;;  %v27943_v42 = vld [vmem:[#allocation52_spill] sm:$0xff] }
 0x892   :  { %12632 = vmatmul.mubr.f32.vlgmr.msra.gmra.mrb[62].mxu1 %v25778_v15  ;;  %v10819_v31 = vadd.f32 %v10818_v19, %v10817_v54  ;;  %v27944_v54 = vld [vmem:[#allocation53_spill] sm:$0xff]  ;;  %v27946_v19 = vld [vmem:[#allocation44_spill] sm:$0xff] }
 0x893   :  { %19892 = vmatpush3.bf16.msra.mxu1 %v27925_v41  ;;  %12975 = vmatprep.mubr.f32.mxu1 %v26017_v50  ;;  %v27933_v41 = vld [vmem:[#allocation40_spill] sm:$0xff] }
 0x894   :  { %19820 = vmatpush3.bf16.msra.mxu0 %v27924_v57  ;;  %19894 = vmatprep.subr.bf16.mxu1 %v27927_v13  ;;  %v27934_v13 = vld [vmem:[#allocation100_spill] sm:$0xff]  ;;  %v27941_v57 = vld [vmem:[#allocation49_spill] sm:$0xff] }
 0x895   :  { %19822 = vmatprep.subr.bf16.mxu0 %v27926_v26  ;;  %v27938_v26 = vld [vmem:[#allocation32_spill] sm:$0xff] }
 0x897   :  { %19896 = vmatpush3.bf16.msra.mxu1 %v27929_v44  ;;  %v27937_v44 = vld [vmem:[#allocation46_spill] sm:$0xff] }
 0x898   :  { %19824 = vmatpush3.bf16.msra.mxu0 %v27928_v7  ;;  %19898 = vmatprep.subr.bf16.mxu1 %v27931_v3  ;;  %v27936_v7 = vld [vmem:[#allocation35_spill] sm:$0xff]  ;;  %v10820_v3 = vrot.slane %v10819_v31, 1 }
 0x899   :  { %19858 = vmatprep.subr.bf16.mxu0 %v27930_v27 }
 0x89b   :  { %12528 = vmatmul.mubr.f32.vlgmr.msra.gmra.mrb[62].mxu0 %v25778_v15  ;;  %19900 = vmatpush3.bf16.msra.mxu1 %v27933_v41  ;;  %v27940_v15 = vld [vmem:[#allocation38_spill] sm:$0xff]  ;;  %v10821_v41 = vadd.f32 %v10820_v3, %v10819_v31  ;;  %v27952_v3 = vld [vmem:[#allocation64_spill] sm:$0xff] }
 0x89c   :  { %19860 = vmatpush3.bf16.msra.mxu0 %v27932_v23  ;;  %12739 = vmatprep.mubr.f32.mxu0 %v12738_v28  ;;  %v27942_v28 = vld [vmem:[#allocation37_spill] sm:$0xff] }
 0x89d   :  { %19862 = vmatprep.subr.bf16.mxu0 %v27934_v13  ;;  %19902 = vmatprep.subr.bf16.mxu1 %v27935_v37  ;;  %v27945_v37 = vld [vmem:[#allocation58_spill] sm:$0xff] }
 0x89f   :  { %19904 = vmatpush3.bf16.msra.mxu1 %v27937_v44  ;;  %v26058_v44 = vand.u32 4294901760, %v10821_v41 }
 0x8a0   :  { %19864 = vmatpush3.bf16.msra.mxu0 %v27936_v7  ;;  %19906 = vmatprep.subr.bf16.mxu1 %v27939_v25  ;;  %v27948_v25 = vld [vmem:[#allocation56_spill] sm:$0xff] }
 0x8a1   :  { %19866 = vmatprep.subr.bf16.mxu0 %v27938_v26  ;;  %v26065_v31 = vsub.f32 %v10821_v41, %v26058_v44  ;;  %v27956_v41 = vld [vmem:[#allocation66_spill] sm:$0xff] }
 0x8a3   :  { %19908 = vmatpush3.bf16.msra.mxu1 %v27941_v57  ;;  %v27950_v57 = vld [vmem:[#allocation41_spill] sm:$0xff]  ;;  %v12742_v4 = vand.u32 4294901760, %v26065_v31 }
 0x8a4   :  { %19868 = vmatpush3.bf16.msra.mxu0 %v27940_v15  ;;  %19910 = vmatprep.subr.bf16.mxu1 %v27943_v42  ;;  %v27951_v42 = vld [vmem:[#allocation69_spill] sm:$0xff] }
 0x8a5   :  { %19870 = vmatprep.subr.bf16.mxu0 %v27942_v28 }
 0x8a7   :  { %19912 = vmatpush3.bf16.msra.mxu1 %v27945_v37  ;;  %v27953_v37 = vld [vmem:[#allocation80_spill] sm:$0xff] }
 0x8a8   :  { %19872 = vmatpush3.bf16.msra.mxu0 %v27944_v54  ;;  %19914 = vmatprep.subr.bf16.mxu1 %v27947_v29  ;;  %v12743_v29 = vsub.f32 %v26065_v31, %v12742_v4 }
 0x8a9   :  { %19874 = vmatprep.subr.bf16.mxu0 %v27946_v19 }
 0x8ab   :  { %19916 = vmatpush3.bf16.msra.mxu1 %v27949_v63  ;;  %v27955_v63 = vld [vmem:[#allocation55_spill] sm:$0xff] }
 0x8ac   :  { %19876 = vmatpush3.bf16.msra.mxu0 %v27948_v25  ;;  %19918 = vmatprep.subr.bf16.mxu1 %v27951_v42  ;;  %v27957_v42 = vld [vmem:[#allocation60_spill] sm:$0xff] }
 0x8ad   :  { %19878 = vmatprep.subr.bf16.mxu0 %v27950_v57 }
 0x8af   :  { %19920 = vmatpush3.bf16.msra.mxu1 %v27953_v37  ;;  %v12744_v37 = vand.u32 4294901760, %v12743_v29  ;;  %v27962_v29 = vld [vmem:[#allocation65_spill] sm:$0xff] }
 0x8b0   :  { %19880 = vmatpush3.bf16.msra.mxu0 %v27952_v3  ;;  %19954 = vmatprep.subr.bf16.mxu1 %v27930_v27 }
 0x8b1   :  { %19882 = vmatprep.subr.bf16.mxu0 %v27954_v39 }
 0x8b2   :  { %12977 = vmatmul.mubr.f32.vlgmr.msra.gmra.mrb[64].mxu1 %v26058_v44 }
 0x8b3   :  { %19956 = vmatpush3.bf16.msra.mxu1 %v27932_v23  ;;  %13219 = vmatprep.mubr.f32.mxu1 %v12736_v40  ;;  %v27960_v40 = vld [vmem:[#allocation74_spill] sm:$0xff] }
 0x8b4   :  { %19884 = vmatpush3.bf16.msra.mxu0 %v27955_v63  ;;  %19958 = vmatprep.subr.bf16.mxu1 %v27934_v13 }
 0x8b5   :  { %19886 = vmatprep.subr.bf16.mxu0 %v27956_v41 }
 0x8b7   :  { %19960 = vmatpush3.bf16.msra.mxu1 %v27936_v7 }
 0x8b8   :  { %19888 = vmatpush3.bf16.msra.mxu0 %v27957_v42  ;;  %19962 = vmatprep.subr.bf16.mxu1 %v27938_v26 }
 0x8b9   :  { %19922 = vmatprep.subr.bf16.mxu0 %v27958_v1  ;;  %v27963_v1 = vld [vmem:[#allocation94_spill] sm:$0xff] }
 0x8bb   :  { %12745 = vmatmul.mubr.f32.vlgmr.msra.gmra.mrb[64].mxu0 %v12744_v37  ;;  %19964 = vmatpush3.bf16.msra.mxu1 %v27940_v15  ;;  %v10804_v37 = vmul.f32 %v27963_v1, %v27963_v1 }
 0x8bc   :  { %19924 = vmatpush3.bf16.msra.mxu0 %v27959_v51  ;;  %13112 = vmatprep.mubr.f32.mxu0 %v26024_v24  ;;  %v27964_v51 = vld [vmem:[#allocation70_spill] sm:$0xff]  ;;  %v27965_v24 = vld [vmem:[#allocation72_spill] sm:$0xff] }
 0x8bd   :  { %19926 = vmatprep.subr.bf16.mxu0 %v27960_v40  ;;  %19966 = vmatprep.subr.bf16.mxu1 %v27942_v28  ;;  %v27966_v40 = vld [vmem:[#allocation169_spill] sm:$0xff] }
 0x8be   :  { %v10800_v17 = vmul.f32 %v27966_v40, %v27966_v40  ;;  %v27971_v40 = vld [vmem:[#allocation76_spill] sm:$0xff] }
 0x8bf   :  { %19968 = vmatpush3.bf16.msra.mxu1 %v27944_v54 }
 0x8c0   :  { %19928 = vmatpush3.bf16.msra.mxu0 %v27961_v8  ;;  %19970 = vmatprep.subr.bf16.mxu1 %v27946_v19  ;;  %v10808_v8 = vmul.f32 %v27967_v33, %v27967_v33  ;;  %v10840_v20 = vadd.f32 %v10804_v37, %v10800_v17  ;;  %v27972_v33 = vld [vmem:[#allocation77_spill] sm:$0xff] }
 0x8c1   :  { %19930 = vmatprep.subr.bf16.mxu0 %v27962_v29 }
 0x8c2   :  { %v17932_v55 = vpop.f32.mrb[52].mxu1  ;;  %v10841_v1 = vadd.f32 %v10840_v20, %v10808_v8  ;;  %v27974_v20 = vld [vmem:[#allocation81_spill] sm:$0xff] }
 0x8c3   :  { %19972 = vmatpush3.bf16.msra.mxu1 %v27948_v25  ;;  %v17933_v29 = vpop.f32.mrb[53].mxu1 }
 0x8c4   :  { %19932 = vmatpush3.bf16.msra.mxu0 %v27964_v51  ;;  %19974 = vmatprep.subr.bf16.mxu1 %v27950_v57  ;;  %v17934_v62 = vadd.f32 %v17933_v29, %v17932_v55  ;;  %v27969_v51 = vld [vmem:[#allocation73_spill] sm:$0xff]  ;;  %v27973_v29 = vld [vmem:[#allocation79_spill] sm:$0xff] }
 0x8c5   :  { %19934 = vmatprep.subr.bf16.mxu0 %v27965_v24  ;;  %v27970_v24 = vld [vmem:[#allocation130_spill] sm:$0xff] }
 0x8c6   :  { %v10812_v36 = vmul.f32 %v27970_v24, %v27970_v24 }
 0x8c7   :  { %19976 = vmatpush3.bf16.msra.mxu1 %v27952_v3 }
 0x8c8   :  { %19936 = vmatpush3.bf16.msra.mxu0 %v27968_v9  ;;  %19978 = vmatprep.subr.bf16.mxu1 %v27954_v39  ;;  %v10842_v17 = vadd.f32 %v10841_v1, %v10812_v36  ;;  %v27977_v1 = vld [vmem:[#allocation139_spill] sm:$0xff] }
 0x8c9   :  { %19938 = vmatprep.subr.bf16.mxu0 %v27969_v51 }
 0x8ca   :  { %v17897_v55 = vpop.f32.mrb[52].mxu0  ;;  %v10843_v8 = vrot.slane %v10842_v17, 4 }
 0x8cb   :  { %19980 = vmatpush3.bf16.msra.mxu1 %v27955_v63  ;;  %v17898_v9 = vpop.f32.mrb[53].mxu0 }
 0x8cc   :  { %19940 = vmatpush3.bf16.msra.mxu0 %v27971_v40  ;;  %19982 = vmatprep.subr.bf16.mxu1 %v27956_v41  ;;  %v17899_v37 = vadd.f32 %v17898_v9, %v17897_v55  ;;  %v27975_v40 = vld [vmem:[#allocation82_spill] sm:$0xff]  ;;  %v10844_v36 = vadd.f32 %v10843_v8, %v10842_v17  ;;  %v27978_v55 = vld [vmem:[#allocation84_spill] sm:$0xff] }
 0x8cd   :  { %19942 = vmatprep.subr.bf16.mxu0 %v27972_v33  ;;  %v27976_v33 = vld [vmem:[#allocation83_spill] sm:$0xff] }
 0x8ce   :  { %v11254_v51 = vadd.f32 %v17934_v62, %v17899_v37  ;;  %v10845_v62 = vrot.slane %v10844_v36, 2  ;;  %v27986_v37 = vld [vmem:[#allocation106_spill] sm:$0xff] }
 0x8cf   :  { %19984 = vmatpush3.bf16.msra.mxu1 %v27957_v42 }
 0x8d0   :  { %19944 = vmatpush3.bf16.msra.mxu0 %v27973_v29  ;;  %20018 = vmatprep.subr.bf16.mxu1 %v27930_v27  ;;  %v27979_v27 = vld [vmem:[#allocation85_spill] sm:$0xff]  ;;  %v27987_v29 = vld [vmem:[#allocation90_spill] sm:$0xff] }
 0x8d1   :  { %19946 = vmatprep.subr.bf16.mxu0 %v27974_v20 }
 0x8d2   :  { %13223 = vmatmul.mubr.f32.vlgmr.msra.gmra.mrb[66].mxu1 %v12742_v4  ;;  %v27980_v4 = vld [vmem:[#allocation86_spill] sm:$0xff] }
 0x8d3   :  { %20020 = vmatpush3.bf16.msra.mxu1 %v27932_v23  ;;  %13493 = vmatprep.mubr.f32.mxu1 %v26017_v50  ;;  %v10846_v23 = vadd.f32 %v10845_v62, %v10844_v36  ;;  %v27988_v36 = vld [vmem:[#allocation145_spill] sm:$0xff]  ;;  %v27990_v62 = vld [vmem:[#allocation150_spill] sm:$0xff] }
 0x8d4   :  { %19948 = vmatpush3.bf16.msra.mxu0 %v27975_v40  ;;  %20022 = vmatprep.subr.bf16.mxu1 %v27934_v13  ;;  %v27981_v13 = vld [vmem:[#allocation87_spill] sm:$0xff] }
 0x8d5   :  { %19950 = vmatprep.subr.bf16.mxu0 %v27976_v33 }
 0x8d7   :  { %20024 = vmatpush3.bf16.msra.mxu1 %v27936_v7  ;;  %v27982_v7 = vld [vmem:[#allocation88_spill] sm:$0xff] }
 0x8d8   :  { %19952 = vmatpush3.bf16.msra.mxu0 %v27977_v1  ;;  %20026 = vmatprep.subr.bf16.mxu1 %v27938_v26  ;;  %v10847_v26 = vrot.slane %v10846_v23, 1  ;;  %v27989_v1 = vld [vmem:[#allocation107_spill] sm:$0xff] }
 0x8d9   :  { %19986 = vmatprep.subr.bf16.mxu0 %v27978_v55  ;;  %v10811_v55 = vmul.f32 %v27989_v1, %v27989_v1 }
 0x8db   :  { %13115 = vmatmul.mubr.f32.vlgmr.msra.gmra.mrb[66].mxu0 %v26065_v31  ;;  %20028 = vmatpush3.bf16.msra.mxu1 %v27940_v15  ;;  %v27983_v31 = vld [vmem:[#allocation103_spill] sm:$0xff]  ;;  %v27985_v15 = vld [vmem:[#allocation129_spill] sm:$0xff] }
 0x8dc   :  { %19988 = vmatpush3.bf16.msra.mxu0 %v27979_v27  ;;  %13389 = vmatprep.mubr.f32.mxu0 %v26017_v50  ;;  %v10803_v17 = vmul.f32 %v27983_v31, %v27983_v31  ;;  %v27984_v50 = vld [vmem:[#allocation89_spill] sm:$0xff]  ;;  %v10799_v9 = vmul.f32 %v27985_v15, %v27985_v15  ;;  %v27991_v27 = vld [vmem:[#allocation152_spill] sm:$0xff] }
 0x8dd   :  { %19990 = vmatprep.subr.bf16.mxu0 %v27980_v4  ;;  %20030 = vmatprep.subr.bf16.mxu1 %v27942_v28  ;;  %v10807_v28 = vmul.f32 %v27986_v37, %v27986_v37  ;;  %v27992_v4 = vld [vmem:[#allocation154_spill] sm:$0xff] }
 0x8de   :  { %v10831_v20 = vadd.f32 %v10803_v17, %v10799_v9  ;;  %v27994_v17 = vld [vmem:[#allocation51_spill] sm:$0xff]  ;;  %v27995_v9 = vld [vmem:[#allocation108_spill] sm:$0xff] }
 0x8df   :  { %20032 = vmatpush3.bf16.msra.mxu1 %v27944_v54 }
 0x8e0   :  { %19992 = vmatpush3.bf16.msra.mxu0 %v27981_v13  ;;  %20034 = vmatprep.subr.bf16.mxu1 %v27946_v19  ;;  %v10848_v19 = vadd.f32 %v10847_v26, %v10846_v23  ;;  %v10832_v33 = vadd.f32 %v10831_v20, %v10807_v28  ;;  %v27993_v26 = vld [vmem:[#allocation50_spill] sm:$0xff] }
 0x8e1   :  { %19994 = vmatprep.subr.bf16.mxu0 %v27982_v7  ;;  %v28000_v20 = vld [vmem:[#allocation62_spill] sm:$0xff] }
 0x8e3   :  { %20036 = vmatpush3.bf16.msra.mxu1 %v27948_v25  ;;  %v26151_v25 = vand.u32 4294901760, %v10848_v19 }
 0x8e4   :  { %19996 = vmatpush3.bf16.msra.mxu0 %v27984_v50  ;;  %20038 = vmatprep.subr.bf16.mxu1 %v27950_v57  ;;  %v10833_v57 = vadd.f32 %v10832_v33, %v10811_v55  ;;  %v28002_v33 = vld [vmem:[#allocation29_spill] sm:$0xff]  ;;  %v28003_v55 = vld [vmem:[#allocation164_spill] sm:$0xff] }
 0x8e5   :  { %19998 = vmatprep.subr.bf16.mxu0 %v27987_v29  ;;  %v18002_v54 = vpop.f32.mrb[54].mxu1  ;;  %v26158_v13 = vsub.f32 %v10848_v19, %v26151_v25  ;;  %v27998_v19 = vld [vmem:[#allocation33_spill] sm:$0xff] }
 0x8e6   :  { %v18003_v8 = vpop.f32.mrb[55].mxu1 }
 0x8e7   :  { %v18004_v40 = vadd.f32 %v18003_v8, %v18002_v54  ;;  %20040 = vmatpush3.bf16.msra.mxu1 %v27952_v3  ;;  %v27997_v54 = vld [vmem:[#allocation109_spill] sm:$0xff] }
 0x8e8   :  { %20000 = vmatpush3.bf16.msra.mxu0 %v27988_v36  ;;  %20042 = vmatprep.subr.bf16.mxu1 %v27954_v39  ;;  %v10834_v39 = vrot.slane %v10833_v57, 4  ;;  %v28001_v36 = vld [vmem:[#allocation28_spill] sm:$0xff] }
 0x8e9   :  { %20002 = vmatprep.subr.bf16.mxu0 %v27990_v62 }
 0x8ea   :  { %v10835_v29 = vadd.f32 %v10834_v39, %v10833_v57  ;;  %v28005_v57 = vld [vmem:[#allocation131_spill] sm:$0xff] }
 0x8eb   :  { %20044 = vmatpush3.bf16.msra.mxu1 %v27955_v63  ;;  %v17967_v23 = vpop.f32.mrb[54].mxu0  ;;  %v13598_v63 = vand.u32 4294901760, %v26158_v13 }
 0x8ec   :  { %20004 = vmatpush3.bf16.msra.mxu0 %v27991_v27  ;;  %20046 = vmatprep.subr.bf16.mxu1 %v27956_v41  ;;  %v17968_v3 = vpop.f32.mrb[55].mxu0  ;;  %v27996_v41 = vld [vmem:[#allocation155_spill] sm:$0xff]  ;;  %v10836_v8 = vrot.slane %v10835_v29, 2  ;;  %v28004_v27 = vld [vmem:[#allocation101_spill] sm:$0xff] }
 0x8ed   :  { %20006 = vmatprep.subr.bf16.mxu0 %v27992_v4  ;;  %v17969_v7 = vadd.f32 %v17968_v3, %v17967_v23  ;;  %v28006_v23 = vld [vmem:[#allocation172_spill] sm:$0xff] }
 0x8ee   :  { %v10837_v62 = vadd.f32 %v10836_v8, %v10835_v29  ;;  %v28009_v29 = vld [vmem:[#allocation140_spill] sm:$0xff] }
 0x8ef   :  { %20048 = vmatpush3.bf16.msra.mxu1 %v27957_v42  ;;  %v11392_v50 = vadd.f32 %v17969_v7, %v11254_v51  ;;  %v27999_v42 = vld [vmem:[#allocation27_spill] sm:$0xff]  ;;  %v13599_v51 = vsub.f32 %v26158_v13, %v13598_v63 }
 0x8f0   :  { %20008 = vmatpush3.bf16.msra.mxu0 %v27993_v26  ;;  %20082 = vmatprep.subr.bf16.mxu1 %v27995_v9  ;;  %v10838_v4 = vrot.slane %v10837_v62, 1 }
 0x8f1   :  { %20010 = vmatprep.subr.bf16.mxu0 %v27994_v17  ;;  %v11500_v28 = vadd.f32 %v18004_v40, %v11392_v50  ;;  %v13600_v40 = vand.u32 4294901760, %v13599_v51 }
 0x8f2   :  { %13495 = vmatmul.mubr.f32.vlgmr.msra.gmra.mrb[68].mxu1 %v26058_v44  ;;  %v10839_v3 = vadd.f32 %v10838_v4, %v10837_v62 }
 0x8f3   :  { %20084 = vmatpush3.bf16.msra.mxu1 %v27997_v54  ;;  %13837 = vmatprep.mubr.f32.mxu1 %v26151_v25  ;;  %v28011_v54 = vld [vmem:[#allocation161_spill] sm:$0xff] }
 0x8f4   :  { %20012 = vmatpush3.bf16.msra.mxu0 %v27996_v41  ;;  %20086 = vmatprep.subr.bf16.mxu1 %v27999_v42  ;;  %v26192_v17 = vand.u32 4294901760, %v10839_v3  ;;  %v28013_v42 = vld [vmem:[#allocation63_spill] sm:$0xff] }
 0x8f5   :  { %20014 = vmatprep.subr.bf16.mxu0 %v27998_v19  ;;  %v28012_v19 = vld [vmem:[#allocation92_spill] sm:$0xff] }
 0x8f7   :  { %20088 = vmatpush3.bf16.msra.mxu1 %v28001_v36 }
 0x8f8   :  { %20016 = vmatpush3.bf16.msra.mxu0 %v28000_v20  ;;  %20090 = vmatprep.subr.bf16.mxu1 %v28002_v33 }
 0x8f9   :  { %20050 = vmatprep.subr.bf16.mxu0 %v25619_v59 }
 0x8fb   :  { %13391 = vmatmul.mubr.f32.vlgmr.msra.gmra.mrb[68].mxu0 %v26058_v44  ;;  %20092 = vmatpush3.bf16.msra.mxu1 %v28003_v55  ;;  %v28007_v44 = vld [vmem:[#allocation142_spill] sm:$0xff] }
 0x8fc   :  { %20052 = vmatpush3.bf16.msra.mxu0 %v25649_v16  ;;  %13601 = vmatprep.mubr.f32.mxu0 %v13600_v40  ;;  %v28023_v40 = vld [vmem:[#allocation144_spill] sm:$0xff] }
 0x8fd   :  { %20054 = vmatprep.subr.bf16.mxu0 %v25642_v18  ;;  %20094 = vmatprep.subr.bf16.mxu1 %v28004_v27  ;;  %v28026_v27 = vld [vmem:[#allocation151_spill] sm:$0xff] }
 0x8ff   :  { %20096 = vmatpush3.bf16.msra.mxu1 %v28005_v57 }
 0x900   :  { %20056 = vmatpush3.bf16.msra.mxu0 %v25681_v58  ;;  %20098 = vmatprep.subr.bf16.mxu1 %v28006_v23 }
 0x901   :  { %20058 = vmatprep.subr.bf16.mxu0 %v25675_v32 }
 0x903   :  { %20100 = vmatpush3.bf16.msra.mxu1 %v28007_v44 }
 0x904   :  { %20060 = vmatpush3.bf16.msra.mxu0 %v25714_v2  ;;  %20102 = vmatprep.subr.bf16.mxu1 %v25723_v10  ;;  %v26199_v10 = vsub.f32 %v10839_v3, %v26192_v17  ;;  %v28027_v3 = vld [vmem:[#allocation153_spill] sm:$0xff] }
 0x905   :  { %20062 = vmatprep.subr.bf16.mxu0 %v25707_v48  ;;  %v18072_v7 = vpop.f32.mrb[56].mxu1 }
 0x906   :  { %v18073_v26 = vpop.f32.mrb[57].mxu1 }
 0x907   :  { %v18074_v39 = vadd.f32 %v18073_v26, %v18072_v7  ;;  %20104 = vmatpush3.bf16.msra.mxu1 %v25748_v6  ;;  %v28028_v7 = vld [vmem:[#allocation146_spill] sm:$0xff] }
 0x908   :  { %20064 = vmatpush3.bf16.msra.mxu0 %v25746_v5  ;;  %20106 = vmatprep.subr.bf16.mxu1 %v25759_v56  ;;  %v13604_v56 = vand.u32 4294901760, %v26199_v10 }
 0x909   :  { %20066 = vmatprep.subr.bf16.mxu0 %v25739_v43 }
 0x90b   :  { %20108 = vmatpush3.bf16.msra.mxu1 %v25776_v53  ;;  %v18037_v50 = vpop.f32.mrb[56].mxu0 }
 0x90c   :  { %20068 = vmatpush3.bf16.msra.mxu0 %v25772_v38  ;;  %20110 = vmatprep.subr.bf16.mxu1 %v25781_v11  ;;  %v18038_v9 = vpop.f32.mrb[57].mxu0  ;;  %v13605_v11 = vsub.f32 %v26199_v10, %v13604_v56 }
 0x90d   :  { %20070 = vmatprep.subr.bf16.mxu0 %v25765_v34  ;;  %v18039_v6 = vadd.f32 %v18038_v9, %v18037_v50  ;;  %v28030_v9 = vld [vmem:[#allocation95_spill] sm:$0xff] }
 0x90f   :  { %20112 = vmatpush3.bf16.msra.mxu1 %v25798_v49  ;;  %v11668_v41 = vadd.f32 %v18039_v6, %v11500_v28  ;;  %v13606_v49 = vand.u32 4294901760, %v13605_v11  ;;  %v28008_v28 = vld [vmem:[#allocation156_spill] sm:$0xff] }
 0x910   :  { %20072 = vmatpush3.bf16.msra.mxu0 %v25788_v21  ;;  %20146 = vmatprep.subr.bf16.mxu1 %v25619_v59 }
 0x911   :  { %20074 = vmatprep.subr.bf16.mxu0 %v25794_v14  ;;  %v11772_v53 = vadd.f32 %v18074_v39, %v11668_v41  ;;  %v28032_v41 = vld [vmem:[#allocation104_spill] sm:$0xff] }
 0x912   :  { %13839 = vmatmul.mubr.f32.vlgmr.msra.gmra.mrb[70].mxu1 %v26192_v17 }
 0x913   :  { %20148 = vmatpush3.bf16.msra.mxu1 %v25649_v16  ;;  %14081 = vmatprep.mubr.f32.mxu1 %v13598_v63  ;;  %v28010_v63 = vld [vmem:[#allocation93_spill] sm:$0xff] }
 0x914   :  { %20076 = vmatpush3.bf16.msra.mxu0 %v25809_v12  ;;  %20150 = vmatprep.subr.bf16.mxu1 %v25642_v18 }
 0x915   :  { %20078 = vmatprep.subr.bf16.mxu0 %v25818_v60 }
 0x917   :  { %20152 = vmatpush3.bf16.msra.mxu1 %v25681_v58 }
 0x918   :  { %20080 = vmatpush3.bf16.msra.mxu0 %v25827_v52  ;;  %20154 = vmatprep.subr.bf16.mxu1 %v25675_v32 }
 0x919   :  { %20114 = vmatprep.subr.bf16.mxu0 %v28008_v28 }
 0x91b   :  { %13607 = vmatmul.mubr.f32.vlgmr.msra.gmra.mrb[70].mxu0 %v13606_v49  ;;  %20156 = vmatpush3.bf16.msra.mxu1 %v25714_v2 }
 0x91c   :  { %20116 = vmatpush3.bf16.msra.mxu0 %v28009_v29  ;;  %13974 = vmatprep.mubr.f32.mxu0 %v26158_v13 }
 0x91d   :  { %20118 = vmatprep.subr.bf16.mxu0 %v28010_v63  ;;  %20158 = vmatprep.subr.bf16.mxu1 %v25707_v48 }
 0x91f   :  { %20160 = vmatpush3.bf16.msra.mxu1 %v25746_v5 }
 0x920   :  { %20120 = vmatpush3.bf16.msra.mxu0 %v28011_v54  ;;  %20162 = vmatprep.subr.bf16.mxu1 %v25739_v43 }
 0x921   :  { %20122 = vmatprep.subr.bf16.mxu0 %v28012_v19 }
 0x923   :  { %20164 = vmatpush3.bf16.msra.mxu1 %v25772_v38 }
 0x924   :  { %20124 = vmatpush3.bf16.msra.mxu0 %v28013_v42  ;;  %20166 = vmatprep.subr.bf16.mxu1 %v25765_v34 }
 0x925   :  { %20126 = vmatprep.subr.bf16.mxu0 %v25875_v45  ;;  %v18142_v13 = vpop.f32.mrb[58].mxu1 }
 0x926   :  { %v18143_v51 = vpop.f32.mrb[59].mxu1 }
 0x927   :  { %v18144_v20 = vadd.f32 %v18143_v51, %v18142_v13  ;;  %20168 = vmatpush3.bf16.msra.mxu1 %v25788_v21 }
 0x928   :  { %20128 = vmatpush3.bf16.msra.mxu0 %v25883_v0  ;;  %20170 = vmatprep.subr.bf16.mxu1 %v25794_v14 }
 0x929   :  { %20130 = vmatprep.subr.bf16.mxu0 %v25889_v22 }
 0x92b   :  { %20172 = vmatpush3.bf16.msra.mxu1 %v25809_v12 }
 0x92c   :  { %20132 = vmatpush3.bf16.msra.mxu0 %v25899_v61  ;;  %20174 = vmatprep.subr.bf16.mxu1 %v25818_v60  ;;  %v28014_v61 = vld [vmem:[#allocation143_spill] sm:$0xff] }
 0x92d   :  { %20134 = vmatprep.subr.bf16.mxu0 %v25905_v46  ;;  %v28015_v46 = vld [vmem:[#allocation167_spill] sm:$0xff] }
 0x92e   :  { %v18107_v45 = vpop.f32.mrb[58].mxu0 }
 0x92f   :  { %v18108_v8 = vpop.f32.mrb[59].mxu0  ;;  %20176 = vmatpush3.bf16.msra.mxu1 %v25827_v52 }
 0x930   :  { %v18109_v36 = vadd.f32 %v18108_v8, %v18107_v45  ;;  %20136 = vmatpush3.bf16.msra.mxu0 %v25913_v30  ;;  %20210 = vmatprep.subr.bf16.mxu1 %v25619_v59  ;;  %v28016_v30 = vld [vmem:[#allocation168_spill] sm:$0xff]  ;;  %v28017_v59 = vld [vmem:[#allocation165_spill] sm:$0xff] }
 0x931   :  { %20138 = vmatprep.subr.bf16.mxu0 %v25919_v47  ;;  %v28019_v47 = vld [vmem:[#allocation171_spill] sm:$0xff] }
 0x932   :  { %v11884_v0 = vadd.f32 %v18109_v36, %v11772_v53  ;;  %14085 = vmatmul.mubr.f32.vlgmr.msra.gmra.mrb[72].mxu1 %v13604_v56  ;;  %v28031_v56 = vmov 0.0  }
 0x933   :  { %20212 = vmatpush3.bf16.msra.mxu1 %v25649_v16  ;;  %14355 = vmatprep.mubr.f32.mxu1 %v26151_v25  ;;  %v28018_v16 = vld [vmem:[#allocation166_spill] sm:$0xff] }
 0x934   :  { %20140 = vmatpush3.bf16.msra.mxu0 %v25925_v35  ;;  %v12116_v22 = vadd.f32 %v18144_v20, %v11884_v0  ;;  %20214 = vmatprep.subr.bf16.mxu1 %v25642_v18  ;;  %v14366_v18 = vld [vmem:[#allocation20 + $0x18] sm:$0xff] }
 0x935   :  { %20142 = vmatprep.subr.bf16.mxu0 %v28014_v61  ;;  %v28021_v35 = vld [vmem:[#allocation126_spill] sm:$0xff] }
 0x937   :  { %20216 = vmatpush3.bf16.msra.mxu1 %v25681_v58  ;;  %v28020_v58 = vld [vmem:[#allocation162_spill] sm:$0xff] }
 0x938   :  { %20144 = vmatpush3.bf16.msra.mxu0 %v28015_v46  ;;  %20218 = vmatprep.subr.bf16.mxu1 %v25675_v32  ;;  %v26261_v32 = vand.u32 4294901760, %v14366_v18 }
 0x939   :  { %20178 = vmatprep.subr.bf16.mxu0 %v28016_v30 }
 0x93b   :  { %13977 = vmatmul.mubr.f32.vlgmr.msra.gmra.mrb[72].mxu0 %v26199_v10  ;;  %20220 = vmatpush3.bf16.msra.mxu1 %v25714_v2  ;;  %v28022_v2 = vld [vmem:[#allocation127_spill] sm:$0xff]  ;;  %v28029_v10 = vld [vmem:[#allocation149_spill] sm:$0xff] }
 0x93c   :  { %20180 = vmatpush3.bf16.msra.mxu0 %v28017_v59  ;;  %14251 = vmatprep.mubr.f32.mxu0 %v26151_v25  ;;  %v26268_v25 = vsub.f32 %v14366_v18, %v26261_v32 }
 0x93d   :  { %20182 = vmatprep.subr.bf16.mxu0 %v28018_v16  ;;  %20222 = vmatprep.subr.bf16.mxu1 %v25707_v48  ;;  %v14364_v48 = vld [vmem:[#allocation20 + $0x8] sm:$0xff] }
 0x93e   :  { %v26273_v62 = vand.u32 4294901760, %v14364_v48 }
 0x93f   :  { %20224 = vmatpush3.bf16.msra.mxu1 %v25746_v5 }
 0x940   :  { %20184 = vmatpush3.bf16.msra.mxu0 %v28019_v47  ;;  %20226 = vmatprep.subr.bf16.mxu1 %v25739_v43  ;;  %v28024_v43 = vld [vmem:[#allocation147_spill] sm:$0xff]  ;;  %v26283_v57 = vsub.f32 %v14364_v48, %v26273_v62 }
 0x941   :  { %20186 = vmatprep.subr.bf16.mxu0 %v28020_v58 }
 0x942   :  { %v26294_v26 = vand.u32 4294901760, %v26283_v57 }
 0x943   :  { %20228 = vmatpush3.bf16.msra.mxu1 %v25772_v38  ;;  %v26277_v38 = vand.u32 4294901760, %v26268_v25 }
 0x944   :  { %20188 = vmatpush3.bf16.msra.mxu0 %v28021_v35  ;;  %20230 = vmatprep.subr.bf16.mxu1 %v25765_v34  ;;  %v28025_v34 = vld [vmem:[#allocation148_spill] sm:$0xff]  ;;  %v14451_v6 = vsub.f32 %v26283_v57, %v26294_v26 }
 0x945   :  { %20190 = vmatprep.subr.bf16.mxu0 %v28022_v2  ;;  %v18212_v33 = vpop.f32.mrb[60].mxu1  ;;  %v14916_v23 = vsub.f32 %v26268_v25, %v26277_v38 }
 0x946   :  { %v18213_v5 = vpop.f32.mrb[61].mxu1  ;;  %v26311_v11 = vand.u32 4294901760, %v14451_v6 }
 0x947   :  { %v18214_v55 = vadd.f32 %v18213_v5, %v18212_v33  ;;  %20232 = vmatpush3.bf16.msra.mxu1 %v25788_v21  ;;  %v14365_v21 = vld [vmem:[#allocation20 + $0x10] sm:$0xff] }
 0x948   :  { %20192 = vmatpush3.bf16.msra.mxu0 %v28023_v40  ;;  %20234 = vmatprep.subr.bf16.mxu1 %v25794_v14 }
 0x949   :  { %20194 = vmatprep.subr.bf16.mxu0 %v28024_v43 }
 0x94b   :  { %20236 = vmatpush3.bf16.msra.mxu1 %v25809_v12  ;;  %v26291_v12 = vand.u32 4294901760, %v14365_v21 }
 0x94c   :  { %20196 = vmatpush3.bf16.msra.mxu0 %v28025_v34  ;;  %20238 = vmatprep.subr.bf16.mxu1 %v25818_v60  ;;  %v26297_v60 = vand.u32 4294901760, %v14916_v23 }
 0x94d   :  { %20198 = vmatprep.subr.bf16.mxu0 %v28026_v27  ;;  %v26321_v20 = vsub.f32 %v14365_v21, %v26291_v12 }
 0x94e   :  { %v18177_v4 = vpop.f32.mrb[60].mxu0 }
 0x94f   :  { %v18178_v14 = vpop.f32.mrb[61].mxu0  ;;  %20240 = vmatpush3.bf16.msra.mxu1 %v25827_v52  ;;  %v14363_v52 = vld [vmem:[#allocation20] sm:$0xff]  ;;  %v26328_v0 = vand.u32 4294901760, %v26321_v20 }
 0x950   :  { %v18179_v44 = vadd.f32 %v18178_v14, %v18177_v4  ;;  %20200 = vmatpush3.bf16.msra.mxu0 %v28027_v3  ;;  %14836 = vmatprep.subr.mxu1 %v26261_v32  ;;  %v26308_v53 = vand.u32 4294901760, %v14363_v52 }
 0x951   :  { %20202 = vmatprep.subr.bf16.mxu0 %v28028_v7  ;;  %v14922_v30 = vsub.f32 %v26321_v20, %v26328_v0 }
 0x952   :  { %v12254_v39 = vadd.f32 %v18179_v44, %v12116_v22  ;;  %14357 = vmatmul.mubr.f32.vlgmr.msra.gmra.mrb[74].mxu1 %v26192_v17  ;;  %v26318_v51 = vsub.f32 %v14363_v52, %v26308_v53 }
 0x953   :  { %14838 = vmatpush1.msra.mxu1 %v26291_v12  ;;  %14901 = vmatprep.mubr.f32.mxu1 %v28031_v56  ;;  %v26336_v47 = vand.u32 4294901760, %v14922_v30 }
 0x954   :  { %20204 = vmatpush3.bf16.msra.mxu0 %v28029_v10  ;;  %v12362_v50 = vadd.f32 %v18214_v55, %v12254_v39  ;;  %14918 = vmatprep.subr.mxu1 %v26297_v60  ;;  %v26325_v8 = vand.u32 4294901760, %v26318_v51 }
 0x955   :  { %20206 = vmatprep.subr.bf16.mxu0 %v28030_v9 }
 0x956   :  { %v14457_v61 = vsub.f32 %v26318_v51, %v26325_v8 }
 0x958   :  { %20208 = vmatpush3.bf16.msra.mxu0 %v28032_v41  ;;  %v26334_v16 = vand.u32 4294901760, %v14457_v61 }
 0x959   :  { %14371 = vmatprep.subr.mxu0 %v26273_v62 }
 0x95b   :  { %14253 = vmatmul.mubr.f32.vlgmr.msra.gmra.mrb[74].mxu0 %v26192_v17 }
 0x95c   :  { %14373 = vmatpush1.msra.mxu0 %v26308_v53  ;;  %14436 = vmatprep.mubr.f32.mxu0 %v28031_v56 }
 0x95d   :  { %14453 = vmatprep.subr.mxu0 %v26311_v11 }
 0x965   :  { %v18282_v49 = vpop.f32.mrb[62].mxu1 }
 0x966   :  { %v18283_v28 = vpop.f32.mrb[63].mxu1 }
 0x967   :  { %v18284_v29 = vadd.f32 %v18283_v28, %v18282_v49 }
 0x96e   :  { %v18247_v63 = vpop.f32.mrb[62].mxu0 }
 0x96f   :  { %v18248_v54 = vpop.f32.mrb[63].mxu0 }
 0x970   :  { %v18249_v19 = vadd.f32 %v18248_v54, %v18247_v63 }
 0x972   :  { %v12530_v42 = vadd.f32 %v18249_v19, %v12362_v50 }
 0x974   :  { %v12634_v13 = vadd.f32 %v18284_v29, %v12530_v42 }
 0x976   :  { %v12637_v17 = vmul.f32 0.00048828125, %v12634_v13 }
 0x978   :  { %v14368_v45 = vsel %vm5287_vm0, %v12637_v17, 0 }
 0x979   :  { %v14437_v36 = vand.u32 4294901760, %v14368_v45 }
 0x97b   :  { %v14438_v22 = vsub.f32 %v14368_v45, %v14437_v36 }
 0x97d   :  { %v14439_v46 = vand.u32 4294901760, %v14438_v22 }
 0x97f   :  { %v14440_v59 = vsub.f32 %v14438_v22, %v14439_v46 }
 0x981   :  { %v14441_v18 = vand.u32 4294901760, %v14440_v59 }
 0x983   :  { %14442 = vmatmul.mubr.f32.vlgmr.msra.gmra.mrb[76].mxu0 %v14441_v18  ;;  %14907 = vmatmul.mubr.f32.vlgmr.msra.gmra.mrb[76].mxu1 %v14441_v18 }
 0x984   :  { %14459 = vmatpush1.msra.mxu0 %v26334_v16  ;;  %14522 = vmatprep.mubr.f32.mxu0 %v28031_v56 }
 0x985   :  { %14924 = vmatpush1.msra.mxu1 %v26336_v47  ;;  %14987 = vmatprep.mubr.f32.mxu1 %v28031_v56  ;;  %v18352_v58 = vpop.f32.mrb[64].mxu1 }
 0x986   :  { %14532 = vmatprep.subr.mxu0 %v26283_v57  ;;  %14997 = vmatprep.subr.mxu1 %v26268_v25  ;;  %v18353_v35 = vpop.f32.mrb[65].mxu1 }
 0x987   :  { %v18354_v2 = vadd.f32 %v18353_v35, %v18352_v58 }
 0x98b   :  { %14524 = vmatmul.mubr.f32.vlgmr.msra.gmra.mrb[76].mxu0 %v14437_v36  ;;  %14989 = vmatmul.mubr.f32.vlgmr.msra.gmra.mrb[76].mxu1 %v14437_v36 }
 0x98c   :  { %14535 = vmatpush1.msra.mxu0 %v26318_v51  ;;  %14598 = vmatprep.mubr.f32.mxu0 %v28031_v56 }
 0x98d   :  { %15000 = vmatpush1.msra.mxu1 %v26321_v20  ;;  %15063 = vmatprep.mubr.f32.mxu1 %v28031_v56 }
 0x98e   :  { %v18317_v48 = vpop.f32.mrb[64].mxu0  ;;  %14608 = vmatprep.subr.mxu0 %v26273_v62  ;;  %15073 = vmatprep.subr.mxu1 %v26261_v32 }
 0x98f   :  { %v18318_v33 = vpop.f32.mrb[65].mxu0 }
 0x990   :  { %v18319_v5 = vadd.f32 %v18318_v33, %v18317_v48 }
 0x992   :  { %v12979_v40 = vadd.f32 %v18354_v2, %v18319_v5 }
 0x993   :  { %14601 = vmatmul.mubr.f32.vlgmr.msra.gmra.mrb[76].mxu0 %v14438_v22  ;;  %15066 = vmatmul.mubr.f32.vlgmr.msra.gmra.mrb[76].mxu1 %v14438_v22 }
 0x994   :  { %14610 = vmatpush1.msra.mxu0 %v26308_v53  ;;  %14673 = vmatprep.mubr.f32.mxu0 %v28031_v56 }
 0x995   :  { %15075 = vmatpush1.msra.mxu1 %v26291_v12  ;;  %15138 = vmatprep.mubr.f32.mxu1 %v28031_v56 }
 0x996   :  { %14686 = vmatprep.subr.mxu0 %v26294_v26  ;;  %15151 = vmatprep.subr.mxu1 %v26277_v38 }
 0x99b   :  { %14677 = vmatmul.mubr.f32.vlgmr.msra.gmra.mrb[76].mxu0 %v14439_v46  ;;  %15142 = vmatmul.mubr.f32.vlgmr.msra.gmra.mrb[76].mxu1 %v14439_v46 }
 0x99c   :  { %14690 = vmatpush1.msra.mxu0 %v26325_v8  ;;  %14753 = vmatprep.mubr.f32.mxu0 %v28031_v56 }
 0x99d   :  { %15155 = vmatpush1.msra.mxu1 %v26328_v0  ;;  %15218 = vmatprep.mubr.f32.mxu1 %v28031_v56 }
 0x99e   :  { %14762 = vmatprep.subr.mxu0 %v26273_v62  ;;  %15227 = vmatprep.subr.mxu1 %v26261_v32 }
 0x9a3   :  { %14755 = vmatmul.mubr.f32.vlgmr.msra.gmra.mrb[76].mxu0 %v14437_v36  ;;  %15220 = vmatmul.mubr.f32.vlgmr.msra.gmra.mrb[76].mxu1 %v14437_v36 }
 0x9a4   :  { %14764 = vmatpush1.msra.mxu0 %v26308_v53  ;;  %14827 = vmatprep.mubr.f32.mxu0 %v28031_v56 }
 0x9a5   :  { %15229 = vmatpush1.msra.mxu1 %v26291_v12  ;;  %15292 = vmatprep.mubr.f32.mxu1 %v28031_v56  ;;  %v18422_v55 = vpop.f32.mrb[66].mxu1 }
 0x9a6   :  { %15304 = vmatprep.subr.mxu0 %v26273_v62  ;;  %15769 = vmatprep.subr.mxu1 %v26261_v32  ;;  %v18423_v43 = vpop.f32.mrb[67].mxu1 }
 0x9a7   :  { %v18424_v34 = vadd.f32 %v18423_v43, %v18422_v55 }
 0x9ab   :  { %14829 = vmatmul.mubr.f32.vlgmr.msra.gmra.mrb[76].mxu0 %v14437_v36  ;;  %15294 = vmatmul.mubr.f32.vlgmr.msra.gmra.mrb[76].mxu1 %v14437_v36 }
 0x9ac   :  { %15306 = vmatpush1.msra.mxu0 %v26308_v53  ;;  %15771 = vmatpush1.msra.mxu1 %v26291_v12 }
 0x9ad   :  { %15369 = vmatprep.mubr.f32.mxu0 %v28031_v56  ;;  %15386 = vmatprep.subr.mxu0 %v26311_v11 }
 0x9ae   :  { %v18387_v27 = vpop.f32.mrb[66].mxu0  ;;  %15834 = vmatprep.mubr.f32.mxu1 %v28031_v56  ;;  %15851 = vmatprep.subr.mxu1 %v26297_v60 }
 0x9af   :  { %v18388_v4 = vpop.f32.mrb[67].mxu0 }
 0x9b0   :  { %v18389_v21 = vadd.f32 %v18388_v4, %v18387_v27 }
 0x9b2   :  { %v13117_v23 = vadd.f32 %v18389_v21, %v12979_v40 }
 0x9b4   :  { %v13225_v14 = vadd.f32 %v18424_v34, %v13117_v23 }
 0x9c5   :  { %v18492_v44 = vpop.f32.mrb[68].mxu1 }
 0x9c6   :  { %v18493_v3 = vpop.f32.mrb[69].mxu1 }
 0x9c7   :  { %v18494_v7 = vadd.f32 %v18493_v3, %v18492_v44 }
 0x9ce   :  { %v18457_v39 = vpop.f32.mrb[68].mxu0 }
 0x9cf   :  { %v18458_v10 = vpop.f32.mrb[69].mxu0 }
 0x9d0   :  { %v18459_v50 = vadd.f32 %v18458_v10, %v18457_v39 }
 0x9d2   :  { %v13393_v9 = vadd.f32 %v18459_v50, %v13225_v14 }
 0x9d4   :  { %v13497_v52 = vadd.f32 %v18494_v7, %v13393_v9  ;;  %v28033_v9 = vld [vmem:[#allocation42_spill] sm:$0xff] }
 0x9e5   :  { %v18562_v6 = vpop.f32.mrb[70].mxu1 }
 0x9e6   :  { %v18563_v41 = vpop.f32.mrb[71].mxu1 }
 0x9e7   :  { %v18564_v11 = vadd.f32 %v18563_v41, %v18562_v6 }
 0x9ee   :  { %v18527_v49 = vpop.f32.mrb[70].mxu0 }
 0x9ef   :  { %v18528_v28 = vpop.f32.mrb[71].mxu0 }
 0x9f0   :  { %v18529_v29 = vadd.f32 %v18528_v28, %v18527_v49  ;;  %v16389_v28 = vld [vmem:[#allocation18] sm:$0xf] }
 0x9f2   :  { %v13609_v63 = vadd.f32 %v18529_v29, %v13497_v52 }
 0x9f4   :  { %v13841_v60 = vadd.f32 %v18564_v11, %v13609_v63  ;;  %v16241_v11 = vld [vmem:[#allocation15] sm:$0xf]  ;;  %v28034_v63 = vld [vmem:[#allocation98_spill] sm:$0xff] }
 0xa05   :  { %v18632_v54 = vpop.f32.mrb[72].mxu1 }
 0xa06   :  { %v18633_v19 = vpop.f32.mrb[73].mxu1 }
 0xa07   :  { %v18634_v42 = vadd.f32 %v18633_v19, %v18632_v54  ;;  %v28035_v54 = vld [vmem:[#allocation99_spill] sm:$0xff] }
 0xa0e   :  { %v18597_v13 = vpop.f32.mrb[72].mxu0 }
 0xa0f   :  { %v18598_v17 = vpop.f32.mrb[73].mxu0 }
 0xa10   :  { %v18599_v45 = vadd.f32 %v18598_v17, %v18597_v13  ;;  %v28037_v17 = vld [vmem:[#allocation97_spill] sm:$0xff] }
 0xa12   :  { %v13979_v36 = vadd.f32 %v18599_v45, %v13841_v60 }
 0xa14   :  { %v14087_v22 = vadd.f32 %v18634_v42, %v13979_v36  ;;  %v28036_v42 = vld [vmem:[#allocation96_spill] sm:$0xff]  ;;  %v16394_v36 = vrot.slane %v16389_v28, %v28034_v63 }
 0xa25   :  { %v18702_v61 = vpop.f32.mrb[74].mxu1 }
 0xa26   :  { %v18703_v46 = vpop.f32.mrb[75].mxu1 }
 0xa27   :  { %v18704_v30 = vadd.f32 %v18703_v46, %v18702_v61 }
 0xa2e   :  { %v18667_v59 = vpop.f32.mrb[74].mxu0 }
 0xa2f   :  { %v18668_v18 = vpop.f32.mrb[75].mxu0 }
 0xa30   :  { %v18669_v58 = vadd.f32 %v18668_v18, %v18667_v59  ;;  %v16402_v18 = vrot.slane %v16389_v28, %v28036_v42 }
 0xa32   :  { %v14255_v35 = vadd.f32 %v18669_v58, %v14087_v22  ;;  %v16398_v22 = vrot.slane %v16389_v28, %v28035_v54  ;;  %v16406_v58 = vrot.slane %v16389_v28, %v28037_v17 }
 0xa34   :  { %v14359_v2 = vadd.f32 %v18704_v30, %v14255_v35 }
 0xa36   :  { %v14362_v48 = vmul.f32 0.00048828125, %v14359_v2 }
 0xa38   :  { %v15301_v33 = vsel %vm5287_vm0, %v14362_v48, 0  ;;  %v28038_v48 = vld [vmem:[#allocation110_spill] sm:$0xff] }
 0xa39   :  { %v15370_v5 = vand.u32 4294901760, %v15301_v33 }
 0xa3b   :  { %v15371_v40 = vsub.f32 %v15301_v33, %v15370_v5  ;;  %v16411_v33 = vadd.f32 %v16394_v36, %v28038_v48 }
 0xa3d   :  { %v15372_v55 = vand.u32 4294901760, %v15371_v40 }
 0xa3f   :  { %v15373_v43 = vsub.f32 %v15371_v40, %v15372_v55 }
 0xa41   :  { %v15374_v34 = vand.u32 4294901760, %v15373_v43 }
 0xa43   :  { %15375 = vmatmul.mubr.f32.vlgmr.msra.gmra.mrb[78].mxu0 %v15374_v34  ;;  %15840 = vmatmul.mubr.f32.vlgmr.msra.gmra.mrb[78].mxu1 %v15374_v34 }
 0xa44   :  { %15392 = vmatpush1.msra.mxu0 %v26334_v16  ;;  %15857 = vmatpush1.msra.mxu1 %v26336_v47 }
 0xa45   :  { %15455 = vmatprep.mubr.f32.mxu0 %v28031_v56  ;;  %15465 = vmatprep.subr.mxu0 %v26283_v57 }
 0xa46   :  { %15920 = vmatprep.mubr.f32.mxu1 %v28031_v56  ;;  %15930 = vmatprep.subr.mxu1 %v26268_v25 }
 0xa4b   :  { %15457 = vmatmul.mubr.f32.vlgmr.msra.gmra.mrb[78].mxu0 %v15370_v5  ;;  %15922 = vmatmul.mubr.f32.vlgmr.msra.gmra.mrb[78].mxu1 %v15370_v5 }
 0xa4c   :  { %15468 = vmatpush1.msra.mxu0 %v26318_v51  ;;  %15933 = vmatpush1.msra.mxu1 %v26321_v20 }
 0xa4d   :  { %15531 = vmatprep.mubr.f32.mxu0 %v28031_v56  ;;  %15541 = vmatprep.subr.mxu0 %v26273_v62 }
 0xa4e   :  { %15996 = vmatprep.mubr.f32.mxu1 %v28031_v56  ;;  %16006 = vmatprep.subr.mxu1 %v26261_v32 }
 0xa53   :  { %15534 = vmatmul.mubr.f32.vlgmr.msra.gmra.mrb[78].mxu0 %v15371_v40  ;;  %15999 = vmatmul.mubr.f32.vlgmr.msra.gmra.mrb[78].mxu1 %v15371_v40 }
 0xa54   :  { %15543 = vmatpush1.msra.mxu0 %v26308_v53  ;;  %16008 = vmatpush1.msra.mxu1 %v26291_v12 }
 0xa55   :  { %15606 = vmatprep.mubr.f32.mxu0 %v28031_v56  ;;  %15619 = vmatprep.subr.mxu0 %v26294_v26 }
 0xa56   :  { %16071 = vmatprep.mubr.f32.mxu1 %v28031_v56  ;;  %16084 = vmatprep.subr.mxu1 %v26277_v38 }
 0xa5b   :  { %15610 = vmatmul.mubr.f32.vlgmr.msra.gmra.mrb[78].mxu0 %v15372_v55  ;;  %16075 = vmatmul.mubr.f32.vlgmr.msra.gmra.mrb[78].mxu1 %v15372_v55  ;;  %v28040_v55 = vld [vmem:[#allocation112_spill] sm:$0xff] }
 0xa5c   :  { %15623 = vmatpush1.msra.mxu0 %v26325_v8  ;;  %16088 = vmatpush1.msra.mxu1 %v26328_v0  ;;  %v16415_v43 = vadd.f32 %v16394_v36, %v28040_v55 }
 0xa5d   :  { %15686 = vmatprep.mubr.f32.mxu0 %v28031_v56  ;;  %15695 = vmatprep.subr.mxu0 %v26273_v62 }
 0xa5e   :  { %16151 = vmatprep.mubr.f32.mxu1 %v28031_v56  ;;  %16160 = vmatprep.subr.mxu1 %v26261_v32 }
 0xa63   :  { %15688 = vmatmul.mubr.f32.vlgmr.msra.gmra.mrb[78].mxu0 %v15370_v5  ;;  %16153 = vmatmul.mubr.f32.vlgmr.msra.gmra.mrb[78].mxu1 %v15370_v5 }
 0xa64   :  { %15697 = vmatpush1.msra.mxu0 %v26308_v53  ;;  %16162 = vmatpush1.msra.mxu1 %v26291_v12 }
 0xa65   :  { %15760 = vmatprep.mubr.f32.mxu0 %v28031_v56  ;;  %16225 = vmatprep.mubr.f32.mxu1 %v28031_v56 }
 0xa6b   :  { %15762 = vmatmul.mubr.f32.vlgmr.msra.gmra.mrb[78].mxu0 %v15370_v5  ;;  %16227 = vmatmul.mubr.f32.vlgmr.msra.gmra.mrb[78].mxu1 %v15370_v5  ;;  %v28039_v5 = vld [vmem:[#allocation111_spill] sm:$0xff] }
 0xa6c   :  { %v16412_v40 = vadd.f32 %v16398_v22, %v28039_v5 }
 0xa7e   :  { %v14830_v25 = vpop.f32.mrb[76].mxu0  ;;  %v15295_v38 = vpop.f32.mrb[76].mxu1 }
 0xa7f   :  { %v14832_v57 = vpop.f32.mrb[77].mxu0  ;;  %v15297_v62 = vpop.f32.mrb[77].mxu1  ;;  %v16233_v26 = vmul.f32 %v14830_v25, %v14830_v25  ;;  %v16235_v51 = vmul.f32 %v15295_v38, %v15295_v38 }
 0xa80   :  { %v16234_v20 = vmul.f32 %v14832_v57, %v14832_v57  ;;  %v16236_v32 = vmul.f32 %v15297_v62, %v15297_v62 }
 0xb3e   :  { %v15763_v8 = vpop.f32.mrb[78].mxu0  ;;  %v16228_v0 = vpop.f32.mrb[78].mxu1 }
 0xb3f   :  { %v16237_v16 = vsub.f32 %v15763_v8, %v16233_v26  ;;  %v16239_v53 = vsub.f32 %v16228_v0, %v16235_v51  ;;  %v15765_v47 = vpop.f32.mrb[79].mxu0  ;;  %v16230_v12 = vpop.f32.mrb[79].mxu1  ;;  %v28043_v51 = vld [vmem:[#allocation113_spill] sm:$0xff]  ;;  %v28045_v0 = vld [vmem:[#allocation119_spill] sm:$0xff] }
 0xb40   :  { %v16238_v27 = vsub.f32 %v15765_v47, %v16234_v20  ;;  %v16240_v4 = vsub.f32 %v16230_v12, %v16236_v32  ;;  %v16413_v20 = vadd.f32 %v16402_v18, %v28043_v51  ;;  %v28044_v32 = vld [vmem:[#allocation115_spill] sm:$0xff]  ;;  %v28047_v12 = vld [vmem:[#allocation122_spill] sm:$0xff] }
 0xb41   :  { %v16242_v21 = vadd.f32 1e-05, %v16237_v16  ;;  %v16244_v56 = vadd.f32 1e-05, %v16239_v53  ;;  %v16414_v8 = vadd.f32 %v16406_v58, %v28044_v32  ;;  %v16420_v16 = vadd.f32 %v16398_v22, %v28045_v0  ;;  %v28046_v53 = vld [vmem:[#allocation120_spill] sm:$0xff] }
 0xb42   :  { %v16243_v23 = vadd.f32 1e-05, %v16238_v27  ;;  %v16245_v14 = vadd.f32 1e-05, %v16240_v4  ;;  %v26425_v47 = vadd.f32 %v16394_v36, %v28046_v53  ;;  %v26428_v27 = vadd.f32 %v16398_v22, %v28047_v12  ;;  %v28063_v12 = vld [vmem:[#allocation91_spill] sm:$0xff] }
 0xb43   :  { %21208 = vrsqrt.f32 %v16242_v21  ;;  %v28048_v21 = vld [vmem:[#allocation116_spill] sm:$0xff] }
 0xb44   :  { %21210 = vrsqrt.f32 %v16244_v56  ;;  %v16417_v56 = vadd.f32 %v16402_v18, %v28048_v21 }
 0xb45   :  { %21212 = vrsqrt.f32 %v16243_v23  ;;  %v28049_v23 = vld [vmem:[#allocation117_spill] sm:$0xff] }
 0xb46   :  { %21214 = vrsqrt.f32 %v16245_v14  ;;  %v16418_v14 = vadd.f32 %v16406_v58, %v28049_v23 }
 0xb4d   :  { %v21209_v44 = vpop.eup %21208 }
 0xb4e   :  { %v21211_v3 = vpop.eup %21210 }
 0xb4f   :  { %v21213_v7 = vpop.eup %21212 }
 0xb50   :  { %v21215_v39 = vpop.eup %21214  ;;  %v16254_v10 = vcombine.low %v21209_v44, %v21213_v7  ;;  %v28050_v44 = vld [vmem:[#allocation121_spill] sm:$0xff]  ;;  %v28051_v7 = vld [vmem:[#allocation123_spill] sm:$0xff] }
 0xb51   :  { %v16255_v50 = vcombine.low %v21211_v3, %v21215_v39  ;;  %v16421_v3 = vadd.f32 %v16402_v18, %v28050_v44  ;;  %v16422_v39 = vadd.f32 %v16406_v58, %v28051_v7 }
 0xb52   :  { %v16262_v52 = vrot.slane %v16254_v10, %v28033_v9  ;;  %v16280_v10 = vld [vmem:[#allocation17] sm:$0xf] }
 0xb53   :  { %v16269_v6 = vrot.slane %v16255_v50, %v28033_v9  ;;  %v28052_v50 = vld [vmem:[#allocation124_spill] sm:$0xff] }
 0xb55   :  { %v16270_v41 = vcombine.low %v16262_v52, %v16269_v6  ;;  %v16425_v52 = vadd.f32 %v16402_v18, %v28052_v50  ;;  %v28053_v6 = vld [vmem:[#allocation125_spill] sm:$0xff]  ;;  %v28059_v18 = vld [vmem:[#allocation94_spill] sm:$0xff] }
 0xb57   :  { %v16277_v49 = vrot.slane %v16270_v41, %v28033_v9  ;;  %v16426_v41 = vadd.f32 %v16406_v58, %v28053_v6  ;;  %v28060_v58 = vld [vmem:[#allocation47_spill] sm:$0xff] }
 0xb59   :  { %v16279_v29 = vmul.f32 %v16277_v49, %v16241_v11  ;;  %v28054_v49 = vld [vmem:[#allocation36_spill] sm:$0xff] }
 0xb5b   :  { %v16285_v60 = vrot.slane %v16279_v29, %v28034_v63  ;;  %v16289_v19 = vrot.slane %v16279_v29, %v28035_v54  ;;  %v16293_v13 = vrot.slane %v16279_v29, %v28036_v42  ;;  %v16297_v45 = vrot.slane %v16279_v29, %v28037_v17  ;;  %v28055_v29 = vld [vmem:[#allocation43_spill] sm:$0xff] }
 0xb5d   :  { %v16302_v61 = vmul.f32 %v16285_v60, %v14830_v25  ;;  %v16303_v46 = vmul.f32 %v16289_v19, %v14832_v57  ;;  %v16304_v30 = vmul.f32 %v16293_v13, %v15295_v38  ;;  %v16305_v59 = vmul.f32 %v16297_v45, %v15297_v62  ;;  %v28041_v25 = vld [vmem:[#allocation114_spill] sm:$0xff] }
 0xb5e   :  { %v16416_v57 = vadd.f32 %v16398_v22, %v28041_v25  ;;  %v28042_v38 = vld [vmem:[#allocation118_spill] sm:$0xff]  ;;  %v16336_v28 = vmul.f32 %v16285_v60, %v28054_v49  ;;  %v16338_v22 = vmul.f32 %v16293_v13, %v27985_v15  ;;  %v16342_v5 = vmul.f32 %v16293_v13, %v27983_v31 }
 0xb5f   :  { %v16310_v35 = vcombine.low %v16302_v61, %v16303_v46  ;;  %v16311_v2 = vcombine.low %v16304_v30, %v16305_v59  ;;  %v16419_v62 = vadd.f32 %v16394_v36, %v28042_v38  ;;  %v16337_v36 = vmul.f32 %v16289_v19, %v28055_v29  ;;  %v28056_v61 = vld [vmem:[#allocation169_spill] sm:$0xff]  ;;  %v28057_v30 = vld [vmem:[#allocation34_spill] sm:$0xff] }
 0xb60   :  { %v16339_v46 = vmul.f32 %v16297_v45, %v28056_v61  ;;  %v16340_v59 = vmul.f32 %v16285_v60, %v28057_v30  ;;  %v16343_v55 = vmul.f32 %v16297_v45, %v28059_v18  ;;  %v16346_v25 = vmul.f32 %v16293_v13, %v27986_v37  ;;  %v28062_v38 = vld [vmem:[#allocation170_spill] sm:$0xff] }
 0xb61   :  { %v16318_v34 = vrot.slane %v16310_v35, %v28033_v9  ;;  %v16325_v26 = vrot.slane %v16311_v2, %v28033_v9  ;;  %v28058_v2 = vld [vmem:[#allocation160_spill] sm:$0xff]  ;;  %v16347_v51 = vmul.f32 %v16297_v45, %v28062_v38  ;;  %v16348_v31 = vmul.f32 %v16285_v60, %v28063_v12 }
 0xb62   :  { %v16341_v48 = vmul.f32 %v16289_v19, %v28058_v2  ;;  %v16350_v23 = vmul.f32 %v16293_v13, %v27989_v1  ;;  %v16351_v44 = vmul.f32 %v16297_v45, %v27970_v24 }
 0xb63   :  { %v16326_v4 = vcombine.low %v16318_v34, %v16325_v26  ;;  %v16344_v34 = vmul.f32 %v16285_v60, %v28060_v58 }
 0xb65   :  { %v16333_v11 = vrot.slane %v16326_v4, %v28033_v9  ;;  %v28061_v9 = vld [vmem:[#allocation48_spill] sm:$0xff]  ;;  %v28064_v4 = vld [vmem:[#allocation54_spill] sm:$0xff] }
 0xb66   :  { %v16345_v26 = vmul.f32 %v16289_v19, %v28061_v9  ;;  %v16349_v21 = vmul.f32 %v16289_v19, %v28064_v4 }
 0xb67   :  { %v16335_v35 = vsub.f32 %v16280_v10, %v16333_v11 }
 0xb69   :  { %v16356_v15 = vrot.slane %v16335_v35, %v28034_v63  ;;  %v16360_v32 = vrot.slane %v16335_v35, %v28035_v54  ;;  %v16364_v0 = vrot.slane %v16335_v35, %v28036_v42  ;;  %v16368_v53 = vrot.slane %v16335_v35, %v28037_v17 }
 0xb6b   :  { %v16373_v7 = vadd.f32 %v16356_v15, %v16336_v28  ;;  %v16374_v37 = vadd.f32 %v16360_v32, %v16337_v36  ;;  %v16375_v10 = vadd.f32 %v16364_v0, %v16338_v22  ;;  %v16376_v50 = vadd.f32 %v16368_v53, %v16339_v46 }
 0xb6c   :  { %v16377_v6 = vadd.f32 %v16356_v15, %v16340_v59  ;;  %v16378_v63 = vadd.f32 %v16360_v32, %v16341_v48  ;;  %v16379_v11 = vadd.f32 %v16364_v0, %v16342_v5  ;;  %v16380_v54 = vadd.f32 %v16368_v53, %v16343_v55 }
 0xb6d   :  { %v16381_v49 = vadd.f32 %v16356_v15, %v16344_v34  ;;  %v16382_v42 = vadd.f32 %v16360_v32, %v16345_v26  ;;  %v16383_v29 = vadd.f32 %v16364_v0, %v16346_v25  ;;  %v16384_v17 = vadd.f32 %v16368_v53, %v16347_v51 }
 0xb6e   :  { %v16385_v61 = vadd.f32 %v16356_v15, %v16348_v31  ;;  %v16386_v60 = vadd.f32 %v16360_v32, %v16349_v21  ;;  %v16387_v30 = vadd.f32 %v16364_v0, %v16350_v23  ;;  %v16388_v19 = vadd.f32 %v16368_v53, %v16351_v44 }
 0xb6f   :  { %v16427_v35 = vadd.f32 %v16411_v33, %v16373_v7  ;;  %v16428_v1 = vadd.f32 %v16412_v40, %v16374_v37  ;;  %v16429_v13 = vadd.f32 %v16413_v20, %v16375_v10  ;;  %v16430_v24 = vadd.f32 %v16414_v8, %v16376_v50 }
 0xb70   :  { %v16431_v45 = vadd.f32 %v16415_v43, %v16377_v6  ;;  %v16432_v28 = vadd.f32 %v16416_v57, %v16378_v63  ;;  %v16433_v36 = vadd.f32 %v16417_v56, %v16379_v11  ;;  %v16434_v22 = vadd.f32 %v16418_v14, %v16380_v54 }
 0xb71   :  { %v16435_v46 = vadd.f32 %v16419_v62, %v16381_v49  ;;  %v16436_v59 = vadd.f32 %v16420_v16, %v16382_v42  ;;  %v16437_v2 = vadd.f32 %v16421_v3, %v16383_v29  ;;  %v16438_v48 = vadd.f32 %v16422_v39, %v16384_v17  ;;  %16443 = vst [vmem:[%s26520_s13] sm:$0xff] %v16427_v35 }
 0xb72   :  { %16444 = vst [vmem:[%s26520_s13 + $0x8] sm:$0xff] %v16428_v1  ;;  %16445 = vst [vmem:[%s26520_s13 + $0x10] sm:$0xff] %v16429_v13  ;;  %v16439_v33 = vadd.f32 %v26425_v47, %v16385_v61  ;;  %v16440_v40 = vadd.f32 %v26428_v27, %v16386_v60  ;;  %v16441_v43 = vadd.f32 %v16425_v52, %v16387_v30 }
 0xb73   :  { %16446 = vst [vmem:[%s26520_s13 + $0x18] sm:$0xff] %v16430_v24  ;;  %v16442_v57 = vadd.f32 %v16426_v41, %v16388_v19  ;;  %16447 = vst [vmem:[%s26520_s13 + $0x20] sm:$0xff] %v16431_v45 }
 0xb74   :  { %16448 = vst [vmem:[%s26520_s13 + $0x28] sm:$0xff] %v16432_v28  ;;  %16449 = vst [vmem:[%s26520_s13 + $0x30] sm:$0xff] %v16433_v36 }
 0xb75   :  { %16450 = vst [vmem:[%s26520_s13 + $0x38] sm:$0xff] %v16434_v22  ;;  %16451 = vst [vmem:[%s26520_s13 + $0x40] sm:$0xff] %v16435_v46 }
 0xb76   :  { %16452 = vst [vmem:[%s26520_s13 + $0x48] sm:$0xff] %v16436_v59  ;;  %16453 = vst [vmem:[%s26520_s13 + $0x50] sm:$0xff] %v16437_v2 }
 0xb77   :  { %16454 = vst [vmem:[%s26520_s13 + $0x58] sm:$0xff] %v16438_v48  ;;  %16455 = vst [vmem:[%s26520_s13 + $0x60] sm:$0xff] %v16439_v33 }
 0xb78   :  { %16456 = vst [vmem:[%s26520_s13 + $0x68] sm:$0xff] %v16440_v40  ;;  %16457 = vst [vmem:[%s26520_s13 + $0x70] sm:$0xff] %v16441_v43 }
 0xb79   :  { %16458 = vst [vmem:[%s26520_s13 + $0x78] sm:$0xff] %v16442_v57 }
 0xb7a   :  { %16463 = vsyncpa [#allocation5], 1 }
 0xb7b   :  { %16464 = vsyncpa [#allocation7], 1 }
 0xb7c   :  { %16465 = vsyncpa [#allocation10], 1 }
 0xb7d   :  { %16466 = vsyncpa [#allocation13], 1 }
 0xb7e   :  { %16467 = vsyncpa [#allocation16], 1 }
 0xb7f   :  { %16468 = vsyncpa [#allocation19], 1 }

</bundles_post_ra>
